<compile_context>
chip_gen: v6e
topology: v6e:2x2x1
jax: 0.10.0
libtpu: 0.0.40
codegen_flags: <defaults>
</compile_context>

<pallas_src>
import jax
import jax.numpy as jnp
from jax.experimental import pallas as pl
from jax.experimental.pallas import tpu as pltpu

# ---- module hyper-parameters (from bigram.py) ----
N_HEAD = 4
BATCH_SIZE_HP = 32                   # only used to define n_embed in the original file
N_EMBED = N_HEAD * BATCH_SIZE_HP     # 128
HEAD_SIZE = N_EMBED // N_HEAD        # 32
N_LAYER = 4
BLOCK_SIZE = 128
VOCAB_SIZE = 65                      # synthetic vocab (len(chars) in original)
VOCAB_PAD = 128                      # lane-dense logits; sliced to VOCAB_SIZE outside
LN_EPS = 1e-5
NEG_INF = -1e30


def _layernorm(x, gamma, beta):
    mu = jnp.mean(x, axis=-1, keepdims=True)
    var = jnp.mean((x - mu) ** 2, axis=-1, keepdims=True)
    return (x - mu) * jax.lax.rsqrt(var + LN_EPS) * gamma + beta


# --------------------------------------------------------------------------
# Single fused kernel: all transformer blocks + ln_f + lm_head for one batch
# block of shape (Bb, T, E).
# --------------------------------------------------------------------------
def fused_model_kernel(x_ref,
                       ln1_g_ref, ln1_b_ref, wqkv_ref, wo_ref, bo_ref,
                       ln2_g_ref, ln2_b_ref, w1_ref, b1_ref, w2_ref, b2_ref,
                       lnf_g_ref, lnf_b_ref, wlm_ref, blm_ref,
                       o_ref):
    BB, T, E = x_ref.shape
    M = BB * T
    x2 = x_ref[...].reshape(M, E)                       # (M, E) f32

    # Hoisted causal mask, shared by all layers / heads.
    row = jax.lax.broadcasted_iota(jnp.int32, (T, T), 0)
    col = jax.lax.broadcasted_iota(jnp.int32, (T, T), 1)
    causal = row >= col                                 # (T, T) bool

    # NOTE: original PyTorch code scales by C**-0.5 with C = n_embed (not head_size).
    scale = float(N_EMBED) ** -0.5

    for layer in range(N_LAYER):                        # static unroll (4 trips)
        # ---- multi-head self-attention on ln1(x) ----
        xn = _layernorm(x2, ln1_g_ref[layer], ln1_b_ref[layer])
        qkv = jnp.dot(xn.astype(jnp.bfloat16), wqkv_ref[layer],
                      preferred_element_type=jnp.float32)        # (M, 3E) f32
        # Attention scale applied once to q (full lane width), before slicing.
        q = (qkv[:, 0:E] * scale).astype(jnp.bfloat16).reshape(BB, T, E)
        k = qkv[:, E:2 * E].astype(jnp.bfloat16).reshape(BB, T, E)
        v = qkv[:, 2 * E:3 * E].astype(jnp.bfloat16).reshape(BB, T, E)

        wo_l = wo_ref[layer]                            # (E, E) bf16
        att = jnp.zeros((M, E), jnp.float32)
        for h in range(N_HEAD):
            lo, hi = h * HEAD_SIZE, (h + 1) * HEAD_SIZE
            # Scores are already batched over the bb rows of this grid step.
            s = jnp.einsum('bqd,bkd->bqk', q[:, :, lo:hi], k[:, :, lo:hi],
                           preferred_element_type=jnp.float32)   # (BB, T, T)
            s = jnp.where(causal, s, NEG_INF)
            p = jnp.exp(s - jnp.max(s, axis=-1, keepdims=True))  # unnormalized
            denom = jnp.sum(p, axis=-1, keepdims=True)           # (BB, T, 1)
            oh = jnp.einsum('bqk,bkd->bqd', p.astype(jnp.bfloat16), v[:, :, lo:hi],
                            preferred_element_type=jnp.float32)  # (BB, T, D)
            # Deferred (flash-style) softmax normalization: scale the (T, D)
            # head output instead of the (T, T) probability matrix.
            oh = oh * pl.reciprocal(denom, approx=True)
            # Accumulate through the output projection: no concat, lane-dense output.
            att += jnp.dot(oh.reshape(M, HEAD_SIZE).astype(jnp.bfloat16),
                           wo_l[lo:hi, :], preferred_element_type=jnp.float32)
        x2 = x2 + att + bo_ref[layer]                   # dropout -> identity (eval)

        # ---- feed-forward on ln2(x) ----
        xn2 = _layernorm(x2, ln2_g_ref[layer], ln2_b_ref[layer])
        h1 = jnp.dot(xn2.astype(jnp.bfloat16), w1_ref[layer],
                     preferred_element_type=jnp.float32) + b1_ref[layer]
        h1 = jnp.maximum(h1, 0.0)
        ff = jnp.dot(h1.astype(jnp.bfloat16), w2_ref[layer],
                     preferred_element_type=jnp.float32) + b2_ref[layer]
        x2 = x2 + ff                                    # dropout -> identity (eval)

    # ---- final layernorm + lm_head (vocab padded to 128 lanes) ----
    xf = _layernorm(x2, lnf_g_ref[...], lnf_b_ref[...])
    logits = jnp.dot(xf.astype(jnp.bfloat16), wlm_ref[...],
                     preferred_element_type=jnp.float32) + blm_ref[...]
    # bf16 store: halves the largest per-step HBM writeback.
    o_ref[...] = logits.reshape(BB, T, VOCAB_PAD).astype(o_ref.dtype)


def _bcast_spec(shape):
    """BlockSpec for a weight that is identical for every grid step."""
    zeros = (0,) * len(shape)
    return pl.BlockSpec(shape, lambda b, _z=zeros: _z)


def run_fused_model(x, p, bb):
    B, T, E = x.shape
    L, H4 = N_LAYER, 4 * N_EMBED
    in_specs = [
        pl.BlockSpec((bb, T, E), lambda b: (b, 0, 0)),        # x
        _bcast_spec((L, 1, E)), _bcast_spec((L, 1, E)),       # ln1 gamma/beta
        _bcast_spec((L, E, 3 * E)),                           # fused Wq|Wk|Wv
        _bcast_spec((L, E, E)), _bcast_spec((L, 1, E)),       # Wo, bo
        _bcast_spec((L, 1, E)), _bcast_spec((L, 1, E)),       # ln2 gamma/beta
        _bcast_spec((L, E, H4)), _bcast_spec((L, 1, H4)),     # W1, b1
        _bcast_spec((L, H4, E)), _bcast_spec((L, 1, E)),      # W2, b2
        _bcast_spec((1, E)), _bcast_spec((1, E)),             # ln_f gamma/beta
        _bcast_spec((E, VOCAB_PAD)), _bcast_spec((1, VOCAB_PAD)),  # lm_head (padded)
    ]
    return pl.pallas_call(
        fused_model_kernel,
        out_shape=jax.ShapeDtypeStruct((B, T, VOCAB_PAD), jnp.bfloat16),
        grid=(B // bb,),
        in_specs=in_specs,
        out_specs=pl.BlockSpec((bb, T, VOCAB_PAD), lambda b: (b, 0, 0)),
        compiler_params=pltpu.CompilerParams(
            dimension_semantics=("parallel",),
            # Scoped-VMEM default (16/32 MiB) binds before the ~30 MiB peak at
            # bb=16..32; 64 MiB is within physical VMEM on v5e/v6e/v7x.
            vmem_limit_bytes=64 * 1024 * 1024,
        ),
    )(x, p["ln1_g"], p["ln1_b"], p["wqkv"], p["wo"], p["bo"],
      p["ln2_g"], p["ln2_b"], p["w1"], p["b1"], p["w2"], p["b2"],
      p["lnf_g"], p["lnf_b"], p["wlm"], p["blm"])


def _pick_bb(B, T):
    """Batch rows per grid step.

    Largest divisor of B that is <= 32 (tall M amortizes the ~0.35us/step
    overhead and per-step MXU weight pushes), but prefer >= 2 grid steps so the
    "parallel" batch axis can be split across v7x's two TensorCores, as long as
    that keeps the per-step M = bb*T reasonably tall (>= 512 rows).
    """
    divs = [d for d in range(1, min(B, 32) + 1) if B % d == 0]
    best = max(divs)
    multi = [d for d in divs if B // d >= 2]
    if multi and max(multi) * T >= 512:
        best = max(multi)
    return best


# --------------------------------------------------------------------------
# Parameters (stacked per-layer, matmul weights in bf16, vocab padded to 128)
# --------------------------------------------------------------------------
def init_params(key):
    kit = iter(jax.random.split(key, 16))
    nrm = lambda shape, s=0.02: jax.random.normal(next(kit), shape, jnp.float32) * s

    E, H4, L = N_EMBED, 4 * N_EMBED, N_LAYER
    wq, wk, wv = nrm((L, E, E)), nrm((L, E, E)), nrm((L, E, E))
    wqkv = jnp.concatenate([wq, wk, wv], axis=-1).astype(jnp.bfloat16)   # (L, E, 3E)

    wlm = nrm((E, VOCAB_SIZE))
    wlm_pad = jnp.zeros((E, VOCAB_PAD), jnp.float32).at[:, :VOCAB_SIZE].set(wlm)

    return {
        "tok_emb": nrm((VOCAB_SIZE, E)),
        "pos_emb": nrm((BLOCK_SIZE, E)),
        "ln1_g": jnp.ones((L, 1, E), jnp.float32),
        "ln1_b": jnp.zeros((L, 1, E), jnp.float32),
        "wqkv": wqkv,
        "wo": nrm((L, E, E)).astype(jnp.bfloat16),
        "bo": jnp.zeros((L, 1, E), jnp.float32),
        "ln2_g": jnp.ones((L, 1, E), jnp.float32),
        "ln2_b": jnp.zeros((L, 1, E), jnp.float32),
        "w1": nrm((L, E, H4)).astype(jnp.bfloat16),
        "b1": jnp.zeros((L, 1, H4), jnp.float32),
        "w2": nrm((L, H4, E)).astype(jnp.bfloat16),
        "b2": jnp.zeros((L, 1, E), jnp.float32),
        "lnf_g": jnp.ones((1, E), jnp.float32),
        "lnf_b": jnp.zeros((1, E), jnp.float32),
        "wlm": wlm_pad.astype(jnp.bfloat16),
        "blm": jnp.zeros((1, VOCAB_PAD), jnp.float32),
    }


# --------------------------------------------------------------------------
# Full forward: embedding gathers are glue in plain JAX; the entire hot path
# (all blocks + ln_f + lm_head) is one Pallas kernel.
# --------------------------------------------------------------------------
@jax.jit
def bigram_forward(idx, params):
    B, T = idx.shape
    tok = jnp.take(params["tok_emb"], idx, axis=0)          # (B, T, E)
    pos = params["pos_emb"][:T]                             # (T, E)
    x = tok + pos[None, :, :]
    bb = _pick_bb(B, T)
    logits_pad = run_fused_model(x, params, bb)             # (B, T, 128) bf16
    # Slice padded vocab (cols 65..127 are padding) and restore f32 interface.
    return logits_pad[..., :VOCAB_SIZE].astype(jnp.float32)


if __name__ == "__main__":
    key = jax.random.PRNGKey(0)
    pkey, ikey = jax.random.split(key)
    params = init_params(pkey)

    B, T = 2, 16                                            # T <= block_size (128)
    idx = jax.random.randint(ikey, (B, T), 0, VOCAB_SIZE, dtype=jnp.int32)

    logits = bigram_forward(idx, params)
    jax.block_until_ready(logits)
    assert logits.shape == (B, T, VOCAB_SIZE)
    assert bool(jnp.all(jnp.isfinite(logits)))
    print("KERNEL_OK")
</pallas_src>

<mosaic_0001>
module attributes {stable_mosaic.version = 11 : i64} {
  func.func @fused_model_kernel(%arg0: i32, %arg1: memref<2x16x128xf32, #tpu.memory_space<vmem>>, %arg2: memref<4x1x128xf32, #tpu.memory_space<vmem>>, %arg3: memref<4x1x128xf32, #tpu.memory_space<vmem>>, %arg4: memref<4x128x384xbf16, #tpu.memory_space<vmem>>, %arg5: memref<4x128x128xbf16, #tpu.memory_space<vmem>>, %arg6: memref<4x1x128xf32, #tpu.memory_space<vmem>>, %arg7: memref<4x1x128xf32, #tpu.memory_space<vmem>>, %arg8: memref<4x1x128xf32, #tpu.memory_space<vmem>>, %arg9: memref<4x128x512xbf16, #tpu.memory_space<vmem>>, %arg10: memref<4x1x512xf32, #tpu.memory_space<vmem>>, %arg11: memref<4x512x128xbf16, #tpu.memory_space<vmem>>, %arg12: memref<4x1x128xf32, #tpu.memory_space<vmem>>, %arg13: memref<1x128xf32, #tpu.memory_space<vmem>>, %arg14: memref<1x128xf32, #tpu.memory_space<vmem>>, %arg15: memref<128x128xbf16, #tpu.memory_space<vmem>>, %arg16: memref<1x128xf32, #tpu.memory_space<vmem>>, %arg17: memref<2x16x128xbf16, #tpu.memory_space<vmem>>) attributes {dimension_semantics = [#tpu.dimension_semantics<parallel>], iteration_bounds = array<i64: 1>, scalar_prefetch = 0 : i64, scratch_operands = 0 : i64, tpu.core_type = #tpu.core_type<tc>, window_params = [{transform_indices = @transform_0, window_bounds = array<i64: 2, 16, 128>}, {pipeline_mode = #tpu.pipeline_mode<synchronous>, transform_indices = @transform_1, window_bounds = array<i64: 4, 1, 128>}, {pipeline_mode = #tpu.pipeline_mode<synchronous>, transform_indices = @transform_2, window_bounds = array<i64: 4, 1, 128>}, {pipeline_mode = #tpu.pipeline_mode<synchronous>, transform_indices = @transform_3, window_bounds = array<i64: 4, 128, 384>}, {pipeline_mode = #tpu.pipeline_mode<synchronous>, transform_indices = @transform_4, window_bounds = array<i64: 4, 128, 128>}, {pipeline_mode = #tpu.pipeline_mode<synchronous>, transform_indices = @transform_5, window_bounds = array<i64: 4, 1, 128>}, {pipeline_mode = #tpu.pipeline_mode<synchronous>, transform_indices = @transform_6, window_bounds = array<i64: 4, 1, 128>}, {pipeline_mode = #tpu.pipeline_mode<synchronous>, transform_indices = @transform_7, window_bounds = array<i64: 4, 1, 128>}, {pipeline_mode = #tpu.pipeline_mode<synchronous>, transform_indices = @transform_8, window_bounds = array<i64: 4, 128, 512>}, {pipeline_mode = #tpu.pipeline_mode<synchronous>, transform_indices = @transform_9, window_bounds = array<i64: 4, 1, 512>}, {pipeline_mode = #tpu.pipeline_mode<synchronous>, transform_indices = @transform_10, window_bounds = array<i64: 4, 512, 128>}, {pipeline_mode = #tpu.pipeline_mode<synchronous>, transform_indices = @transform_11, window_bounds = array<i64: 4, 1, 128>}, {pipeline_mode = #tpu.pipeline_mode<synchronous>, transform_indices = @transform_12, window_bounds = array<i64: 1, 128>}, {pipeline_mode = #tpu.pipeline_mode<synchronous>, transform_indices = @transform_13, window_bounds = array<i64: 1, 128>}, {pipeline_mode = #tpu.pipeline_mode<synchronous>, transform_indices = @transform_14, window_bounds = array<i64: 128, 128>}, {pipeline_mode = #tpu.pipeline_mode<synchronous>, transform_indices = @transform_15, window_bounds = array<i64: 1, 128>}, {transform_indices = @transform_16, window_bounds = array<i64: 2, 16, 128>}]} {
    %c0 = arith.constant 0 : index
    %c0_0 = arith.constant 0 : index
    %c0_1 = arith.constant 0 : index
    %0 = vector.load %arg1[%c0, %c0_0, %c0_1] : memref<2x16x128xf32, #tpu.memory_space<vmem>>, vector<2x16x128xf32>
    %1 = vector.shape_cast %0 : vector<2x16x128xf32> to vector<32x128xf32>
    %2 = tpu.iota {dimensions = array<i32: 0>} : vector<16x16xi32>
    %3 = tpu.iota {dimensions = array<i32: 1>} : vector<16x16xi32>
    %4 = arith.cmpi sge, %2, %3 : vector<16x16xi32>
    %c0_2 = arith.constant 0 : index
    %c0_3 = arith.constant 0 : index
    %c0_4 = arith.constant 0 : index
    %5 = vector.load %arg2[%c0_2, %c0_3, %c0_4] : memref<4x1x128xf32, #tpu.memory_space<vmem>>, vector<1x1x128xf32>
    %6 = vector.shape_cast %5 : vector<1x1x128xf32> to vector<1x128xf32>
    %c0_5 = arith.constant 0 : index
    %c0_6 = arith.constant 0 : index
    %c0_7 = arith.constant 0 : index
    %7 = vector.load %arg3[%c0_5, %c0_6, %c0_7] : memref<4x1x128xf32, #tpu.memory_space<vmem>>, vector<1x1x128xf32>
    %8 = vector.shape_cast %7 : vector<1x1x128xf32> to vector<1x128xf32>
    %cst = arith.constant dense<0.000000e+00> : vector<32xf32>
    %9 = vector.multi_reduction <add>, %1, %cst [1] : vector<32x128xf32> to vector<32xf32>
    %10 = vector.shape_cast %9 : vector<32xf32> to vector<32x1xf32>
    %cst_8 = arith.constant 1.280000e+02 : f32
    %11 = vector.broadcast %cst_8 : f32 to vector<32x1xf32>
    %12 = arith.divf %10, %11 : vector<32x1xf32>
    %13 = vector.broadcast %12 : vector<32x1xf32> to vector<32x128xf32>
    %14 = arith.subf %1, %13 : vector<32x128xf32>
    %15 = arith.mulf %14, %14 : vector<32x128xf32>
    %cst_9 = arith.constant dense<0.000000e+00> : vector<32xf32>
    %16 = vector.multi_reduction <add>, %15, %cst_9 [1] : vector<32x128xf32> to vector<32xf32>
    %17 = vector.shape_cast %16 : vector<32xf32> to vector<32x1xf32>
    %cst_10 = arith.constant 1.280000e+02 : f32
    %18 = vector.broadcast %cst_10 : f32 to vector<32x1xf32>
    %19 = arith.divf %17, %18 : vector<32x1xf32>
    %20 = vector.broadcast %12 : vector<32x1xf32> to vector<32x128xf32>
    %21 = arith.subf %1, %20 : vector<32x128xf32>
    %cst_11 = arith.constant 9.99999974E-6 : f32
    %22 = vector.broadcast %cst_11 : f32 to vector<32x1xf32>
    %23 = arith.addf %19, %22 : vector<32x1xf32>
    %24 = math.rsqrt %23 : vector<32x1xf32>
    %25 = vector.broadcast %24 : vector<32x1xf32> to vector<32x128xf32>
    %26 = arith.mulf %21, %25 : vector<32x128xf32>
    %27 = vector.broadcast %6 : vector<1x128xf32> to vector<32x128xf32>
    %28 = arith.mulf %26, %27 : vector<32x128xf32>
    %29 = vector.broadcast %8 : vector<1x128xf32> to vector<32x128xf32>
    %30 = arith.addf %28, %29 : vector<32x128xf32>
    %31 = arith.truncf %30 : vector<32x128xf32> to vector<32x128xbf16>
    %c0_12 = arith.constant 0 : index
    %c0_13 = arith.constant 0 : index
    %c0_14 = arith.constant 0 : index
    %32 = vector.load %arg4[%c0_12, %c0_13, %c0_14] : memref<4x128x384xbf16, #tpu.memory_space<vmem>>, vector<1x128x384xbf16>
    %33 = vector.shape_cast %32 : vector<1x128x384xbf16> to vector<128x384xbf16>
    %cst_15 = arith.constant dense<0.000000e+00> : vector<32x384xf32>
    %34 = tpu.matmul %31, %33, %cst_15 {dimension_numbers = #tpu.dot_dimension_numbers<[1], [0], [0], [1], [0, 0, 1, 1], [], []>} : vector<32x128xbf16>, vector<128x384xbf16>, vector<32x384xf32> -> vector<32x384xf32>
    %35 = vector.extract_strided_slice %34 {offsets = [0, 0], sizes = [32, 128], strides = [1, 1]} : vector<32x384xf32> to vector<32x128xf32>
    %cst_16 = arith.constant 0.0883883461 : f32
    %36 = vector.broadcast %cst_16 : f32 to vector<32x128xf32>
    %37 = arith.mulf %35, %36 : vector<32x128xf32>
    %38 = arith.truncf %37 : vector<32x128xf32> to vector<32x128xbf16>
    %39 = vector.shape_cast %38 : vector<32x128xbf16> to vector<2x16x128xbf16>
    %40 = vector.extract_strided_slice %34 {offsets = [0, 128], sizes = [32, 128], strides = [1, 1]} : vector<32x384xf32> to vector<32x128xf32>
    %41 = arith.truncf %40 : vector<32x128xf32> to vector<32x128xbf16>
    %42 = vector.shape_cast %41 : vector<32x128xbf16> to vector<2x16x128xbf16>
    %43 = vector.extract_strided_slice %34 {offsets = [0, 256], sizes = [32, 128], strides = [1, 1]} : vector<32x384xf32> to vector<32x128xf32>
    %44 = arith.truncf %43 : vector<32x128xf32> to vector<32x128xbf16>
    %45 = vector.shape_cast %44 : vector<32x128xbf16> to vector<2x16x128xbf16>
    %c0_17 = arith.constant 0 : index
    %c0_18 = arith.constant 0 : index
    %c0_19 = arith.constant 0 : index
    %46 = vector.load %arg5[%c0_17, %c0_18, %c0_19] : memref<4x128x128xbf16, #tpu.memory_space<vmem>>, vector<1x128x128xbf16>
    %47 = vector.shape_cast %46 : vector<1x128x128xbf16> to vector<128x128xbf16>
    %cst_20 = arith.constant 0.000000e+00 : f32
    %48 = vector.broadcast %cst_20 : f32 to vector<32x128xf32>
    %49 = vector.extract_strided_slice %39 {offsets = [0, 0, 0], sizes = [2, 16, 32], strides = [1, 1, 1]} : vector<2x16x128xbf16> to vector<2x16x32xbf16>
    %50 = vector.extract_strided_slice %42 {offsets = [0, 0, 0], sizes = [2, 16, 32], strides = [1, 1, 1]} : vector<2x16x128xbf16> to vector<2x16x32xbf16>
    "tpu.trace_start"() <{level = 10 : i32, message = "bqd,bkd->bqk"}> : () -> ()
    %cst_21 = arith.constant dense<0.000000e+00> : vector<2x16x16xf32>
    %51 = tpu.matmul %49, %50, %cst_21 {dimension_numbers = #tpu.dot_dimension_numbers<[2], [2], [1], [1], [0, 0, 0, 1, 1, 1], [0], [0]>} : vector<2x16x32xbf16>, vector<2x16x32xbf16>, vector<2x16x16xf32> -> vector<2x16x16xf32>
    %cst_22 = arith.constant -1.000000e+30 : f32
    "tpu.trace_stop"() : () -> ()
    %52 = vector.shape_cast %4 : vector<16x16xi1> to vector<1x16x16xi1>
    %53 = vector.broadcast %52 : vector<1x16x16xi1> to vector<2x16x16xi1>
    %54 = vector.broadcast %cst_22 : f32 to vector<2x16x16xf32>
    %55 = arith.select %53, %51, %54 : vector<2x16x16xi1>, vector<2x16x16xf32>
    %cst_23 = arith.constant dense<0xFF800000> : vector<2x16xf32>
    %56 = vector.multi_reduction <maximumf>, %55, %cst_23 [2] : vector<2x16x16xf32> to vector<2x16xf32>
    %57 = vector.shape_cast %56 : vector<2x16xf32> to vector<2x16x1xf32>
    %58 = vector.broadcast %57 : vector<2x16x1xf32> to vector<2x16x16xf32>
    %59 = arith.subf %55, %58 : vector<2x16x16xf32>
    %60 = math.exp %59 : vector<2x16x16xf32>
    %cst_24 = arith.constant dense<0.000000e+00> : vector<2x16xf32>
    %61 = vector.multi_reduction <add>, %60, %cst_24 [2] : vector<2x16x16xf32> to vector<2x16xf32>
    %62 = vector.shape_cast %61 : vector<2x16xf32> to vector<2x16x1xf32>
    %63 = arith.truncf %60 : vector<2x16x16xf32> to vector<2x16x16xbf16>
    %64 = vector.extract_strided_slice %45 {offsets = [0, 0, 0], sizes = [2, 16, 32], strides = [1, 1, 1]} : vector<2x16x128xbf16> to vector<2x16x32xbf16>
    "tpu.trace_start"() <{level = 10 : i32, message = "bqk,bkd->bqd"}> : () -> ()
    %cst_25 = arith.constant dense<0.000000e+00> : vector<2x16x32xf32>
    %65 = tpu.matmul %63, %64, %cst_25 {dimension_numbers = #tpu.dot_dimension_numbers<[2], [1], [1], [2], [0, 0, 0, 1, 1, 2], [0], [0]>} : vector<2x16x16xbf16>, vector<2x16x32xbf16>, vector<2x16x32xf32> -> vector<2x16x32xf32>
    "tpu.trace_stop"() : () -> ()
    %66 = tpu.reciprocal %62 {approx = true} : vector<2x16x1xf32> -> vector<2x16x1xf32>
    %67 = vector.broadcast %66 : vector<2x16x1xf32> to vector<2x16x32xf32>
    %68 = arith.mulf %65, %67 : vector<2x16x32xf32>
    %69 = vector.shape_cast %68 : vector<2x16x32xf32> to vector<32x32xf32>
    %70 = arith.truncf %69 : vector<32x32xf32> to vector<32x32xbf16>
    %71 = vector.extract_strided_slice %47 {offsets = [0, 0], sizes = [32, 128], strides = [1, 1]} : vector<128x128xbf16> to vector<32x128xbf16>
    %cst_26 = arith.constant dense<0.000000e+00> : vector<32x128xf32>
    %72 = tpu.matmul %70, %71, %cst_26 {dimension_numbers = #tpu.dot_dimension_numbers<[1], [0], [0], [1], [0, 0, 1, 1], [], []>} : vector<32x32xbf16>, vector<32x128xbf16>, vector<32x128xf32> -> vector<32x128xf32>
    %73 = arith.addf %48, %72 : vector<32x128xf32>
    %74 = vector.extract_strided_slice %39 {offsets = [0, 0, 32], sizes = [2, 16, 32], strides = [1, 1, 1]} : vector<2x16x128xbf16> to vector<2x16x32xbf16>
    %75 = vector.extract_strided_slice %42 {offsets = [0, 0, 32], sizes = [2, 16, 32], strides = [1, 1, 1]} : vector<2x16x128xbf16> to vector<2x16x32xbf16>
    "tpu.trace_start"() <{level = 10 : i32, message = "bqd,bkd->bqk"}> : () -> ()
    %cst_27 = arith.constant dense<0.000000e+00> : vector<2x16x16xf32>
    %76 = tpu.matmul %74, %75, %cst_27 {dimension_numbers = #tpu.dot_dimension_numbers<[2], [2], [1], [1], [0, 0, 0, 1, 1, 1], [0], [0]>} : vector<2x16x32xbf16>, vector<2x16x32xbf16>, vector<2x16x16xf32> -> vector<2x16x16xf32>
    %cst_28 = arith.constant -1.000000e+30 : f32
    "tpu.trace_stop"() : () -> ()
    %77 = vector.shape_cast %4 : vector<16x16xi1> to vector<1x16x16xi1>
    %78 = vector.broadcast %77 : vector<1x16x16xi1> to vector<2x16x16xi1>
    %79 = vector.broadcast %cst_28 : f32 to vector<2x16x16xf32>
    %80 = arith.select %78, %76, %79 : vector<2x16x16xi1>, vector<2x16x16xf32>
    %cst_29 = arith.constant dense<0xFF800000> : vector<2x16xf32>
    %81 = vector.multi_reduction <maximumf>, %80, %cst_29 [2] : vector<2x16x16xf32> to vector<2x16xf32>
    %82 = vector.shape_cast %81 : vector<2x16xf32> to vector<2x16x1xf32>
    %83 = vector.broadcast %82 : vector<2x16x1xf32> to vector<2x16x16xf32>
    %84 = arith.subf %80, %83 : vector<2x16x16xf32>
    %85 = math.exp %84 : vector<2x16x16xf32>
    %cst_30 = arith.constant dense<0.000000e+00> : vector<2x16xf32>
    %86 = vector.multi_reduction <add>, %85, %cst_30 [2] : vector<2x16x16xf32> to vector<2x16xf32>
    %87 = vector.shape_cast %86 : vector<2x16xf32> to vector<2x16x1xf32>
    %88 = arith.truncf %85 : vector<2x16x16xf32> to vector<2x16x16xbf16>
    %89 = vector.extract_strided_slice %45 {offsets = [0, 0, 32], sizes = [2, 16, 32], strides = [1, 1, 1]} : vector<2x16x128xbf16> to vector<2x16x32xbf16>
    "tpu.trace_start"() <{level = 10 : i32, message = "bqk,bkd->bqd"}> : () -> ()
    %cst_31 = arith.constant dense<0.000000e+00> : vector<2x16x32xf32>
    %90 = tpu.matmul %88, %89, %cst_31 {dimension_numbers = #tpu.dot_dimension_numbers<[2], [1], [1], [2], [0, 0, 0, 1, 1, 2], [0], [0]>} : vector<2x16x16xbf16>, vector<2x16x32xbf16>, vector<2x16x32xf32> -> vector<2x16x32xf32>
    "tpu.trace_stop"() : () -> ()
    %91 = tpu.reciprocal %87 {approx = true} : vector<2x16x1xf32> -> vector<2x16x1xf32>
    %92 = vector.broadcast %91 : vector<2x16x1xf32> to vector<2x16x32xf32>
    %93 = arith.mulf %90, %92 : vector<2x16x32xf32>
    %94 = vector.shape_cast %93 : vector<2x16x32xf32> to vector<32x32xf32>
    %95 = arith.truncf %94 : vector<32x32xf32> to vector<32x32xbf16>
    %96 = vector.extract_strided_slice %47 {offsets = [32, 0], sizes = [32, 128], strides = [1, 1]} : vector<128x128xbf16> to vector<32x128xbf16>
    %cst_32 = arith.constant dense<0.000000e+00> : vector<32x128xf32>
    %97 = tpu.matmul %95, %96, %cst_32 {dimension_numbers = #tpu.dot_dimension_numbers<[1], [0], [0], [1], [0, 0, 1, 1], [], []>} : vector<32x32xbf16>, vector<32x128xbf16>, vector<32x128xf32> -> vector<32x128xf32>
    %98 = arith.addf %73, %97 : vector<32x128xf32>
    %99 = vector.extract_strided_slice %39 {offsets = [0, 0, 64], sizes = [2, 16, 32], strides = [1, 1, 1]} : vector<2x16x128xbf16> to vector<2x16x32xbf16>
    %100 = vector.extract_strided_slice %42 {offsets = [0, 0, 64], sizes = [2, 16, 32], strides = [1, 1, 1]} : vector<2x16x128xbf16> to vector<2x16x32xbf16>
    "tpu.trace_start"() <{level = 10 : i32, message = "bqd,bkd->bqk"}> : () -> ()
    %cst_33 = arith.constant dense<0.000000e+00> : vector<2x16x16xf32>
    %101 = tpu.matmul %99, %100, %cst_33 {dimension_numbers = #tpu.dot_dimension_numbers<[2], [2], [1], [1], [0, 0, 0, 1, 1, 1], [0], [0]>} : vector<2x16x32xbf16>, vector<2x16x32xbf16>, vector<2x16x16xf32> -> vector<2x16x16xf32>
    %cst_34 = arith.constant -1.000000e+30 : f32
    "tpu.trace_stop"() : () -> ()
    %102 = vector.shape_cast %4 : vector<16x16xi1> to vector<1x16x16xi1>
    %103 = vector.broadcast %102 : vector<1x16x16xi1> to vector<2x16x16xi1>
    %104 = vector.broadcast %cst_34 : f32 to vector<2x16x16xf32>
    %105 = arith.select %103, %101, %104 : vector<2x16x16xi1>, vector<2x16x16xf32>
    %cst_35 = arith.constant dense<0xFF800000> : vector<2x16xf32>
    %106 = vector.multi_reduction <maximumf>, %105, %cst_35 [2] : vector<2x16x16xf32> to vector<2x16xf32>
    %107 = vector.shape_cast %106 : vector<2x16xf32> to vector<2x16x1xf32>
    %108 = vector.broadcast %107 : vector<2x16x1xf32> to vector<2x16x16xf32>
    %109 = arith.subf %105, %108 : vector<2x16x16xf32>
    %110 = math.exp %109 : vector<2x16x16xf32>
    %cst_36 = arith.constant dense<0.000000e+00> : vector<2x16xf32>
    %111 = vector.multi_reduction <add>, %110, %cst_36 [2] : vector<2x16x16xf32> to vector<2x16xf32>
    %112 = vector.shape_cast %111 : vector<2x16xf32> to vector<2x16x1xf32>
    %113 = arith.truncf %110 : vector<2x16x16xf32> to vector<2x16x16xbf16>
    %114 = vector.extract_strided_slice %45 {offsets = [0, 0, 64], sizes = [2, 16, 32], strides = [1, 1, 1]} : vector<2x16x128xbf16> to vector<2x16x32xbf16>
    "tpu.trace_start"() <{level = 10 : i32, message = "bqk,bkd->bqd"}> : () -> ()
    %cst_37 = arith.constant dense<0.000000e+00> : vector<2x16x32xf32>
    %115 = tpu.matmul %113, %114, %cst_37 {dimension_numbers = #tpu.dot_dimension_numbers<[2], [1], [1], [2], [0, 0, 0, 1, 1, 2], [0], [0]>} : vector<2x16x16xbf16>, vector<2x16x32xbf16>, vector<2x16x32xf32> -> vector<2x16x32xf32>
    "tpu.trace_stop"() : () -> ()
    %116 = tpu.reciprocal %112 {approx = true} : vector<2x16x1xf32> -> vector<2x16x1xf32>
    %117 = vector.broadcast %116 : vector<2x16x1xf32> to vector<2x16x32xf32>
    %118 = arith.mulf %115, %117 : vector<2x16x32xf32>
    %119 = vector.shape_cast %118 : vector<2x16x32xf32> to vector<32x32xf32>
    %120 = arith.truncf %119 : vector<32x32xf32> to vector<32x32xbf16>
    %121 = vector.extract_strided_slice %47 {offsets = [64, 0], sizes = [32, 128], strides = [1, 1]} : vector<128x128xbf16> to vector<32x128xbf16>
    %cst_38 = arith.constant dense<0.000000e+00> : vector<32x128xf32>
    %122 = tpu.matmul %120, %121, %cst_38 {dimension_numbers = #tpu.dot_dimension_numbers<[1], [0], [0], [1], [0, 0, 1, 1], [], []>} : vector<32x32xbf16>, vector<32x128xbf16>, vector<32x128xf32> -> vector<32x128xf32>
    %123 = arith.addf %98, %122 : vector<32x128xf32>
    %124 = vector.extract_strided_slice %39 {offsets = [0, 0, 96], sizes = [2, 16, 32], strides = [1, 1, 1]} : vector<2x16x128xbf16> to vector<2x16x32xbf16>
    %125 = vector.extract_strided_slice %42 {offsets = [0, 0, 96], sizes = [2, 16, 32], strides = [1, 1, 1]} : vector<2x16x128xbf16> to vector<2x16x32xbf16>
    "tpu.trace_start"() <{level = 10 : i32, message = "bqd,bkd->bqk"}> : () -> ()
    %cst_39 = arith.constant dense<0.000000e+00> : vector<2x16x16xf32>
    %126 = tpu.matmul %124, %125, %cst_39 {dimension_numbers = #tpu.dot_dimension_numbers<[2], [2], [1], [1], [0, 0, 0, 1, 1, 1], [0], [0]>} : vector<2x16x32xbf16>, vector<2x16x32xbf16>, vector<2x16x16xf32> -> vector<2x16x16xf32>
    %cst_40 = arith.constant -1.000000e+30 : f32
    "tpu.trace_stop"() : () -> ()
    %127 = vector.shape_cast %4 : vector<16x16xi1> to vector<1x16x16xi1>
    %128 = vector.broadcast %127 : vector<1x16x16xi1> to vector<2x16x16xi1>
    %129 = vector.broadcast %cst_40 : f32 to vector<2x16x16xf32>
    %130 = arith.select %128, %126, %129 : vector<2x16x16xi1>, vector<2x16x16xf32>
    %cst_41 = arith.constant dense<0xFF800000> : vector<2x16xf32>
    %131 = vector.multi_reduction <maximumf>, %130, %cst_41 [2] : vector<2x16x16xf32> to vector<2x16xf32>
    %132 = vector.shape_cast %131 : vector<2x16xf32> to vector<2x16x1xf32>
    %133 = vector.broadcast %132 : vector<2x16x1xf32> to vector<2x16x16xf32>
    %134 = arith.subf %130, %133 : vector<2x16x16xf32>
    %135 = math.exp %134 : vector<2x16x16xf32>
    %cst_42 = arith.constant dense<0.000000e+00> : vector<2x16xf32>
    %136 = vector.multi_reduction <add>, %135, %cst_42 [2] : vector<2x16x16xf32> to vector<2x16xf32>
    %137 = vector.shape_cast %136 : vector<2x16xf32> to vector<2x16x1xf32>
    %138 = arith.truncf %135 : vector<2x16x16xf32> to vector<2x16x16xbf16>
    %139 = vector.extract_strided_slice %45 {offsets = [0, 0, 96], sizes = [2, 16, 32], strides = [1, 1, 1]} : vector<2x16x128xbf16> to vector<2x16x32xbf16>
    "tpu.trace_start"() <{level = 10 : i32, message = "bqk,bkd->bqd"}> : () -> ()
    %cst_43 = arith.constant dense<0.000000e+00> : vector<2x16x32xf32>
    %140 = tpu.matmul %138, %139, %cst_43 {dimension_numbers = #tpu.dot_dimension_numbers<[2], [1], [1], [2], [0, 0, 0, 1, 1, 2], [0], [0]>} : vector<2x16x16xbf16>, vector<2x16x32xbf16>, vector<2x16x32xf32> -> vector<2x16x32xf32>
    "tpu.trace_stop"() : () -> ()
    %141 = tpu.reciprocal %137 {approx = true} : vector<2x16x1xf32> -> vector<2x16x1xf32>
    %142 = vector.broadcast %141 : vector<2x16x1xf32> to vector<2x16x32xf32>
    %143 = arith.mulf %140, %142 : vector<2x16x32xf32>
    %144 = vector.shape_cast %143 : vector<2x16x32xf32> to vector<32x32xf32>
    %145 = arith.truncf %144 : vector<32x32xf32> to vector<32x32xbf16>
    %146 = vector.extract_strided_slice %47 {offsets = [96, 0], sizes = [32, 128], strides = [1, 1]} : vector<128x128xbf16> to vector<32x128xbf16>
    %cst_44 = arith.constant dense<0.000000e+00> : vector<32x128xf32>
    %147 = tpu.matmul %145, %146, %cst_44 {dimension_numbers = #tpu.dot_dimension_numbers<[1], [0], [0], [1], [0, 0, 1, 1], [], []>} : vector<32x32xbf16>, vector<32x128xbf16>, vector<32x128xf32> -> vector<32x128xf32>
    %148 = arith.addf %123, %147 : vector<32x128xf32>
    %149 = arith.addf %1, %148 : vector<32x128xf32>
    %c0_45 = arith.constant 0 : index
    %c0_46 = arith.constant 0 : index
    %c0_47 = arith.constant 0 : index
    %150 = vector.load %arg6[%c0_45, %c0_46, %c0_47] : memref<4x1x128xf32, #tpu.memory_space<vmem>>, vector<1x1x128xf32>
    %151 = vector.shape_cast %150 : vector<1x1x128xf32> to vector<1x128xf32>
    %152 = vector.broadcast %151 : vector<1x128xf32> to vector<32x128xf32>
    %153 = arith.addf %149, %152 : vector<32x128xf32>
    %c0_48 = arith.constant 0 : index
    %c0_49 = arith.constant 0 : index
    %c0_50 = arith.constant 0 : index
    %154 = vector.load %arg7[%c0_48, %c0_49, %c0_50] : memref<4x1x128xf32, #tpu.memory_space<vmem>>, vector<1x1x128xf32>
    %155 = vector.shape_cast %154 : vector<1x1x128xf32> to vector<1x128xf32>
    %c0_51 = arith.constant 0 : index
    %c0_52 = arith.constant 0 : index
    %c0_53 = arith.constant 0 : index
    %156 = vector.load %arg8[%c0_51, %c0_52, %c0_53] : memref<4x1x128xf32, #tpu.memory_space<vmem>>, vector<1x1x128xf32>
    %157 = vector.shape_cast %156 : vector<1x1x128xf32> to vector<1x128xf32>
    %cst_54 = arith.constant dense<0.000000e+00> : vector<32xf32>
    %158 = vector.multi_reduction <add>, %153, %cst_54 [1] : vector<32x128xf32> to vector<32xf32>
    %159 = vector.shape_cast %158 : vector<32xf32> to vector<32x1xf32>
    %cst_55 = arith.constant 1.280000e+02 : f32
    %160 = vector.broadcast %cst_55 : f32 to vector<32x1xf32>
    %161 = arith.divf %159, %160 : vector<32x1xf32>
    %162 = vector.broadcast %161 : vector<32x1xf32> to vector<32x128xf32>
    %163 = arith.subf %153, %162 : vector<32x128xf32>
    %164 = arith.mulf %163, %163 : vector<32x128xf32>
    %cst_56 = arith.constant dense<0.000000e+00> : vector<32xf32>
    %165 = vector.multi_reduction <add>, %164, %cst_56 [1] : vector<32x128xf32> to vector<32xf32>
    %166 = vector.shape_cast %165 : vector<32xf32> to vector<32x1xf32>
    %cst_57 = arith.constant 1.280000e+02 : f32
    %167 = vector.broadcast %cst_57 : f32 to vector<32x1xf32>
    %168 = arith.divf %166, %167 : vector<32x1xf32>
    %169 = vector.broadcast %161 : vector<32x1xf32> to vector<32x128xf32>
    %170 = arith.subf %153, %169 : vector<32x128xf32>
    %cst_58 = arith.constant 9.99999974E-6 : f32
    %171 = vector.broadcast %cst_58 : f32 to vector<32x1xf32>
    %172 = arith.addf %168, %171 : vector<32x1xf32>
    %173 = math.rsqrt %172 : vector<32x1xf32>
    %174 = vector.broadcast %173 : vector<32x1xf32> to vector<32x128xf32>
    %175 = arith.mulf %170, %174 : vector<32x128xf32>
    %176 = vector.broadcast %155 : vector<1x128xf32> to vector<32x128xf32>
    %177 = arith.mulf %175, %176 : vector<32x128xf32>
    %178 = vector.broadcast %157 : vector<1x128xf32> to vector<32x128xf32>
    %179 = arith.addf %177, %178 : vector<32x128xf32>
    %180 = arith.truncf %179 : vector<32x128xf32> to vector<32x128xbf16>
    %c0_59 = arith.constant 0 : index
    %c0_60 = arith.constant 0 : index
    %c0_61 = arith.constant 0 : index
    %181 = vector.load %arg9[%c0_59, %c0_60, %c0_61] : memref<4x128x512xbf16, #tpu.memory_space<vmem>>, vector<1x128x512xbf16>
    %182 = vector.shape_cast %181 : vector<1x128x512xbf16> to vector<128x512xbf16>
    %cst_62 = arith.constant dense<0.000000e+00> : vector<32x512xf32>
    %183 = tpu.matmul %180, %182, %cst_62 {dimension_numbers = #tpu.dot_dimension_numbers<[1], [0], [0], [1], [0, 0, 1, 1], [], []>} : vector<32x128xbf16>, vector<128x512xbf16>, vector<32x512xf32> -> vector<32x512xf32>
    %c0_63 = arith.constant 0 : index
    %c0_64 = arith.constant 0 : index
    %c0_65 = arith.constant 0 : index
    %184 = vector.load %arg10[%c0_63, %c0_64, %c0_65] : memref<4x1x512xf32, #tpu.memory_space<vmem>>, vector<1x1x512xf32>
    %185 = vector.shape_cast %184 : vector<1x1x512xf32> to vector<1x512xf32>
    %186 = vector.broadcast %185 : vector<1x512xf32> to vector<32x512xf32>
    %187 = arith.addf %183, %186 : vector<32x512xf32>
    %cst_66 = arith.constant 0.000000e+00 : f32
    %188 = vector.broadcast %cst_66 : f32 to vector<32x512xf32>
    %189 = arith.maximumf %187, %188 : vector<32x512xf32>
    %190 = arith.truncf %189 : vector<32x512xf32> to vector<32x512xbf16>
    %c0_67 = arith.constant 0 : index
    %c0_68 = arith.constant 0 : index
    %c0_69 = arith.constant 0 : index
    %191 = vector.load %arg11[%c0_67, %c0_68, %c0_69] : memref<4x512x128xbf16, #tpu.memory_space<vmem>>, vector<1x512x128xbf16>
    %192 = vector.shape_cast %191 : vector<1x512x128xbf16> to vector<512x128xbf16>
    %cst_70 = arith.constant dense<0.000000e+00> : vector<32x128xf32>
    %193 = tpu.matmul %190, %192, %cst_70 {dimension_numbers = #tpu.dot_dimension_numbers<[1], [0], [0], [1], [0, 0, 1, 1], [], []>} : vector<32x512xbf16>, vector<512x128xbf16>, vector<32x128xf32> -> vector<32x128xf32>
    %c0_71 = arith.constant 0 : index
    %c0_72 = arith.constant 0 : index
    %c0_73 = arith.constant 0 : index
    %194 = vector.load %arg12[%c0_71, %c0_72, %c0_73] : memref<4x1x128xf32, #tpu.memory_space<vmem>>, vector<1x1x128xf32>
    %195 = vector.shape_cast %194 : vector<1x1x128xf32> to vector<1x128xf32>
    %196 = vector.broadcast %195 : vector<1x128xf32> to vector<32x128xf32>
    %197 = arith.addf %193, %196 : vector<32x128xf32>
    %198 = arith.addf %153, %197 : vector<32x128xf32>
    %c1 = arith.constant 1 : index
    %c0_74 = arith.constant 0 : index
    %c0_75 = arith.constant 0 : index
    %199 = vector.load %arg2[%c1, %c0_74, %c0_75] : memref<4x1x128xf32, #tpu.memory_space<vmem>>, vector<1x1x128xf32>
    %200 = vector.shape_cast %199 : vector<1x1x128xf32> to vector<1x128xf32>
    %c1_76 = arith.constant 1 : index
    %c0_77 = arith.constant 0 : index
    %c0_78 = arith.constant 0 : index
    %201 = vector.load %arg3[%c1_76, %c0_77, %c0_78] : memref<4x1x128xf32, #tpu.memory_space<vmem>>, vector<1x1x128xf32>
    %202 = vector.shape_cast %201 : vector<1x1x128xf32> to vector<1x128xf32>
    %cst_79 = arith.constant dense<0.000000e+00> : vector<32xf32>
    %203 = vector.multi_reduction <add>, %198, %cst_79 [1] : vector<32x128xf32> to vector<32xf32>
    %204 = vector.shape_cast %203 : vector<32xf32> to vector<32x1xf32>
    %cst_80 = arith.constant 1.280000e+02 : f32
    %205 = vector.broadcast %cst_80 : f32 to vector<32x1xf32>
    %206 = arith.divf %204, %205 : vector<32x1xf32>
    %207 = vector.broadcast %206 : vector<32x1xf32> to vector<32x128xf32>
    %208 = arith.subf %198, %207 : vector<32x128xf32>
    %209 = arith.mulf %208, %208 : vector<32x128xf32>
    %cst_81 = arith.constant dense<0.000000e+00> : vector<32xf32>
    %210 = vector.multi_reduction <add>, %209, %cst_81 [1] : vector<32x128xf32> to vector<32xf32>
    %211 = vector.shape_cast %210 : vector<32xf32> to vector<32x1xf32>
    %cst_82 = arith.constant 1.280000e+02 : f32
    %212 = vector.broadcast %cst_82 : f32 to vector<32x1xf32>
    %213 = arith.divf %211, %212 : vector<32x1xf32>
    %214 = vector.broadcast %206 : vector<32x1xf32> to vector<32x128xf32>
    %215 = arith.subf %198, %214 : vector<32x128xf32>
    %cst_83 = arith.constant 9.99999974E-6 : f32
    %216 = vector.broadcast %cst_83 : f32 to vector<32x1xf32>
    %217 = arith.addf %213, %216 : vector<32x1xf32>
    %218 = math.rsqrt %217 : vector<32x1xf32>
    %219 = vector.broadcast %218 : vector<32x1xf32> to vector<32x128xf32>
    %220 = arith.mulf %215, %219 : vector<32x128xf32>
    %221 = vector.broadcast %200 : vector<1x128xf32> to vector<32x128xf32>
    %222 = arith.mulf %220, %221 : vector<32x128xf32>
    %223 = vector.broadcast %202 : vector<1x128xf32> to vector<32x128xf32>
    %224 = arith.addf %222, %223 : vector<32x128xf32>
    %225 = arith.truncf %224 : vector<32x128xf32> to vector<32x128xbf16>
    %c1_84 = arith.constant 1 : index
    %c0_85 = arith.constant 0 : index
    %c0_86 = arith.constant 0 : index
    %226 = vector.load %arg4[%c1_84, %c0_85, %c0_86] : memref<4x128x384xbf16, #tpu.memory_space<vmem>>, vector<1x128x384xbf16>
    %227 = vector.shape_cast %226 : vector<1x128x384xbf16> to vector<128x384xbf16>
    %cst_87 = arith.constant dense<0.000000e+00> : vector<32x384xf32>
    %228 = tpu.matmul %225, %227, %cst_87 {dimension_numbers = #tpu.dot_dimension_numbers<[1], [0], [0], [1], [0, 0, 1, 1], [], []>} : vector<32x128xbf16>, vector<128x384xbf16>, vector<32x384xf32> -> vector<32x384xf32>
    %229 = vector.extract_strided_slice %228 {offsets = [0, 0], sizes = [32, 128], strides = [1, 1]} : vector<32x384xf32> to vector<32x128xf32>
    %cst_88 = arith.constant 0.0883883461 : f32
    %230 = vector.broadcast %cst_88 : f32 to vector<32x128xf32>
    %231 = arith.mulf %229, %230 : vector<32x128xf32>
    %232 = arith.truncf %231 : vector<32x128xf32> to vector<32x128xbf16>
    %233 = vector.shape_cast %232 : vector<32x128xbf16> to vector<2x16x128xbf16>
    %234 = vector.extract_strided_slice %228 {offsets = [0, 128], sizes = [32, 128], strides = [1, 1]} : vector<32x384xf32> to vector<32x128xf32>
    %235 = arith.truncf %234 : vector<32x128xf32> to vector<32x128xbf16>
    %236 = vector.shape_cast %235 : vector<32x128xbf16> to vector<2x16x128xbf16>
    %237 = vector.extract_strided_slice %228 {offsets = [0, 256], sizes = [32, 128], strides = [1, 1]} : vector<32x384xf32> to vector<32x128xf32>
    %238 = arith.truncf %237 : vector<32x128xf32> to vector<32x128xbf16>
    %239 = vector.shape_cast %238 : vector<32x128xbf16> to vector<2x16x128xbf16>
    %c1_89 = arith.constant 1 : index
    %c0_90 = arith.constant 0 : index
    %c0_91 = arith.constant 0 : index
    %240 = vector.load %arg5[%c1_89, %c0_90, %c0_91] : memref<4x128x128xbf16, #tpu.memory_space<vmem>>, vector<1x128x128xbf16>
    %241 = vector.shape_cast %240 : vector<1x128x128xbf16> to vector<128x128xbf16>
    %cst_92 = arith.constant 0.000000e+00 : f32
    %242 = vector.broadcast %cst_92 : f32 to vector<32x128xf32>
    %243 = vector.extract_strided_slice %233 {offsets = [0, 0, 0], sizes = [2, 16, 32], strides = [1, 1, 1]} : vector<2x16x128xbf16> to vector<2x16x32xbf16>
    %244 = vector.extract_strided_slice %236 {offsets = [0, 0, 0], sizes = [2, 16, 32], strides = [1, 1, 1]} : vector<2x16x128xbf16> to vector<2x16x32xbf16>
    "tpu.trace_start"() <{level = 10 : i32, message = "bqd,bkd->bqk"}> : () -> ()
    %cst_93 = arith.constant dense<0.000000e+00> : vector<2x16x16xf32>
    %245 = tpu.matmul %243, %244, %cst_93 {dimension_numbers = #tpu.dot_dimension_numbers<[2], [2], [1], [1], [0, 0, 0, 1, 1, 1], [0], [0]>} : vector<2x16x32xbf16>, vector<2x16x32xbf16>, vector<2x16x16xf32> -> vector<2x16x16xf32>
    %cst_94 = arith.constant -1.000000e+30 : f32
    "tpu.trace_stop"() : () -> ()
    %246 = vector.shape_cast %4 : vector<16x16xi1> to vector<1x16x16xi1>
    %247 = vector.broadcast %246 : vector<1x16x16xi1> to vector<2x16x16xi1>
    %248 = vector.broadcast %cst_94 : f32 to vector<2x16x16xf32>
    %249 = arith.select %247, %245, %248 : vector<2x16x16xi1>, vector<2x16x16xf32>
    %cst_95 = arith.constant dense<0xFF800000> : vector<2x16xf32>
    %250 = vector.multi_reduction <maximumf>, %249, %cst_95 [2] : vector<2x16x16xf32> to vector<2x16xf32>
    %251 = vector.shape_cast %250 : vector<2x16xf32> to vector<2x16x1xf32>
    %252 = vector.broadcast %251 : vector<2x16x1xf32> to vector<2x16x16xf32>
    %253 = arith.subf %249, %252 : vector<2x16x16xf32>
    %254 = math.exp %253 : vector<2x16x16xf32>
    %cst_96 = arith.constant dense<0.000000e+00> : vector<2x16xf32>
    %255 = vector.multi_reduction <add>, %254, %cst_96 [2] : vector<2x16x16xf32> to vector<2x16xf32>
    %256 = vector.shape_cast %255 : vector<2x16xf32> to vector<2x16x1xf32>
    %257 = arith.truncf %254 : vector<2x16x16xf32> to vector<2x16x16xbf16>
    %258 = vector.extract_strided_slice %239 {offsets = [0, 0, 0], sizes = [2, 16, 32], strides = [1, 1, 1]} : vector<2x16x128xbf16> to vector<2x16x32xbf16>
    "tpu.trace_start"() <{level = 10 : i32, message = "bqk,bkd->bqd"}> : () -> ()
    %cst_97 = arith.constant dense<0.000000e+00> : vector<2x16x32xf32>
    %259 = tpu.matmul %257, %258, %cst_97 {dimension_numbers = #tpu.dot_dimension_numbers<[2], [1], [1], [2], [0, 0, 0, 1, 1, 2], [0], [0]>} : vector<2x16x16xbf16>, vector<2x16x32xbf16>, vector<2x16x32xf32> -> vector<2x16x32xf32>
    "tpu.trace_stop"() : () -> ()
    %260 = tpu.reciprocal %256 {approx = true} : vector<2x16x1xf32> -> vector<2x16x1xf32>
    %261 = vector.broadcast %260 : vector<2x16x1xf32> to vector<2x16x32xf32>
    %262 = arith.mulf %259, %261 : vector<2x16x32xf32>
    %263 = vector.shape_cast %262 : vector<2x16x32xf32> to vector<32x32xf32>
    %264 = arith.truncf %263 : vector<32x32xf32> to vector<32x32xbf16>
    %265 = vector.extract_strided_slice %241 {offsets = [0, 0], sizes = [32, 128], strides = [1, 1]} : vector<128x128xbf16> to vector<32x128xbf16>
    %cst_98 = arith.constant dense<0.000000e+00> : vector<32x128xf32>
    %266 = tpu.matmul %264, %265, %cst_98 {dimension_numbers = #tpu.dot_dimension_numbers<[1], [0], [0], [1], [0, 0, 1, 1], [], []>} : vector<32x32xbf16>, vector<32x128xbf16>, vector<32x128xf32> -> vector<32x128xf32>
    %267 = arith.addf %242, %266 : vector<32x128xf32>
    %268 = vector.extract_strided_slice %233 {offsets = [0, 0, 32], sizes = [2, 16, 32], strides = [1, 1, 1]} : vector<2x16x128xbf16> to vector<2x16x32xbf16>
    %269 = vector.extract_strided_slice %236 {offsets = [0, 0, 32], sizes = [2, 16, 32], strides = [1, 1, 1]} : vector<2x16x128xbf16> to vector<2x16x32xbf16>
    "tpu.trace_start"() <{level = 10 : i32, message = "bqd,bkd->bqk"}> : () -> ()
    %cst_99 = arith.constant dense<0.000000e+00> : vector<2x16x16xf32>
    %270 = tpu.matmul %268, %269, %cst_99 {dimension_numbers = #tpu.dot_dimension_numbers<[2], [2], [1], [1], [0, 0, 0, 1, 1, 1], [0], [0]>} : vector<2x16x32xbf16>, vector<2x16x32xbf16>, vector<2x16x16xf32> -> vector<2x16x16xf32>
    %cst_100 = arith.constant -1.000000e+30 : f32
    "tpu.trace_stop"() : () -> ()
    %271 = vector.shape_cast %4 : vector<16x16xi1> to vector<1x16x16xi1>
    %272 = vector.broadcast %271 : vector<1x16x16xi1> to vector<2x16x16xi1>
    %273 = vector.broadcast %cst_100 : f32 to vector<2x16x16xf32>
    %274 = arith.select %272, %270, %273 : vector<2x16x16xi1>, vector<2x16x16xf32>
    %cst_101 = arith.constant dense<0xFF800000> : vector<2x16xf32>
    %275 = vector.multi_reduction <maximumf>, %274, %cst_101 [2] : vector<2x16x16xf32> to vector<2x16xf32>
    %276 = vector.shape_cast %275 : vector<2x16xf32> to vector<2x16x1xf32>
    %277 = vector.broadcast %276 : vector<2x16x1xf32> to vector<2x16x16xf32>
    %278 = arith.subf %274, %277 : vector<2x16x16xf32>
    %279 = math.exp %278 : vector<2x16x16xf32>
    %cst_102 = arith.constant dense<0.000000e+00> : vector<2x16xf32>
    %280 = vector.multi_reduction <add>, %279, %cst_102 [2] : vector<2x16x16xf32> to vector<2x16xf32>
    %281 = vector.shape_cast %280 : vector<2x16xf32> to vector<2x16x1xf32>
    %282 = arith.truncf %279 : vector<2x16x16xf32> to vector<2x16x16xbf16>
    %283 = vector.extract_strided_slice %239 {offsets = [0, 0, 32], sizes = [2, 16, 32], strides = [1, 1, 1]} : vector<2x16x128xbf16> to vector<2x16x32xbf16>
    "tpu.trace_start"() <{level = 10 : i32, message = "bqk,bkd->bqd"}> : () -> ()
    %cst_103 = arith.constant dense<0.000000e+00> : vector<2x16x32xf32>
    %284 = tpu.matmul %282, %283, %cst_103 {dimension_numbers = #tpu.dot_dimension_numbers<[2], [1], [1], [2], [0, 0, 0, 1, 1, 2], [0], [0]>} : vector<2x16x16xbf16>, vector<2x16x32xbf16>, vector<2x16x32xf32> -> vector<2x16x32xf32>
    "tpu.trace_stop"() : () -> ()
    %285 = tpu.reciprocal %281 {approx = true} : vector<2x16x1xf32> -> vector<2x16x1xf32>
    %286 = vector.broadcast %285 : vector<2x16x1xf32> to vector<2x16x32xf32>
    %287 = arith.mulf %284, %286 : vector<2x16x32xf32>
    %288 = vector.shape_cast %287 : vector<2x16x32xf32> to vector<32x32xf32>
    %289 = arith.truncf %288 : vector<32x32xf32> to vector<32x32xbf16>
    %290 = vector.extract_strided_slice %241 {offsets = [32, 0], sizes = [32, 128], strides = [1, 1]} : vector<128x128xbf16> to vector<32x128xbf16>
    %cst_104 = arith.constant dense<0.000000e+00> : vector<32x128xf32>
    %291 = tpu.matmul %289, %290, %cst_104 {dimension_numbers = #tpu.dot_dimension_numbers<[1], [0], [0], [1], [0, 0, 1, 1], [], []>} : vector<32x32xbf16>, vector<32x128xbf16>, vector<32x128xf32> -> vector<32x128xf32>
    %292 = arith.addf %267, %291 : vector<32x128xf32>
    %293 = vector.extract_strided_slice %233 {offsets = [0, 0, 64], sizes = [2, 16, 32], strides = [1, 1, 1]} : vector<2x16x128xbf16> to vector<2x16x32xbf16>
    %294 = vector.extract_strided_slice %236 {offsets = [0, 0, 64], sizes = [2, 16, 32], strides = [1, 1, 1]} : vector<2x16x128xbf16> to vector<2x16x32xbf16>
    "tpu.trace_start"() <{level = 10 : i32, message = "bqd,bkd->bqk"}> : () -> ()
    %cst_105 = arith.constant dense<0.000000e+00> : vector<2x16x16xf32>
    %295 = tpu.matmul %293, %294, %cst_105 {dimension_numbers = #tpu.dot_dimension_numbers<[2], [2], [1], [1], [0, 0, 0, 1, 1, 1], [0], [0]>} : vector<2x16x32xbf16>, vector<2x16x32xbf16>, vector<2x16x16xf32> -> vector<2x16x16xf32>
    %cst_106 = arith.constant -1.000000e+30 : f32
    "tpu.trace_stop"() : () -> ()
    %296 = vector.shape_cast %4 : vector<16x16xi1> to vector<1x16x16xi1>
    %297 = vector.broadcast %296 : vector<1x16x16xi1> to vector<2x16x16xi1>
    %298 = vector.broadcast %cst_106 : f32 to vector<2x16x16xf32>
    %299 = arith.select %297, %295, %298 : vector<2x16x16xi1>, vector<2x16x16xf32>
    %cst_107 = arith.constant dense<0xFF800000> : vector<2x16xf32>
    %300 = vector.multi_reduction <maximumf>, %299, %cst_107 [2] : vector<2x16x16xf32> to vector<2x16xf32>
    %301 = vector.shape_cast %300 : vector<2x16xf32> to vector<2x16x1xf32>
    %302 = vector.broadcast %301 : vector<2x16x1xf32> to vector<2x16x16xf32>
    %303 = arith.subf %299, %302 : vector<2x16x16xf32>
    %304 = math.exp %303 : vector<2x16x16xf32>
    %cst_108 = arith.constant dense<0.000000e+00> : vector<2x16xf32>
    %305 = vector.multi_reduction <add>, %304, %cst_108 [2] : vector<2x16x16xf32> to vector<2x16xf32>
    %306 = vector.shape_cast %305 : vector<2x16xf32> to vector<2x16x1xf32>
    %307 = arith.truncf %304 : vector<2x16x16xf32> to vector<2x16x16xbf16>
    %308 = vector.extract_strided_slice %239 {offsets = [0, 0, 64], sizes = [2, 16, 32], strides = [1, 1, 1]} : vector<2x16x128xbf16> to vector<2x16x32xbf16>
    "tpu.trace_start"() <{level = 10 : i32, message = "bqk,bkd->bqd"}> : () -> ()
    %cst_109 = arith.constant dense<0.000000e+00> : vector<2x16x32xf32>
    %309 = tpu.matmul %307, %308, %cst_109 {dimension_numbers = #tpu.dot_dimension_numbers<[2], [1], [1], [2], [0, 0, 0, 1, 1, 2], [0], [0]>} : vector<2x16x16xbf16>, vector<2x16x32xbf16>, vector<2x16x32xf32> -> vector<2x16x32xf32>
    "tpu.trace_stop"() : () -> ()
    %310 = tpu.reciprocal %306 {approx = true} : vector<2x16x1xf32> -> vector<2x16x1xf32>
    %311 = vector.broadcast %310 : vector<2x16x1xf32> to vector<2x16x32xf32>
    %312 = arith.mulf %309, %311 : vector<2x16x32xf32>
    %313 = vector.shape_cast %312 : vector<2x16x32xf32> to vector<32x32xf32>
    %314 = arith.truncf %313 : vector<32x32xf32> to vector<32x32xbf16>
    %315 = vector.extract_strided_slice %241 {offsets = [64, 0], sizes = [32, 128], strides = [1, 1]} : vector<128x128xbf16> to vector<32x128xbf16>
    %cst_110 = arith.constant dense<0.000000e+00> : vector<32x128xf32>
    %316 = tpu.matmul %314, %315, %cst_110 {dimension_numbers = #tpu.dot_dimension_numbers<[1], [0], [0], [1], [0, 0, 1, 1], [], []>} : vector<32x32xbf16>, vector<32x128xbf16>, vector<32x128xf32> -> vector<32x128xf32>
    %317 = arith.addf %292, %316 : vector<32x128xf32>
    %318 = vector.extract_strided_slice %233 {offsets = [0, 0, 96], sizes = [2, 16, 32], strides = [1, 1, 1]} : vector<2x16x128xbf16> to vector<2x16x32xbf16>
    %319 = vector.extract_strided_slice %236 {offsets = [0, 0, 96], sizes = [2, 16, 32], strides = [1, 1, 1]} : vector<2x16x128xbf16> to vector<2x16x32xbf16>
    "tpu.trace_start"() <{level = 10 : i32, message = "bqd,bkd->bqk"}> : () -> ()
    %cst_111 = arith.constant dense<0.000000e+00> : vector<2x16x16xf32>
    %320 = tpu.matmul %318, %319, %cst_111 {dimension_numbers = #tpu.dot_dimension_numbers<[2], [2], [1], [1], [0, 0, 0, 1, 1, 1], [0], [0]>} : vector<2x16x32xbf16>, vector<2x16x32xbf16>, vector<2x16x16xf32> -> vector<2x16x16xf32>
    %cst_112 = arith.constant -1.000000e+30 : f32
    "tpu.trace_stop"() : () -> ()
    %321 = vector.shape_cast %4 : vector<16x16xi1> to vector<1x16x16xi1>
    %322 = vector.broadcast %321 : vector<1x16x16xi1> to vector<2x16x16xi1>
    %323 = vector.broadcast %cst_112 : f32 to vector<2x16x16xf32>
    %324 = arith.select %322, %320, %323 : vector<2x16x16xi1>, vector<2x16x16xf32>
    %cst_113 = arith.constant dense<0xFF800000> : vector<2x16xf32>
    %325 = vector.multi_reduction <maximumf>, %324, %cst_113 [2] : vector<2x16x16xf32> to vector<2x16xf32>
    %326 = vector.shape_cast %325 : vector<2x16xf32> to vector<2x16x1xf32>
    %327 = vector.broadcast %326 : vector<2x16x1xf32> to vector<2x16x16xf32>
    %328 = arith.subf %324, %327 : vector<2x16x16xf32>
    %329 = math.exp %328 : vector<2x16x16xf32>
    %cst_114 = arith.constant dense<0.000000e+00> : vector<2x16xf32>
    %330 = vector.multi_reduction <add>, %329, %cst_114 [2] : vector<2x16x16xf32> to vector<2x16xf32>
    %331 = vector.shape_cast %330 : vector<2x16xf32> to vector<2x16x1xf32>
    %332 = arith.truncf %329 : vector<2x16x16xf32> to vector<2x16x16xbf16>
    %333 = vector.extract_strided_slice %239 {offsets = [0, 0, 96], sizes = [2, 16, 32], strides = [1, 1, 1]} : vector<2x16x128xbf16> to vector<2x16x32xbf16>
    "tpu.trace_start"() <{level = 10 : i32, message = "bqk,bkd->bqd"}> : () -> ()
    %cst_115 = arith.constant dense<0.000000e+00> : vector<2x16x32xf32>
    %334 = tpu.matmul %332, %333, %cst_115 {dimension_numbers = #tpu.dot_dimension_numbers<[2], [1], [1], [2], [0, 0, 0, 1, 1, 2], [0], [0]>} : vector<2x16x16xbf16>, vector<2x16x32xbf16>, vector<2x16x32xf32> -> vector<2x16x32xf32>
    "tpu.trace_stop"() : () -> ()
    %335 = tpu.reciprocal %331 {approx = true} : vector<2x16x1xf32> -> vector<2x16x1xf32>
    %336 = vector.broadcast %335 : vector<2x16x1xf32> to vector<2x16x32xf32>
    %337 = arith.mulf %334, %336 : vector<2x16x32xf32>
    %338 = vector.shape_cast %337 : vector<2x16x32xf32> to vector<32x32xf32>
    %339 = arith.truncf %338 : vector<32x32xf32> to vector<32x32xbf16>
    %340 = vector.extract_strided_slice %241 {offsets = [96, 0], sizes = [32, 128], strides = [1, 1]} : vector<128x128xbf16> to vector<32x128xbf16>
    %cst_116 = arith.constant dense<0.000000e+00> : vector<32x128xf32>
    %341 = tpu.matmul %339, %340, %cst_116 {dimension_numbers = #tpu.dot_dimension_numbers<[1], [0], [0], [1], [0, 0, 1, 1], [], []>} : vector<32x32xbf16>, vector<32x128xbf16>, vector<32x128xf32> -> vector<32x128xf32>
    %342 = arith.addf %317, %341 : vector<32x128xf32>
    %343 = arith.addf %198, %342 : vector<32x128xf32>
    %c1_117 = arith.constant 1 : index
    %c0_118 = arith.constant 0 : index
    %c0_119 = arith.constant 0 : index
    %344 = vector.load %arg6[%c1_117, %c0_118, %c0_119] : memref<4x1x128xf32, #tpu.memory_space<vmem>>, vector<1x1x128xf32>
    %345 = vector.shape_cast %344 : vector<1x1x128xf32> to vector<1x128xf32>
    %346 = vector.broadcast %345 : vector<1x128xf32> to vector<32x128xf32>
    %347 = arith.addf %343, %346 : vector<32x128xf32>
    %c1_120 = arith.constant 1 : index
    %c0_121 = arith.constant 0 : index
    %c0_122 = arith.constant 0 : index
    %348 = vector.load %arg7[%c1_120, %c0_121, %c0_122] : memref<4x1x128xf32, #tpu.memory_space<vmem>>, vector<1x1x128xf32>
    %349 = vector.shape_cast %348 : vector<1x1x128xf32> to vector<1x128xf32>
    %c1_123 = arith.constant 1 : index
    %c0_124 = arith.constant 0 : index
    %c0_125 = arith.constant 0 : index
    %350 = vector.load %arg8[%c1_123, %c0_124, %c0_125] : memref<4x1x128xf32, #tpu.memory_space<vmem>>, vector<1x1x128xf32>
    %351 = vector.shape_cast %350 : vector<1x1x128xf32> to vector<1x128xf32>
    %cst_126 = arith.constant dense<0.000000e+00> : vector<32xf32>
    %352 = vector.multi_reduction <add>, %347, %cst_126 [1] : vector<32x128xf32> to vector<32xf32>
    %353 = vector.shape_cast %352 : vector<32xf32> to vector<32x1xf32>
    %cst_127 = arith.constant 1.280000e+02 : f32
    %354 = vector.broadcast %cst_127 : f32 to vector<32x1xf32>
    %355 = arith.divf %353, %354 : vector<32x1xf32>
    %356 = vector.broadcast %355 : vector<32x1xf32> to vector<32x128xf32>
    %357 = arith.subf %347, %356 : vector<32x128xf32>
    %358 = arith.mulf %357, %357 : vector<32x128xf32>
    %cst_128 = arith.constant dense<0.000000e+00> : vector<32xf32>
    %359 = vector.multi_reduction <add>, %358, %cst_128 [1] : vector<32x128xf32> to vector<32xf32>
    %360 = vector.shape_cast %359 : vector<32xf32> to vector<32x1xf32>
    %cst_129 = arith.constant 1.280000e+02 : f32
    %361 = vector.broadcast %cst_129 : f32 to vector<32x1xf32>
    %362 = arith.divf %360, %361 : vector<32x1xf32>
    %363 = vector.broadcast %355 : vector<32x1xf32> to vector<32x128xf32>
    %364 = arith.subf %347, %363 : vector<32x128xf32>
    %cst_130 = arith.constant 9.99999974E-6 : f32
    %365 = vector.broadcast %cst_130 : f32 to vector<32x1xf32>
    %366 = arith.addf %362, %365 : vector<32x1xf32>
    %367 = math.rsqrt %366 : vector<32x1xf32>
    %368 = vector.broadcast %367 : vector<32x1xf32> to vector<32x128xf32>
    %369 = arith.mulf %364, %368 : vector<32x128xf32>
    %370 = vector.broadcast %349 : vector<1x128xf32> to vector<32x128xf32>
    %371 = arith.mulf %369, %370 : vector<32x128xf32>
    %372 = vector.broadcast %351 : vector<1x128xf32> to vector<32x128xf32>
    %373 = arith.addf %371, %372 : vector<32x128xf32>
    %374 = arith.truncf %373 : vector<32x128xf32> to vector<32x128xbf16>
    %c1_131 = arith.constant 1 : index
    %c0_132 = arith.constant 0 : index
    %c0_133 = arith.constant 0 : index
    %375 = vector.load %arg9[%c1_131, %c0_132, %c0_133] : memref<4x128x512xbf16, #tpu.memory_space<vmem>>, vector<1x128x512xbf16>
    %376 = vector.shape_cast %375 : vector<1x128x512xbf16> to vector<128x512xbf16>
    %cst_134 = arith.constant dense<0.000000e+00> : vector<32x512xf32>
    %377 = tpu.matmul %374, %376, %cst_134 {dimension_numbers = #tpu.dot_dimension_numbers<[1], [0], [0], [1], [0, 0, 1, 1], [], []>} : vector<32x128xbf16>, vector<128x512xbf16>, vector<32x512xf32> -> vector<32x512xf32>
    %c1_135 = arith.constant 1 : index
    %c0_136 = arith.constant 0 : index
    %c0_137 = arith.constant 0 : index
    %378 = vector.load %arg10[%c1_135, %c0_136, %c0_137] : memref<4x1x512xf32, #tpu.memory_space<vmem>>, vector<1x1x512xf32>
    %379 = vector.shape_cast %378 : vector<1x1x512xf32> to vector<1x512xf32>
    %380 = vector.broadcast %379 : vector<1x512xf32> to vector<32x512xf32>
    %381 = arith.addf %377, %380 : vector<32x512xf32>
    %cst_138 = arith.constant 0.000000e+00 : f32
    %382 = vector.broadcast %cst_138 : f32 to vector<32x512xf32>
    %383 = arith.maximumf %381, %382 : vector<32x512xf32>
    %384 = arith.truncf %383 : vector<32x512xf32> to vector<32x512xbf16>
    %c1_139 = arith.constant 1 : index
    %c0_140 = arith.constant 0 : index
    %c0_141 = arith.constant 0 : index
    %385 = vector.load %arg11[%c1_139, %c0_140, %c0_141] : memref<4x512x128xbf16, #tpu.memory_space<vmem>>, vector<1x512x128xbf16>
    %386 = vector.shape_cast %385 : vector<1x512x128xbf16> to vector<512x128xbf16>
    %cst_142 = arith.constant dense<0.000000e+00> : vector<32x128xf32>
    %387 = tpu.matmul %384, %386, %cst_142 {dimension_numbers = #tpu.dot_dimension_numbers<[1], [0], [0], [1], [0, 0, 1, 1], [], []>} : vector<32x512xbf16>, vector<512x128xbf16>, vector<32x128xf32> -> vector<32x128xf32>
    %c1_143 = arith.constant 1 : index
    %c0_144 = arith.constant 0 : index
    %c0_145 = arith.constant 0 : index
    %388 = vector.load %arg12[%c1_143, %c0_144, %c0_145] : memref<4x1x128xf32, #tpu.memory_space<vmem>>, vector<1x1x128xf32>
    %389 = vector.shape_cast %388 : vector<1x1x128xf32> to vector<1x128xf32>
    %390 = vector.broadcast %389 : vector<1x128xf32> to vector<32x128xf32>
    %391 = arith.addf %387, %390 : vector<32x128xf32>
    %392 = arith.addf %347, %391 : vector<32x128xf32>
    %c2 = arith.constant 2 : index
    %c0_146 = arith.constant 0 : index
    %c0_147 = arith.constant 0 : index
    %393 = vector.load %arg2[%c2, %c0_146, %c0_147] : memref<4x1x128xf32, #tpu.memory_space<vmem>>, vector<1x1x128xf32>
    %394 = vector.shape_cast %393 : vector<1x1x128xf32> to vector<1x128xf32>
    %c2_148 = arith.constant 2 : index
    %c0_149 = arith.constant 0 : index
    %c0_150 = arith.constant 0 : index
    %395 = vector.load %arg3[%c2_148, %c0_149, %c0_150] : memref<4x1x128xf32, #tpu.memory_space<vmem>>, vector<1x1x128xf32>
    %396 = vector.shape_cast %395 : vector<1x1x128xf32> to vector<1x128xf32>
    %cst_151 = arith.constant dense<0.000000e+00> : vector<32xf32>
    %397 = vector.multi_reduction <add>, %392, %cst_151 [1] : vector<32x128xf32> to vector<32xf32>
    %398 = vector.shape_cast %397 : vector<32xf32> to vector<32x1xf32>
    %cst_152 = arith.constant 1.280000e+02 : f32
    %399 = vector.broadcast %cst_152 : f32 to vector<32x1xf32>
    %400 = arith.divf %398, %399 : vector<32x1xf32>
    %401 = vector.broadcast %400 : vector<32x1xf32> to vector<32x128xf32>
    %402 = arith.subf %392, %401 : vector<32x128xf32>
    %403 = arith.mulf %402, %402 : vector<32x128xf32>
    %cst_153 = arith.constant dense<0.000000e+00> : vector<32xf32>
    %404 = vector.multi_reduction <add>, %403, %cst_153 [1] : vector<32x128xf32> to vector<32xf32>
    %405 = vector.shape_cast %404 : vector<32xf32> to vector<32x1xf32>
    %cst_154 = arith.constant 1.280000e+02 : f32
    %406 = vector.broadcast %cst_154 : f32 to vector<32x1xf32>
    %407 = arith.divf %405, %406 : vector<32x1xf32>
    %408 = vector.broadcast %400 : vector<32x1xf32> to vector<32x128xf32>
    %409 = arith.subf %392, %408 : vector<32x128xf32>
    %cst_155 = arith.constant 9.99999974E-6 : f32
    %410 = vector.broadcast %cst_155 : f32 to vector<32x1xf32>
    %411 = arith.addf %407, %410 : vector<32x1xf32>
    %412 = math.rsqrt %411 : vector<32x1xf32>
    %413 = vector.broadcast %412 : vector<32x1xf32> to vector<32x128xf32>
    %414 = arith.mulf %409, %413 : vector<32x128xf32>
    %415 = vector.broadcast %394 : vector<1x128xf32> to vector<32x128xf32>
    %416 = arith.mulf %414, %415 : vector<32x128xf32>
    %417 = vector.broadcast %396 : vector<1x128xf32> to vector<32x128xf32>
    %418 = arith.addf %416, %417 : vector<32x128xf32>
    %419 = arith.truncf %418 : vector<32x128xf32> to vector<32x128xbf16>
    %c2_156 = arith.constant 2 : index
    %c0_157 = arith.constant 0 : index
    %c0_158 = arith.constant 0 : index
    %420 = vector.load %arg4[%c2_156, %c0_157, %c0_158] : memref<4x128x384xbf16, #tpu.memory_space<vmem>>, vector<1x128x384xbf16>
    %421 = vector.shape_cast %420 : vector<1x128x384xbf16> to vector<128x384xbf16>
    %cst_159 = arith.constant dense<0.000000e+00> : vector<32x384xf32>
    %422 = tpu.matmul %419, %421, %cst_159 {dimension_numbers = #tpu.dot_dimension_numbers<[1], [0], [0], [1], [0, 0, 1, 1], [], []>} : vector<32x128xbf16>, vector<128x384xbf16>, vector<32x384xf32> -> vector<32x384xf32>
    %423 = vector.extract_strided_slice %422 {offsets = [0, 0], sizes = [32, 128], strides = [1, 1]} : vector<32x384xf32> to vector<32x128xf32>
    %cst_160 = arith.constant 0.0883883461 : f32
    %424 = vector.broadcast %cst_160 : f32 to vector<32x128xf32>
    %425 = arith.mulf %423, %424 : vector<32x128xf32>
    %426 = arith.truncf %425 : vector<32x128xf32> to vector<32x128xbf16>
    %427 = vector.shape_cast %426 : vector<32x128xbf16> to vector<2x16x128xbf16>
    %428 = vector.extract_strided_slice %422 {offsets = [0, 128], sizes = [32, 128], strides = [1, 1]} : vector<32x384xf32> to vector<32x128xf32>
    %429 = arith.truncf %428 : vector<32x128xf32> to vector<32x128xbf16>
    %430 = vector.shape_cast %429 : vector<32x128xbf16> to vector<2x16x128xbf16>
    %431 = vector.extract_strided_slice %422 {offsets = [0, 256], sizes = [32, 128], strides = [1, 1]} : vector<32x384xf32> to vector<32x128xf32>
    %432 = arith.truncf %431 : vector<32x128xf32> to vector<32x128xbf16>
    %433 = vector.shape_cast %432 : vector<32x128xbf16> to vector<2x16x128xbf16>
    %c2_161 = arith.constant 2 : index
    %c0_162 = arith.constant 0 : index
    %c0_163 = arith.constant 0 : index
    %434 = vector.load %arg5[%c2_161, %c0_162, %c0_163] : memref<4x128x128xbf16, #tpu.memory_space<vmem>>, vector<1x128x128xbf16>
    %435 = vector.shape_cast %434 : vector<1x128x128xbf16> to vector<128x128xbf16>
    %cst_164 = arith.constant 0.000000e+00 : f32
    %436 = vector.broadcast %cst_164 : f32 to vector<32x128xf32>
    %437 = vector.extract_strided_slice %427 {offsets = [0, 0, 0], sizes = [2, 16, 32], strides = [1, 1, 1]} : vector<2x16x128xbf16> to vector<2x16x32xbf16>
    %438 = vector.extract_strided_slice %430 {offsets = [0, 0, 0], sizes = [2, 16, 32], strides = [1, 1, 1]} : vector<2x16x128xbf16> to vector<2x16x32xbf16>
    "tpu.trace_start"() <{level = 10 : i32, message = "bqd,bkd->bqk"}> : () -> ()
    %cst_165 = arith.constant dense<0.000000e+00> : vector<2x16x16xf32>
    %439 = tpu.matmul %437, %438, %cst_165 {dimension_numbers = #tpu.dot_dimension_numbers<[2], [2], [1], [1], [0, 0, 0, 1, 1, 1], [0], [0]>} : vector<2x16x32xbf16>, vector<2x16x32xbf16>, vector<2x16x16xf32> -> vector<2x16x16xf32>
    %cst_166 = arith.constant -1.000000e+30 : f32
    "tpu.trace_stop"() : () -> ()
    %440 = vector.shape_cast %4 : vector<16x16xi1> to vector<1x16x16xi1>
    %441 = vector.broadcast %440 : vector<1x16x16xi1> to vector<2x16x16xi1>
    %442 = vector.broadcast %cst_166 : f32 to vector<2x16x16xf32>
    %443 = arith.select %441, %439, %442 : vector<2x16x16xi1>, vector<2x16x16xf32>
    %cst_167 = arith.constant dense<0xFF800000> : vector<2x16xf32>
    %444 = vector.multi_reduction <maximumf>, %443, %cst_167 [2] : vector<2x16x16xf32> to vector<2x16xf32>
    %445 = vector.shape_cast %444 : vector<2x16xf32> to vector<2x16x1xf32>
    %446 = vector.broadcast %445 : vector<2x16x1xf32> to vector<2x16x16xf32>
    %447 = arith.subf %443, %446 : vector<2x16x16xf32>
    %448 = math.exp %447 : vector<2x16x16xf32>
    %cst_168 = arith.constant dense<0.000000e+00> : vector<2x16xf32>
    %449 = vector.multi_reduction <add>, %448, %cst_168 [2] : vector<2x16x16xf32> to vector<2x16xf32>
    %450 = vector.shape_cast %449 : vector<2x16xf32> to vector<2x16x1xf32>
    %451 = arith.truncf %448 : vector<2x16x16xf32> to vector<2x16x16xbf16>
    %452 = vector.extract_strided_slice %433 {offsets = [0, 0, 0], sizes = [2, 16, 32], strides = [1, 1, 1]} : vector<2x16x128xbf16> to vector<2x16x32xbf16>
    "tpu.trace_start"() <{level = 10 : i32, message = "bqk,bkd->bqd"}> : () -> ()
    %cst_169 = arith.constant dense<0.000000e+00> : vector<2x16x32xf32>
    %453 = tpu.matmul %451, %452, %cst_169 {dimension_numbers = #tpu.dot_dimension_numbers<[2], [1], [1], [2], [0, 0, 0, 1, 1, 2], [0], [0]>} : vector<2x16x16xbf16>, vector<2x16x32xbf16>, vector<2x16x32xf32> -> vector<2x16x32xf32>
    "tpu.trace_stop"() : () -> ()
    %454 = tpu.reciprocal %450 {approx = true} : vector<2x16x1xf32> -> vector<2x16x1xf32>
    %455 = vector.broadcast %454 : vector<2x16x1xf32> to vector<2x16x32xf32>
    %456 = arith.mulf %453, %455 : vector<2x16x32xf32>
    %457 = vector.shape_cast %456 : vector<2x16x32xf32> to vector<32x32xf32>
    %458 = arith.truncf %457 : vector<32x32xf32> to vector<32x32xbf16>
    %459 = vector.extract_strided_slice %435 {offsets = [0, 0], sizes = [32, 128], strides = [1, 1]} : vector<128x128xbf16> to vector<32x128xbf16>
    %cst_170 = arith.constant dense<0.000000e+00> : vector<32x128xf32>
    %460 = tpu.matmul %458, %459, %cst_170 {dimension_numbers = #tpu.dot_dimension_numbers<[1], [0], [0], [1], [0, 0, 1, 1], [], []>} : vector<32x32xbf16>, vector<32x128xbf16>, vector<32x128xf32> -> vector<32x128xf32>
    %461 = arith.addf %436, %460 : vector<32x128xf32>
    %462 = vector.extract_strided_slice %427 {offsets = [0, 0, 32], sizes = [2, 16, 32], strides = [1, 1, 1]} : vector<2x16x128xbf16> to vector<2x16x32xbf16>
    %463 = vector.extract_strided_slice %430 {offsets = [0, 0, 32], sizes = [2, 16, 32], strides = [1, 1, 1]} : vector<2x16x128xbf16> to vector<2x16x32xbf16>
    "tpu.trace_start"() <{level = 10 : i32, message = "bqd,bkd->bqk"}> : () -> ()
    %cst_171 = arith.constant dense<0.000000e+00> : vector<2x16x16xf32>
    %464 = tpu.matmul %462, %463, %cst_171 {dimension_numbers = #tpu.dot_dimension_numbers<[2], [2], [1], [1], [0, 0, 0, 1, 1, 1], [0], [0]>} : vector<2x16x32xbf16>, vector<2x16x32xbf16>, vector<2x16x16xf32> -> vector<2x16x16xf32>
    %cst_172 = arith.constant -1.000000e+30 : f32
    "tpu.trace_stop"() : () -> ()
    %465 = vector.shape_cast %4 : vector<16x16xi1> to vector<1x16x16xi1>
    %466 = vector.broadcast %465 : vector<1x16x16xi1> to vector<2x16x16xi1>
    %467 = vector.broadcast %cst_172 : f32 to vector<2x16x16xf32>
    %468 = arith.select %466, %464, %467 : vector<2x16x16xi1>, vector<2x16x16xf32>
    %cst_173 = arith.constant dense<0xFF800000> : vector<2x16xf32>
    %469 = vector.multi_reduction <maximumf>, %468, %cst_173 [2] : vector<2x16x16xf32> to vector<2x16xf32>
    %470 = vector.shape_cast %469 : vector<2x16xf32> to vector<2x16x1xf32>
    %471 = vector.broadcast %470 : vector<2x16x1xf32> to vector<2x16x16xf32>
    %472 = arith.subf %468, %471 : vector<2x16x16xf32>
    %473 = math.exp %472 : vector<2x16x16xf32>
    %cst_174 = arith.constant dense<0.000000e+00> : vector<2x16xf32>
    %474 = vector.multi_reduction <add>, %473, %cst_174 [2] : vector<2x16x16xf32> to vector<2x16xf32>
    %475 = vector.shape_cast %474 : vector<2x16xf32> to vector<2x16x1xf32>
    %476 = arith.truncf %473 : vector<2x16x16xf32> to vector<2x16x16xbf16>
    %477 = vector.extract_strided_slice %433 {offsets = [0, 0, 32], sizes = [2, 16, 32], strides = [1, 1, 1]} : vector<2x16x128xbf16> to vector<2x16x32xbf16>
    "tpu.trace_start"() <{level = 10 : i32, message = "bqk,bkd->bqd"}> : () -> ()
    %cst_175 = arith.constant dense<0.000000e+00> : vector<2x16x32xf32>
    %478 = tpu.matmul %476, %477, %cst_175 {dimension_numbers = #tpu.dot_dimension_numbers<[2], [1], [1], [2], [0, 0, 0, 1, 1, 2], [0], [0]>} : vector<2x16x16xbf16>, vector<2x16x32xbf16>, vector<2x16x32xf32> -> vector<2x16x32xf32>
    "tpu.trace_stop"() : () -> ()
    %479 = tpu.reciprocal %475 {approx = true} : vector<2x16x1xf32> -> vector<2x16x1xf32>
    %480 = vector.broadcast %479 : vector<2x16x1xf32> to vector<2x16x32xf32>
    %481 = arith.mulf %478, %480 : vector<2x16x32xf32>
    %482 = vector.shape_cast %481 : vector<2x16x32xf32> to vector<32x32xf32>
    %483 = arith.truncf %482 : vector<32x32xf32> to vector<32x32xbf16>
    %484 = vector.extract_strided_slice %435 {offsets = [32, 0], sizes = [32, 128], strides = [1, 1]} : vector<128x128xbf16> to vector<32x128xbf16>
    %cst_176 = arith.constant dense<0.000000e+00> : vector<32x128xf32>
    %485 = tpu.matmul %483, %484, %cst_176 {dimension_numbers = #tpu.dot_dimension_numbers<[1], [0], [0], [1], [0, 0, 1, 1], [], []>} : vector<32x32xbf16>, vector<32x128xbf16>, vector<32x128xf32> -> vector<32x128xf32>
    %486 = arith.addf %461, %485 : vector<32x128xf32>
    %487 = vector.extract_strided_slice %427 {offsets = [0, 0, 64], sizes = [2, 16, 32], strides = [1, 1, 1]} : vector<2x16x128xbf16> to vector<2x16x32xbf16>
    %488 = vector.extract_strided_slice %430 {offsets = [0, 0, 64], sizes = [2, 16, 32], strides = [1, 1, 1]} : vector<2x16x128xbf16> to vector<2x16x32xbf16>
    "tpu.trace_start"() <{level = 10 : i32, message = "bqd,bkd->bqk"}> : () -> ()
    %cst_177 = arith.constant dense<0.000000e+00> : vector<2x16x16xf32>
    %489 = tpu.matmul %487, %488, %cst_177 {dimension_numbers = #tpu.dot_dimension_numbers<[2], [2], [1], [1], [0, 0, 0, 1, 1, 1], [0], [0]>} : vector<2x16x32xbf16>, vector<2x16x32xbf16>, vector<2x16x16xf32> -> vector<2x16x16xf32>
    %cst_178 = arith.constant -1.000000e+30 : f32
    "tpu.trace_stop"() : () -> ()
    %490 = vector.shape_cast %4 : vector<16x16xi1> to vector<1x16x16xi1>
    %491 = vector.broadcast %490 : vector<1x16x16xi1> to vector<2x16x16xi1>
    %492 = vector.broadcast %cst_178 : f32 to vector<2x16x16xf32>
    %493 = arith.select %491, %489, %492 : vector<2x16x16xi1>, vector<2x16x16xf32>
    %cst_179 = arith.constant dense<0xFF800000> : vector<2x16xf32>
    %494 = vector.multi_reduction <maximumf>, %493, %cst_179 [2] : vector<2x16x16xf32> to vector<2x16xf32>
    %495 = vector.shape_cast %494 : vector<2x16xf32> to vector<2x16x1xf32>
    %496 = vector.broadcast %495 : vector<2x16x1xf32> to vector<2x16x16xf32>
    %497 = arith.subf %493, %496 : vector<2x16x16xf32>
    %498 = math.exp %497 : vector<2x16x16xf32>
    %cst_180 = arith.constant dense<0.000000e+00> : vector<2x16xf32>
    %499 = vector.multi_reduction <add>, %498, %cst_180 [2] : vector<2x16x16xf32> to vector<2x16xf32>
    %500 = vector.shape_cast %499 : vector<2x16xf32> to vector<2x16x1xf32>
    %501 = arith.truncf %498 : vector<2x16x16xf32> to vector<2x16x16xbf16>
    %502 = vector.extract_strided_slice %433 {offsets = [0, 0, 64], sizes = [2, 16, 32], strides = [1, 1, 1]} : vector<2x16x128xbf16> to vector<2x16x32xbf16>
    "tpu.trace_start"() <{level = 10 : i32, message = "bqk,bkd->bqd"}> : () -> ()
    %cst_181 = arith.constant dense<0.000000e+00> : vector<2x16x32xf32>
    %503 = tpu.matmul %501, %502, %cst_181 {dimension_numbers = #tpu.dot_dimension_numbers<[2], [1], [1], [2], [0, 0, 0, 1, 1, 2], [0], [0]>} : vector<2x16x16xbf16>, vector<2x16x32xbf16>, vector<2x16x32xf32> -> vector<2x16x32xf32>
    "tpu.trace_stop"() : () -> ()
    %504 = tpu.reciprocal %500 {approx = true} : vector<2x16x1xf32> -> vector<2x16x1xf32>
    %505 = vector.broadcast %504 : vector<2x16x1xf32> to vector<2x16x32xf32>
    %506 = arith.mulf %503, %505 : vector<2x16x32xf32>
    %507 = vector.shape_cast %506 : vector<2x16x32xf32> to vector<32x32xf32>
    %508 = arith.truncf %507 : vector<32x32xf32> to vector<32x32xbf16>
    %509 = vector.extract_strided_slice %435 {offsets = [64, 0], sizes = [32, 128], strides = [1, 1]} : vector<128x128xbf16> to vector<32x128xbf16>
    %cst_182 = arith.constant dense<0.000000e+00> : vector<32x128xf32>
    %510 = tpu.matmul %508, %509, %cst_182 {dimension_numbers = #tpu.dot_dimension_numbers<[1], [0], [0], [1], [0, 0, 1, 1], [], []>} : vector<32x32xbf16>, vector<32x128xbf16>, vector<32x128xf32> -> vector<32x128xf32>
    %511 = arith.addf %486, %510 : vector<32x128xf32>
    %512 = vector.extract_strided_slice %427 {offsets = [0, 0, 96], sizes = [2, 16, 32], strides = [1, 1, 1]} : vector<2x16x128xbf16> to vector<2x16x32xbf16>
    %513 = vector.extract_strided_slice %430 {offsets = [0, 0, 96], sizes = [2, 16, 32], strides = [1, 1, 1]} : vector<2x16x128xbf16> to vector<2x16x32xbf16>
    "tpu.trace_start"() <{level = 10 : i32, message = "bqd,bkd->bqk"}> : () -> ()
    %cst_183 = arith.constant dense<0.000000e+00> : vector<2x16x16xf32>
    %514 = tpu.matmul %512, %513, %cst_183 {dimension_numbers = #tpu.dot_dimension_numbers<[2], [2], [1], [1], [0, 0, 0, 1, 1, 1], [0], [0]>} : vector<2x16x32xbf16>, vector<2x16x32xbf16>, vector<2x16x16xf32> -> vector<2x16x16xf32>
    %cst_184 = arith.constant -1.000000e+30 : f32
    "tpu.trace_stop"() : () -> ()
    %515 = vector.shape_cast %4 : vector<16x16xi1> to vector<1x16x16xi1>
    %516 = vector.broadcast %515 : vector<1x16x16xi1> to vector<2x16x16xi1>
    %517 = vector.broadcast %cst_184 : f32 to vector<2x16x16xf32>
    %518 = arith.select %516, %514, %517 : vector<2x16x16xi1>, vector<2x16x16xf32>
    %cst_185 = arith.constant dense<0xFF800000> : vector<2x16xf32>
    %519 = vector.multi_reduction <maximumf>, %518, %cst_185 [2] : vector<2x16x16xf32> to vector<2x16xf32>
    %520 = vector.shape_cast %519 : vector<2x16xf32> to vector<2x16x1xf32>
    %521 = vector.broadcast %520 : vector<2x16x1xf32> to vector<2x16x16xf32>
    %522 = arith.subf %518, %521 : vector<2x16x16xf32>
    %523 = math.exp %522 : vector<2x16x16xf32>
    %cst_186 = arith.constant dense<0.000000e+00> : vector<2x16xf32>
    %524 = vector.multi_reduction <add>, %523, %cst_186 [2] : vector<2x16x16xf32> to vector<2x16xf32>
    %525 = vector.shape_cast %524 : vector<2x16xf32> to vector<2x16x1xf32>
    %526 = arith.truncf %523 : vector<2x16x16xf32> to vector<2x16x16xbf16>
    %527 = vector.extract_strided_slice %433 {offsets = [0, 0, 96], sizes = [2, 16, 32], strides = [1, 1, 1]} : vector<2x16x128xbf16> to vector<2x16x32xbf16>
    "tpu.trace_start"() <{level = 10 : i32, message = "bqk,bkd->bqd"}> : () -> ()
    %cst_187 = arith.constant dense<0.000000e+00> : vector<2x16x32xf32>
    %528 = tpu.matmul %526, %527, %cst_187 {dimension_numbers = #tpu.dot_dimension_numbers<[2], [1], [1], [2], [0, 0, 0, 1, 1, 2], [0], [0]>} : vector<2x16x16xbf16>, vector<2x16x32xbf16>, vector<2x16x32xf32> -> vector<2x16x32xf32>
    "tpu.trace_stop"() : () -> ()
    %529 = tpu.reciprocal %525 {approx = true} : vector<2x16x1xf32> -> vector<2x16x1xf32>
    %530 = vector.broadcast %529 : vector<2x16x1xf32> to vector<2x16x32xf32>
    %531 = arith.mulf %528, %530 : vector<2x16x32xf32>
    %532 = vector.shape_cast %531 : vector<2x16x32xf32> to vector<32x32xf32>
    %533 = arith.truncf %532 : vector<32x32xf32> to vector<32x32xbf16>
    %534 = vector.extract_strided_slice %435 {offsets = [96, 0], sizes = [32, 128], strides = [1, 1]} : vector<128x128xbf16> to vector<32x128xbf16>
    %cst_188 = arith.constant dense<0.000000e+00> : vector<32x128xf32>
    %535 = tpu.matmul %533, %534, %cst_188 {dimension_numbers = #tpu.dot_dimension_numbers<[1], [0], [0], [1], [0, 0, 1, 1], [], []>} : vector<32x32xbf16>, vector<32x128xbf16>, vector<32x128xf32> -> vector<32x128xf32>
    %536 = arith.addf %511, %535 : vector<32x128xf32>
    %537 = arith.addf %392, %536 : vector<32x128xf32>
    %c2_189 = arith.constant 2 : index
    %c0_190 = arith.constant 0 : index
    %c0_191 = arith.constant 0 : index
    %538 = vector.load %arg6[%c2_189, %c0_190, %c0_191] : memref<4x1x128xf32, #tpu.memory_space<vmem>>, vector<1x1x128xf32>
    %539 = vector.shape_cast %538 : vector<1x1x128xf32> to vector<1x128xf32>
    %540 = vector.broadcast %539 : vector<1x128xf32> to vector<32x128xf32>
    %541 = arith.addf %537, %540 : vector<32x128xf32>
    %c2_192 = arith.constant 2 : index
    %c0_193 = arith.constant 0 : index
    %c0_194 = arith.constant 0 : index
    %542 = vector.load %arg7[%c2_192, %c0_193, %c0_194] : memref<4x1x128xf32, #tpu.memory_space<vmem>>, vector<1x1x128xf32>
    %543 = vector.shape_cast %542 : vector<1x1x128xf32> to vector<1x128xf32>
    %c2_195 = arith.constant 2 : index
    %c0_196 = arith.constant 0 : index
    %c0_197 = arith.constant 0 : index
    %544 = vector.load %arg8[%c2_195, %c0_196, %c0_197] : memref<4x1x128xf32, #tpu.memory_space<vmem>>, vector<1x1x128xf32>
    %545 = vector.shape_cast %544 : vector<1x1x128xf32> to vector<1x128xf32>
    %cst_198 = arith.constant dense<0.000000e+00> : vector<32xf32>
    %546 = vector.multi_reduction <add>, %541, %cst_198 [1] : vector<32x128xf32> to vector<32xf32>
    %547 = vector.shape_cast %546 : vector<32xf32> to vector<32x1xf32>
    %cst_199 = arith.constant 1.280000e+02 : f32
    %548 = vector.broadcast %cst_199 : f32 to vector<32x1xf32>
    %549 = arith.divf %547, %548 : vector<32x1xf32>
    %550 = vector.broadcast %549 : vector<32x1xf32> to vector<32x128xf32>
    %551 = arith.subf %541, %550 : vector<32x128xf32>
    %552 = arith.mulf %551, %551 : vector<32x128xf32>
    %cst_200 = arith.constant dense<0.000000e+00> : vector<32xf32>
    %553 = vector.multi_reduction <add>, %552, %cst_200 [1] : vector<32x128xf32> to vector<32xf32>
    %554 = vector.shape_cast %553 : vector<32xf32> to vector<32x1xf32>
    %cst_201 = arith.constant 1.280000e+02 : f32
    %555 = vector.broadcast %cst_201 : f32 to vector<32x1xf32>
    %556 = arith.divf %554, %555 : vector<32x1xf32>
    %557 = vector.broadcast %549 : vector<32x1xf32> to vector<32x128xf32>
    %558 = arith.subf %541, %557 : vector<32x128xf32>
    %cst_202 = arith.constant 9.99999974E-6 : f32
    %559 = vector.broadcast %cst_202 : f32 to vector<32x1xf32>
    %560 = arith.addf %556, %559 : vector<32x1xf32>
    %561 = math.rsqrt %560 : vector<32x1xf32>
    %562 = vector.broadcast %561 : vector<32x1xf32> to vector<32x128xf32>
    %563 = arith.mulf %558, %562 : vector<32x128xf32>
    %564 = vector.broadcast %543 : vector<1x128xf32> to vector<32x128xf32>
    %565 = arith.mulf %563, %564 : vector<32x128xf32>
    %566 = vector.broadcast %545 : vector<1x128xf32> to vector<32x128xf32>
    %567 = arith.addf %565, %566 : vector<32x128xf32>
    %568 = arith.truncf %567 : vector<32x128xf32> to vector<32x128xbf16>
    %c2_203 = arith.constant 2 : index
    %c0_204 = arith.constant 0 : index
    %c0_205 = arith.constant 0 : index
    %569 = vector.load %arg9[%c2_203, %c0_204, %c0_205] : memref<4x128x512xbf16, #tpu.memory_space<vmem>>, vector<1x128x512xbf16>
    %570 = vector.shape_cast %569 : vector<1x128x512xbf16> to vector<128x512xbf16>
    %cst_206 = arith.constant dense<0.000000e+00> : vector<32x512xf32>
    %571 = tpu.matmul %568, %570, %cst_206 {dimension_numbers = #tpu.dot_dimension_numbers<[1], [0], [0], [1], [0, 0, 1, 1], [], []>} : vector<32x128xbf16>, vector<128x512xbf16>, vector<32x512xf32> -> vector<32x512xf32>
    %c2_207 = arith.constant 2 : index
    %c0_208 = arith.constant 0 : index
    %c0_209 = arith.constant 0 : index
    %572 = vector.load %arg10[%c2_207, %c0_208, %c0_209] : memref<4x1x512xf32, #tpu.memory_space<vmem>>, vector<1x1x512xf32>
    %573 = vector.shape_cast %572 : vector<1x1x512xf32> to vector<1x512xf32>
    %574 = vector.broadcast %573 : vector<1x512xf32> to vector<32x512xf32>
    %575 = arith.addf %571, %574 : vector<32x512xf32>
    %cst_210 = arith.constant 0.000000e+00 : f32
    %576 = vector.broadcast %cst_210 : f32 to vector<32x512xf32>
    %577 = arith.maximumf %575, %576 : vector<32x512xf32>
    %578 = arith.truncf %577 : vector<32x512xf32> to vector<32x512xbf16>
    %c2_211 = arith.constant 2 : index
    %c0_212 = arith.constant 0 : index
    %c0_213 = arith.constant 0 : index
    %579 = vector.load %arg11[%c2_211, %c0_212, %c0_213] : memref<4x512x128xbf16, #tpu.memory_space<vmem>>, vector<1x512x128xbf16>
    %580 = vector.shape_cast %579 : vector<1x512x128xbf16> to vector<512x128xbf16>
    %cst_214 = arith.constant dense<0.000000e+00> : vector<32x128xf32>
    %581 = tpu.matmul %578, %580, %cst_214 {dimension_numbers = #tpu.dot_dimension_numbers<[1], [0], [0], [1], [0, 0, 1, 1], [], []>} : vector<32x512xbf16>, vector<512x128xbf16>, vector<32x128xf32> -> vector<32x128xf32>
    %c2_215 = arith.constant 2 : index
    %c0_216 = arith.constant 0 : index
    %c0_217 = arith.constant 0 : index
    %582 = vector.load %arg12[%c2_215, %c0_216, %c0_217] : memref<4x1x128xf32, #tpu.memory_space<vmem>>, vector<1x1x128xf32>
    %583 = vector.shape_cast %582 : vector<1x1x128xf32> to vector<1x128xf32>
    %584 = vector.broadcast %583 : vector<1x128xf32> to vector<32x128xf32>
    %585 = arith.addf %581, %584 : vector<32x128xf32>
    %586 = arith.addf %541, %585 : vector<32x128xf32>
    %c3 = arith.constant 3 : index
    %c0_218 = arith.constant 0 : index
    %c0_219 = arith.constant 0 : index
    %587 = vector.load %arg2[%c3, %c0_218, %c0_219] : memref<4x1x128xf32, #tpu.memory_space<vmem>>, vector<1x1x128xf32>
    %588 = vector.shape_cast %587 : vector<1x1x128xf32> to vector<1x128xf32>
    %c3_220 = arith.constant 3 : index
    %c0_221 = arith.constant 0 : index
    %c0_222 = arith.constant 0 : index
    %589 = vector.load %arg3[%c3_220, %c0_221, %c0_222] : memref<4x1x128xf32, #tpu.memory_space<vmem>>, vector<1x1x128xf32>
    %590 = vector.shape_cast %589 : vector<1x1x128xf32> to vector<1x128xf32>
    %cst_223 = arith.constant dense<0.000000e+00> : vector<32xf32>
    %591 = vector.multi_reduction <add>, %586, %cst_223 [1] : vector<32x128xf32> to vector<32xf32>
    %592 = vector.shape_cast %591 : vector<32xf32> to vector<32x1xf32>
    %cst_224 = arith.constant 1.280000e+02 : f32
    %593 = vector.broadcast %cst_224 : f32 to vector<32x1xf32>
    %594 = arith.divf %592, %593 : vector<32x1xf32>
    %595 = vector.broadcast %594 : vector<32x1xf32> to vector<32x128xf32>
    %596 = arith.subf %586, %595 : vector<32x128xf32>
    %597 = arith.mulf %596, %596 : vector<32x128xf32>
    %cst_225 = arith.constant dense<0.000000e+00> : vector<32xf32>
    %598 = vector.multi_reduction <add>, %597, %cst_225 [1] : vector<32x128xf32> to vector<32xf32>
    %599 = vector.shape_cast %598 : vector<32xf32> to vector<32x1xf32>
    %cst_226 = arith.constant 1.280000e+02 : f32
    %600 = vector.broadcast %cst_226 : f32 to vector<32x1xf32>
    %601 = arith.divf %599, %600 : vector<32x1xf32>
    %602 = vector.broadcast %594 : vector<32x1xf32> to vector<32x128xf32>
    %603 = arith.subf %586, %602 : vector<32x128xf32>
    %cst_227 = arith.constant 9.99999974E-6 : f32
    %604 = vector.broadcast %cst_227 : f32 to vector<32x1xf32>
    %605 = arith.addf %601, %604 : vector<32x1xf32>
    %606 = math.rsqrt %605 : vector<32x1xf32>
    %607 = vector.broadcast %606 : vector<32x1xf32> to vector<32x128xf32>
    %608 = arith.mulf %603, %607 : vector<32x128xf32>
    %609 = vector.broadcast %588 : vector<1x128xf32> to vector<32x128xf32>
    %610 = arith.mulf %608, %609 : vector<32x128xf32>
    %611 = vector.broadcast %590 : vector<1x128xf32> to vector<32x128xf32>
    %612 = arith.addf %610, %611 : vector<32x128xf32>
    %613 = arith.truncf %612 : vector<32x128xf32> to vector<32x128xbf16>
    %c3_228 = arith.constant 3 : index
    %c0_229 = arith.constant 0 : index
    %c0_230 = arith.constant 0 : index
    %614 = vector.load %arg4[%c3_228, %c0_229, %c0_230] : memref<4x128x384xbf16, #tpu.memory_space<vmem>>, vector<1x128x384xbf16>
    %615 = vector.shape_cast %614 : vector<1x128x384xbf16> to vector<128x384xbf16>
    %cst_231 = arith.constant dense<0.000000e+00> : vector<32x384xf32>
    %616 = tpu.matmul %613, %615, %cst_231 {dimension_numbers = #tpu.dot_dimension_numbers<[1], [0], [0], [1], [0, 0, 1, 1], [], []>} : vector<32x128xbf16>, vector<128x384xbf16>, vector<32x384xf32> -> vector<32x384xf32>
    %617 = vector.extract_strided_slice %616 {offsets = [0, 0], sizes = [32, 128], strides = [1, 1]} : vector<32x384xf32> to vector<32x128xf32>
    %cst_232 = arith.constant 0.0883883461 : f32
    %618 = vector.broadcast %cst_232 : f32 to vector<32x128xf32>
    %619 = arith.mulf %617, %618 : vector<32x128xf32>
    %620 = arith.truncf %619 : vector<32x128xf32> to vector<32x128xbf16>
    %621 = vector.shape_cast %620 : vector<32x128xbf16> to vector<2x16x128xbf16>
    %622 = vector.extract_strided_slice %616 {offsets = [0, 128], sizes = [32, 128], strides = [1, 1]} : vector<32x384xf32> to vector<32x128xf32>
    %623 = arith.truncf %622 : vector<32x128xf32> to vector<32x128xbf16>
    %624 = vector.shape_cast %623 : vector<32x128xbf16> to vector<2x16x128xbf16>
    %625 = vector.extract_strided_slice %616 {offsets = [0, 256], sizes = [32, 128], strides = [1, 1]} : vector<32x384xf32> to vector<32x128xf32>
    %626 = arith.truncf %625 : vector<32x128xf32> to vector<32x128xbf16>
    %627 = vector.shape_cast %626 : vector<32x128xbf16> to vector<2x16x128xbf16>
    %c3_233 = arith.constant 3 : index
    %c0_234 = arith.constant 0 : index
    %c0_235 = arith.constant 0 : index
    %628 = vector.load %arg5[%c3_233, %c0_234, %c0_235] : memref<4x128x128xbf16, #tpu.memory_space<vmem>>, vector<1x128x128xbf16>
    %629 = vector.shape_cast %628 : vector<1x128x128xbf16> to vector<128x128xbf16>
    %cst_236 = arith.constant 0.000000e+00 : f32
    %630 = vector.broadcast %cst_236 : f32 to vector<32x128xf32>
    %631 = vector.extract_strided_slice %621 {offsets = [0, 0, 0], sizes = [2, 16, 32], strides = [1, 1, 1]} : vector<2x16x128xbf16> to vector<2x16x32xbf16>
    %632 = vector.extract_strided_slice %624 {offsets = [0, 0, 0], sizes = [2, 16, 32], strides = [1, 1, 1]} : vector<2x16x128xbf16> to vector<2x16x32xbf16>
    "tpu.trace_start"() <{level = 10 : i32, message = "bqd,bkd->bqk"}> : () -> ()
    %cst_237 = arith.constant dense<0.000000e+00> : vector<2x16x16xf32>
    %633 = tpu.matmul %631, %632, %cst_237 {dimension_numbers = #tpu.dot_dimension_numbers<[2], [2], [1], [1], [0, 0, 0, 1, 1, 1], [0], [0]>} : vector<2x16x32xbf16>, vector<2x16x32xbf16>, vector<2x16x16xf32> -> vector<2x16x16xf32>
    %cst_238 = arith.constant -1.000000e+30 : f32
    "tpu.trace_stop"() : () -> ()
    %634 = vector.shape_cast %4 : vector<16x16xi1> to vector<1x16x16xi1>
    %635 = vector.broadcast %634 : vector<1x16x16xi1> to vector<2x16x16xi1>
    %636 = vector.broadcast %cst_238 : f32 to vector<2x16x16xf32>
    %637 = arith.select %635, %633, %636 : vector<2x16x16xi1>, vector<2x16x16xf32>
    %cst_239 = arith.constant dense<0xFF800000> : vector<2x16xf32>
    %638 = vector.multi_reduction <maximumf>, %637, %cst_239 [2] : vector<2x16x16xf32> to vector<2x16xf32>
    %639 = vector.shape_cast %638 : vector<2x16xf32> to vector<2x16x1xf32>
    %640 = vector.broadcast %639 : vector<2x16x1xf32> to vector<2x16x16xf32>
    %641 = arith.subf %637, %640 : vector<2x16x16xf32>
    %642 = math.exp %641 : vector<2x16x16xf32>
    %cst_240 = arith.constant dense<0.000000e+00> : vector<2x16xf32>
    %643 = vector.multi_reduction <add>, %642, %cst_240 [2] : vector<2x16x16xf32> to vector<2x16xf32>
    %644 = vector.shape_cast %643 : vector<2x16xf32> to vector<2x16x1xf32>
    %645 = arith.truncf %642 : vector<2x16x16xf32> to vector<2x16x16xbf16>
    %646 = vector.extract_strided_slice %627 {offsets = [0, 0, 0], sizes = [2, 16, 32], strides = [1, 1, 1]} : vector<2x16x128xbf16> to vector<2x16x32xbf16>
    "tpu.trace_start"() <{level = 10 : i32, message = "bqk,bkd->bqd"}> : () -> ()
    %cst_241 = arith.constant dense<0.000000e+00> : vector<2x16x32xf32>
    %647 = tpu.matmul %645, %646, %cst_241 {dimension_numbers = #tpu.dot_dimension_numbers<[2], [1], [1], [2], [0, 0, 0, 1, 1, 2], [0], [0]>} : vector<2x16x16xbf16>, vector<2x16x32xbf16>, vector<2x16x32xf32> -> vector<2x16x32xf32>
    "tpu.trace_stop"() : () -> ()
    %648 = tpu.reciprocal %644 {approx = true} : vector<2x16x1xf32> -> vector<2x16x1xf32>
    %649 = vector.broadcast %648 : vector<2x16x1xf32> to vector<2x16x32xf32>
    %650 = arith.mulf %647, %649 : vector<2x16x32xf32>
    %651 = vector.shape_cast %650 : vector<2x16x32xf32> to vector<32x32xf32>
    %652 = arith.truncf %651 : vector<32x32xf32> to vector<32x32xbf16>
    %653 = vector.extract_strided_slice %629 {offsets = [0, 0], sizes = [32, 128], strides = [1, 1]} : vector<128x128xbf16> to vector<32x128xbf16>
    %cst_242 = arith.constant dense<0.000000e+00> : vector<32x128xf32>
    %654 = tpu.matmul %652, %653, %cst_242 {dimension_numbers = #tpu.dot_dimension_numbers<[1], [0], [0], [1], [0, 0, 1, 1], [], []>} : vector<32x32xbf16>, vector<32x128xbf16>, vector<32x128xf32> -> vector<32x128xf32>
    %655 = arith.addf %630, %654 : vector<32x128xf32>
    %656 = vector.extract_strided_slice %621 {offsets = [0, 0, 32], sizes = [2, 16, 32], strides = [1, 1, 1]} : vector<2x16x128xbf16> to vector<2x16x32xbf16>
    %657 = vector.extract_strided_slice %624 {offsets = [0, 0, 32], sizes = [2, 16, 32], strides = [1, 1, 1]} : vector<2x16x128xbf16> to vector<2x16x32xbf16>
    "tpu.trace_start"() <{level = 10 : i32, message = "bqd,bkd->bqk"}> : () -> ()
    %cst_243 = arith.constant dense<0.000000e+00> : vector<2x16x16xf32>
    %658 = tpu.matmul %656, %657, %cst_243 {dimension_numbers = #tpu.dot_dimension_numbers<[2], [2], [1], [1], [0, 0, 0, 1, 1, 1], [0], [0]>} : vector<2x16x32xbf16>, vector<2x16x32xbf16>, vector<2x16x16xf32> -> vector<2x16x16xf32>
    %cst_244 = arith.constant -1.000000e+30 : f32
    "tpu.trace_stop"() : () -> ()
    %659 = vector.shape_cast %4 : vector<16x16xi1> to vector<1x16x16xi1>
    %660 = vector.broadcast %659 : vector<1x16x16xi1> to vector<2x16x16xi1>
    %661 = vector.broadcast %cst_244 : f32 to vector<2x16x16xf32>
    %662 = arith.select %660, %658, %661 : vector<2x16x16xi1>, vector<2x16x16xf32>
    %cst_245 = arith.constant dense<0xFF800000> : vector<2x16xf32>
    %663 = vector.multi_reduction <maximumf>, %662, %cst_245 [2] : vector<2x16x16xf32> to vector<2x16xf32>
    %664 = vector.shape_cast %663 : vector<2x16xf32> to vector<2x16x1xf32>
    %665 = vector.broadcast %664 : vector<2x16x1xf32> to vector<2x16x16xf32>
    %666 = arith.subf %662, %665 : vector<2x16x16xf32>
    %667 = math.exp %666 : vector<2x16x16xf32>
    %cst_246 = arith.constant dense<0.000000e+00> : vector<2x16xf32>
    %668 = vector.multi_reduction <add>, %667, %cst_246 [2] : vector<2x16x16xf32> to vector<2x16xf32>
    %669 = vector.shape_cast %668 : vector<2x16xf32> to vector<2x16x1xf32>
    %670 = arith.truncf %667 : vector<2x16x16xf32> to vector<2x16x16xbf16>
    %671 = vector.extract_strided_slice %627 {offsets = [0, 0, 32], sizes = [2, 16, 32], strides = [1, 1, 1]} : vector<2x16x128xbf16> to vector<2x16x32xbf16>
    "tpu.trace_start"() <{level = 10 : i32, message = "bqk,bkd->bqd"}> : () -> ()
    %cst_247 = arith.constant dense<0.000000e+00> : vector<2x16x32xf32>
    %672 = tpu.matmul %670, %671, %cst_247 {dimension_numbers = #tpu.dot_dimension_numbers<[2], [1], [1], [2], [0, 0, 0, 1, 1, 2], [0], [0]>} : vector<2x16x16xbf16>, vector<2x16x32xbf16>, vector<2x16x32xf32> -> vector<2x16x32xf32>
    "tpu.trace_stop"() : () -> ()
    %673 = tpu.reciprocal %669 {approx = true} : vector<2x16x1xf32> -> vector<2x16x1xf32>
    %674 = vector.broadcast %673 : vector<2x16x1xf32> to vector<2x16x32xf32>
    %675 = arith.mulf %672, %674 : vector<2x16x32xf32>
    %676 = vector.shape_cast %675 : vector<2x16x32xf32> to vector<32x32xf32>
    %677 = arith.truncf %676 : vector<32x32xf32> to vector<32x32xbf16>
    %678 = vector.extract_strided_slice %629 {offsets = [32, 0], sizes = [32, 128], strides = [1, 1]} : vector<128x128xbf16> to vector<32x128xbf16>
    %cst_248 = arith.constant dense<0.000000e+00> : vector<32x128xf32>
    %679 = tpu.matmul %677, %678, %cst_248 {dimension_numbers = #tpu.dot_dimension_numbers<[1], [0], [0], [1], [0, 0, 1, 1], [], []>} : vector<32x32xbf16>, vector<32x128xbf16>, vector<32x128xf32> -> vector<32x128xf32>
    %680 = arith.addf %655, %679 : vector<32x128xf32>
    %681 = vector.extract_strided_slice %621 {offsets = [0, 0, 64], sizes = [2, 16, 32], strides = [1, 1, 1]} : vector<2x16x128xbf16> to vector<2x16x32xbf16>
    %682 = vector.extract_strided_slice %624 {offsets = [0, 0, 64], sizes = [2, 16, 32], strides = [1, 1, 1]} : vector<2x16x128xbf16> to vector<2x16x32xbf16>
    "tpu.trace_start"() <{level = 10 : i32, message = "bqd,bkd->bqk"}> : () -> ()
    %cst_249 = arith.constant dense<0.000000e+00> : vector<2x16x16xf32>
    %683 = tpu.matmul %681, %682, %cst_249 {dimension_numbers = #tpu.dot_dimension_numbers<[2], [2], [1], [1], [0, 0, 0, 1, 1, 1], [0], [0]>} : vector<2x16x32xbf16>, vector<2x16x32xbf16>, vector<2x16x16xf32> -> vector<2x16x16xf32>
    %cst_250 = arith.constant -1.000000e+30 : f32
    "tpu.trace_stop"() : () -> ()
    %684 = vector.shape_cast %4 : vector<16x16xi1> to vector<1x16x16xi1>
    %685 = vector.broadcast %684 : vector<1x16x16xi1> to vector<2x16x16xi1>
    %686 = vector.broadcast %cst_250 : f32 to vector<2x16x16xf32>
    %687 = arith.select %685, %683, %686 : vector<2x16x16xi1>, vector<2x16x16xf32>
    %cst_251 = arith.constant dense<0xFF800000> : vector<2x16xf32>
    %688 = vector.multi_reduction <maximumf>, %687, %cst_251 [2] : vector<2x16x16xf32> to vector<2x16xf32>
    %689 = vector.shape_cast %688 : vector<2x16xf32> to vector<2x16x1xf32>
    %690 = vector.broadcast %689 : vector<2x16x1xf32> to vector<2x16x16xf32>
    %691 = arith.subf %687, %690 : vector<2x16x16xf32>
    %692 = math.exp %691 : vector<2x16x16xf32>
    %cst_252 = arith.constant dense<0.000000e+00> : vector<2x16xf32>
    %693 = vector.multi_reduction <add>, %692, %cst_252 [2] : vector<2x16x16xf32> to vector<2x16xf32>
    %694 = vector.shape_cast %693 : vector<2x16xf32> to vector<2x16x1xf32>
    %695 = arith.truncf %692 : vector<2x16x16xf32> to vector<2x16x16xbf16>
    %696 = vector.extract_strided_slice %627 {offsets = [0, 0, 64], sizes = [2, 16, 32], strides = [1, 1, 1]} : vector<2x16x128xbf16> to vector<2x16x32xbf16>
    "tpu.trace_start"() <{level = 10 : i32, message = "bqk,bkd->bqd"}> : () -> ()
    %cst_253 = arith.constant dense<0.000000e+00> : vector<2x16x32xf32>
    %697 = tpu.matmul %695, %696, %cst_253 {dimension_numbers = #tpu.dot_dimension_numbers<[2], [1], [1], [2], [0, 0, 0, 1, 1, 2], [0], [0]>} : vector<2x16x16xbf16>, vector<2x16x32xbf16>, vector<2x16x32xf32> -> vector<2x16x32xf32>
    "tpu.trace_stop"() : () -> ()
    %698 = tpu.reciprocal %694 {approx = true} : vector<2x16x1xf32> -> vector<2x16x1xf32>
    %699 = vector.broadcast %698 : vector<2x16x1xf32> to vector<2x16x32xf32>
    %700 = arith.mulf %697, %699 : vector<2x16x32xf32>
    %701 = vector.shape_cast %700 : vector<2x16x32xf32> to vector<32x32xf32>
    %702 = arith.truncf %701 : vector<32x32xf32> to vector<32x32xbf16>
    %703 = vector.extract_strided_slice %629 {offsets = [64, 0], sizes = [32, 128], strides = [1, 1]} : vector<128x128xbf16> to vector<32x128xbf16>
    %cst_254 = arith.constant dense<0.000000e+00> : vector<32x128xf32>
    %704 = tpu.matmul %702, %703, %cst_254 {dimension_numbers = #tpu.dot_dimension_numbers<[1], [0], [0], [1], [0, 0, 1, 1], [], []>} : vector<32x32xbf16>, vector<32x128xbf16>, vector<32x128xf32> -> vector<32x128xf32>
    %705 = arith.addf %680, %704 : vector<32x128xf32>
    %706 = vector.extract_strided_slice %621 {offsets = [0, 0, 96], sizes = [2, 16, 32], strides = [1, 1, 1]} : vector<2x16x128xbf16> to vector<2x16x32xbf16>
    %707 = vector.extract_strided_slice %624 {offsets = [0, 0, 96], sizes = [2, 16, 32], strides = [1, 1, 1]} : vector<2x16x128xbf16> to vector<2x16x32xbf16>
    "tpu.trace_start"() <{level = 10 : i32, message = "bqd,bkd->bqk"}> : () -> ()
    %cst_255 = arith.constant dense<0.000000e+00> : vector<2x16x16xf32>
    %708 = tpu.matmul %706, %707, %cst_255 {dimension_numbers = #tpu.dot_dimension_numbers<[2], [2], [1], [1], [0, 0, 0, 1, 1, 1], [0], [0]>} : vector<2x16x32xbf16>, vector<2x16x32xbf16>, vector<2x16x16xf32> -> vector<2x16x16xf32>
    %cst_256 = arith.constant -1.000000e+30 : f32
    "tpu.trace_stop"() : () -> ()
    %709 = vector.shape_cast %4 : vector<16x16xi1> to vector<1x16x16xi1>
    %710 = vector.broadcast %709 : vector<1x16x16xi1> to vector<2x16x16xi1>
    %711 = vector.broadcast %cst_256 : f32 to vector<2x16x16xf32>
    %712 = arith.select %710, %708, %711 : vector<2x16x16xi1>, vector<2x16x16xf32>
    %cst_257 = arith.constant dense<0xFF800000> : vector<2x16xf32>
    %713 = vector.multi_reduction <maximumf>, %712, %cst_257 [2] : vector<2x16x16xf32> to vector<2x16xf32>
    %714 = vector.shape_cast %713 : vector<2x16xf32> to vector<2x16x1xf32>
    %715 = vector.broadcast %714 : vector<2x16x1xf32> to vector<2x16x16xf32>
    %716 = arith.subf %712, %715 : vector<2x16x16xf32>
    %717 = math.exp %716 : vector<2x16x16xf32>
    %cst_258 = arith.constant dense<0.000000e+00> : vector<2x16xf32>
    %718 = vector.multi_reduction <add>, %717, %cst_258 [2] : vector<2x16x16xf32> to vector<2x16xf32>
    %719 = vector.shape_cast %718 : vector<2x16xf32> to vector<2x16x1xf32>
    %720 = arith.truncf %717 : vector<2x16x16xf32> to vector<2x16x16xbf16>
    %721 = vector.extract_strided_slice %627 {offsets = [0, 0, 96], sizes = [2, 16, 32], strides = [1, 1, 1]} : vector<2x16x128xbf16> to vector<2x16x32xbf16>
    "tpu.trace_start"() <{level = 10 : i32, message = "bqk,bkd->bqd"}> : () -> ()
    %cst_259 = arith.constant dense<0.000000e+00> : vector<2x16x32xf32>
    %722 = tpu.matmul %720, %721, %cst_259 {dimension_numbers = #tpu.dot_dimension_numbers<[2], [1], [1], [2], [0, 0, 0, 1, 1, 2], [0], [0]>} : vector<2x16x16xbf16>, vector<2x16x32xbf16>, vector<2x16x32xf32> -> vector<2x16x32xf32>
    "tpu.trace_stop"() : () -> ()
    %723 = tpu.reciprocal %719 {approx = true} : vector<2x16x1xf32> -> vector<2x16x1xf32>
    %724 = vector.broadcast %723 : vector<2x16x1xf32> to vector<2x16x32xf32>
    %725 = arith.mulf %722, %724 : vector<2x16x32xf32>
    %726 = vector.shape_cast %725 : vector<2x16x32xf32> to vector<32x32xf32>
    %727 = arith.truncf %726 : vector<32x32xf32> to vector<32x32xbf16>
    %728 = vector.extract_strided_slice %629 {offsets = [96, 0], sizes = [32, 128], strides = [1, 1]} : vector<128x128xbf16> to vector<32x128xbf16>
    %cst_260 = arith.constant dense<0.000000e+00> : vector<32x128xf32>
    %729 = tpu.matmul %727, %728, %cst_260 {dimension_numbers = #tpu.dot_dimension_numbers<[1], [0], [0], [1], [0, 0, 1, 1], [], []>} : vector<32x32xbf16>, vector<32x128xbf16>, vector<32x128xf32> -> vector<32x128xf32>
    %730 = arith.addf %705, %729 : vector<32x128xf32>
    %731 = arith.addf %586, %730 : vector<32x128xf32>
    %c3_261 = arith.constant 3 : index
    %c0_262 = arith.constant 0 : index
    %c0_263 = arith.constant 0 : index
    %732 = vector.load %arg6[%c3_261, %c0_262, %c0_263] : memref<4x1x128xf32, #tpu.memory_space<vmem>>, vector<1x1x128xf32>
    %733 = vector.shape_cast %732 : vector<1x1x128xf32> to vector<1x128xf32>
    %734 = vector.broadcast %733 : vector<1x128xf32> to vector<32x128xf32>
    %735 = arith.addf %731, %734 : vector<32x128xf32>
    %c3_264 = arith.constant 3 : index
    %c0_265 = arith.constant 0 : index
    %c0_266 = arith.constant 0 : index
    %736 = vector.load %arg7[%c3_264, %c0_265, %c0_266] : memref<4x1x128xf32, #tpu.memory_space<vmem>>, vector<1x1x128xf32>
    %737 = vector.shape_cast %736 : vector<1x1x128xf32> to vector<1x128xf32>
    %c3_267 = arith.constant 3 : index
    %c0_268 = arith.constant 0 : index
    %c0_269 = arith.constant 0 : index
    %738 = vector.load %arg8[%c3_267, %c0_268, %c0_269] : memref<4x1x128xf32, #tpu.memory_space<vmem>>, vector<1x1x128xf32>
    %739 = vector.shape_cast %738 : vector<1x1x128xf32> to vector<1x128xf32>
    %cst_270 = arith.constant dense<0.000000e+00> : vector<32xf32>
    %740 = vector.multi_reduction <add>, %735, %cst_270 [1] : vector<32x128xf32> to vector<32xf32>
    %741 = vector.shape_cast %740 : vector<32xf32> to vector<32x1xf32>
    %cst_271 = arith.constant 1.280000e+02 : f32
    %742 = vector.broadcast %cst_271 : f32 to vector<32x1xf32>
    %743 = arith.divf %741, %742 : vector<32x1xf32>
    %744 = vector.broadcast %743 : vector<32x1xf32> to vector<32x128xf32>
    %745 = arith.subf %735, %744 : vector<32x128xf32>
    %746 = arith.mulf %745, %745 : vector<32x128xf32>
    %cst_272 = arith.constant dense<0.000000e+00> : vector<32xf32>
    %747 = vector.multi_reduction <add>, %746, %cst_272 [1] : vector<32x128xf32> to vector<32xf32>
    %748 = vector.shape_cast %747 : vector<32xf32> to vector<32x1xf32>
    %cst_273 = arith.constant 1.280000e+02 : f32
    %749 = vector.broadcast %cst_273 : f32 to vector<32x1xf32>
    %750 = arith.divf %748, %749 : vector<32x1xf32>
    %751 = vector.broadcast %743 : vector<32x1xf32> to vector<32x128xf32>
    %752 = arith.subf %735, %751 : vector<32x128xf32>
    %cst_274 = arith.constant 9.99999974E-6 : f32
    %753 = vector.broadcast %cst_274 : f32 to vector<32x1xf32>
    %754 = arith.addf %750, %753 : vector<32x1xf32>
    %755 = math.rsqrt %754 : vector<32x1xf32>
    %756 = vector.broadcast %755 : vector<32x1xf32> to vector<32x128xf32>
    %757 = arith.mulf %752, %756 : vector<32x128xf32>
    %758 = vector.broadcast %737 : vector<1x128xf32> to vector<32x128xf32>
    %759 = arith.mulf %757, %758 : vector<32x128xf32>
    %760 = vector.broadcast %739 : vector<1x128xf32> to vector<32x128xf32>
    %761 = arith.addf %759, %760 : vector<32x128xf32>
    %762 = arith.truncf %761 : vector<32x128xf32> to vector<32x128xbf16>
    %c3_275 = arith.constant 3 : index
    %c0_276 = arith.constant 0 : index
    %c0_277 = arith.constant 0 : index
    %763 = vector.load %arg9[%c3_275, %c0_276, %c0_277] : memref<4x128x512xbf16, #tpu.memory_space<vmem>>, vector<1x128x512xbf16>
    %764 = vector.shape_cast %763 : vector<1x128x512xbf16> to vector<128x512xbf16>
    %cst_278 = arith.constant dense<0.000000e+00> : vector<32x512xf32>
    %765 = tpu.matmul %762, %764, %cst_278 {dimension_numbers = #tpu.dot_dimension_numbers<[1], [0], [0], [1], [0, 0, 1, 1], [], []>} : vector<32x128xbf16>, vector<128x512xbf16>, vector<32x512xf32> -> vector<32x512xf32>
    %c3_279 = arith.constant 3 : index
    %c0_280 = arith.constant 0 : index
    %c0_281 = arith.constant 0 : index
    %766 = vector.load %arg10[%c3_279, %c0_280, %c0_281] : memref<4x1x512xf32, #tpu.memory_space<vmem>>, vector<1x1x512xf32>
    %767 = vector.shape_cast %766 : vector<1x1x512xf32> to vector<1x512xf32>
    %768 = vector.broadcast %767 : vector<1x512xf32> to vector<32x512xf32>
    %769 = arith.addf %765, %768 : vector<32x512xf32>
    %cst_282 = arith.constant 0.000000e+00 : f32
    %770 = vector.broadcast %cst_282 : f32 to vector<32x512xf32>
    %771 = arith.maximumf %769, %770 : vector<32x512xf32>
    %772 = arith.truncf %771 : vector<32x512xf32> to vector<32x512xbf16>
    %c3_283 = arith.constant 3 : index
    %c0_284 = arith.constant 0 : index
    %c0_285 = arith.constant 0 : index
    %773 = vector.load %arg11[%c3_283, %c0_284, %c0_285] : memref<4x512x128xbf16, #tpu.memory_space<vmem>>, vector<1x512x128xbf16>
    %774 = vector.shape_cast %773 : vector<1x512x128xbf16> to vector<512x128xbf16>
    %cst_286 = arith.constant dense<0.000000e+00> : vector<32x128xf32>
    %775 = tpu.matmul %772, %774, %cst_286 {dimension_numbers = #tpu.dot_dimension_numbers<[1], [0], [0], [1], [0, 0, 1, 1], [], []>} : vector<32x512xbf16>, vector<512x128xbf16>, vector<32x128xf32> -> vector<32x128xf32>
    %c3_287 = arith.constant 3 : index
    %c0_288 = arith.constant 0 : index
    %c0_289 = arith.constant 0 : index
    %776 = vector.load %arg12[%c3_287, %c0_288, %c0_289] : memref<4x1x128xf32, #tpu.memory_space<vmem>>, vector<1x1x128xf32>
    %777 = vector.shape_cast %776 : vector<1x1x128xf32> to vector<1x128xf32>
    %778 = vector.broadcast %777 : vector<1x128xf32> to vector<32x128xf32>
    %779 = arith.addf %775, %778 : vector<32x128xf32>
    %780 = arith.addf %735, %779 : vector<32x128xf32>
    %c0_290 = arith.constant 0 : index
    %c0_291 = arith.constant 0 : index
    %781 = vector.load %arg13[%c0_290, %c0_291] : memref<1x128xf32, #tpu.memory_space<vmem>>, vector<1x128xf32>
    %c0_292 = arith.constant 0 : index
    %c0_293 = arith.constant 0 : index
    %782 = vector.load %arg14[%c0_292, %c0_293] : memref<1x128xf32, #tpu.memory_space<vmem>>, vector<1x128xf32>
    %cst_294 = arith.constant dense<0.000000e+00> : vector<32xf32>
    %783 = vector.multi_reduction <add>, %780, %cst_294 [1] : vector<32x128xf32> to vector<32xf32>
    %784 = vector.shape_cast %783 : vector<32xf32> to vector<32x1xf32>
    %cst_295 = arith.constant 1.280000e+02 : f32
    %785 = vector.broadcast %cst_295 : f32 to vector<32x1xf32>
    %786 = arith.divf %784, %785 : vector<32x1xf32>
    %787 = vector.broadcast %786 : vector<32x1xf32> to vector<32x128xf32>
    %788 = arith.subf %780, %787 : vector<32x128xf32>
    %789 = arith.mulf %788, %788 : vector<32x128xf32>
    %cst_296 = arith.constant dense<0.000000e+00> : vector<32xf32>
    %790 = vector.multi_reduction <add>, %789, %cst_296 [1] : vector<32x128xf32> to vector<32xf32>
    %791 = vector.shape_cast %790 : vector<32xf32> to vector<32x1xf32>
    %cst_297 = arith.constant 1.280000e+02 : f32
    %792 = vector.broadcast %cst_297 : f32 to vector<32x1xf32>
    %793 = arith.divf %791, %792 : vector<32x1xf32>
    %794 = vector.broadcast %786 : vector<32x1xf32> to vector<32x128xf32>
    %795 = arith.subf %780, %794 : vector<32x128xf32>
    %cst_298 = arith.constant 9.99999974E-6 : f32
    %796 = vector.broadcast %cst_298 : f32 to vector<32x1xf32>
    %797 = arith.addf %793, %796 : vector<32x1xf32>
    %798 = math.rsqrt %797 : vector<32x1xf32>
    %799 = vector.broadcast %798 : vector<32x1xf32> to vector<32x128xf32>
    %800 = arith.mulf %795, %799 : vector<32x128xf32>
    %801 = vector.broadcast %781 : vector<1x128xf32> to vector<32x128xf32>
    %802 = arith.mulf %800, %801 : vector<32x128xf32>
    %803 = vector.broadcast %782 : vector<1x128xf32> to vector<32x128xf32>
    %804 = arith.addf %802, %803 : vector<32x128xf32>
    %805 = arith.truncf %804 : vector<32x128xf32> to vector<32x128xbf16>
    %c0_299 = arith.constant 0 : index
    %c0_300 = arith.constant 0 : index
    %806 = vector.load %arg15[%c0_299, %c0_300] : memref<128x128xbf16, #tpu.memory_space<vmem>>, vector<128x128xbf16>
    %cst_301 = arith.constant dense<0.000000e+00> : vector<32x128xf32>
    %807 = tpu.matmul %805, %806, %cst_301 {dimension_numbers = #tpu.dot_dimension_numbers<[1], [0], [0], [1], [0, 0, 1, 1], [], []>} : vector<32x128xbf16>, vector<128x128xbf16>, vector<32x128xf32> -> vector<32x128xf32>
    %c0_302 = arith.constant 0 : index
    %c0_303 = arith.constant 0 : index
    %808 = vector.load %arg16[%c0_302, %c0_303] : memref<1x128xf32, #tpu.memory_space<vmem>>, vector<1x128xf32>
    %809 = vector.broadcast %808 : vector<1x128xf32> to vector<32x128xf32>
    %810 = arith.addf %807, %809 : vector<32x128xf32>
    %811 = vector.shape_cast %810 : vector<32x128xf32> to vector<2x16x128xf32>
    %812 = arith.truncf %811 : vector<2x16x128xf32> to vector<2x16x128xbf16>
    %c0_304 = arith.constant 0 : index
    %c0_305 = arith.constant 0 : index
    %c0_306 = arith.constant 0 : index
    %813 = vector.load %arg17[%c0_304, %c0_305, %c0_306] : memref<2x16x128xbf16, #tpu.memory_space<vmem>>, vector<2x16x128xbf16>
    tpu.vector_store %arg17[%c0_304, %c0_305, %c0_306], %812 {strides = array<i32>} : memref<2x16x128xbf16, #tpu.memory_space<vmem>>, vector<2x16x128xbf16>,
    return
  }
  func.func @transform_0(%arg0: i32) -> (i32, i32, i32) {
    %c0_i32 = arith.constant 0 : i32
    %c0_i32_0 = arith.constant 0 : i32
    %c0_i32_1 = arith.constant 0 : i32
    return %arg0, %c0_i32, %c0_i32_0 : i32, i32, i32
  }
  func.func @transform_1(%arg0: i32) -> (i32, i32, i32) {
    %c0_i32 = arith.constant 0 : i32
    %c0_i32_0 = arith.constant 0 : i32
    %c0_i32_1 = arith.constant 0 : i32
    %c0_i32_2 = arith.constant 0 : i32
    return %c0_i32, %c0_i32_0, %c0_i32_1 : i32, i32, i32
  }
  func.func @transform_2(%arg0: i32) -> (i32, i32, i32) {
    %c0_i32 = arith.constant 0 : i32
    %c0_i32_0 = arith.constant 0 : i32
    %c0_i32_1 = arith.constant 0 : i32
    %c0_i32_2 = arith.constant 0 : i32
    return %c0_i32, %c0_i32_0, %c0_i32_1 : i32, i32, i32
  }
  func.func @transform_3(%arg0: i32) -> (i32, i32, i32) {
    %c0_i32 = arith.constant 0 : i32
    %c0_i32_0 = arith.constant 0 : i32
    %c0_i32_1 = arith.constant 0 : i32
    %c0_i32_2 = arith.constant 0 : i32
    return %c0_i32, %c0_i32_0, %c0_i32_1 : i32, i32, i32
  }
  func.func @transform_4(%arg0: i32) -> (i32, i32, i32) {
    %c0_i32 = arith.constant 0 : i32
    %c0_i32_0 = arith.constant 0 : i32
    %c0_i32_1 = arith.constant 0 : i32
    %c0_i32_2 = arith.constant 0 : i32
    return %c0_i32, %c0_i32_0, %c0_i32_1 : i32, i32, i32
  }
  func.func @transform_5(%arg0: i32) -> (i32, i32, i32) {
    %c0_i32 = arith.constant 0 : i32
    %c0_i32_0 = arith.constant 0 : i32
    %c0_i32_1 = arith.constant 0 : i32
    %c0_i32_2 = arith.constant 0 : i32
    return %c0_i32, %c0_i32_0, %c0_i32_1 : i32, i32, i32
  }
  func.func @transform_6(%arg0: i32) -> (i32, i32, i32) {
    %c0_i32 = arith.constant 0 : i32
    %c0_i32_0 = arith.constant 0 : i32
    %c0_i32_1 = arith.constant 0 : i32
    %c0_i32_2 = arith.constant 0 : i32
    return %c0_i32, %c0_i32_0, %c0_i32_1 : i32, i32, i32
  }
  func.func @transform_7(%arg0: i32) -> (i32, i32, i32) {
    %c0_i32 = arith.constant 0 : i32
    %c0_i32_0 = arith.constant 0 : i32
    %c0_i32_1 = arith.constant 0 : i32
    %c0_i32_2 = arith.constant 0 : i32
    return %c0_i32, %c0_i32_0, %c0_i32_1 : i32, i32, i32
  }
  func.func @transform_8(%arg0: i32) -> (i32, i32, i32) {
    %c0_i32 = arith.constant 0 : i32
    %c0_i32_0 = arith.constant 0 : i32
    %c0_i32_1 = arith.constant 0 : i32
    %c0_i32_2 = arith.constant 0 : i32
    return %c0_i32, %c0_i32_0, %c0_i32_1 : i32, i32, i32
  }
  func.func @transform_9(%arg0: i32) -> (i32, i32, i32) {
    %c0_i32 = arith.constant 0 : i32
    %c0_i32_0 = arith.constant 0 : i32
    %c0_i32_1 = arith.constant 0 : i32
    %c0_i32_2 = arith.constant 0 : i32
    return %c0_i32, %c0_i32_0, %c0_i32_1 : i32, i32, i32
  }
  func.func @transform_10(%arg0: i32) -> (i32, i32, i32) {
    %c0_i32 = arith.constant 0 : i32
    %c0_i32_0 = arith.constant 0 : i32
    %c0_i32_1 = arith.constant 0 : i32
    %c0_i32_2 = arith.constant 0 : i32
    return %c0_i32, %c0_i32_0, %c0_i32_1 : i32, i32, i32
  }
  func.func @transform_11(%arg0: i32) -> (i32, i32, i32) {
    %c0_i32 = arith.constant 0 : i32
    %c0_i32_0 = arith.constant 0 : i32
    %c0_i32_1 = arith.constant 0 : i32
    %c0_i32_2 = arith.constant 0 : i32
    return %c0_i32, %c0_i32_0, %c0_i32_1 : i32, i32, i32
  }
  func.func @transform_12(%arg0: i32) -> (i32, i32) {
    %c0_i32 = arith.constant 0 : i32
    %c0_i32_0 = arith.constant 0 : i32
    %c0_i32_1 = arith.constant 0 : i32
    return %c0_i32, %c0_i32_0 : i32, i32
  }
  func.func @transform_13(%arg0: i32) -> (i32, i32) {
    %c0_i32 = arith.constant 0 : i32
    %c0_i32_0 = arith.constant 0 : i32
    %c0_i32_1 = arith.constant 0 : i32
    return %c0_i32, %c0_i32_0 : i32, i32
  }
  func.func @transform_14(%arg0: i32) -> (i32, i32) {
    %c0_i32 = arith.constant 0 : i32
    %c0_i32_0 = arith.constant 0 : i32
    %c0_i32_1 = arith.constant 0 : i32
    return %c0_i32, %c0_i32_0 : i32, i32
  }
  func.func @transform_15(%arg0: i32) -> (i32, i32) {
    %c0_i32 = arith.constant 0 : i32
    %c0_i32_0 = arith.constant 0 : i32
    %c0_i32_1 = arith.constant 0 : i32
    return %c0_i32, %c0_i32_0 : i32, i32
  }
  func.func @transform_16(%arg0: i32) -> (i32, i32, i32) {
    %c0_i32 = arith.constant 0 : i32
    %c0_i32_0 = arith.constant 0 : i32
    %c0_i32_1 = arith.constant 0 : i32
    return %arg0, %c0_i32, %c0_i32_0 : i32, i32, i32
  }
}

</mosaic_0001>

<bundles_post_ra>
// kernel: bigram_forward.1
= control target key start
LH: loop header
LB: loop body
LE: loop exit
PB: predicated region body
PF: predicated region fallthrough
CT: control target
= control target key end

     0   :  { %s14282_s0 = inlined_call_operand.vmem [shape: f32[2,16,128], index: 0, kind: input, shape index: {}]   ;;  %s14283_s1 = inlined_call_operand.vmem [shape: f32[4,1,128], index: 1, kind: input, shape index: {}]   ;;  %s14284_s2 = inlined_call_operand.vmem [shape: f32[4,1,128], index: 2, kind: input, shape index: {}]   ;;  %s14285_s3 = inlined_call_operand.hbm [shape: bf16[4,128,384], index: 3, kind: input, shape index: {}]   ;;  %s14286_s4 = inlined_call_operand.vmem [shape: bf16[4,128,128], index: 4, kind: input, shape index: {}]   ;;  %s14287_s5 = inlined_call_operand.vmem [shape: f32[4,1,128], index: 5, kind: input, shape index: {}]   ;;  %s14288_s6 = inlined_call_operand.vmem [shape: f32[4,1,128], index: 6, kind: input, shape index: {}]   ;;  %s14289_s7 = inlined_call_operand.vmem [shape: f32[4,1,128], index: 7, kind: input, shape index: {}]   ;;  %s14290_s8 = inlined_call_operand.hbm [shape: bf16[4,128,512], index: 8, kind: input, shape index: {}]   ;;  %s14291_s9 = inlined_call_operand.vmem [shape: f32[4,1,512], index: 9, kind: input, shape index: {}]   ;;  %s14292_s10 = inlined_call_operand.hbm [shape: bf16[4,512,128], index: 10, kind: input, shape index: {}]   ;;  %s14293_s11 = inlined_call_operand.vmem [shape: f32[4,1,128], index: 11, kind: input, shape index: {}]   ;;  %s14294_s12 = inlined_call_operand.vmem [shape: f32[1,128], index: 12, kind: input, shape index: {}]   ;;  %s14295_s13 = inlined_call_operand.vmem [shape: f32[1,128], index: 13, kind: input, shape index: {}]   ;;  %s14296_s14 = inlined_call_operand.vmem [shape: bf16[128,128], index: 14, kind: input, shape index: {}]   ;;  %s14297_s15 = inlined_call_operand.vmem [shape: f32[1,128], index: 15, kind: input, shape index: {}]   ;;  %s14298_s16 = inlined_call_operand.vmem [shape: bf16[2,16,128], index: 16, kind: output, shape index: {}]  }
   0x1   :  { %14300 = sst [smem:[#allocation9_spill]] %s14282_s0 }
   0x2   :  { %21 = vsyncpa [#allocation3], 0 }
   0x3   :  { %22 = vsyncpa [#allocation5], 0  ;;  %s12571_s21 = smov [#allocation4]  }
   0x4   :  { %s54_s22 = sshll.u32 %s12571_s21, 4  ;;  %s55_s22 = int_to_ptr.vmem [resolvable:$true] %s54_s22 }
   0x5   :  { %s12515_s23 = scalar_lea.vmem %s55_s22, 16384  ;;  %p12520_p1 = scmp.lt.s32.totalorder %s55_s22, %s55_s22 }
   0x6   :  { %p12516_p0 = scmp.ne.s32.totalorder %s55_s22, %s12515_s23  ;;  %p12521_p2 = scmp.lt.s32.totalorder %s12515_s23, %s12515_s23 }
   0x8   :  { %p12522_p3 = por %p12521_p2, %p12520_p1 }
   0xa   :  { %p12523_p4 = pnand %p12522_p3, %p12516_p0 }
   0xc   :  { %12526 = shalt.err (!%p12523_p4)
}
   0xd   :  { %s12572_s24 = smov 256   ;;  %s12573_s25 = smov 16  }
   0xe   :  { %60 = dma.hbm_to_vmem [thread:$0]  %s14290_s8, 16384, %s55_s22, [#allocation5], %s12572_s24, %s12572_s24, %s12573_s25  }
   0xf   :  { %s12574_s28 = smov [#allocation2]  }
  0x10   :  { %s34_s29 = sshll.u32 %s12574_s28, 4  ;;  %s35_s29 = int_to_ptr.vmem [resolvable:$true] %s34_s29 }
  0x11   :  { %s12535_s30 = scalar_lea.vmem %s35_s29, 12288  ;;  %p12540_p6 = scmp.lt.s32.totalorder %s35_s29, %s35_s29 }
  0x12   :  { %p12536_p5 = scmp.ne.s32.totalorder %s35_s29, %s12535_s30  ;;  %p12541_p7 = scmp.lt.s32.totalorder %s12535_s30, %s12535_s30 }
  0x14   :  { %p12542_p8 = por %p12541_p7, %p12540_p6 }
  0x16   :  { %p12543_p9 = pnand %p12542_p8, %p12536_p5 }
  0x18   :  { %12546 = shalt.err (!%p12543_p9)
}
  0x19   :  { %s12575_s0 = smov 192   ;;  %s12576_s17 = smov 12  }
  0x1a   :  { %40 = dma.hbm_to_vmem [thread:$0]  %s14285_s3, 12288, %s35_s29, [#allocation3], %s12575_s0, %s12575_s0, %s12576_s17  }
  0x1b   :  { %s12577_s20 = smov [#allocation6]  }
  0x1c   :  { %s68_s21 = sshll.u32 %s12577_s20, 4  ;;  %s69_s21 = int_to_ptr.vmem [resolvable:$true] %s68_s21 }
  0x1d   :  { %s12555_s8 = scalar_lea.vmem %s69_s21, 16384  ;;  %p12560_p11 = scmp.lt.s32.totalorder %s69_s21, %s69_s21 }
  0x1e   :  { %p12556_p10 = scmp.ne.s32.totalorder %s69_s21, %s12555_s8  ;;  %p12561_p12 = scmp.lt.s32.totalorder %s12555_s8, %s12555_s8 }
  0x20   :  { %p12562_p13 = por %p12561_p12, %p12560_p11 }
  0x22   :  { %p12563_p0 = pnand %p12562_p13, %p12556_p10 }
  0x24   :  { %12566 = shalt.err (!%p12563_p0)
}
  0x25   :  { %s12578_s22 = smov 64   ;;  %s12579_s23 = smov 4  }
  0x26   :  { %74 = dma.hbm_to_vmem [thread:$0]  %s14292_s10, 16384, %s69_s21, [#allocation5], %s12578_s22, %s12578_s22, %s12579_s23  }
  0x27   :  { %12567 = dma.done.wait [#allocation3], 12288  }
  0x28   :  { %12568 = vsyncadd [#allocation3], 4294955008 }
  0x29   :  { %12569 = dma.done.wait [#allocation5], 32768  }
  0x2a   :  { %12570 = vsyncadd [#allocation5], 4294934528  ;;  %s14301_s27 = sld [smem:[#allocation9_spill]]  ;;  %v11687_v4 = vld [vmem:[#allocation2 + $0xac] ss:$12 sps:$4 sm:$0xff]   ;;  %v12580_v40 = vmov 0  }
  0x2b   :  { %v11689_v5 = vld [vmem:[#allocation2 + $0xa8] ss:$12 sps:$4 sm:$0xff]   ;;  %335 = vmatprep.subr.bf16.mxu0 %v11687_v4  ;;  %v11692_v23 = vld [vmem:[#allocation2 + $0xb0] ss:$12 sps:$4 sm:$0xff]   ;;  %v11696_v26 = vld [vmem:[#allocation2 + $0x98] ss:$12 sps:$4 sm:$0xff]   ;;  %367 = vmatprep.mubr.bf16.mxu0 %v12580_v40 }
  0x2c   :  { %336 = vmatpush1.bf16.msra.mxu0 %v11689_v5  ;;  %v11690_v22 = vld [vmem:[#allocation2 + $0x94] ss:$12 sps:$4 sm:$0xff]   ;;  %v11693_v24 = vld [vmem:[#allocation2 + $0x90] ss:$12 sps:$4 sm:$0xff]   ;;  %11061 = vmatprep.subr.bf16.mxu1 %v11692_v23  ;;  %v11697_v27 = vld [vmem:[#allocation2 + $0x78] ss:$12 sps:$4 sm:$0xff]  }
  0x2d   :  { %337 = vmatprep.subr.bf16.mxu0 %v11690_v22  ;;  %11062 = vmatpush3.bf16.msra.mxu1 %v11692_v23  ;;  %v11694_v25 = vld [vmem:[#allocation2 + $0x7c] ss:$12 sps:$4 sm:$0xff]   ;;  %v11698_v28 = vld [vmem:[#allocation2 + $0x64] ss:$12 sps:$4 sm:$0xff]   ;;  %v11700_v29 = vld [vmem:[#allocation2 + $0x80] ss:$12 sps:$4 sm:$0xff]  }
  0x2e   :  { %11063 = vmatprep.subr.bf16.mxu1 %v11696_v26  ;;  %v11701_v30 = vld [vmem:[#allocation2 + $0x60] ss:$12 sps:$4 sm:$0xff]   ;;  %v11704_v32 = vld [vmem:[#allocation2 + $0x68] ss:$12 sps:$4 sm:$0xff]   ;;  %v11708_v35 = vld [vmem:[#allocation2 + $0x50] ss:$12 sps:$4 sm:$0xff]  }
  0x2f   :  { %v11702_v31 = vld [vmem:[#allocation2 + $0x4c] ss:$12 sps:$4 sm:$0xff]   ;;  %v11705_v33 = vld [vmem:[#allocation2 + $0x48] ss:$12 sps:$4 sm:$0xff]   ;;  %v11709_v36 = vld [vmem:[#allocation2 + $0x30] ss:$12 sps:$4 sm:$0xff]  }
  0x30   :  { %v95_v0 = vld [vmem:[%s14301_s27] sm:$0xff]  ;;  %v97_v1 = vld [vmem:[%s14301_s27 + $0x10] sm:$0xff]  ;;  %v96_v2 = vld [vmem:[%s14301_s27 + $0x8] sm:$0xff]  ;;  %338 = vmatpush1.bf16.msra.mxu0 %v11693_v24  ;;  %vm12582_vm0 = vmmov 0   ;;  %vm463_vm1 = vcmask 261120   ;;  %vm566_vm3 = vcmask 130048  }
  0x31   :  { %108 = vadd.xlane.f32.xlu0 %v95_v0  ;;  %112 = vadd.xlane.f32.xlu1 %v97_v1  ;;  %v98_v3 = vld [vmem:[%s14301_s27 + $0x18] sm:$0xff]  ;;  %v11706_v34 = vld [vmem:[#allocation2 + $0x34] ss:$12 sps:$4 sm:$0xff]   ;;  %v11714_v41 = vld [vmem:[#allocation2 + $0x4] ss:$12 sps:$4 sm:$0xff]   ;;  %s12583_s8 = smov 96  }
  0x32   :  { %339 = vmatprep.subr.bf16.mxu0 %v11694_v25  ;;  %11064 = vmatpush3.bf16.msra.mxu1 %v11696_v26  ;;  %v11710_v37 = vld [vmem:[#allocation2 + $0x1c] ss:$12 sps:$4 sm:$0xff]   ;;  %v11712_v38 = vld [vmem:[#allocation2 + $0x38] ss:$12 sps:$4 sm:$0xff]   ;;  %v11716_v42 = vld [vmem:[#allocation2 + $0x20] ss:$12 sps:$4 sm:$0xff]  }
  0x33   :  { %11065 = vmatprep.subr.bf16.mxu1 %v11700_v29  ;;  %v11713_v39 = vld [vmem:[#allocation2 + $0x18] ss:$12 sps:$4 sm:$0xff]   ;;  %v11717_v43 = vld [vmem:[#allocation2] ss:$12 sps:$4 sm:$0xff]   ;;  %v11718_v44 = vld [vmem:[#allocation2 + $0x8] ss:$12 sps:$4 sm:$0xff]  }
  0x34   :  { %340 = vmatpush1.bf16.msra.mxu0 %v11697_v27  ;;  %v9992_v59 = vld [vmem:[%s14283_s1] ss:$0 sm:$0xff]  ;;  %s12584_s0 = smov 32  }
  0x35   :  { %110 = vadd.xlane.f32.xlu0 %v96_v2  ;;  %114 = vadd.xlane.f32.xlu1 %v98_v3 }
  0x36   :  { %341 = vmatprep.subr.bf16.mxu0 %v11698_v28  ;;  %11066 = vmatpush3.bf16.msra.mxu1 %v11700_v29 }
  0x37   :  { %11067 = vmatprep.subr.bf16.mxu1 %v11704_v32 }
  0x38   :  { %342 = vmatpush1.bf16.msra.mxu0 %v11701_v30 }
  0x39   :  { %343 = vmatprep.subr.bf16.mxu0 %v11702_v31 }
  0x3a   :  { %11068 = vmatpush3.bf16.msra.mxu1 %v11704_v32 }
  0x3b   :  { %11069 = vmatprep.subr.bf16.mxu1 %v11708_v35 }
  0x3c   :  { %344 = vmatpush1.bf16.msra.mxu0 %v11705_v33 }
  0x3d   :  { %345 = vmatprep.subr.bf16.mxu0 %v11706_v34 }
  0x3e   :  { %11070 = vmatpush3.bf16.msra.mxu1 %v11708_v35 }
  0x3f   :  { %11071 = vmatprep.subr.bf16.mxu1 %v11712_v38 }
  0x40   :  { %346 = vmatpush1.bf16.msra.mxu0 %v11709_v36 }
  0x41   :  { %347 = vmatprep.subr.bf16.mxu0 %v11710_v37 }
  0x42   :  { %11072 = vmatpush3.bf16.msra.mxu1 %v11712_v38  ;;  %v99_v38 = vlaneseq }
  0x43   :  { %11073 = vmatprep.subr.bf16.mxu1 %v11716_v42 }
  0x44   :  { %348 = vmatpush1.bf16.msra.mxu0 %v11713_v39  ;;  %v12757_v39 = vshrl.u32 %v99_v38, 7 }
  0x45   :  { %349 = vmatprep.subr.bf16.mxu0 %v11714_v41  ;;  %v103_v41 = vand.u32 127, %v99_v38 }
  0x46   :  { %11074 = vmatpush3.bf16.msra.mxu1 %v11716_v42 }
  0x47   :  { %11075 = vmatprep.subr.bf16.mxu1 %v11718_v44  ;;  %vm12760_vm2 = vcmp.ge.s32.totalorder %v12757_v39, %v103_v41 }
  0x48   :  { %350 = vmatpush1.bf16.msra.mxu0 %v11717_v43  ;;  %v101_v43 = vadd.s32 8, %v12757_v39 }
  0x4a   :  { %11076 = vmatpush3.bf16.msra.mxu1 %v11718_v44  ;;  %vm12768_vm4 = vcmp.ge.s32.totalorder %v101_v43, %v103_v41 }
  0xba   :  { %v109_v6 = vpop.xlane.xlu0 %108  ;;  %v113_v7 = vpop.xlane.xlu1 %112 }
  0xbb   :  { %v117_v8 = vmul.f32 0.0078125, %v109_v6  ;;  %v119_v9 = vmul.f32 0.0078125, %v113_v7 }
  0xbd   :  { %v12693_v10 = vsub.f32 %v95_v0, %v117_v8  ;;  %v12695_v11 = vsub.f32 %v97_v1, %v119_v9  ;;  %v9993_v0 = vld [vmem:[%s14284_s2] ss:$0 sm:$0xff] }
  0xbe   :  { %v111_v12 = vpop.xlane.xlu0 %110  ;;  %v115_v13 = vpop.xlane.xlu1 %114 }
  0xbf   :  { %v118_v14 = vmul.f32 0.0078125, %v111_v12  ;;  %v125_v15 = vmul.f32 %v12693_v10, %v12693_v10  ;;  %v120_v16 = vmul.f32 0.0078125, %v115_v13  ;;  %v127_v17 = vmul.f32 %v12695_v11, %v12695_v11 }
  0xc1   :  { %129 = vadd.xlane.f32.xlu0 %v125_v15  ;;  %v12701_v18 = vsub.f32 %v96_v2, %v118_v14  ;;  %v12703_v19 = vsub.f32 %v98_v3, %v120_v16  ;;  %v12581_v14 = vmov 0.0  }
  0xc2   :  { %11081 = vmatprep.subr.bf16.mxu1 %v12581_v14  ;;  %11099 = vmatprep.subr.bf16.mxu0 %v12581_v14 }
  0xc3   :  { %v126_v20 = vmul.f32 %v12701_v18, %v12701_v18  ;;  %v128_v21 = vmul.f32 %v12703_v19, %v12703_v19 }
  0xc5   :  { %133 = vadd.xlane.f32.xlu0 %v127_v17  ;;  %131 = vadd.xlane.f32.xlu1 %v126_v20 }
  0xc9   :  { %135 = vadd.xlane.f32.xlu1 %v128_v21 }
 0x14a   :  { %v130_v45 = vpop.xlane.xlu0 %129 }
 0x14b   :  { %v137_v46 = vmul.f32 0.0078125, %v130_v45 }
 0x14d   :  { %v141_v47 = vadd.f32 1e-05, %v137_v46 }
 0x14e   :  { %v132_v48 = vpop.xlane.xlu1 %131  ;;  %v134_v49 = vpop.xlane.xlu0 %133 }
 0x14f   :  { %12175 = vrsqrt.f32 %v141_v47  ;;  %v138_v50 = vmul.f32 0.0078125, %v132_v48  ;;  %v139_v51 = vmul.f32 0.0078125, %v134_v49 }
 0x151   :  { %v142_v52 = vadd.f32 1e-05, %v138_v50  ;;  %v143_v53 = vadd.f32 1e-05, %v139_v51 }
 0x152   :  { %v136_v54 = vpop.xlane.xlu1 %135 }
 0x153   :  { %12177 = vrsqrt.f32 %v142_v52  ;;  %v140_v55 = vmul.f32 0.0078125, %v136_v54 }
 0x154   :  { %12179 = vrsqrt.f32 %v143_v53 }
 0x155   :  { %v144_v56 = vadd.f32 1e-05, %v140_v55 }
 0x157   :  { %12181 = vrsqrt.f32 %v144_v56 }
 0x15c   :  { %v12176_v57 = vpop.eup %12175 }
 0x15d   :  { %v149_v58 = vmul.f32 %v12176_v57, %v12693_v10 }
 0x15f   :  { %v159_v63 = vmul.f32 %v9992_v59, %v149_v58 }
 0x160   :  { %v12178_v60 = vpop.eup %12177 }
 0x161   :  { %v12180_v61 = vpop.eup %12179  ;;  %v150_v62 = vmul.f32 %v12178_v60, %v12701_v18  ;;  %v169_v4 = vadd.f32 %v9993_v0, %v159_v63 }
 0x162   :  { %v151_v1 = vmul.f32 %v12180_v61, %v12695_v11 }
 0x163   :  { %v160_v2 = vmul.f32 %v9992_v59, %v150_v62 }
 0x164   :  { %v12182_v3 = vpop.eup %12181  ;;  %v161_v7 = vmul.f32 %v9992_v59, %v151_v1 }
 0x165   :  { %v170_v5 = vadd.f32 %v9993_v0, %v160_v2  ;;  %v152_v6 = vmul.f32 %v12182_v3, %v12703_v19 }
 0x166   :  { %v171_v10 = vadd.f32 %v9993_v0, %v161_v7 }
 0x167   :  { %v173_v8 = vpack.c.bf16 %v170_v5, %v169_v4  ;;  %v162_v9 = vmul.f32 %v9992_v59, %v152_v6 }
 0x169   :  { %368 = vmatmul.mubr.bf16.vlgmr.msra.gmra.mxu0 %v173_v8  ;;  %11077 = vmatprep.mubr.bf16.mxu1 %v173_v8  ;;  %v172_v12 = vadd.f32 %v9993_v0, %v162_v9 }
 0x16a   :  { %377 = vmatprep.mubr.bf16.mxu0 %v12580_v40 }
 0x16b   :  { %v174_v13 = vpack.c.bf16 %v172_v12, %v171_v10 }
 0x16d   :  { %11078 = vmatmul.mubr.bf16.vlgmr.msra.gmra.mxu1 %v174_v13 }
 0x16e   :  { %11083 = vmatprep.mubr.msk.bf16.mxu1 %vm12582_vm0, %v12581_v14 }
 0x171   :  { %378 = vmatmul.mubr.bf16.gmra.mxu0 %v174_v13 }
 0x172   :  { %11101 = vmatprep.mubr.msk.bf16.mxu0 %vm12582_vm0, %v12581_v14 }
 0x229   :  { %v369_v11 = vpop.f32.mrf.mxu0 }
 0x22a   :  { %v437_v28 = vmul.f32 0.088388346, %v369_v11 }
 0x22b   :  { %v371_v15 = vpop.f32.mrf.mxu0 }
 0x22d   :  { %v373_v16 = vpop.f32.mrf.mxu0  ;;  %v11079_v17 = vpop.f32.mrf.mxu1 }
 0x22e   :  { %v438_v26 = vmul.f32 0.088388346, %v373_v16 }
 0x22f   :  { %v375_v18 = vpop.f32.mrf.mxu0  ;;  %v422_v19 = vpop.f32.mrf.mxu1 }
 0x230   :  { %v12727_v20 = vpack.c.bf16 %v375_v18, %v371_v15  ;;  %v12736_v30 = vpack.c.bf16 %v438_v26, %v437_v28 }
 0x231   :  { %v379_v21 = vpop.f32.mrf.mxu0  ;;  %v11080_v22 = vpop.f32.mrf.mxu1 }
 0x232   :  { %v12729_v23 = vpack.c.bf16 %v11080_v22, %v11079_v17  ;;  %v468_v24 = vsel %vm463_vm1, %v12727_v20, 0  ;;  %v439_v34 = vmul.f32 0.088388346, %v379_v21 }
 0x233   :  { %v381_v25 = vpop.f32.mrf.mxu0  ;;  %11082 = vmatpush3.bf16.xpose.msra.mxu1 %v468_v24  ;;  %v425_v35 = vpop.f32.mrf.mxu1 }
 0x234   :  { %11100 = vmatpush3.bf16.msra.mxu0 %v12729_v23  ;;  %11087 = vmatprep.subr.bf16.mxu1 %v12581_v14  ;;  %v12749_v37 = vpack.c.bf16 %v425_v35, %v422_v19 }
 0x235   :  { %v383_v27 = vpop.f32.mrf.mxu0  ;;  %11111 = vmatprep.subr.bf16.mxu0 %v12581_v14 }
 0x236   :  { %v440_v33 = vmul.f32 0.088388346, %v383_v27 }
 0x237   :  { %v385_v29 = vpop.f32.mrf.mxu0 }
 0x238   :  { %v12738_v31 = vpack.c.bf16 %v385_v29, %v381_v25  ;;  %v12747_v36 = vpack.c.bf16 %v440_v33, %v439_v34 }
 0x23a   :  { %11084 = vmatmul.mubr.msk.bf16.vlgmr.msra.gmra.mxu1 %vm463_vm1, %v12736_v30  ;;  %v515_v32 = vsel %vm463_vm1, %v12738_v31, 0 }
 0x23b   :  { %11088 = vmatpush3.bf16.xpose.msra.mxu1 %v515_v32  ;;  %11089 = vmatprep.mubr.msk.bf16.mxu1 %vm12582_vm0, %v12581_v14 }
 0x23c   :  { %11093 = vmatprep.subr.bf16.mxu1 %v12581_v14 }
 0x242   :  { %11090 = vmatmul.mubr.msk.bf16.vlgmr.msra.gmra.mxu1 %vm463_vm1, %v12747_v36 }
 0x243   :  { %11094 = vmatpush3.bf16.msra.mxu1 %v12749_v37  ;;  %11095 = vmatprep.mubr.msk.bf16.mxu1 %vm12582_vm0, %v12581_v14 }
 0x244   :  { %11105 = vmatprep.subr.bf16.mxu1 %v12581_v14 }
 0x2fa   :  { %v504_v44 = vpop.f32.mrf.mxu1 }
 0x2fb   :  { %v562_v45 = vsel %vm12760_vm2, %v504_v44, -1e+30 }
 0x2fc   :  { %v11085_v46 = vpop.f32.mrf.mxu1  ;;  %v567_v47 = vsel %vm566_vm3, %v562_v45, -inf }
 0x2fd   :  { %568 = vmax.xlane.f32.xlu0 %v567_v47 }
 0x2fe   :  { %v507_v49 = vpop.f32.mrf.mxu1 }
 0x2ff   :  { %v563_v50 = vsel %vm12768_vm4, %v507_v49, -1e+30 }
 0x300   :  { %v11086_v51 = vpop.f32.mrf.mxu1  ;;  %v570_v52 = vsel %vm566_vm3, %v563_v50, -inf }
 0x301   :  { %571 = vmax.xlane.f32.xlu1 %v570_v52 }
 0x302   :  { %v551_v53 = vpop.f32.mrf.mxu1 }
 0x303   :  { %v564_v54 = vsel %vm12760_vm2, %v551_v53, -1e+30 }
 0x304   :  { %v11091_v55 = vpop.f32.mrf.mxu1  ;;  %v573_v56 = vsel %vm566_vm3, %v564_v54, -inf }
 0x305   :  { %574 = vmax.xlane.f32.xlu0 %v573_v56 }
 0x306   :  { %v554_v57 = vpop.f32.mrf.mxu1 }
 0x307   :  { %v565_v59 = vsel %vm12768_vm4, %v554_v57, -1e+30 }
 0x308   :  { %v11092_v58 = vpop.f32.mrf.mxu1  ;;  %v576_v60 = vsel %vm566_vm3, %v565_v59, -inf }
 0x312   :  { %760 = vrot.lane.b32.xlu1 %v12738_v31, %s12583_s8 }
 0x31b   :  { %707 = vrot.lane.b32.xlu0 %v12727_v20, %s12583_s8 }
 0x336   :  { %577 = vmax.xlane.f32.xlu1 %v576_v60 }
 0x347   :  { %704 = vrot.lane.b32.xlu1 %v12736_v30, %s12583_s8 }
 0x34b   :  { %757 = vrot.lane.b32.xlu1 %v12747_v36, %s12583_s8 }
 0x386   :  { %v569_v61 = vpop.xlane.xlu0 %568 }
 0x387   :  { %v579_v62 = vsub.f32 %v562_v45, %v569_v61 }
 0x389   :  { %v583_v63 = vmul.f32 1.442695, %v579_v62 }
 0x38a   :  { %v572_v0 = vpop.xlane.xlu1 %571 }
 0x38b   :  { %v580_v1 = vsub.f32 %v563_v50, %v572_v0  ;;  %12183 = vpow2.f32 %v583_v63 }
 0x38d   :  { %v585_v2 = vmul.f32 1.442695, %v580_v1  ;;  %v11719_v1 = vld [vmem:[%s14286_s4 + $0x8] sm:$0xff]  }
 0x38e   :  { %v575_v3 = vpop.xlane.xlu0 %574  ;;  %v761_v9 = vpop.permute.xlu1 %760 }
 0x38f   :  { %12185 = vpow2.f32 %v585_v2  ;;  %v581_v10 = vsub.f32 %v564_v54, %v575_v3  ;;  %v766_v21 = vsel %vm463_vm1, %v761_v9, 0 }
 0x391   :  { %v587_v12 = vmul.f32 1.442695, %v581_v10 }
 0x392   :  { %v708_v6 = vpop.permute.xlu0 %707 }
 0x393   :  { %v713_v8 = vsel %vm463_vm1, %v708_v6, 0  ;;  %12187 = vpow2.f32 %v587_v12 }
 0x398   :  { %v12789_v4 = vpop.eup %12183 }
 0x399   :  { %v591_v58 = vsel %vm566_vm3, %v12789_v4, 0.0 }
 0x39c   :  { %v12186_v5 = vpop.eup %12185 }
 0x39d   :  { %v603_v7 = vpack.c.bf16 %v12186_v5, %v12789_v4  ;;  %v594_v56 = vsel %vm566_vm3, %v12186_v5, 0.0 }
 0x39f   :  { %11096 = vmatmul.mubr.msk.bf16.vlgmr.msra.gmra.mxu1 %vm566_vm3, %v603_v7 }
 0x3a0   :  { %11106 = vmatpush3.bf16.xpose.msra.mxu1 %v713_v8  ;;  %11107 = vmatprep.mubr.msk.bf16.mxu1 %vm12582_vm0, %v12581_v14  ;;  %v12188_v17 = vpop.eup %12187 }
 0x3a1   :  { %11117 = vmatprep.subr.bf16.mxu1 %v12581_v14 }
 0x3bf   :  { %v578_v13 = vpop.xlane.xlu1 %577 }
 0x3c0   :  { %v582_v11 = vsub.f32 %v565_v59, %v578_v13  ;;  %v597_v59 = vsel %vm566_vm3, %v12188_v17, 0.0 }
 0x3c2   :  { %v589_v15 = vmul.f32 1.442695, %v582_v11 }
 0x3c3   :  { %v705_v16 = vpop.permute.xlu1 %704 }
 0x3c4   :  { %12189 = vpow2.f32 %v589_v15  ;;  %11108 = vmatmul.mubr.msk.bf16.vlgmr.msra.gmra.mxu1 %vm463_vm1, %v705_v16 }
 0x3c5   :  { %11119 = vmatprep.mubr.msk.bf16.mxu1 %vm12582_vm0, %v12581_v14 }
 0x3c7   :  { %v758_v22 = vpop.permute.xlu1 %757 }
 0x3d1   :  { %v12190_v18 = vpop.eup %12189 }
 0x3d2   :  { %v604_v19 = vpack.c.bf16 %v12190_v18, %v12188_v17  ;;  %v600_v57 = vsel %vm566_vm3, %v12190_v18, 0.0 }
 0x3d4   :  { %11102 = vmatmul.mubr.msk.bf16.vlgmr.msra.gmra.mxu0 %vm566_vm3, %v604_v19 }
 0x3d5   :  { %11112 = vmatpush3.bf16.xpose.msra.mxu0 %v766_v21  ;;  %11113 = vmatprep.mubr.msk.bf16.mxu0 %vm12582_vm0, %v12581_v14 }
 0x3d6   :  { %11123 = vmatprep.subr.bf16.mxu0 %v12581_v14 }
 0x3dc   :  { %11114 = vmatmul.mubr.msk.bf16.vlgmr.msra.gmra.mxu0 %vm463_vm1, %v758_v22  ;;  %v11720_v22 = vld [vmem:[%s14286_s4] sm:$0xff]  }
 0x3dd   :  { %11125 = vmatprep.mubr.msk.bf16.mxu0 %vm12582_vm0, %v12581_v14 }
 0x45f   :  { %v12808_v24 = vpop.f32.mrf.mxu1 }
 0x461   :  { %v11097_v25 = vpop.f32.mrf.mxu1 }
 0x463   :  { %v12810_v26 = vpop.f32.mrf.mxu1 }
 0x465   :  { %v11098_v27 = vpop.f32.mrf.mxu1 }
 0x484   :  { %v749_v28 = vpop.f32.mrf.mxu1 }
 0x485   :  { %v809_v29 = vsel %vm12760_vm2, %v749_v28, -1e+30 }
 0x486   :  { %v11109_v32 = vpop.f32.mrf.mxu1  ;;  %v813_v33 = vsel %vm566_vm3, %v809_v29, -inf }
 0x487   :  { %814 = vmax.xlane.f32.xlu0 %v813_v33 }
 0x488   :  { %v752_v34 = vpop.f32.mrf.mxu1 }
 0x489   :  { %v810_v35 = vsel %vm12768_vm4, %v752_v34, -1e+30 }
 0x48a   :  { %v11110_v38 = vpop.f32.mrf.mxu1  ;;  %v816_v41 = vsel %vm566_vm3, %v810_v35, -inf }
 0x48b   :  { %817 = vmax.xlane.f32.xlu1 %v816_v41 }
 0x494   :  { %v12818_v43 = vpop.f32.mrf.mxu0 }
 0x496   :  { %v11103_v44 = vpop.f32.mrf.mxu0 }
 0x498   :  { %v12820_v45 = vpop.f32.mrf.mxu0 }
 0x49a   :  { %v11104_v46 = vpop.f32.mrf.mxu0 }
 0x49c   :  { %v802_v47 = vpop.f32.mrf.mxu0  ;;  %900 = vrot.lane.b32.xlu1 %v12729_v23, %s12583_s8 }
 0x49d   :  { %v811_v49 = vsel %vm12760_vm2, %v802_v47, -1e+30 }
 0x49e   :  { %v11115_v50 = vpop.f32.mrf.mxu0  ;;  %v819_v51 = vsel %vm566_vm3, %v811_v49, -inf }
 0x49f   :  { %820 = vmax.xlane.f32.xlu0 %v819_v51 }
 0x4a0   :  { %v805_v52 = vpop.f32.mrf.mxu0 }
 0x4a1   :  { %v812_v53 = vsel %vm12768_vm4, %v805_v52, -1e+30 }
 0x4a2   :  { %v11116_v54 = vpop.f32.mrf.mxu0  ;;  %v822_v55 = vsel %vm566_vm3, %v812_v53, -inf }
 0x4a3   :  { %823 = vmax.xlane.f32.xlu0 %v822_v55 }
 0x4b9   :  { %852 = vrot.lane.b32.xlu0 %v12749_v37, %s12583_s8 }
 0x4c0   :  { %595 = vadd.xlane.f32.xlu1 %v594_v56 }
 0x4c4   :  { %601 = vadd.xlane.f32.xlu1 %v600_v57 }
 0x4d8   :  { %592 = vadd.xlane.f32.xlu0 %v591_v58 }
 0x4dc   :  { %598 = vadd.xlane.f32.xlu0 %v597_v59 }
 0x510   :  { %v815_v60 = vpop.xlane.xlu0 %814 }
 0x511   :  { %v825_v61 = vsub.f32 %v809_v29, %v815_v60 }
 0x513   :  { %v829_v62 = vmul.f32 1.442695, %v825_v61 }
 0x514   :  { %v818_v63 = vpop.xlane.xlu1 %817 }
 0x515   :  { %12191 = vpow2.f32 %v829_v62  ;;  %v826_v0 = vsub.f32 %v810_v35, %v818_v63 }
 0x517   :  { %v831_v2 = vmul.f32 1.442695, %v826_v0 }
 0x518   :  { %v901_v3 = vpop.permute.xlu1 %900 }
 0x519   :  { %12193 = vpow2.f32 %v831_v2  ;;  %11124 = vmatpush3.bf16.msra.mxu0 %v901_v3 }
 0x51a   :  { %11137 = vmatprep.subr.bf16.mxu0 %v11719_v1 }
 0x522   :  { %v12192_v4 = vpop.eup %12191 }
 0x523   :  { %v837_v5 = vsel %vm566_vm3, %v12192_v4, 0.0 }
 0x524   :  { %838 = vadd.xlane.f32.xlu1 %v837_v5 }
 0x526   :  { %v12194_v6 = vpop.eup %12193 }
 0x527   :  { %v840_v7 = vsel %vm566_vm3, %v12194_v6, 0.0  ;;  %v849_v16 = vpack.c.bf16 %v12194_v6, %v12192_v4 }
 0x528   :  { %v821_v8 = vpop.xlane.xlu0 %820  ;;  %841 = vadd.xlane.f32.xlu0 %v840_v7 }
 0x529   :  { %v827_v9 = vsub.f32 %v811_v49, %v821_v8 }
 0x52b   :  { %v833_v10 = vmul.f32 1.442695, %v827_v9 }
 0x52c   :  { %v824_v12 = vpop.xlane.xlu0 %823 }
 0x52d   :  { %12195 = vpow2.f32 %v833_v10  ;;  %v828_v13 = vsub.f32 %v812_v53, %v824_v12 }
 0x52f   :  { %v835_v11 = vmul.f32 1.442695, %v828_v13 }
 0x530   :  { %v853_v15 = vpop.permute.xlu0 %852 }
 0x531   :  { %12197 = vpow2.f32 %v835_v11  ;;  %11118 = vmatpush3.bf16.msra.mxu1 %v853_v15 }
 0x534   :  { %11120 = vmatmul.mubr.msk.bf16.vlgmr.msra.gmra.mxu1 %vm566_vm3, %v849_v16 }
 0x535   :  { %1144 = vrot.lane.b32.xlu1 %v12738_v31, %s12578_s22 }
 0x53a   :  { %v12196_v17 = vpop.eup %12195 }
 0x53b   :  { %v843_v18 = vsel %vm566_vm3, %v12196_v17, 0.0 }
 0x53c   :  { %844 = vadd.xlane.f32.xlu0 %v843_v18 }
 0x53e   :  { %v12198_v19 = vpop.eup %12197 }
 0x53f   :  { %v850_v21 = vpack.c.bf16 %v12198_v19, %v12196_v17  ;;  %v846_v25 = vsel %vm566_vm3, %v12198_v19, 0.0 }
 0x541   :  { %11126 = vmatmul.mubr.msk.bf16.vlgmr.msra.gmra.mxu0 %vm566_vm3, %v850_v21 }
 0x542   :  { %11138 = vmatpush3.bf16.msra.mxu0 %v11719_v1 }
 0x543   :  { %11139 = vmatprep.subr.bf16.mxu0 %v11720_v22 }
 0x546   :  { %11140 = vmatpush3.bf16.msra.mxu0 %v11720_v22 }
 0x547   :  { %11151 = vmatprep.subr.bf16.mxu0 %v12581_v14 }
 0x549   :  { %v596_v27 = vpop.xlane.xlu1 %595 }
 0x54a   :  { %12199 = vrcp.f32 %v596_v27 }
 0x54d   :  { %v602_v28 = vpop.xlane.xlu1 %601 }
 0x552   :  { %1093 = vrot.lane.b32.xlu0 %v12727_v20, %s12578_s22 }
 0x557   :  { %v12200_v33 = vpop.eup %12199 }
 0x558   :  { %v698_v38 = vmul.f32 %v12200_v33, %v12810_v26  ;;  %v11722_v26 = vld [vmem:[%s14286_s4 + $0x10] sm:$0xff]  }
 0x559   :  { %847 = vadd.xlane.f32.xlu1 %v846_v25 }
 0x561   :  { %v593_v29 = vpop.xlane.xlu0 %592 }
 0x562   :  { %12201 = vrcp.f32 %v593_v29 }
 0x563   :  { %12203 = vrcp.f32 %v602_v28 }
 0x565   :  { %v599_v32 = vpop.xlane.xlu0 %598 }
 0x566   :  { %12205 = vrcp.f32 %v599_v32 }
 0x56a   :  { %1091 = vrot.lane.b32.xlu1 %v12736_v30, %s12578_s22 }
 0x56e   :  { %1142 = vrot.lane.b32.xlu1 %v12747_v36, %s12578_s22 }
 0x56f   :  { %v12202_v34 = vpop.eup %12201 }
 0x570   :  { %v697_v35 = vmul.f32 %v12202_v34, %v12808_v24  ;;  %v12204_v41 = vpop.eup %12203  ;;  %v11721_v24 = vld [vmem:[%s14286_s4 + $0x18] sm:$0xff]  }
 0x571   :  { %v700_v49 = vmul.f32 %v12204_v41, %v12820_v45  ;;  %11129 = vmatprep.subr.bf16.mxu1 %v11721_v24 }
 0x572   :  { %v701_v44 = vpack.c.bf16 %v698_v38, %v697_v35  ;;  %11130 = vmatpush3.bf16.msra.mxu1 %v11721_v24 }
 0x573   :  { %v12206_v46 = vpop.eup %12205  ;;  %11131 = vmatprep.subr.bf16.mxu1 %v11722_v26 }
 0x574   :  { %11141 = vmatprep.mubr.msk.bf16.mxu0 %vm463_vm1, %v701_v44  ;;  %v699_v47 = vmul.f32 %v12206_v46, %v12818_v43 }
 0x576   :  { %v702_v50 = vpack.c.bf16 %v700_v49, %v699_v47  ;;  %11132 = vmatpush3.bf16.msra.mxu1 %v11722_v26 }
 0x577   :  { %11145 = vmatprep.subr.bf16.mxu1 %v12581_v14 }
 0x578   :  { %11142 = vmatmul.mubr.msk.bf16.vlgmr.msra.gmra.mxu0 %vm463_vm1, %v702_v50 }
 0x579   :  { %11153 = vmatprep.mubr.msk.bf16.mxu0 %vm12582_vm0, %v12581_v14 }
 0x5ad   :  { %v839_v43 = vpop.xlane.xlu1 %838 }
 0x5ae   :  { %12207 = vrcp.f32 %v839_v43 }
 0x5b1   :  { %v1145_v45 = vpop.permute.xlu1 %1144  ;;  %v842_v54 = vpop.xlane.xlu0 %841 }
 0x5b2   :  { %v1150_v51 = vsel %vm463_vm1, %v1145_v45, 0  ;;  %12209 = vrcp.f32 %v842_v54 }
 0x5b3   :  { %11152 = vmatpush3.bf16.xpose.msra.mxu0 %v1150_v51 }
 0x5b4   :  { %11163 = vmatprep.subr.bf16.mxu0 %v12581_v14 }
 0x5bb   :  { %v12208_v59 = vpop.eup %12207 }
 0x5bf   :  { %v12210_v60 = vpop.eup %12209 }
 0x5c5   :  { %v845_v56 = vpop.xlane.xlu0 %844 }
 0x5c6   :  { %12211 = vrcp.f32 %v845_v56 }
 0x5c9   :  { %v1094_v9 = vpop.permute.xlu0 %1093 }
 0x5ca   :  { %v1099_v13 = vsel %vm463_vm1, %v1094_v9, 0  ;;  %v11724_v9 = vld [vmem:[%s14286_s4 + $0x20] sm:$0xff]  }
 0x5d3   :  { %v12212_v4 = vpop.eup %12211 }
 0x5e2   :  { %v848_v52 = vpop.xlane.xlu1 %847 }
 0x5e3   :  { %12213 = vrcp.f32 %v848_v52 }
 0x5e6   :  { %v1092_v53 = vpop.permute.xlu1 %1091 }
 0x5ea   :  { %v1143_v55 = vpop.permute.xlu1 %1142 }
 0x5eb   :  { %11154 = vmatmul.mubr.msk.bf16.vlgmr.msra.gmra.mxu0 %vm463_vm1, %v1143_v55 }
 0x5ec   :  { %11165 = vmatprep.mubr.msk.bf16.mxu0 %vm12582_vm0, %v12581_v14 }
 0x5f0   :  { %v12214_v5 = vpop.eup %12213 }
 0x5f4   :  { %v892_v57 = vpop.f32.mrf.mxu1 }
 0x5f5   :  { %v951_v62 = vmul.f32 %v12208_v59, %v892_v57 }
 0x5f6   :  { %v11121_v58 = vpop.f32.mrf.mxu1 }
 0x5f8   :  { %v895_v61 = vpop.f32.mrf.mxu1 }
 0x5f9   :  { %v952_v63 = vmul.f32 %v12210_v60, %v895_v61 }
 0x5fa   :  { %v11122_v0 = vpop.f32.mrf.mxu1 }
 0x5fb   :  { %v955_v1 = vpack.c.bf16 %v952_v63, %v951_v62 }
 0x5fd   :  { %11133 = vmatprep.mubr.msk.bf16.mxu1 %vm463_vm1, %v955_v1 }
 0x601   :  { %v940_v2 = vpop.f32.mrf.mxu0 }
 0x602   :  { %v953_v7 = vmul.f32 %v12212_v4, %v940_v2 }
 0x603   :  { %v11127_v3 = vpop.f32.mrf.mxu0 }
 0x605   :  { %v943_v6 = vpop.f32.mrf.mxu0 }
 0x606   :  { %v954_v8 = vmul.f32 %v12214_v5, %v943_v6 }
 0x607   :  { %v11128_v10 = vpop.f32.mrf.mxu0 }
 0x608   :  { %v956_v12 = vpack.c.bf16 %v954_v8, %v953_v7  ;;  %v11723_v8 = vld [vmem:[%s14286_s4 + $0x28] sm:$0xff]  }
 0x60a   :  { %11134 = vmatmul.mubr.msk.bf16.vlgmr.msra.gmra.mxu1 %vm463_vm1, %v956_v12 }
 0x60b   :  { %11146 = vmatpush3.bf16.xpose.msra.mxu1 %v1099_v13  ;;  %11147 = vmatprep.mubr.msk.bf16.mxu1 %vm12582_vm0, %v12581_v14 }
 0x60c   :  { %11157 = vmatprep.subr.bf16.mxu1 %v12581_v14 }
 0x612   :  { %11148 = vmatmul.mubr.msk.bf16.vlgmr.msra.gmra.mxu1 %vm463_vm1, %v1092_v53 }
 0x613   :  { %11159 = vmatprep.mubr.msk.bf16.mxu1 %vm12582_vm0, %v12581_v14 }
 0x638   :  { %v12887_v11 = vpop.f32.mrf.mxu0 }
 0x63a   :  { %v12889_v15 = vpop.f32.mrf.mxu0 }
 0x63c   :  { %v12891_v16 = vpop.f32.mrf.mxu0 }
 0x63e   :  { %v12893_v17 = vpop.f32.mrf.mxu0 }
 0x6ab   :  { %v1186_v18 = vpop.f32.mrf.mxu0 }
 0x6ac   :  { %v1195_v19 = vsel %vm12760_vm2, %v1186_v18, -1e+30 }
 0x6ad   :  { %v11155_v21 = vpop.f32.mrf.mxu0  ;;  %v1203_v22 = vsel %vm566_vm3, %v1195_v19, -inf }
 0x6ae   :  { %1204 = vmax.xlane.f32.xlu0 %v1203_v22 }
 0x6af   :  { %v1189_v25 = vpop.f32.mrf.mxu0 }
 0x6b0   :  { %v1196_v27 = vsel %vm12768_vm4, %v1189_v25, -1e+30 }
 0x6b1   :  { %v11156_v28 = vpop.f32.mrf.mxu0  ;;  %v1206_v29 = vsel %vm566_vm3, %v1196_v27, -inf }
 0x6b2   :  { %1207 = vmax.xlane.f32.xlu0 %v1206_v29 }
 0x6ca   :  { %v12901_v32 = vpop.f32.mrf.mxu1 }
 0x6cc   :  { %v12903_v33 = vpop.f32.mrf.mxu1 }
 0x6ce   :  { %v12905_v34 = vpop.f32.mrf.mxu1 }
 0x6d0   :  { %v12907_v35 = vpop.f32.mrf.mxu1 }
 0x6d2   :  { %v1135_v38 = vpop.f32.mrf.mxu1 }
 0x6d3   :  { %v1193_v41 = vsel %vm12760_vm2, %v1135_v38, -1e+30 }
 0x6d4   :  { %v11149_v44 = vpop.f32.mrf.mxu1  ;;  %v1197_v46 = vsel %vm566_vm3, %v1193_v41, -inf }
 0x6d5   :  { %1198 = vmax.xlane.f32.xlu0 %v1197_v46 }
 0x6d6   :  { %v1138_v47 = vpop.f32.mrf.mxu1 }
 0x6d7   :  { %v1194_v49 = vsel %vm12768_vm4, %v1138_v47, -1e+30 }
 0x6d8   :  { %v11150_v50 = vpop.f32.mrf.mxu1  ;;  %v1200_v24 = vsel %vm566_vm3, %v1194_v49, -inf }
 0x6d9   :  { %1201 = vmax.xlane.f32.xlu1 %v1200_v24 }
 0x6ea   :  { %1282 = vrot.lane.b32.xlu1 %v12729_v23, %s12578_s22 }
 0x6eb   :  { %1235 = vrot.lane.b32.xlu0 %v12749_v37, %s12578_s22 }
 0x737   :  { %v1205_v26 = vpop.xlane.xlu0 %1204 }
 0x738   :  { %v1211_v43 = vsub.f32 %v1195_v19, %v1205_v26 }
 0x73a   :  { %v1217_v45 = vmul.f32 1.442695, %v1211_v43 }
 0x73b   :  { %v1208_v51 = vpop.xlane.xlu0 %1207 }
 0x73c   :  { %12215 = vpow2.f32 %v1217_v45  ;;  %v1212_v52 = vsub.f32 %v1196_v27, %v1208_v51 }
 0x73e   :  { %v1219_v53 = vmul.f32 1.442695, %v1212_v52 }
 0x740   :  { %12217 = vpow2.f32 %v1219_v53 }
 0x749   :  { %v12216_v54 = vpop.eup %12215 }
 0x74a   :  { %v1227_v55 = vsel %vm566_vm3, %v12216_v54, 0.0 }
 0x74b   :  { %1228 = vadd.xlane.f32.xlu0 %v1227_v55 }
 0x74d   :  { %v12218_v56 = vpop.eup %12217 }
 0x74e   :  { %v1230_v57 = vsel %vm566_vm3, %v12218_v56, 0.0  ;;  %v1234_v2 = vpack.c.bf16 %v12218_v56, %v12216_v54 }
 0x74f   :  { %1231 = vadd.xlane.f32.xlu1 %v1230_v57 }
 0x75e   :  { %v1199_v58 = vpop.xlane.xlu0 %1198 }
 0x75f   :  { %v1209_v59 = vsub.f32 %v1193_v41, %v1199_v58 }
 0x761   :  { %v1213_v60 = vmul.f32 1.442695, %v1209_v59 }
 0x762   :  { %v1236_v61 = vpop.permute.xlu0 %1235  ;;  %v1202_v62 = vpop.xlane.xlu1 %1201 }
 0x763   :  { %12219 = vpow2.f32 %v1213_v60  ;;  %v1210_v63 = vsub.f32 %v1194_v49, %v1202_v62  ;;  %11158 = vmatpush3.bf16.msra.mxu1 %v1236_v61  ;;  %v1085_v61 = vadd.f32 %v12887_v11, %v12901_v32 }
 0x764   :  { %11169 = vmatprep.subr.bf16.mxu1 %v11723_v8 }
 0x765   :  { %v1215_v0 = vmul.f32 1.442695, %v1210_v63  ;;  %v1077_v63 = vadd.f32 %v12889_v15, %v12903_v33 }
 0x766   :  { %v1283_v1 = vpop.permute.xlu1 %1282 }
 0x767   :  { %12221 = vpow2.f32 %v1215_v0  ;;  %11164 = vmatpush3.bf16.msra.mxu0 %v1283_v1 }
 0x768   :  { %11177 = vmatprep.subr.bf16.mxu0 %v12581_v14 }
 0x76a   :  { %11166 = vmatmul.mubr.msk.bf16.vlgmr.msra.gmra.mxu0 %vm566_vm3, %v1234_v2  ;;  %v1088_v2 = vadd.f32 %v12891_v16, %v12905_v34 }
 0x76b   :  { %11179 = vmatprep.mubr.msk.bf16.mxu0 %vm12582_vm0, %v12581_v14 }
 0x770   :  { %v12220_v3 = vpop.eup %12219 }
 0x771   :  { %v1221_v4 = vsel %vm566_vm3, %v12220_v3, 0.0 }
 0x772   :  { %1222 = vadd.xlane.f32.xlu1 %v1221_v4 }
 0x774   :  { %v12222_v5 = vpop.eup %12221 }
 0x775   :  { %v1224_v6 = vsel %vm566_vm3, %v12222_v5, 0.0  ;;  %v1233_v7 = vpack.c.bf16 %v12222_v5, %v12220_v3 }
 0x776   :  { %1225 = vadd.xlane.f32.xlu0 %v1224_v6 }
 0x777   :  { %11160 = vmatmul.mubr.msk.bf16.vlgmr.msra.gmra.mxu1 %vm566_vm3, %v1233_v7 }
 0x778   :  { %11170 = vmatpush3.bf16.msra.mxu1 %v11723_v8 }
 0x779   :  { %11171 = vmatprep.subr.bf16.mxu1 %v11724_v9 }
 0x77c   :  { %11172 = vmatpush3.bf16.msra.mxu1 %v11724_v9 }
 0x77d   :  { %11183 = vmatprep.subr.bf16.mxu1 %v12581_v14 }
 0x783   :  { %1463 = vrot.lane.b32.xlu1 %v12738_v31, %s12584_s0 }
 0x787   :  { %1410 = vrot.lane.b32.xlu1 %v12736_v30, %s12584_s0 }
 0x78b   :  { %1461 = vrot.lane.b32.xlu1 %v12747_v36, %s12584_s0 }
 0x78c   :  { %1412 = vrot.lane.b32.xlu0 %v12727_v20, %s12584_s0 }
 0x7d4   :  { %v1229_v30 = vpop.xlane.xlu0 %1228 }
 0x7d8   :  { %v1232_v31 = vpop.xlane.xlu1 %1231 }
 0x7d9   :  { %12223 = vrcp.f32 %v1232_v31 }
 0x7e6   :  { %v12224_v28 = vpop.eup %12223 }
 0x7fb   :  { %v1223_v36 = vpop.xlane.xlu1 %1222 }
 0x7fc   :  { %12225 = vrcp.f32 %v1223_v36 }
 0x7ff   :  { %v1226_v10 = vpop.xlane.xlu0 %1225  ;;  %v1464_v13 = vpop.permute.xlu1 %1463 }
 0x800   :  { %12227 = vrcp.f32 %v1226_v10  ;;  %v1469_v51 = vsel %vm463_vm1, %v1464_v13, 0 }
 0x801   :  { %12229 = vrcp.f32 %v1229_v30 }
 0x803   :  { %v1413_v12 = vpop.permute.xlu0 %1412  ;;  %v1411_v18 = vpop.permute.xlu1 %1410 }
 0x804   :  { %v1418_v20 = vsel %vm463_vm1, %v1413_v12, 0 }
 0x805   :  { %11178 = vmatpush3.bf16.xpose.msra.mxu0 %v1418_v20 }
 0x806   :  { %11189 = vmatprep.subr.bf16.mxu0 %v12581_v14 }
 0x807   :  { %v1462_v52 = vpop.permute.xlu1 %1461 }
 0x809   :  { %v12226_v38 = vpop.eup %12225 }
 0x80c   :  { %11180 = vmatmul.mubr.msk.bf16.vlgmr.msra.gmra.mxu0 %vm463_vm1, %v1411_v18 }
 0x80d   :  { %11191 = vmatprep.mubr.msk.bf16.mxu0 %vm12582_vm0, %v12581_v14  ;;  %v12228_v41 = vpop.eup %12227 }
 0x80e   :  { %v12230_v47 = vpop.eup %12229 }
 0x82a   :  { %v1322_v19 = vpop.f32.mrf.mxu0 }
 0x82b   :  { %v1335_v24 = vmul.f32 %v12230_v47, %v1322_v19 }
 0x82c   :  { %v11167_v21 = vpop.f32.mrf.mxu0 }
 0x82e   :  { %v1325_v22 = vpop.f32.mrf.mxu0 }
 0x82f   :  { %v1336_v44 = vmul.f32 %v12224_v28, %v1325_v22 }
 0x830   :  { %v11168_v25 = vpop.f32.mrf.mxu0 }
 0x831   :  { %v1338_v45 = vpack.c.bf16 %v1336_v44, %v1335_v24  ;;  %v11726_v24 = vld [vmem:[%s14286_s4 + $0x30] sm:$0xff]  }
 0x837   :  { %v1275_v27 = vpop.f32.mrf.mxu1 }
 0x838   :  { %v1333_v49 = vmul.f32 %v12226_v38, %v1275_v27 }
 0x839   :  { %v11161_v29 = vpop.f32.mrf.mxu1 }
 0x83b   :  { %v1278_v46 = vpop.f32.mrf.mxu1 }
 0x83c   :  { %v1334_v50 = vmul.f32 %v12228_v41, %v1278_v46 }
 0x83d   :  { %v11162_v26 = vpop.f32.mrf.mxu1 }
 0x83e   :  { %v1337_v43 = vpack.c.bf16 %v1334_v50, %v1333_v49  ;;  %v11725_v50 = vld [vmem:[%s14286_s4 + $0x38] sm:$0xff]  }
 0x840   :  { %11173 = vmatprep.mubr.msk.bf16.mxu1 %vm463_vm1, %v1337_v43 }
 0x841   :  { %11174 = vmatmul.mubr.msk.bf16.vlgmr.msra.gmra.mxu1 %vm463_vm1, %v1338_v45 }
 0x842   :  { %11184 = vmatpush3.bf16.xpose.msra.mxu1 %v1469_v51  ;;  %11185 = vmatprep.mubr.msk.bf16.mxu1 %vm12582_vm0, %v12581_v14 }
 0x843   :  { %11195 = vmatprep.subr.bf16.mxu1 %v12581_v14 }
 0x849   :  { %11186 = vmatmul.mubr.msk.bf16.vlgmr.msra.gmra.mxu1 %vm463_vm1, %v1462_v52 }
 0x84a   :  { %11197 = vmatprep.mubr.msk.bf16.mxu1 %vm12582_vm0, %v12581_v14 }
 0x8cc   :  { %v1454_v53 = vpop.f32.mrf.mxu0 }
 0x8cd   :  { %v1512_v54 = vsel %vm12760_vm2, %v1454_v53, -1e+30 }
 0x8ce   :  { %v11181_v55 = vpop.f32.mrf.mxu0  ;;  %v1516_v56 = vsel %vm566_vm3, %v1512_v54, -inf }
 0x8cf   :  { %1517 = vmax.xlane.f32.xlu0 %v1516_v56 }
 0x8d0   :  { %v1457_v57 = vpop.f32.mrf.mxu0 }
 0x8d1   :  { %v1513_v58 = vsel %vm12768_vm4, %v1457_v57, -1e+30 }
 0x8d2   :  { %v11182_v59 = vpop.f32.mrf.mxu0  ;;  %v1519_v60 = vsel %vm566_vm3, %v1513_v58, -inf }
 0x8d3   :  { %1520 = vmax.xlane.f32.xlu1 %v1519_v60 }
 0x8e4   :  { %1601 = vrot.lane.b32.xlu1 %v12729_v23, %s12584_s0 }
 0x901   :  { %v11175_v62 = vpop.f32.mrf.mxu1 }
 0x902   :  { %v12969_v0 = vadd.f32 %v11175_v62, %v1085_v61 }
 0x903   :  { %v1391_v1 = vpop.f32.mrf.mxu1 }
 0x904   :  { %v12973_v3 = vadd.f32 %v1391_v1, %v1077_v63 }
 0x905   :  { %v11176_v4 = vpop.f32.mrf.mxu1 }
 0x906   :  { %v12975_v5 = vadd.f32 %v11176_v4, %v1088_v2 }
 0x907   :  { %v12977_v6 = vpop.f32.mrf.mxu1 }
 0x909   :  { %v1505_v23 = vpop.f32.mrf.mxu1 }
 0x90a   :  { %v1514_v11 = vsel %vm12760_vm2, %v1505_v23, -1e+30 }
 0x90b   :  { %v11187_v32 = vpop.f32.mrf.mxu1  ;;  %v1522_v15 = vsel %vm566_vm3, %v1514_v11, -inf }
 0x90c   :  { %1523 = vmax.xlane.f32.xlu0 %v1522_v15 }
 0x90d   :  { %v1508_v33 = vpop.f32.mrf.mxu1 }
 0x90e   :  { %v1515_v7 = vsel %vm12768_vm4, %v1508_v33, -1e+30 }
 0x90f   :  { %v11188_v16 = vpop.f32.mrf.mxu1  ;;  %v1525_v34 = vsel %vm566_vm3, %v1515_v7, -inf }
 0x910   :  { %1526 = vmax.xlane.f32.xlu0 %v1525_v34 }
 0x926   :  { %1554 = vrot.lane.b32.xlu0 %v12749_v37, %s12584_s0 }
 0x958   :  { %v1518_v8 = vpop.xlane.xlu0 %1517 }
 0x959   :  { %v1528_v9 = vsub.f32 %v1512_v54, %v1518_v8 }
 0x95b   :  { %v1532_v30 = vmul.f32 1.442695, %v1528_v9 }
 0x95c   :  { %v1521_v31 = vpop.xlane.xlu1 %1520 }
 0x95d   :  { %12231 = vpow2.f32 %v1532_v30  ;;  %v1529_v36 = vsub.f32 %v1513_v58, %v1521_v31  ;;  %v12503_v30 = vld [vmem:[%s14301_s27] sm:$0xff] }
 0x95f   :  { %v1534_v10 = vmul.f32 1.442695, %v1529_v36 }
 0x960   :  { %v1602_v12 = vpop.permute.xlu1 %1601 }
 0x961   :  { %12233 = vpow2.f32 %v1534_v10  ;;  %11196 = vmatpush3.bf16.msra.mxu1 %v1602_v12  ;;  %v10050_v10 = vld [vmem:[%s14287_s5] ss:$0 sm:$0xff] }
 0x96a   :  { %v12232_v20 = vpop.eup %12231 }
 0x96b   :  { %v1540_v13 = vsel %vm566_vm3, %v12232_v20, 0.0 }
 0x96c   :  { %1541 = vadd.xlane.f32.xlu1 %v1540_v13  ;;  %v12506_v13 = vld [vmem:[%s14301_s27 + $0x18] sm:$0xff] }
 0x96e   :  { %v12234_v18 = vpop.eup %12233 }
 0x96f   :  { %v1543_v19 = vsel %vm566_vm3, %v12234_v18, 0.0  ;;  %v1552_v38 = vpack.c.bf16 %v12234_v18, %v12232_v20 }
 0x970   :  { %1544 = vadd.xlane.f32.xlu0 %v1543_v19 }
 0x995   :  { %v1524_v21 = vpop.xlane.xlu0 %1523 }
 0x996   :  { %v1530_v37 = vsub.f32 %v1514_v11, %v1524_v21 }
 0x998   :  { %v1536_v22 = vmul.f32 1.442695, %v1530_v37  ;;  %v11727_v37 = vld [vmem:[#allocation4 + $0xe0] ss:$16 sps:$4 sm:$0xff]  }
 0x999   :  { %v1527_v25 = vpop.xlane.xlu0 %1526 }
 0x99a   :  { %12235 = vpow2.f32 %v1536_v22  ;;  %v1531_v27 = vsub.f32 %v1515_v7, %v1527_v25  ;;  %v1080_v7 = vadd.f32 %v12893_v17, %v12907_v35  ;;  %v12504_v17 = vld [vmem:[%s14301_s27 + $0x10] sm:$0xff]  ;;  %v11730_v25 = vld [vmem:[#allocation4 + $0xe8] ss:$16 sps:$4 sm:$0xff]  }
 0x99b   :  { %v11729_v22 = vld [vmem:[#allocation4 + $0xe4] ss:$16 sps:$4 sm:$0xff]  }
 0x99c   :  { %v1538_v28 = vmul.f32 1.442695, %v1531_v27  ;;  %v1407_v9 = vadd.f32 %v12977_v6, %v1080_v7  ;;  %v12505_v6 = vld [vmem:[%s14301_s27 + $0x8] sm:$0xff]  ;;  %2026 = vmatprep.subr.bf16.mxu1 %v11729_v22  ;;  %v11757_v7 = vld [vmem:[#allocation4 + $0x40] ss:$16 sps:$4 sm:$0xff]  }
 0x99d   :  { %v1555_v29 = vpop.permute.xlu0 %1554  ;;  %v11732_v27 = vld [vmem:[#allocation4 + $0xec] ss:$16 sps:$4 sm:$0xff]  }
 0x99e   :  { %12237 = vpow2.f32 %v1538_v28  ;;  %11190 = vmatpush3.bf16.msra.mxu0 %v1555_v29 }
 0x99f   :  { %11201 = vmatprep.subr.bf16.mxu0 %v11725_v50 }
 0x9a1   :  { %11192 = vmatmul.mubr.msk.bf16.vlgmr.msra.gmra.mxu0 %vm566_vm3, %v1552_v38 }
 0x9a2   :  { %11202 = vmatpush3.bf16.msra.mxu0 %v11725_v50 }
 0x9a3   :  { %11203 = vmatprep.subr.bf16.mxu0 %v11726_v24 }
 0x9a6   :  { %11204 = vmatpush3.bf16.msra.mxu0 %v11726_v24 }
 0x9a7   :  { %v12236_v41 = vpop.eup %12235  ;;  %2079 = vmatprep.subr.bf16.mxu0 %v11732_v27 }
 0x9a8   :  { %v1546_v44 = vsel %vm566_vm3, %v12236_v41, 0.0 }
 0x9a9   :  { %1547 = vadd.xlane.f32.xlu0 %v1546_v44 }
 0x9ab   :  { %v12238_v46 = vpop.eup %12237 }
 0x9ac   :  { %v1549_v47 = vsel %vm566_vm3, %v12238_v46, 0.0  ;;  %v1553_v49 = vpack.c.bf16 %v12238_v46, %v12236_v41 }
 0x9ad   :  { %1550 = vadd.xlane.f32.xlu1 %v1549_v47 }
 0x9ae   :  { %11198 = vmatmul.mubr.msk.bf16.vlgmr.msra.gmra.mxu1 %vm566_vm3, %v1553_v49 }
 0x9af   :  { %2058 = vmatprep.mubr.bf16.mxu1 %v12580_v40  ;;  %2027 = vmatpush1.bf16.msra.mxu1 %v11727_v37 }
 0x9f5   :  { %v1542_v26 = vpop.xlane.xlu1 %1541 }
 0x9f6   :  { %12239 = vrcp.f32 %v1542_v26 }
 0x9f9   :  { %v1545_v43 = vpop.xlane.xlu0 %1544 }
 0x9fa   :  { %12241 = vrcp.f32 %v1545_v43 }
 0xa03   :  { %v12240_v54 = vpop.eup %12239 }
 0xa07   :  { %v12242_v55 = vpop.eup %12241 }
 0xa32   :  { %v1548_v45 = vpop.xlane.xlu0 %1547 }
 0xa33   :  { %12243 = vrcp.f32 %v1548_v45 }
 0xa36   :  { %v1551_v52 = vpop.xlane.xlu1 %1550 }
 0xa37   :  { %12245 = vrcp.f32 %v1551_v52 }
 0xa40   :  { %v12244_v63 = vpop.eup %12243 }
 0xa44   :  { %v12246_v1 = vpop.eup %12245 }
 0xa61   :  { %v1594_v51 = vpop.f32.mrf.mxu0 }
 0xa62   :  { %v1652_v57 = vmul.f32 %v12240_v54, %v1594_v51  ;;  %v11735_v54 = vld [vmem:[#allocation4 + $0xc4] ss:$16 sps:$4 sm:$0xff]  }
 0xa63   :  { %v11193_v53 = vpop.f32.mrf.mxu0  ;;  %2028 = vmatprep.subr.bf16.mxu1 %v11735_v54 }
 0xa65   :  { %v1597_v56 = vpop.f32.mrf.mxu0 }
 0xa66   :  { %v1653_v58 = vmul.f32 %v12242_v55, %v1597_v56  ;;  %v11738_v55 = vld [vmem:[#allocation4 + $0xcc] ss:$16 sps:$4 sm:$0xff]   ;;  %v11733_v56 = vld [vmem:[#allocation4 + $0xc0] ss:$16 sps:$4 sm:$0xff]  }
 0xa67   :  { %v11194_v59 = vpop.f32.mrf.mxu0  ;;  %2029 = vmatpush1.bf16.msra.mxu1 %v11733_v56 }
 0xa68   :  { %v1656_v60 = vpack.c.bf16 %v1653_v58, %v1652_v57  ;;  %v11736_v57 = vld [vmem:[#allocation4 + $0xc8] ss:$16 sps:$4 sm:$0xff]   ;;  %v11741_v58 = vld [vmem:[#allocation4 + $0xa4] ss:$16 sps:$4 sm:$0xff]   ;;  %v11744_v59 = vld [vmem:[#allocation4 + $0xac] ss:$16 sps:$4 sm:$0xff]  }
 0xa69   :  { %2030 = vmatprep.subr.bf16.mxu1 %v11741_v58 }
 0xa6a   :  { %11205 = vmatprep.mubr.msk.bf16.mxu0 %vm463_vm1, %v1656_v60  ;;  %v11739_v60 = vld [vmem:[#allocation4 + $0xa0] ss:$16 sps:$4 sm:$0xff]  }
 0xa6b   :  { %2031 = vmatpush1.bf16.msra.mxu1 %v11739_v60  ;;  %v11777_v60 = vld [vmem:[#allocation6 + $0x38] sm:$0xff]  }
 0xa6e   :  { %v1641_v61 = vpop.f32.mrf.mxu1 }
 0xa6f   :  { %v1654_v4 = vmul.f32 %v12244_v63, %v1641_v61  ;;  %v11742_v61 = vld [vmem:[#allocation4 + $0xa8] ss:$16 sps:$4 sm:$0xff]   ;;  %v11750_v63 = vld [vmem:[#allocation4 + $0x8c] ss:$16 sps:$4 sm:$0xff]  }
 0xa70   :  { %v11199_v62 = vpop.f32.mrf.mxu1 }
 0xa71   :  { %v11747_v62 = vld [vmem:[#allocation4 + $0x84] ss:$16 sps:$4 sm:$0xff]  }
 0xa72   :  { %v1644_v2 = vpop.f32.mrf.mxu1  ;;  %2032 = vmatprep.subr.bf16.mxu1 %v11747_v62  ;;  %v11779_v62 = vld [vmem:[#allocation6 + $0x70] sm:$0xff]  }
 0xa73   :  { %v1655_v23 = vmul.f32 %v12246_v1, %v1644_v2  ;;  %v11745_v1 = vld [vmem:[#allocation4 + $0x80] ss:$16 sps:$4 sm:$0xff]   ;;  %v11748_v2 = vld [vmem:[#allocation4 + $0x88] ss:$16 sps:$4 sm:$0xff]  }
 0xa74   :  { %v11200_v11 = vpop.f32.mrf.mxu1  ;;  %2033 = vmatpush1.bf16.msra.mxu1 %v11745_v1 }
 0xa75   :  { %v1657_v32 = vpack.c.bf16 %v1655_v23, %v1654_v4  ;;  %v11751_v4 = vld [vmem:[#allocation4 + $0x60] ss:$16 sps:$4 sm:$0xff]   ;;  %v11753_v23 = vld [vmem:[#allocation4 + $0x64] ss:$16 sps:$4 sm:$0xff]   ;;  %v11754_v11 = vld [vmem:[#allocation4 + $0x68] ss:$16 sps:$4 sm:$0xff]  }
 0xa76   :  { %2034 = vmatprep.subr.bf16.mxu1 %v11753_v23 }
 0xa77   :  { %11206 = vmatmul.mubr.msk.bf16.vlgmr.msra.gmra.mxu0 %vm463_vm1, %v1657_v32  ;;  %v11756_v32 = vld [vmem:[#allocation4 + $0x6c] ss:$16 sps:$4 sm:$0xff]  }
 0xa78   :  { %2111 = vmatprep.mubr.bf16.mxu0 %v12580_v40  ;;  %2080 = vmatpush1.bf16.msra.mxu0 %v11730_v25 }
 0xa79   :  { %2081 = vmatprep.subr.bf16.mxu0 %v11738_v55  ;;  %2035 = vmatpush1.bf16.msra.mxu1 %v11751_v4  ;;  %v11784_v4 = vld [vmem:[#allocation6 + $0xe8] sm:$0xff]  }
 0xa7c   :  { %2082 = vmatpush1.bf16.msra.mxu0 %v11736_v57 }
 0xa7d   :  { %2083 = vmatprep.subr.bf16.mxu0 %v11744_v59 }
 0xa80   :  { %2084 = vmatpush1.bf16.msra.mxu0 %v11742_v61  ;;  %v11778_v61 = vld [vmem:[#allocation6 + $0xb8] sm:$0xff]  }
 0xa81   :  { %2085 = vmatprep.subr.bf16.mxu0 %v11750_v63 }
 0xa84   :  { %2086 = vmatpush1.bf16.msra.mxu0 %v11748_v2  ;;  %v11782_v2 = vld [vmem:[#allocation6 + $0xb0] sm:$0xff]  }
 0xa85   :  { %2087 = vmatprep.subr.bf16.mxu0 %v11756_v32  ;;  %v11785_v32 = vld [vmem:[#allocation6 + $0x28] sm:$0xff]  }
 0xa88   :  { %2088 = vmatpush1.bf16.msra.mxu0 %v11754_v11 }
 0xb37   :  { %v11207_v15 = vpop.f32.mrf.mxu0 }
 0xb38   :  { %v1727_v16 = vadd.f32 %v11207_v15, %v12969_v0  ;;  %v11759_v15 = vld [vmem:[#allocation4 + $0x44] ss:$16 sps:$4 sm:$0xff]  }
 0xb39   :  { %v1710_v33 = vpop.f32.mrf.mxu0  ;;  %2036 = vmatprep.subr.bf16.mxu1 %v11759_v15  ;;  %v11786_v15 = vld [vmem:[#allocation6 + $0xa8] sm:$0xff]  }
 0xb3a   :  { %v1725_v34 = vadd.f32 %v1710_v33, %v12973_v3  ;;  %v1731_v35 = vadd.f32 %v12504_v17, %v1727_v16  ;;  %v11762_v33 = vld [vmem:[#allocation4 + $0x4c] ss:$16 sps:$4 sm:$0xff]   ;;  %v11760_v16 = vld [vmem:[#allocation4 + $0x48] ss:$16 sps:$4 sm:$0xff]   ;;  %2037 = vmatpush1.bf16.msra.mxu1 %v11757_v7  ;;  %v11788_v7 = vld [vmem:[#allocation6 + $0xe0] sm:$0xff]  }
 0xb3b   :  { %v11208_v8 = vpop.f32.mrf.mxu0  ;;  %2089 = vmatprep.subr.bf16.mxu0 %v11762_v33  ;;  %v11772_v17 = vld [vmem:[#allocation4 + $0x8] ss:$16 sps:$4 sm:$0xff]   ;;  %v11787_v33 = vld [vmem:[#allocation6 + $0x60] sm:$0xff]  }
 0xb3c   :  { %v1729_v31 = vadd.f32 %v12503_v30, %v1725_v34  ;;  %v1728_v0 = vadd.f32 %v11208_v8, %v12975_v5  ;;  %v13027_v19 = vadd.f32 %v10050_v10, %v1731_v35  ;;  %v11765_v34 = vld [vmem:[#allocation4 + $0x24] ss:$16 sps:$4 sm:$0xff]   ;;  %v11768_v8 = vld [vmem:[#allocation4 + $0x2c] ss:$16 sps:$4 sm:$0xff]   ;;  %2090 = vmatpush1.bf16.msra.mxu0 %v11760_v16  ;;  %v11766_v30 = vld [vmem:[#allocation4 + $0x28] ss:$16 sps:$4 sm:$0xff]  }
 0xb3d   :  { %v1713_v36 = vpop.f32.mrf.mxu0  ;;  %2038 = vmatprep.subr.bf16.mxu1 %v11765_v34  ;;  %2091 = vmatprep.subr.bf16.mxu0 %v11768_v8  ;;  %v11775_v35 = vld [vmem:[#allocation6 + $0x78] sm:$0xff]   ;;  %v11789_v16 = vld [vmem:[#allocation6 + $0x20] sm:$0xff]  }
 0xb3e   :  { %v1726_v3 = vadd.f32 %v1713_v36, %v1407_v9  ;;  %v13018_v12 = vadd.f32 %v10050_v10, %v1729_v31  ;;  %v1732_v18 = vadd.f32 %v12506_v13, %v1728_v0  ;;  %v11763_v9 = vld [vmem:[#allocation4 + $0x20] ss:$16 sps:$4 sm:$0xff]   ;;  %v11771_v31 = vld [vmem:[#allocation4 + $0x4] ss:$16 sps:$4 sm:$0xff]   ;;  %v11774_v36 = vld [vmem:[#allocation4 + $0xc] ss:$16 sps:$4 sm:$0xff]  }
 0xb3f   :  { %2039 = vmatpush1.bf16.msra.mxu1 %v11763_v9  ;;  %v11776_v0 = vld [vmem:[#allocation6 + $0xf8] sm:$0xff]   ;;  %v11790_v34 = vld [vmem:[#allocation6 + $0xa0] sm:$0xff]  }
 0xb40   :  { %v1730_v20 = vadd.f32 %v12505_v6, %v1726_v3  ;;  %1746 = vadd.xlane.f32.xlu0 %v13018_v12  ;;  %v13033_v5 = vadd.f32 %v10050_v10, %v1732_v18  ;;  %2092 = vmatpush1.bf16.msra.mxu0 %v11766_v30  ;;  %v11791_v8 = vld [vmem:[#allocation6 + $0x58] sm:$0xff]  }
 0xb41   :  { %2040 = vmatprep.subr.bf16.mxu1 %v11771_v31  ;;  %2093 = vmatprep.subr.bf16.mxu0 %v11774_v36  ;;  %v11792_v9 = vld [vmem:[#allocation6 + $0xd8] sm:$0xff]   ;;  %v11795_v36 = vld [vmem:[#allocation6 + $0x50] sm:$0xff]  }
 0xb42   :  { %v13029_v21 = vadd.f32 %v10050_v10, %v1730_v20  ;;  %v11769_v10 = vld [vmem:[#allocation4] ss:$16 sps:$4 sm:$0xff]   ;;  %v11793_v30 = vld [vmem:[#allocation6 + $0x18] sm:$0xff]  }
 0xb43   :  { %2041 = vmatpush1.bf16.msra.mxu1 %v11769_v10  ;;  %v11794_v31 = vld [vmem:[#allocation6 + $0x98] sm:$0xff]   ;;  %v11796_v10 = vld [vmem:[#allocation6 + $0xd0] sm:$0xff]  }
 0xb44   :  { %1750 = vadd.xlane.f32.xlu0 %v13027_v19  ;;  %1748 = vadd.xlane.f32.xlu1 %v13029_v21 }
 0xb45   :  { %2094 = vmatpush1.bf16.msra.mxu0 %v11772_v17  ;;  %10653 = vmatprep.subr.bf16.mxu1 %v11775_v35  ;;  %v11797_v17 = vld [vmem:[#allocation6 + $0x10] sm:$0xff]  }
 0xb46   :  { %10681 = vmatprep.subr.bf16.mxu0 %v11776_v0  ;;  %v11798_v35 = vld [vmem:[#allocation6 + $0x90] sm:$0xff]   ;;  %v11799_v0 = vld [vmem:[#allocation6 + $0x48] sm:$0xff]  }
 0xb48   :  { %1752 = vadd.xlane.f32.xlu1 %v13033_v5 }
 0xbc9   :  { %v1747_v28 = vpop.xlane.xlu0 %1746 }
 0xbca   :  { %v1754_v29 = vmul.f32 0.0078125, %v1747_v28 }
 0xbcc   :  { %v13037_v38 = vsub.f32 %v13018_v12, %v1754_v29 }
 0xbcd   :  { %v1751_v41 = vpop.xlane.xlu0 %1750  ;;  %v1749_v44 = vpop.xlane.xlu1 %1748 }
 0xbce   :  { %v1756_v46 = vmul.f32 0.0078125, %v1751_v41  ;;  %v1755_v47 = vmul.f32 0.0078125, %v1749_v44  ;;  %v1762_v49 = vmul.f32 %v13037_v38, %v13037_v38 }
 0xbd0   :  { %1766 = vadd.xlane.f32.xlu0 %v1762_v49  ;;  %v13042_v50 = vsub.f32 %v13027_v19, %v1756_v46  ;;  %v13045_v24 = vsub.f32 %v13029_v21, %v1755_v47  ;;  %v10051_v47 = vld [vmem:[%s14288_s6] ss:$0 sm:$0xff] }
 0xbd1   :  { %v1753_v26 = vpop.xlane.xlu1 %1752 }
 0xbd2   :  { %v1757_v43 = vmul.f32 0.0078125, %v1753_v26  ;;  %v1764_v45 = vmul.f32 %v13042_v50, %v13042_v50  ;;  %v1763_v51 = vmul.f32 %v13045_v24, %v13045_v24 }
 0xbd4   :  { %1770 = vadd.xlane.f32.xlu0 %v1764_v45  ;;  %1768 = vadd.xlane.f32.xlu1 %v1763_v51  ;;  %v13052_v52 = vsub.f32 %v13033_v5, %v1757_v43  ;;  %v10052_v51 = vld [vmem:[%s14289_s7] ss:$0 sm:$0xff] }
 0xbd6   :  { %v1765_v53 = vmul.f32 %v13052_v52, %v13052_v52 }
 0xbd8   :  { %1772 = vadd.xlane.f32.xlu1 %v1765_v53 }
 0xc59   :  { %v1767_v3 = vpop.xlane.xlu0 %1766 }
 0xc5a   :  { %v1774_v6 = vmul.f32 0.0078125, %v1767_v3  ;;  %v11800_v3 = vld [vmem:[#allocation6 + $0xc8] sm:$0xff]  }
 0xc5c   :  { %v1778_v20 = vadd.f32 1e-05, %v1774_v6  ;;  %v11801_v6 = vld [vmem:[#allocation6 + $0x8] sm:$0xff]  }
 0xc5d   :  { %v1771_v13 = vpop.xlane.xlu0 %1770  ;;  %v1769_v18 = vpop.xlane.xlu1 %1768 }
 0xc5e   :  { %12247 = vrsqrt.f32 %v1778_v20  ;;  %v1776_v37 = vmul.f32 0.0078125, %v1771_v13  ;;  %v1775_v22 = vmul.f32 0.0078125, %v1769_v18  ;;  %v11802_v20 = vld [vmem:[#allocation6 + $0x88] sm:$0xff]   ;;  %v11803_v13 = vld [vmem:[#allocation6 + $0x40] sm:$0xff]  }
 0xc5f   :  { %v11804_v18 = vld [vmem:[#allocation6 + $0xc0] sm:$0xff]  }
 0xc60   :  { %v1779_v25 = vadd.f32 1e-05, %v1775_v22  ;;  %v1780_v27 = vadd.f32 1e-05, %v1776_v37  ;;  %v11805_v37 = vld [vmem:[#allocation6] sm:$0xff]  }
 0xc61   :  { %v1773_v28 = vpop.xlane.xlu1 %1772  ;;  %v11806_v22 = vld [vmem:[#allocation6 + $0x80] sm:$0xff]  }
 0xc62   :  { %v1777_v29 = vmul.f32 0.0078125, %v1773_v28  ;;  %12249 = vrsqrt.f32 %v1779_v25  ;;  %v13069_v25 = vsub.s32 1, %v12757_v39  ;;  %v13075_v28 = vsub.s32 0, %v12757_v39 }
 0xc63   :  { %12251 = vrsqrt.f32 %v1780_v27  ;;  %v13072_v27 = vsub.s32 3, %v12757_v39 }
 0xc64   :  { %v1781_v41 = vadd.f32 1e-05, %v1777_v29  ;;  %v13078_v29 = vsub.s32 2, %v12757_v39 }
 0xc66   :  { %12253 = vrsqrt.f32 %v1781_v41  ;;  %v1844_v41 = vld [vmem:[%s14291_s9] sm:$0xf] }
 0xc6b   :  { %v12248_v44 = vpop.eup %12247 }
 0xc6c   :  { %v1786_v46 = vmul.f32 %v12248_v44, %v13037_v38 }
 0xc6e   :  { %v1796_v43 = vmul.f32 %v10051_v47, %v1786_v46 }
 0xc6f   :  { %v12250_v49 = vpop.eup %12249 }
 0xc70   :  { %v1787_v26 = vmul.f32 %v12250_v49, %v13045_v24  ;;  %v12252_v45 = vpop.eup %12251  ;;  %v1806_v56 = vadd.f32 %v10052_v51, %v1796_v43  ;;  %v11780_v24 = vld [vmem:[#allocation6 + $0xf0] sm:$0xff]   ;;  %v1861_v49 = vrot.slane %v1844_v41, %v13072_v27  ;;  %v1857_v43 = vrot.slane %v1844_v41, %v13078_v29 }
 0xc71   :  { %v1788_v38 = vmul.f32 %v12252_v45, %v13042_v50  ;;  %v11783_v50 = vld [vmem:[#allocation6 + $0x68] sm:$0xff]  }
 0xc72   :  { %v1797_v54 = vmul.f32 %v10051_v47, %v1787_v26  ;;  %v1849_v26 = vrot.slane %v1844_v41, %v13075_v28 }
 0xc73   :  { %v12254_v53 = vpop.eup %12253  ;;  %v1798_v63 = vmul.f32 %v10051_v47, %v1788_v38 }
 0xc74   :  { %v1789_v55 = vmul.f32 %v12254_v53, %v13052_v52  ;;  %v1807_v57 = vadd.f32 %v10052_v51, %v1797_v54  ;;  %v11781_v52 = vld [vmem:[#allocation6 + $0x30] sm:$0xff]  }
 0xc75   :  { %v1808_v23 = vadd.f32 %v10052_v51, %v1798_v63 }
 0xc76   :  { %v1810_v58 = vpack.c.bf16 %v1807_v57, %v1806_v56  ;;  %v1799_v59 = vmul.f32 %v10051_v47, %v1789_v55  ;;  %v1853_v47 = vrot.slane %v1844_v41, %v13069_v25 }
 0xc78   :  { %2059 = vmatmul.mubr.bf16.vlgmr.msra.gmra.mxu1 %v1810_v58  ;;  %2112 = vmatmul.mubr.bf16.vlgmr.msra.gmra.mxu0 %v1810_v58  ;;  %v1809_v1 = vadd.f32 %v10052_v51, %v1799_v59 }
 0xc79   :  { %2068 = vmatprep.mubr.bf16.mxu1 %v12580_v40  ;;  %2121 = vmatprep.mubr.bf16.mxu0 %v12580_v40 }
 0xc7a   :  { %10654 = vmatpush3.bf16.msra.mxu1 %v11777_v60  ;;  %10682 = vmatpush3.bf16.msra.mxu0 %v11778_v61  ;;  %v1811_v11 = vpack.c.bf16 %v1809_v1, %v1808_v23 }
 0xc7b   :  { %10655 = vmatprep.subr.bf16.mxu1 %v11779_v62  ;;  %10683 = vmatprep.subr.bf16.mxu0 %v11780_v24 }
 0xc7e   :  { %10656 = vmatpush3.bf16.msra.mxu1 %v11781_v52  ;;  %10684 = vmatpush3.bf16.msra.mxu0 %v11782_v2 }
 0xc7f   :  { %10657 = vmatprep.subr.bf16.mxu1 %v11783_v50  ;;  %10685 = vmatprep.subr.bf16.mxu0 %v11784_v4 }
 0xc80   :  { %2069 = vmatmul.mubr.bf16.gmra.mxu1 %v1811_v11  ;;  %2122 = vmatmul.mubr.bf16.gmra.mxu0 %v1811_v11 }
 0xc82   :  { %10658 = vmatpush3.bf16.msra.mxu1 %v11785_v32  ;;  %10686 = vmatpush3.bf16.msra.mxu0 %v11786_v15 }
 0xc83   :  { %10659 = vmatprep.subr.bf16.mxu1 %v11787_v33  ;;  %10687 = vmatprep.subr.bf16.mxu0 %v11788_v7 }
 0xc86   :  { %10660 = vmatpush3.bf16.msra.mxu1 %v11789_v16  ;;  %10688 = vmatpush3.bf16.msra.mxu0 %v11790_v34 }
 0xc87   :  { %10661 = vmatprep.subr.bf16.mxu1 %v11791_v8  ;;  %10689 = vmatprep.subr.bf16.mxu0 %v11792_v9 }
 0xc8a   :  { %10662 = vmatpush3.bf16.msra.mxu1 %v11793_v30  ;;  %10690 = vmatpush3.bf16.msra.mxu0 %v11794_v31 }
 0xc8b   :  { %10663 = vmatprep.subr.bf16.mxu1 %v11795_v36  ;;  %10691 = vmatprep.subr.bf16.mxu0 %v11796_v10 }
 0xc8e   :  { %10664 = vmatpush3.bf16.msra.mxu1 %v11797_v17  ;;  %10692 = vmatpush3.bf16.msra.mxu0 %v11798_v35 }
 0xc8f   :  { %10665 = vmatprep.subr.bf16.mxu1 %v11799_v0  ;;  %10693 = vmatprep.subr.bf16.mxu0 %v11800_v3 }
 0xc92   :  { %10666 = vmatpush3.bf16.msra.mxu1 %v11801_v6  ;;  %10694 = vmatpush3.bf16.msra.mxu0 %v11802_v20 }
 0xc93   :  { %10667 = vmatprep.subr.bf16.mxu1 %v11803_v13  ;;  %10695 = vmatprep.subr.bf16.mxu0 %v11804_v18 }
 0xc96   :  { %10668 = vmatpush3.bf16.msra.mxu1 %v11805_v37  ;;  %10696 = vmatpush3.bf16.msra.mxu0 %v11806_v22 }
 0xd38   :  { %v2060_v44 = vpop.f32.mrf.mxu1  ;;  %v2113_v46 = vpop.f32.mrf.mxu0 }
 0xd39   :  { %v2061_v38 = vadd.f32 %v2060_v44, %v1849_v26  ;;  %v2114_v58 = vadd.f32 %v2113_v46, %v1857_v43 }
 0xd3a   :  { %v2062_v45 = vpop.f32.mrf.mxu1  ;;  %v2115_v51 = vpop.f32.mrf.mxu0 }
 0xd3b   :  { %v2063_v39 = vadd.f32 %v2062_v45, %v1853_v47  ;;  %v2116_v55 = vadd.f32 %v2115_v51, %v1861_v49  ;;  %v2132_v11 = vmax.f32 %v2061_v38, 0.0  ;;  %v2134_v32 = vmax.f32 %v2114_v58, 0.0 }
 0xd3c   :  { %v2064_v53 = vpop.f32.mrf.mxu1  ;;  %v2117_v54 = vpop.f32.mrf.mxu0 }
 0xd3d   :  { %v2065_v56 = vadd.f32 %v2064_v53, %v1849_v26  ;;  %v2118_v57 = vadd.f32 %v2117_v54, %v1857_v43  ;;  %v2133_v2 = vmax.f32 %v2063_v39, 0.0  ;;  %v2135_v50 = vmax.f32 %v2116_v55, 0.0 }
 0xd3e   :  { %v2066_v59 = vpop.f32.mrf.mxu1  ;;  %v2119_v60 = vpop.f32.mrf.mxu0 }
 0xd3f   :  { %v2067_v61 = vadd.f32 %v2066_v59, %v1853_v47  ;;  %v2120_v62 = vadd.f32 %v2119_v60, %v1861_v49  ;;  %v2136_v24 = vmax.f32 %v2065_v56, 0.0  ;;  %v2138_v63 = vmax.f32 %v2118_v57, 0.0 }
 0xd40   :  { %v2070_v1 = vpop.f32.mrf.mxu1  ;;  %v2123_v52 = vpop.f32.mrf.mxu0 }
 0xd41   :  { %v2137_v4 = vmax.f32 %v2067_v61, 0.0  ;;  %v2139_v23 = vmax.f32 %v2120_v62, 0.0  ;;  %v2148_v34 = vpack.c.bf16 %v2136_v24, %v2132_v11  ;;  %v2150_v8 = vpack.c.bf16 %v2138_v63, %v2134_v32 }
 0xd42   :  { %v2072_v15 = vpop.f32.mrf.mxu1  ;;  %v2125_v33 = vpop.f32.mrf.mxu0  ;;  %v2071_v35 = vadd.f32 %v2070_v1, %v1849_v26  ;;  %v2124_v0 = vadd.f32 %v2123_v52, %v1857_v43 }
 0xd43   :  { %v2149_v7 = vpack.c.bf16 %v2137_v4, %v2133_v2  ;;  %v2151_v16 = vpack.c.bf16 %v2139_v23, %v2135_v50  ;;  %v2073_v9 = vadd.f32 %v2072_v15, %v1853_v47  ;;  %v2126_v36 = vadd.f32 %v2125_v33, %v1861_v49 }
 0xd44   :  { %v2074_v30 = vpop.f32.mrf.mxu1  ;;  %v2127_v31 = vpop.f32.mrf.mxu0  ;;  %v2140_v45 = vmax.f32 %v2071_v35, 0.0  ;;  %v2142_v51 = vmax.f32 %v2124_v0, 0.0 }
 0xd45   :  { %v2075_v10 = vadd.f32 %v2074_v30, %v1849_v26  ;;  %v2128_v17 = vadd.f32 %v2127_v31, %v1857_v43  ;;  %2451 = vmatprep.mubr.bf16.mxu1 %v2149_v7  ;;  %2500 = vmatprep.mubr.bf16.mxu0 %v2151_v16  ;;  %v2141_v22 = vmax.f32 %v2073_v9, 0.0  ;;  %v2143_v41 = vmax.f32 %v2126_v36, 0.0  ;;  %v10085_v26 = vld [vmem:[%s14293_s11] ss:$0 sm:$0xff] }
 0xd46   :  { %v2076_v3 = vpop.f32.mrf.mxu1  ;;  %v2129_v6 = vpop.f32.mrf.mxu0  ;;  %2452 = vmatmul.mubr.bf16.vlgmr.msra.gmra.mxu1 %v2148_v34  ;;  %2501 = vmatmul.mubr.bf16.vlgmr.msra.gmra.mxu0 %v2150_v8 }
 0xd47   :  { %v2077_v20 = vadd.f32 %v2076_v3, %v1853_v47  ;;  %v2130_v13 = vadd.f32 %v2129_v6, %v1861_v49  ;;  %v2144_v18 = vmax.f32 %v2075_v10, 0.0  ;;  %v2146_v37 = vmax.f32 %v2128_v17, 0.0  ;;  %v11809_v3 = vld [vmem:[#allocation2 + $0x16c] ss:$12 sps:$4 sm:$0xff]  }
 0xd48   :  { %2752 = vmatprep.subr.bf16.mxu1 %v11809_v3 }
 0xd49   :  { %v2145_v44 = vmax.f32 %v2077_v20, 0.0  ;;  %v2147_v46 = vmax.f32 %v2130_v13, 0.0  ;;  %v2152_v39 = vpack.c.bf16 %v2144_v18, %v2140_v45  ;;  %v2154_v55 = vpack.c.bf16 %v2146_v37, %v2142_v51 }
 0xd4b   :  { %v2153_v53 = vpack.c.bf16 %v2145_v44, %v2141_v22  ;;  %v2155_v54 = vpack.c.bf16 %v2147_v46, %v2143_v41 }
 0xd4d   :  { %2459 = vmatprep.mubr.bf16.mxu1 %v2153_v53  ;;  %2508 = vmatprep.mubr.bf16.mxu0 %v2155_v54 }
 0xd4e   :  { %2460 = vmatmul.mubr.bf16.gmra.mxu1 %v2152_v39  ;;  %2509 = vmatmul.mubr.bf16.gmra.mxu0 %v2154_v55  ;;  %v11812_v55 = vld [vmem:[#allocation2 + $0x154] ss:$12 sps:$4 sm:$0xff]  }
 0xd4f   :  { %2784 = vmatprep.mubr.bf16.mxu1 %v12580_v40 }
 0xe06   :  { %v10669_v47 = vpop.f32.mrf.mxu1  ;;  %v10697_v49 = vpop.f32.mrf.mxu0 }
 0xe08   :  { %v10670_v43 = vpop.f32.mrf.mxu1  ;;  %v10698_v56 = vpop.f32.mrf.mxu0 }
 0xe09   :  { %v10671_v57 = vadd.f32 %v10670_v43, %v10669_v47  ;;  %v10699_v60 = vadd.f32 %v10698_v56, %v10697_v49  ;;  %v11810_v47 = vld [vmem:[#allocation2 + $0x150] ss:$12 sps:$4 sm:$0xff]   ;;  %v11813_v43 = vld [vmem:[#allocation2 + $0x138] ss:$12 sps:$4 sm:$0xff]  }
 0xe0a   :  { %v10672_v38 = vpop.f32.mrf.mxu1  ;;  %v10700_v58 = vpop.f32.mrf.mxu0  ;;  %v11815_v49 = vld [vmem:[#allocation2 + $0x13c] ss:$12 sps:$4 sm:$0xff]   ;;  %v11819_v56 = vld [vmem:[#allocation2 + $0x124] ss:$12 sps:$4 sm:$0xff]  }
 0xe0b   :  { %v2454_v59 = vadd.f32 %v10671_v57, %v10085_v26  ;;  %v11820_v57 = vld [vmem:[#allocation2 + $0x158] ss:$12 sps:$4 sm:$0xff]  }
 0xe0c   :  { %v10673_v61 = vpop.f32.mrf.mxu1  ;;  %v10701_v62 = vpop.f32.mrf.mxu0 }
 0xe0d   :  { %v2503_v24 = vadd.f32 %v10699_v60, %v2454_v59  ;;  %v10674_v63 = vadd.f32 %v10673_v61, %v10672_v38  ;;  %v10702_v50 = vadd.f32 %v10701_v62, %v10700_v58  ;;  %v11817_v38 = vld [vmem:[#allocation2 + $0x120] ss:$12 sps:$4 sm:$0xff]   ;;  %v11821_v60 = vld [vmem:[#allocation2 + $0x108] ss:$12 sps:$4 sm:$0xff]  }
 0xe0e   :  { %v10675_v1 = vpop.f32.mrf.mxu1  ;;  %v10703_v52 = vpop.f32.mrf.mxu0  ;;  %v11823_v58 = vld [vmem:[#allocation2 + $0x10c] ss:$12 sps:$4 sm:$0xff]   ;;  %v11827_v61 = vld [vmem:[#allocation2 + $0xf4] ss:$12 sps:$4 sm:$0xff]  }
 0xe0f   :  { %v2457_v2 = vadd.f32 %v10674_v63, %v10085_v26  ;;  %v13092_v4 = vadd.f32 %v2503_v24, %v13018_v12  ;;  %v11824_v59 = vld [vmem:[#allocation2 + $0x140] ss:$12 sps:$4 sm:$0xff]   ;;  %v11828_v62 = vld [vmem:[#allocation2 + $0x128] ss:$12 sps:$4 sm:$0xff]   ;;  %v11825_v24 = vld [vmem:[#allocation2 + $0xf0] ss:$12 sps:$4 sm:$0xff]  }
 0xe10   :  { %v10676_v23 = vpop.f32.mrf.mxu1  ;;  %v10704_v11 = vpop.f32.mrf.mxu0  ;;  %v11831_v63 = vld [vmem:[#allocation2 + $0xdc] ss:$12 sps:$4 sm:$0xff]  }
 0xe11   :  { %v2506_v32 = vadd.f32 %v10702_v50, %v2457_v2  ;;  %v10677_v15 = vadd.f32 %v10676_v23, %v10675_v1  ;;  %2525 = vadd.xlane.f32.xlu0 %v13092_v4  ;;  %v10705_v34 = vadd.f32 %v10704_v11, %v10703_v52  ;;  %v11832_v1 = vld [vmem:[#allocation2 + $0x110] ss:$12 sps:$4 sm:$0xff]   ;;  %v11829_v52 = vld [vmem:[#allocation2 + $0xd8] ss:$12 sps:$4 sm:$0xff]   ;;  %v11833_v23 = vld [vmem:[#allocation2 + $0xc0] ss:$12 sps:$4 sm:$0xff]  }
 0xe12   :  { %v10678_v33 = vpop.f32.mrf.mxu1  ;;  %v10706_v7 = vpop.f32.mrf.mxu0  ;;  %v11835_v2 = vld [vmem:[#allocation2 + $0xc4] ss:$12 sps:$4 sm:$0xff]   ;;  %v11837_v11 = vld [vmem:[#allocation2 + $0xe0] ss:$12 sps:$4 sm:$0xff]  }
 0xe13   :  { %v2462_v16 = vadd.f32 %v10677_v15, %v10085_v26  ;;  %v13096_v8 = vadd.f32 %v2506_v32, %v13029_v21  ;;  %v11807_v21 = vld [vmem:[#allocation2 + $0x168] ss:$12 sps:$4 sm:$0xff]   ;;  %v11836_v50 = vld [vmem:[#allocation2 + $0xf8] ss:$12 sps:$4 sm:$0xff]  }
 0xe14   :  { %v10679_v9 = vpop.f32.mrf.mxu1  ;;  %v10707_v30 = vpop.f32.mrf.mxu0  ;;  %2753 = vmatpush1.bf16.msra.mxu1 %v11807_v21  ;;  %v11838_v32 = vld [vmem:[#allocation2 + $0xc8] ss:$12 sps:$4 sm:$0xff]  }
 0xe15   :  { %v2511_v31 = vadd.f32 %v10705_v34, %v2462_v16  ;;  %v10680_v36 = vadd.f32 %v10679_v9, %v10678_v33  ;;  %2527 = vadd.xlane.f32.xlu1 %v13096_v8  ;;  %v10708_v10 = vadd.f32 %v10707_v30, %v10706_v7  ;;  %2754 = vmatprep.subr.bf16.mxu1 %v11812_v55 }
 0xe17   :  { %v2465_v12 = vadd.f32 %v10680_v36, %v10085_v26  ;;  %v13100_v17 = vadd.f32 %v2511_v31, %v13027_v19  ;;  %v11816_v26 = vld [vmem:[#allocation2 + $0x170] ss:$12 sps:$4 sm:$0xff]  }
 0xe18   :  { %2755 = vmatpush1.bf16.msra.mxu1 %v11810_v47  ;;  %11209 = vmatprep.subr.bf16.mxu0 %v11816_v26 }
 0xe19   :  { %v2514_v35 = vadd.f32 %v10708_v10, %v2465_v12  ;;  %2529 = vadd.xlane.f32.xlu0 %v13100_v17  ;;  %2756 = vmatprep.subr.bf16.mxu1 %v11815_v49 }
 0xe1a   :  { %11210 = vmatpush3.bf16.msra.mxu0 %v11816_v26 }
 0xe1b   :  { %v13104_v0 = vadd.f32 %v2514_v35, %v13033_v5  ;;  %11211 = vmatprep.subr.bf16.mxu0 %v11820_v57 }
 0xe1c   :  { %2757 = vmatpush1.bf16.msra.mxu1 %v11813_v43 }
 0xe1d   :  { %2531 = vadd.xlane.f32.xlu1 %v13104_v0  ;;  %2758 = vmatprep.subr.bf16.mxu1 %v11819_v56 }
 0xe1e   :  { %11212 = vmatpush3.bf16.msra.mxu0 %v11820_v57 }
 0xe1f   :  { %11213 = vmatprep.subr.bf16.mxu0 %v11824_v59 }
 0xe20   :  { %2759 = vmatpush1.bf16.msra.mxu1 %v11817_v38 }
 0xe21   :  { %2760 = vmatprep.subr.bf16.mxu1 %v11823_v58 }
 0xe22   :  { %11214 = vmatpush3.bf16.msra.mxu0 %v11824_v59 }
 0xe23   :  { %11215 = vmatprep.subr.bf16.mxu0 %v11828_v62 }
 0xe24   :  { %2761 = vmatpush1.bf16.msra.mxu1 %v11821_v60 }
 0xe25   :  { %2762 = vmatprep.subr.bf16.mxu1 %v11827_v61 }
 0xe26   :  { %11216 = vmatpush3.bf16.msra.mxu0 %v11828_v62 }
 0xe27   :  { %11217 = vmatprep.subr.bf16.mxu0 %v11832_v1 }
 0xe28   :  { %2763 = vmatpush1.bf16.msra.mxu1 %v11825_v24 }
 0xe29   :  { %2764 = vmatprep.subr.bf16.mxu1 %v11831_v63 }
 0xe2a   :  { %11218 = vmatpush3.bf16.msra.mxu0 %v11832_v1 }
 0xe2b   :  { %11219 = vmatprep.subr.bf16.mxu0 %v11836_v50 }
 0xe2c   :  { %2765 = vmatpush1.bf16.msra.mxu1 %v11829_v52 }
 0xe2d   :  { %2766 = vmatprep.subr.bf16.mxu1 %v11835_v2 }
 0xe2e   :  { %11220 = vmatpush3.bf16.msra.mxu0 %v11836_v50 }
 0xe2f   :  { %11221 = vmatprep.subr.bf16.mxu0 %v11837_v11 }
 0xe30   :  { %2767 = vmatpush1.bf16.msra.mxu1 %v11833_v23 }
 0xe31   :  { %11235 = vmatprep.subr.bf16.mxu1 %v12581_v14 }
 0xe32   :  { %11222 = vmatpush3.bf16.msra.mxu0 %v11837_v11 }
 0xe33   :  { %11223 = vmatprep.subr.bf16.mxu0 %v11838_v32 }
 0xe36   :  { %11224 = vmatpush3.bf16.msra.mxu0 %v11838_v32 }
 0xe37   :  { %11229 = vmatprep.subr.bf16.mxu0 %v12581_v14 }
 0xe9a   :  { %v2526_v6 = vpop.xlane.xlu0 %2525 }
 0xe9b   :  { %v2533_v20 = vmul.f32 0.0078125, %v2526_v6  ;;  %v10120_v6 = vld [vmem:[%s14283_s1 + $0x1] ss:$0 sm:$0xff] }
 0xe9d   :  { %v13108_v13 = vsub.f32 %v13092_v4, %v2533_v20 }
 0xe9e   :  { %v2528_v18 = vpop.xlane.xlu1 %2527 }
 0xe9f   :  { %v2534_v19 = vmul.f32 0.0078125, %v2528_v18  ;;  %v2541_v37 = vmul.f32 %v13108_v13, %v13108_v13 }
 0xea1   :  { %2545 = vadd.xlane.f32.xlu0 %v2541_v37  ;;  %v13113_v5 = vsub.f32 %v13096_v8, %v2534_v19  ;;  %v10121_v37 = vld [vmem:[%s14284_s2 + $0x1] ss:$0 sm:$0xff] }
 0xea2   :  { %v2530_v22 = vpop.xlane.xlu0 %2529 }
 0xea3   :  { %v2535_v41 = vmul.f32 0.0078125, %v2530_v22  ;;  %v2542_v44 = vmul.f32 %v13113_v5, %v13113_v5 }
 0xea5   :  { %2547 = vadd.xlane.f32.xlu1 %v2542_v44  ;;  %v13118_v46 = vsub.f32 %v13100_v17, %v2535_v41 }
 0xea6   :  { %v2532_v45 = vpop.xlane.xlu1 %2531 }
 0xea7   :  { %v2536_v51 = vmul.f32 0.0078125, %v2532_v45  ;;  %v2543_v53 = vmul.f32 %v13118_v46, %v13118_v46 }
 0xea9   :  { %2549 = vadd.xlane.f32.xlu0 %v2543_v53  ;;  %v13123_v54 = vsub.f32 %v13104_v0, %v2536_v51 }
 0xeab   :  { %v2544_v39 = vmul.f32 %v13123_v54, %v13123_v54 }
 0xead   :  { %2551 = vadd.xlane.f32.xlu1 %v2544_v39 }
 0xf2a   :  { %v2546_v15 = vpop.xlane.xlu0 %2545 }
 0xf2b   :  { %v2553_v33 = vmul.f32 0.0078125, %v2546_v15 }
 0xf2d   :  { %v2557_v7 = vadd.f32 1e-05, %v2553_v33 }
 0xf2e   :  { %v2548_v16 = vpop.xlane.xlu1 %2547 }
 0xf2f   :  { %12255 = vrsqrt.f32 %v2557_v7  ;;  %v2554_v34 = vmul.f32 0.0078125, %v2548_v16 }
 0xf31   :  { %v2558_v9 = vadd.f32 1e-05, %v2554_v34 }
 0xf32   :  { %v2550_v30 = vpop.xlane.xlu0 %2549 }
 0xf33   :  { %12257 = vrsqrt.f32 %v2558_v9  ;;  %v2555_v31 = vmul.f32 0.0078125, %v2550_v30 }
 0xf35   :  { %v2559_v36 = vadd.f32 1e-05, %v2555_v31 }
 0xf36   :  { %v2552_v12 = vpop.xlane.xlu1 %2551 }
 0xf37   :  { %12259 = vrsqrt.f32 %v2559_v36  ;;  %v2556_v10 = vmul.f32 0.0078125, %v2552_v12 }
 0xf39   :  { %v2560_v35 = vadd.f32 1e-05, %v2556_v10 }
 0xf3b   :  { %12261 = vrsqrt.f32 %v2560_v35 }
 0xf3c   :  { %v12256_v21 = vpop.eup %12255 }
 0xf3d   :  { %v2565_v3 = vmul.f32 %v12256_v21, %v13108_v13 }
 0xf3f   :  { %v2575_v19 = vmul.f32 %v10120_v6, %v2565_v3 }
 0xf40   :  { %v12258_v20 = vpop.eup %12257 }
 0xf41   :  { %v2566_v18 = vmul.f32 %v12258_v20, %v13113_v5  ;;  %v2585_v44 = vadd.f32 %v10121_v37, %v2575_v19 }
 0xf43   :  { %v2576_v22 = vmul.f32 %v10120_v6, %v2566_v18 }
 0xf44   :  { %v12260_v41 = vpop.eup %12259 }
 0xf45   :  { %v2586_v45 = vadd.f32 %v10121_v37, %v2576_v22  ;;  %v2567_v51 = vmul.f32 %v12260_v41, %v13118_v46 }
 0xf47   :  { %v2589_v53 = vpack.c.bf16 %v2586_v45, %v2585_v44  ;;  %v2577_v55 = vmul.f32 %v10120_v6, %v2567_v51 }
 0xf48   :  { %v12262_v13 = vpop.eup %12261 }
 0xf49   :  { %2785 = vmatmul.mubr.bf16.vlgmr.msra.gmra.mxu1 %v2589_v53  ;;  %11225 = vmatprep.mubr.bf16.mxu0 %v2589_v53  ;;  %v2568_v39 = vmul.f32 %v12262_v13, %v13123_v54  ;;  %v2587_v47 = vadd.f32 %v10121_v37, %v2577_v55 }
 0xf4a   :  { %2794 = vmatprep.mubr.bf16.mxu1 %v12580_v40 }
 0xf4b   :  { %v2578_v5 = vmul.f32 %v10120_v6, %v2568_v39 }
 0xf4d   :  { %v2588_v49 = vadd.f32 %v10121_v37, %v2578_v5 }
 0xf4f   :  { %v2590_v26 = vpack.c.bf16 %v2588_v49, %v2587_v47 }
 0xf51   :  { %2795 = vmatmul.mubr.bf16.gmra.mxu1 %v2590_v26  ;;  %11226 = vmatmul.mubr.bf16.vlgmr.msra.gmra.mxu0 %v2590_v26 }
 0xf52   :  { %11231 = vmatprep.mubr.msk.bf16.mxu0 %vm12582_vm0, %v12581_v14  ;;  %11237 = vmatprep.mubr.msk.bf16.mxu1 %vm12582_vm0, %v12581_v14 }
0x1009   :  { %v2786_v46 = vpop.f32.mrf.mxu1 }
0x100a   :  { %v2854_v1 = vmul.f32 0.088388346, %v2786_v46 }
0x100b   :  { %v2788_v43 = vpop.f32.mrf.mxu1 }
0x100d   :  { %v2790_v56 = vpop.f32.mrf.mxu1 }
0x100e   :  { %v2855_v62 = vmul.f32 0.088388346, %v2790_v56 }
0x100f   :  { %v2792_v57 = vpop.f32.mrf.mxu1 }
0x1010   :  { %v13144_v54 = vpack.c.bf16 %v2792_v57, %v2788_v43  ;;  %v13149_v50 = vpack.c.bf16 %v2855_v62, %v2854_v1 }
0x1011   :  { %v2796_v38 = vpop.f32.mrf.mxu1  ;;  %v11227_v58 = vpop.f32.mrf.mxu0 }
0x1012   :  { %v2885_v59 = vsel %vm463_vm1, %v13144_v54, 0  ;;  %v2856_v33 = vmul.f32 0.088388346, %v2796_v38 }
0x1013   :  { %v2798_v60 = vpop.f32.mrf.mxu1  ;;  %v2839_v61 = vpop.f32.mrf.mxu0  ;;  %11230 = vmatpush3.bf16.xpose.msra.mxu0 %v2885_v59 }
0x1014   :  { %11241 = vmatprep.subr.bf16.mxu0 %v12581_v14 }
0x1015   :  { %v2800_v24 = vpop.f32.mrf.mxu1  ;;  %v11228_v63 = vpop.f32.mrf.mxu0 }
0x1016   :  { %v2857_v15 = vmul.f32 0.088388346, %v2800_v24  ;;  %v13166_v16 = vpack.c.bf16 %v11228_v63, %v11227_v58 }
0x1017   :  { %v2802_v52 = vpop.f32.mrf.mxu1  ;;  %v2842_v2 = vpop.f32.mrf.mxu0 }
0x1018   :  { %v13151_v23 = vpack.c.bf16 %v2802_v52, %v2798_v60  ;;  %v13153_v11 = vpack.c.bf16 %v2842_v2, %v2839_v61  ;;  %v13164_v7 = vpack.c.bf16 %v2857_v15, %v2856_v33 }
0x101a   :  { %11232 = vmatmul.mubr.msk.bf16.vlgmr.msra.gmra.mxu0 %vm463_vm1, %v13149_v50  ;;  %v2932_v32 = vsel %vm463_vm1, %v13151_v23, 0 }
0x101b   :  { %11236 = vmatpush3.bf16.xpose.msra.mxu1 %v2932_v32  ;;  %11242 = vmatpush3.bf16.msra.mxu0 %v13153_v11 }
0x101c   :  { %11247 = vmatprep.subr.bf16.mxu1 %v12581_v14  ;;  %11243 = vmatprep.mubr.msk.bf16.mxu0 %vm12582_vm0, %v12581_v14 }
0x101d   :  { %11253 = vmatprep.subr.bf16.mxu0 %v12581_v14 }
0x1022   :  { %11238 = vmatmul.mubr.msk.bf16.vlgmr.msra.gmra.mxu1 %vm463_vm1, %v13164_v7 }
0x1023   :  { %11248 = vmatpush3.bf16.msra.mxu1 %v13166_v16  ;;  %11249 = vmatprep.mubr.msk.bf16.mxu1 %vm12582_vm0, %v12581_v14 }
0x1024   :  { %11259 = vmatprep.subr.bf16.mxu1 %v12581_v14 }
0x10da   :  { %v2921_v34 = vpop.f32.mrf.mxu0 }
0x10db   :  { %v2975_v9 = vsel %vm12760_vm2, %v2921_v34, -1e+30 }
0x10dc   :  { %v11233_v30 = vpop.f32.mrf.mxu0  ;;  %v2979_v31 = vsel %vm566_vm3, %v2975_v9, -inf }
0x10dd   :  { %2980 = vmax.xlane.f32.xlu0 %v2979_v31 }
0x10de   :  { %v2924_v36 = vpop.f32.mrf.mxu0 }
0x10df   :  { %v2976_v12 = vsel %vm12768_vm4, %v2924_v36, -1e+30 }
0x10e0   :  { %v11234_v10 = vpop.f32.mrf.mxu0  ;;  %v2982_v35 = vsel %vm566_vm3, %v2976_v12, -inf }
0x10e1   :  { %2983 = vmax.xlane.f32.xlu1 %v2982_v35 }
0x10e2   :  { %v2968_v21 = vpop.f32.mrf.mxu1 }
0x10e3   :  { %v2977_v3 = vsel %vm12760_vm2, %v2968_v21, -1e+30 }
0x10e4   :  { %v11239_v6 = vpop.f32.mrf.mxu1  ;;  %v2985_v20 = vsel %vm566_vm3, %v2977_v3, -inf }
0x10e5   :  { %2986 = vmax.xlane.f32.xlu0 %v2985_v20 }
0x10e6   :  { %v2971_v18 = vpop.f32.mrf.mxu1 }
0x10e7   :  { %v2978_v37 = vsel %vm12768_vm4, %v2971_v18, -1e+30 }
0x10e8   :  { %v11240_v19 = vpop.f32.mrf.mxu1  ;;  %v2988_v22 = vsel %vm566_vm3, %v2978_v37, -inf }
0x10f2   :  { %3172 = vrot.lane.b32.xlu1 %v13151_v23, %s12583_s8 }
0x10fb   :  { %3119 = vrot.lane.b32.xlu0 %v13144_v54, %s12583_s8 }
0x1116   :  { %2989 = vmax.xlane.f32.xlu1 %v2988_v22 }
0x1127   :  { %3116 = vrot.lane.b32.xlu1 %v13149_v50, %s12583_s8 }
0x112b   :  { %3169 = vrot.lane.b32.xlu1 %v13164_v7, %s12583_s8 }
0x1166   :  { %v2981_v41 = vpop.xlane.xlu0 %2980 }
0x1167   :  { %v2991_v44 = vsub.f32 %v2975_v9, %v2981_v41 }
0x1169   :  { %v2995_v45 = vmul.f32 1.442695, %v2991_v44 }
0x116a   :  { %v2984_v51 = vpop.xlane.xlu1 %2983 }
0x116b   :  { %v2992_v53 = vsub.f32 %v2976_v12, %v2984_v51  ;;  %12263 = vpow2.f32 %v2995_v45 }
0x116d   :  { %v2997_v13 = vmul.f32 1.442695, %v2992_v53 }
0x116e   :  { %v2987_v39 = vpop.xlane.xlu0 %2986  ;;  %v3173_v46 = vpop.permute.xlu1 %3172 }
0x116f   :  { %12265 = vpow2.f32 %v2997_v13  ;;  %v2993_v43 = vsub.f32 %v2977_v3, %v2987_v39  ;;  %v3178_v24 = vsel %vm463_vm1, %v3173_v46, 0 }
0x1171   :  { %v2999_v56 = vmul.f32 1.442695, %v2993_v43 }
0x1172   :  { %v3120_v47 = vpop.permute.xlu0 %3119 }
0x1173   :  { %v3125_v26 = vsel %vm463_vm1, %v3120_v47, 0  ;;  %12267 = vpow2.f32 %v2999_v56 }
0x1178   :  { %v13194_v55 = vpop.eup %12263 }
0x1179   :  { %v3003_v53 = vsel %vm566_vm3, %v13194_v55, 0.0 }
0x117c   :  { %v12266_v5 = vpop.eup %12265 }
0x117d   :  { %v3015_v49 = vpack.c.bf16 %v12266_v5, %v13194_v55  ;;  %v3006_v45 = vsel %vm566_vm3, %v12266_v5, 0.0  ;;  %v11839_v5 = vld [vmem:[%s14286_s4 + $0x48] sm:$0xff]  }
0x117f   :  { %11244 = vmatmul.mubr.msk.bf16.vlgmr.msra.gmra.mxu0 %vm566_vm3, %v3015_v49 }
0x1180   :  { %11254 = vmatpush3.bf16.xpose.msra.mxu0 %v3125_v26  ;;  %11255 = vmatprep.mubr.msk.bf16.mxu0 %vm12582_vm0, %v12581_v14  ;;  %v12268_v60 = vpop.eup %12267 }
0x1181   :  { %11265 = vmatprep.subr.bf16.mxu0 %v12581_v14  ;;  %v3009_v13 = vsel %vm566_vm3, %v12268_v60, 0.0 }
0x119f   :  { %v2990_v57 = vpop.xlane.xlu1 %2989 }
0x11a0   :  { %v2994_v38 = vsub.f32 %v2978_v37, %v2990_v57 }
0x11a2   :  { %v3001_v58 = vmul.f32 1.442695, %v2994_v38 }
0x11a3   :  { %v3117_v59 = vpop.permute.xlu1 %3116 }
0x11a4   :  { %12269 = vpow2.f32 %v3001_v58  ;;  %11256 = vmatmul.mubr.msk.bf16.vlgmr.msra.gmra.mxu0 %vm463_vm1, %v3117_v59 }
0x11a5   :  { %11267 = vmatprep.mubr.msk.bf16.mxu0 %vm12582_vm0, %v12581_v14 }
0x11a7   :  { %v3170_v63 = vpop.permute.xlu1 %3169 }
0x11b1   :  { %v12270_v61 = vpop.eup %12269 }
0x11b2   :  { %v3016_v62 = vpack.c.bf16 %v12270_v61, %v12268_v60  ;;  %v3012_v51 = vsel %vm566_vm3, %v12270_v61, 0.0 }
0x11b4   :  { %11250 = vmatmul.mubr.msk.bf16.vlgmr.msra.gmra.mxu1 %vm566_vm3, %v3016_v62 }
0x11b5   :  { %11260 = vmatpush3.bf16.xpose.msra.mxu1 %v3178_v24  ;;  %11261 = vmatprep.mubr.msk.bf16.mxu1 %vm12582_vm0, %v12581_v14 }
0x11b6   :  { %11271 = vmatprep.subr.bf16.mxu1 %v12581_v14 }
0x11bc   :  { %11262 = vmatmul.mubr.msk.bf16.vlgmr.msra.gmra.mxu1 %vm463_vm1, %v3170_v63 }
0x11bd   :  { %11273 = vmatprep.mubr.msk.bf16.mxu1 %vm12582_vm0, %v12581_v14 }
0x123f   :  { %v13213_v1 = vpop.f32.mrf.mxu0 }
0x1241   :  { %v11245_v52 = vpop.f32.mrf.mxu0 }
0x1243   :  { %v13215_v2 = vpop.f32.mrf.mxu0 }
0x1245   :  { %v11246_v32 = vpop.f32.mrf.mxu0 }
0x1264   :  { %v3161_v15 = vpop.f32.mrf.mxu0 }
0x1265   :  { %v3221_v33 = vsel %vm12760_vm2, %v3161_v15, -1e+30 }
0x1266   :  { %v11257_v34 = vpop.f32.mrf.mxu0  ;;  %v3225_v9 = vsel %vm566_vm3, %v3221_v33, -inf }
0x1267   :  { %3226 = vmax.xlane.f32.xlu0 %v3225_v9 }
0x1268   :  { %v3164_v30 = vpop.f32.mrf.mxu0 }
0x1269   :  { %v3222_v31 = vsel %vm12768_vm4, %v3164_v30, -1e+30  ;;  %v11840_v30 = vld [vmem:[%s14286_s4 + $0x40] sm:$0xff]  }
0x126a   :  { %v11258_v36 = vpop.f32.mrf.mxu0  ;;  %v3228_v12 = vsel %vm566_vm3, %v3222_v31, -inf }
0x126b   :  { %3229 = vmax.xlane.f32.xlu1 %v3228_v12 }
0x1274   :  { %v13223_v10 = vpop.f32.mrf.mxu1 }
0x1276   :  { %v11251_v35 = vpop.f32.mrf.mxu1 }
0x1278   :  { %v13225_v21 = vpop.f32.mrf.mxu1 }
0x127a   :  { %v11252_v3 = vpop.f32.mrf.mxu1 }
0x127c   :  { %3312 = vrot.lane.b32.xlu1 %v13166_v16, %s12583_s8  ;;  %v3214_v6 = vpop.f32.mrf.mxu1 }
0x127d   :  { %v3223_v20 = vsel %vm12760_vm2, %v3214_v6, -1e+30 }
0x127e   :  { %v11263_v18 = vpop.f32.mrf.mxu1  ;;  %v3231_v19 = vsel %vm566_vm3, %v3223_v20, -inf }
0x127f   :  { %3232 = vmax.xlane.f32.xlu0 %v3231_v19 }
0x1280   :  { %v3217_v37 = vpop.f32.mrf.mxu1 }
0x1281   :  { %v3224_v22 = vsel %vm12768_vm4, %v3217_v37, -1e+30 }
0x1282   :  { %v11264_v41 = vpop.f32.mrf.mxu1  ;;  %v3234_v44 = vsel %vm566_vm3, %v3224_v22, -inf }
0x1283   :  { %3235 = vmax.xlane.f32.xlu0 %v3234_v44 }
0x1299   :  { %3264 = vrot.lane.b32.xlu0 %v13153_v11, %s12583_s8 }
0x12a0   :  { %3007 = vadd.xlane.f32.xlu1 %v3006_v45 }
0x12a4   :  { %3013 = vadd.xlane.f32.xlu1 %v3012_v51 }
0x12b8   :  { %3004 = vadd.xlane.f32.xlu0 %v3003_v53 }
0x12bc   :  { %3010 = vadd.xlane.f32.xlu0 %v3009_v13 }
0x12f0   :  { %v3227_v39 = vpop.xlane.xlu0 %3226 }
0x12f1   :  { %v3237_v47 = vsub.f32 %v3221_v33, %v3227_v39 }
0x12f3   :  { %v3241_v49 = vmul.f32 1.442695, %v3237_v47 }
0x12f4   :  { %v3230_v26 = vpop.xlane.xlu1 %3229 }
0x12f5   :  { %12271 = vpow2.f32 %v3241_v49  ;;  %v3238_v46 = vsub.f32 %v3222_v31, %v3230_v26 }
0x12f7   :  { %v3243_v43 = vmul.f32 1.442695, %v3238_v46 }
0x12f8   :  { %v3313_v56 = vpop.permute.xlu1 %3312 }
0x12f9   :  { %12273 = vpow2.f32 %v3243_v43  ;;  %11272 = vmatpush3.bf16.msra.mxu1 %v3313_v56 }
0x12fa   :  { %11285 = vmatprep.subr.bf16.mxu1 %v11839_v5 }
0x1302   :  { %v12272_v55 = vpop.eup %12271 }
0x1303   :  { %v3249_v57 = vsel %vm566_vm3, %v12272_v55, 0.0 }
0x1304   :  { %3250 = vadd.xlane.f32.xlu1 %v3249_v57 }
0x1306   :  { %v12274_v38 = vpop.eup %12273 }
0x1307   :  { %v3252_v58 = vsel %vm566_vm3, %v12274_v38, 0.0  ;;  %v3261_v32 = vpack.c.bf16 %v12274_v38, %v12272_v55 }
0x1308   :  { %v3233_v59 = vpop.xlane.xlu0 %3232  ;;  %3253 = vadd.xlane.f32.xlu0 %v3252_v58 }
0x1309   :  { %v3239_v60 = vsub.f32 %v3223_v20, %v3233_v59 }
0x130b   :  { %v3245_v61 = vmul.f32 1.442695, %v3239_v60 }
0x130c   :  { %v3236_v62 = vpop.xlane.xlu0 %3235 }
0x130d   :  { %12275 = vpow2.f32 %v3245_v61  ;;  %v3240_v24 = vsub.f32 %v3224_v22, %v3236_v62 }
0x130f   :  { %v3247_v63 = vmul.f32 1.442695, %v3240_v24 }
0x1310   :  { %v3265_v52 = vpop.permute.xlu0 %3264 }
0x1311   :  { %12277 = vpow2.f32 %v3247_v63  ;;  %11266 = vmatpush3.bf16.msra.mxu0 %v3265_v52 }
0x1314   :  { %11268 = vmatmul.mubr.msk.bf16.vlgmr.msra.gmra.mxu0 %vm566_vm3, %v3261_v32 }
0x1315   :  { %3556 = vrot.lane.b32.xlu1 %v13151_v23, %s12578_s22 }
0x131a   :  { %v12276_v15 = vpop.eup %12275 }
0x131b   :  { %v3255_v33 = vsel %vm566_vm3, %v12276_v15, 0.0 }
0x131c   :  { %3256 = vadd.xlane.f32.xlu0 %v3255_v33 }
0x131e   :  { %v12278_v34 = vpop.eup %12277 }
0x131f   :  { %v3262_v9 = vpack.c.bf16 %v12278_v34, %v12276_v15  ;;  %v3258_v31 = vsel %vm566_vm3, %v12278_v34, 0.0 }
0x1321   :  { %11274 = vmatmul.mubr.msk.bf16.vlgmr.msra.gmra.mxu1 %vm566_vm3, %v3262_v9 }
0x1322   :  { %11286 = vmatpush3.bf16.msra.mxu1 %v11839_v5 }
0x1323   :  { %11287 = vmatprep.subr.bf16.mxu1 %v11840_v30 }
0x1326   :  { %11288 = vmatpush3.bf16.msra.mxu1 %v11840_v30 }
0x1327   :  { %11299 = vmatprep.subr.bf16.mxu1 %v12581_v14 }
0x1329   :  { %v3008_v36 = vpop.xlane.xlu1 %3007 }
0x132a   :  { %12279 = vrcp.f32 %v3008_v36 }
0x132d   :  { %v3014_v12 = vpop.xlane.xlu1 %3013 }
0x1332   :  { %3505 = vrot.lane.b32.xlu0 %v13144_v54, %s12578_s22 }
0x1337   :  { %v12280_v6 = vpop.eup %12279 }
0x1338   :  { %v3110_v19 = vmul.f32 %v12280_v6, %v13215_v2  ;;  %v11842_v2 = vld [vmem:[%s14286_s4 + $0x50] sm:$0xff]  }
0x1339   :  { %3259 = vadd.xlane.f32.xlu1 %v3258_v31 }
0x1341   :  { %v3005_v35 = vpop.xlane.xlu0 %3004 }
0x1342   :  { %12281 = vrcp.f32 %v3005_v35 }
0x1343   :  { %12283 = vrcp.f32 %v3014_v12 }
0x1345   :  { %v3011_v3 = vpop.xlane.xlu0 %3010 }
0x1346   :  { %12285 = vrcp.f32 %v3011_v3 }
0x134a   :  { %3503 = vrot.lane.b32.xlu1 %v13149_v50, %s12578_s22 }
0x134e   :  { %3554 = vrot.lane.b32.xlu1 %v13164_v7, %s12578_s22 }
0x134f   :  { %v12282_v20 = vpop.eup %12281 }
0x1350   :  { %v3109_v18 = vmul.f32 %v12282_v20, %v13213_v1  ;;  %v12284_v37 = vpop.eup %12283  ;;  %v11841_v1 = vld [vmem:[%s14286_s4 + $0x58] sm:$0xff]  }
0x1351   :  { %v3112_v45 = vmul.f32 %v12284_v37, %v13225_v21  ;;  %11277 = vmatprep.subr.bf16.mxu0 %v11841_v1 }
0x1352   :  { %v3113_v22 = vpack.c.bf16 %v3110_v19, %v3109_v18  ;;  %11278 = vmatpush3.bf16.msra.mxu0 %v11841_v1 }
0x1353   :  { %v12286_v41 = vpop.eup %12285  ;;  %11279 = vmatprep.subr.bf16.mxu0 %v11842_v2 }
0x1354   :  { %11289 = vmatprep.mubr.msk.bf16.mxu1 %vm463_vm1, %v3113_v22  ;;  %v3111_v44 = vmul.f32 %v12286_v41, %v13223_v10 }
0x1356   :  { %v3114_v51 = vpack.c.bf16 %v3112_v45, %v3111_v44  ;;  %11280 = vmatpush3.bf16.msra.mxu0 %v11842_v2 }
0x1357   :  { %11293 = vmatprep.subr.bf16.mxu0 %v12581_v14 }
0x1358   :  { %11290 = vmatmul.mubr.msk.bf16.vlgmr.msra.gmra.mxu1 %vm463_vm1, %v3114_v51 }
0x1359   :  { %11301 = vmatprep.mubr.msk.bf16.mxu1 %vm12582_vm0, %v12581_v14 }
0x138d   :  { %v3251_v10 = vpop.xlane.xlu1 %3250 }
0x138e   :  { %12287 = vrcp.f32 %v3251_v10 }
0x1391   :  { %v3557_v21 = vpop.permute.xlu1 %3556  ;;  %v3254_v47 = vpop.xlane.xlu0 %3253 }
0x1392   :  { %v3562_v53 = vsel %vm463_vm1, %v3557_v21, 0  ;;  %12289 = vrcp.f32 %v3254_v47 }
0x1393   :  { %11300 = vmatpush3.bf16.xpose.msra.mxu1 %v3562_v53 }
0x1394   :  { %11311 = vmatprep.subr.bf16.mxu1 %v12581_v14 }
0x139b   :  { %v12288_v43 = vpop.eup %12287 }
0x139f   :  { %v12290_v56 = vpop.eup %12289 }
0x13a5   :  { %v3257_v26 = vpop.xlane.xlu0 %3256 }
0x13a6   :  { %12291 = vrcp.f32 %v3257_v26 }
0x13a9   :  { %v3506_v15 = vpop.permute.xlu0 %3505 }
0x13aa   :  { %v3511_v9 = vsel %vm463_vm1, %v3506_v15, 0 }
0x13b3   :  { %v12292_v62 = vpop.eup %12291 }
0x13c2   :  { %v3260_v13 = vpop.xlane.xlu1 %3259 }
0x13c3   :  { %12293 = vrcp.f32 %v3260_v13 }
0x13c6   :  { %v3504_v39 = vpop.permute.xlu1 %3503 }
0x13ca   :  { %v3555_v49 = vpop.permute.xlu1 %3554 }
0x13cb   :  { %11302 = vmatmul.mubr.msk.bf16.vlgmr.msra.gmra.mxu1 %vm463_vm1, %v3555_v49 }
0x13cc   :  { %11313 = vmatprep.mubr.msk.bf16.mxu1 %vm12582_vm0, %v12581_v14 }
0x13d0   :  { %v12294_v24 = vpop.eup %12293 }
0x13d4   :  { %v3304_v46 = vpop.f32.mrf.mxu0 }
0x13d5   :  { %v3363_v57 = vmul.f32 %v12288_v43, %v3304_v46 }
0x13d6   :  { %v11269_v5 = vpop.f32.mrf.mxu0 }
0x13d8   :  { %v3307_v55 = vpop.f32.mrf.mxu0 }
0x13d9   :  { %v3364_v38 = vmul.f32 %v12290_v56, %v3307_v55 }
0x13da   :  { %v11270_v58 = vpop.f32.mrf.mxu0 }
0x13db   :  { %v3367_v59 = vpack.c.bf16 %v3364_v38, %v3363_v57 }
0x13dd   :  { %11281 = vmatprep.mubr.msk.bf16.mxu0 %vm463_vm1, %v3367_v59 }
0x13e1   :  { %v3352_v60 = vpop.f32.mrf.mxu1 }
0x13e2   :  { %v3365_v52 = vmul.f32 %v12292_v62, %v3352_v60 }
0x13e3   :  { %v11275_v61 = vpop.f32.mrf.mxu1 }
0x13e5   :  { %v3355_v63 = vpop.f32.mrf.mxu1 }
0x13e6   :  { %v3366_v32 = vmul.f32 %v12294_v24, %v3355_v63 }
0x13e7   :  { %v11276_v33 = vpop.f32.mrf.mxu1 }
0x13e8   :  { %v3368_v34 = vpack.c.bf16 %v3366_v32, %v3365_v52 }
0x13ea   :  { %11282 = vmatmul.mubr.msk.bf16.vlgmr.msra.gmra.mxu0 %vm463_vm1, %v3368_v34 }
0x13eb   :  { %11294 = vmatpush3.bf16.xpose.msra.mxu0 %v3511_v9  ;;  %11295 = vmatprep.mubr.msk.bf16.mxu0 %vm12582_vm0, %v12581_v14 }
0x13ec   :  { %11305 = vmatprep.subr.bf16.mxu0 %v12581_v14 }
0x13f2   :  { %11296 = vmatmul.mubr.msk.bf16.vlgmr.msra.gmra.mxu0 %vm463_vm1, %v3504_v39 }
0x13f3   :  { %11307 = vmatprep.mubr.msk.bf16.mxu0 %vm12582_vm0, %v12581_v14 }
0x1418   :  { %v13292_v30 = vpop.f32.mrf.mxu1 }
0x141a   :  { %v13294_v31 = vpop.f32.mrf.mxu1 }
0x141c   :  { %v13296_v36 = vpop.f32.mrf.mxu1 }
0x141e   :  { %v13298_v12 = vpop.f32.mrf.mxu1 }
0x148b   :  { %v3598_v35 = vpop.f32.mrf.mxu1 }
0x148c   :  { %v3607_v3 = vsel %vm12760_vm2, %v3598_v35, -1e+30 }
0x148d   :  { %v3615_v6 = vsel %vm566_vm3, %v3607_v3, -inf  ;;  %v11303_v20 = vpop.f32.mrf.mxu1 }
0x148e   :  { %3616 = vmax.xlane.f32.xlu0 %v3615_v6  ;;  %v11843_v6 = vld [vmem:[%s14286_s4 + $0x68] sm:$0xff]   ;;  %v11844_v20 = vld [vmem:[%s14286_s4 + $0x60] sm:$0xff]  }
0x148f   :  { %v3601_v18 = vpop.f32.mrf.mxu1 }
0x1490   :  { %v3608_v19 = vsel %vm12768_vm4, %v3601_v18, -1e+30 }
0x1491   :  { %v3618_v37 = vsel %vm566_vm3, %v3608_v19, -inf  ;;  %v11304_v22 = vpop.f32.mrf.mxu1 }
0x1492   :  { %3619 = vmax.xlane.f32.xlu0 %v3618_v37 }
0x14aa   :  { %v13306_v41 = vpop.f32.mrf.mxu0 }
0x14ac   :  { %v13308_v44 = vpop.f32.mrf.mxu0 }
0x14ae   :  { %v13310_v45 = vpop.f32.mrf.mxu0 }
0x14b0   :  { %v13312_v51 = vpop.f32.mrf.mxu0 }
0x14b2   :  { %v3547_v1 = vpop.f32.mrf.mxu0 }
0x14b3   :  { %v3605_v2 = vsel %vm12760_vm2, %v3547_v1, -1e+30 }
0x14b4   :  { %v3609_v10 = vsel %vm566_vm3, %v3605_v2, -inf  ;;  %v11297_v21 = vpop.f32.mrf.mxu0 }
0x14b5   :  { %3610 = vmax.xlane.f32.xlu0 %v3609_v10 }
0x14b6   :  { %v3550_v53 = vpop.f32.mrf.mxu0 }
0x14b7   :  { %v3606_v13 = vsel %vm12768_vm4, %v3550_v53, -1e+30 }
0x14b8   :  { %v3612_v39 = vsel %vm566_vm3, %v3606_v13, -inf  ;;  %v11298_v47 = vpop.f32.mrf.mxu0 }
0x14b9   :  { %3613 = vmax.xlane.f32.xlu1 %v3612_v39 }
0x14ca   :  { %3694 = vrot.lane.b32.xlu1 %v13166_v16, %s12578_s22 }
0x14cb   :  { %3647 = vrot.lane.b32.xlu0 %v13153_v11, %s12578_s22 }
0x1517   :  { %v3617_v49 = vpop.xlane.xlu0 %3616 }
0x1518   :  { %v3623_v26 = vsub.f32 %v3607_v3, %v3617_v49 }
0x151a   :  { %v3629_v46 = vmul.f32 1.442695, %v3623_v26 }
0x151b   :  { %v3620_v5 = vpop.xlane.xlu0 %3619 }
0x151c   :  { %12295 = vpow2.f32 %v3629_v46  ;;  %v3624_v43 = vsub.f32 %v3608_v19, %v3620_v5 }
0x151e   :  { %v3631_v56 = vmul.f32 1.442695, %v3624_v43 }
0x1520   :  { %12297 = vpow2.f32 %v3631_v56 }
0x1529   :  { %v12296_v55 = vpop.eup %12295 }
0x152a   :  { %v3639_v57 = vsel %vm566_vm3, %v12296_v55, 0.0 }
0x152b   :  { %3640 = vadd.xlane.f32.xlu0 %v3639_v57 }
0x152d   :  { %v12298_v38 = vpop.eup %12297 }
0x152e   :  { %v3642_v58 = vsel %vm566_vm3, %v12298_v38, 0.0  ;;  %v3646_v15 = vpack.c.bf16 %v12298_v38, %v12296_v55 }
0x152f   :  { %3643 = vadd.xlane.f32.xlu1 %v3642_v58 }
0x153e   :  { %v3611_v59 = vpop.xlane.xlu0 %3610 }
0x153f   :  { %v3621_v60 = vsub.f32 %v3605_v2, %v3611_v59 }
0x1541   :  { %v3625_v61 = vmul.f32 1.442695, %v3621_v60 }
0x1542   :  { %v3614_v62 = vpop.xlane.xlu1 %3613  ;;  %v3648_v24 = vpop.permute.xlu0 %3647 }
0x1543   :  { %12299 = vpow2.f32 %v3625_v61  ;;  %v3622_v63 = vsub.f32 %v3606_v13, %v3614_v62  ;;  %11306 = vmatpush3.bf16.msra.mxu0 %v3648_v24 }
0x1544   :  { %11317 = vmatprep.subr.bf16.mxu0 %v11843_v6 }
0x1545   :  { %v3627_v52 = vmul.f32 1.442695, %v3622_v63 }
0x1546   :  { %v3695_v32 = vpop.permute.xlu1 %3694 }
0x1547   :  { %12301 = vpow2.f32 %v3627_v52  ;;  %11312 = vmatpush3.bf16.msra.mxu1 %v3695_v32 }
0x1548   :  { %11325 = vmatprep.subr.bf16.mxu1 %v12581_v14 }
0x154a   :  { %11314 = vmatmul.mubr.msk.bf16.vlgmr.msra.gmra.mxu1 %vm566_vm3, %v3646_v15 }
0x154b   :  { %11327 = vmatprep.mubr.msk.bf16.mxu1 %vm12582_vm0, %v12581_v14 }
0x1550   :  { %v12300_v33 = vpop.eup %12299 }
0x1551   :  { %v3633_v34 = vsel %vm566_vm3, %v12300_v33, 0.0 }
0x1552   :  { %3634 = vadd.xlane.f32.xlu1 %v3633_v34  ;;  %v3497_v34 = vadd.f32 %v13292_v30, %v13306_v41 }
0x1554   :  { %v12302_v9 = vpop.eup %12301 }
0x1555   :  { %v3636_v35 = vsel %vm566_vm3, %v12302_v9, 0.0  ;;  %v3645_v3 = vpack.c.bf16 %v12302_v9, %v12300_v33 }
0x1556   :  { %3637 = vadd.xlane.f32.xlu0 %v3636_v35  ;;  %v3489_v35 = vadd.f32 %v13294_v31, %v13308_v44 }
0x1557   :  { %11308 = vmatmul.mubr.msk.bf16.vlgmr.msra.gmra.mxu0 %vm566_vm3, %v3645_v3 }
0x1558   :  { %11318 = vmatpush3.bf16.msra.mxu0 %v11843_v6 }
0x1559   :  { %11319 = vmatprep.subr.bf16.mxu0 %v11844_v20 }
0x155c   :  { %11320 = vmatpush3.bf16.msra.mxu0 %v11844_v20  ;;  %v3500_v20 = vadd.f32 %v13296_v36, %v13310_v45 }
0x155d   :  { %11331 = vmatprep.subr.bf16.mxu0 %v12581_v14 }
0x1563   :  { %3875 = vrot.lane.b32.xlu1 %v13151_v23, %s12584_s0 }
0x1567   :  { %3822 = vrot.lane.b32.xlu1 %v13149_v50, %s12584_s0 }
0x156b   :  { %3873 = vrot.lane.b32.xlu1 %v13164_v7, %s12584_s0 }
0x156c   :  { %3824 = vrot.lane.b32.xlu0 %v13144_v54, %s12584_s0 }
0x15b4   :  { %v3641_v50 = vpop.xlane.xlu0 %3640 }
0x15b8   :  { %v3644_v23 = vpop.xlane.xlu1 %3643 }
0x15b9   :  { %12303 = vrcp.f32 %v3644_v23 }
0x15c6   :  { %v12304_v13 = vpop.eup %12303 }
0x15db   :  { %v3635_v7 = vpop.xlane.xlu1 %3634 }
0x15dc   :  { %12305 = vrcp.f32 %v3635_v7 }
0x15df   :  { %v3638_v18 = vpop.xlane.xlu0 %3637  ;;  %v3876_v37 = vpop.permute.xlu1 %3875 }
0x15e0   :  { %12307 = vrcp.f32 %v3638_v18  ;;  %v3881_v59 = vsel %vm463_vm1, %v3876_v37, 0 }
0x15e1   :  { %12309 = vrcp.f32 %v3641_v50 }
0x15e3   :  { %v3825_v19 = vpop.permute.xlu0 %3824  ;;  %v3823_v22 = vpop.permute.xlu1 %3822 }
0x15e4   :  { %v3830_v54 = vsel %vm463_vm1, %v3825_v19, 0 }
0x15e5   :  { %11326 = vmatpush3.bf16.xpose.msra.mxu1 %v3830_v54 }
0x15e6   :  { %11337 = vmatprep.subr.bf16.mxu1 %v12581_v14 }
0x15e7   :  { %v3874_v60 = vpop.permute.xlu1 %3873 }
0x15e9   :  { %v12306_v47 = vpop.eup %12305 }
0x15ec   :  { %11328 = vmatmul.mubr.msk.bf16.vlgmr.msra.gmra.mxu1 %vm463_vm1, %v3823_v22 }
0x15ed   :  { %11339 = vmatprep.mubr.msk.bf16.mxu1 %vm12582_vm0, %v12581_v14  ;;  %v12308_v49 = vpop.eup %12307 }
0x15ee   :  { %v12310_v5 = vpop.eup %12309 }
0x160a   :  { %v3734_v1 = vpop.f32.mrf.mxu1 }
0x160b   :  { %v3747_v55 = vmul.f32 %v12310_v5, %v3734_v1 }
0x160c   :  { %v11315_v2 = vpop.f32.mrf.mxu1 }
0x160e   :  { %v3737_v10 = vpop.f32.mrf.mxu1 }
0x160f   :  { %v3748_v26 = vmul.f32 %v12304_v13, %v3737_v10 }
0x1610   :  { %v11316_v21 = vpop.f32.mrf.mxu1 }
0x1611   :  { %v3750_v58 = vpack.c.bf16 %v3748_v26, %v3747_v55 }
0x1617   :  { %v3687_v53 = vpop.f32.mrf.mxu0 }
0x1618   :  { %v3745_v43 = vmul.f32 %v12306_v47, %v3687_v53 }
0x1619   :  { %v11309_v39 = vpop.f32.mrf.mxu0 }
0x161b   :  { %v3690_v46 = vpop.f32.mrf.mxu0 }
0x161c   :  { %v3746_v56 = vmul.f32 %v12308_v49, %v3690_v46 }
0x161d   :  { %v11310_v57 = vpop.f32.mrf.mxu0 }
0x161e   :  { %v3749_v38 = vpack.c.bf16 %v3746_v56, %v3745_v43 }
0x1620   :  { %11321 = vmatprep.mubr.msk.bf16.mxu0 %vm463_vm1, %v3749_v38 }
0x1621   :  { %11322 = vmatmul.mubr.msk.bf16.vlgmr.msra.gmra.mxu0 %vm463_vm1, %v3750_v58 }
0x1622   :  { %11332 = vmatpush3.bf16.xpose.msra.mxu0 %v3881_v59  ;;  %11333 = vmatprep.mubr.msk.bf16.mxu0 %vm12582_vm0, %v12581_v14 }
0x1623   :  { %11343 = vmatprep.subr.bf16.mxu0 %v12581_v14 }
0x1629   :  { %11334 = vmatmul.mubr.msk.bf16.vlgmr.msra.gmra.mxu0 %vm463_vm1, %v3874_v60 }
0x162a   :  { %11345 = vmatprep.mubr.msk.bf16.mxu0 %vm12582_vm0, %v12581_v14 }
0x16ac   :  { %v3866_v61 = vpop.f32.mrf.mxu1 }
0x16ad   :  { %v3924_v62 = vsel %vm12760_vm2, %v3866_v61, -1e+30  ;;  %v11845_v61 = vld [vmem:[%s14286_s4 + $0x78] sm:$0xff]  }
0x16ae   :  { %v3928_v24 = vsel %vm566_vm3, %v3924_v62, -inf  ;;  %v11329_v63 = vpop.f32.mrf.mxu1 }
0x16af   :  { %3929 = vmax.xlane.f32.xlu0 %v3928_v24 }
0x16b0   :  { %v3869_v52 = vpop.f32.mrf.mxu1 }
0x16b1   :  { %v3925_v32 = vsel %vm12768_vm4, %v3869_v52, -1e+30 }
0x16b2   :  { %v3931_v15 = vsel %vm566_vm3, %v3925_v32, -inf  ;;  %v11330_v33 = vpop.f32.mrf.mxu1 }
0x16b3   :  { %3932 = vmax.xlane.f32.xlu1 %v3931_v15 }
0x16c4   :  { %4013 = vrot.lane.b32.xlu1 %v13166_v16, %s12584_s0 }
0x16e1   :  { %v11323_v9 = vpop.f32.mrf.mxu0 }
0x16e2   :  { %v13374_v3 = vadd.f32 %v11323_v9, %v3497_v34 }
0x16e3   :  { %v3803_v6 = vpop.f32.mrf.mxu0 }
0x16e4   :  { %v13378_v50 = vadd.f32 %v3803_v6, %v3489_v35 }
0x16e5   :  { %v11324_v23 = vpop.f32.mrf.mxu0 }
0x16e6   :  { %v13380_v7 = vadd.f32 %v11324_v23, %v3500_v20 }
0x16e7   :  { %v13382_v18 = vpop.f32.mrf.mxu0 }
0x16e9   :  { %v3917_v16 = vpop.f32.mrf.mxu0 }
0x16ea   :  { %v3926_v30 = vsel %vm12760_vm2, %v3917_v16, -1e+30 }
0x16eb   :  { %v3934_v41 = vsel %vm566_vm3, %v3926_v30, -inf  ;;  %v11335_v31 = vpop.f32.mrf.mxu0 }
0x16ec   :  { %3935 = vmax.xlane.f32.xlu0 %v3934_v41 }
0x16ed   :  { %v3920_v44 = vpop.f32.mrf.mxu0 }
0x16ee   :  { %v3927_v19 = vsel %vm12768_vm4, %v3920_v44, -1e+30 }
0x16ef   :  { %v3937_v36 = vsel %vm566_vm3, %v3927_v19, -inf  ;;  %v11336_v45 = vpop.f32.mrf.mxu0 }
0x16f0   :  { %3938 = vmax.xlane.f32.xlu0 %v3937_v36 }
0x1706   :  { %3966 = vrot.lane.b32.xlu0 %v13153_v11, %s12584_s0 }
0x1738   :  { %v3930_v54 = vpop.xlane.xlu0 %3929 }
0x1739   :  { %v3940_v37 = vsub.f32 %v3924_v62, %v3930_v54  ;;  %v11846_v62 = vld [vmem:[%s14286_s4 + $0x70] sm:$0xff]  }
0x173b   :  { %v3944_v22 = vmul.f32 1.442695, %v3940_v37 }
0x173c   :  { %v3933_v1 = vpop.xlane.xlu1 %3932 }
0x173d   :  { %12311 = vpow2.f32 %v3944_v22  ;;  %v3941_v2 = vsub.f32 %v3925_v32, %v3933_v1 }
0x173f   :  { %v3946_v10 = vmul.f32 1.442695, %v3941_v2  ;;  %v3492_v2 = vadd.f32 %v13298_v12, %v13312_v51 }
0x1740   :  { %v4014_v21 = vpop.permute.xlu1 %4013 }
0x1741   :  { %12313 = vpow2.f32 %v3946_v10  ;;  %11344 = vmatpush3.bf16.msra.mxu0 %v4014_v21 }
0x174a   :  { %v12312_v53 = vpop.eup %12311 }
0x174b   :  { %v3952_v13 = vsel %vm566_vm3, %v12312_v53, 0.0 }
0x174c   :  { %3953 = vadd.xlane.f32.xlu1 %v3952_v13  ;;  %v3819_v13 = vadd.f32 %v13382_v18, %v3492_v2  ;;  %v11849_v18 = vld [vmem:[#allocation4 + $0x1e4] ss:$16 sps:$4 sm:$0xff]   ;;  %v11880_v2 = vld [vmem:[#allocation4 + $0x148] ss:$16 sps:$4 sm:$0xff]  }
0x174d   :  { %4443 = vmatprep.subr.bf16.mxu0 %v11849_v18 }
0x174e   :  { %v12314_v39 = vpop.eup %12313 }
0x174f   :  { %v3955_v47 = vsel %vm566_vm3, %v12314_v39, 0.0  ;;  %v3964_v55 = vpack.c.bf16 %v12314_v39, %v12312_v53 }
0x1750   :  { %3956 = vadd.xlane.f32.xlu0 %v3955_v47 }
0x1775   :  { %v3936_v49 = vpop.xlane.xlu0 %3935 }
0x1776   :  { %v3942_v11 = vsub.f32 %v3926_v30, %v3936_v49  ;;  %v10195_v49 = vld [vmem:[%s14287_s5 + $0x1] ss:$0 sm:$0xff] }
0x1778   :  { %v3948_v26 = vmul.f32 1.442695, %v3942_v11 }
0x1779   :  { %v3939_v46 = vpop.xlane.xlu0 %3938 }
0x177a   :  { %12315 = vpow2.f32 %v3948_v26  ;;  %v3943_v5 = vsub.f32 %v3927_v19, %v3939_v46 }
0x177c   :  { %v3950_v43 = vmul.f32 1.442695, %v3943_v5  ;;  %v11850_v5 = vld [vmem:[#allocation4 + $0x1e8] ss:$16 sps:$4 sm:$0xff]  }
0x177d   :  { %v3967_v56 = vpop.permute.xlu0 %3966 }
0x177e   :  { %12317 = vpow2.f32 %v3950_v43  ;;  %11338 = vmatpush3.bf16.msra.mxu1 %v3967_v56 }
0x177f   :  { %11349 = vmatprep.subr.bf16.mxu1 %v11845_v61 }
0x1781   :  { %11340 = vmatmul.mubr.msk.bf16.vlgmr.msra.gmra.mxu1 %vm566_vm3, %v3964_v55 }
0x1782   :  { %11350 = vmatpush3.bf16.msra.mxu1 %v11845_v61 }
0x1783   :  { %11351 = vmatprep.subr.bf16.mxu1 %v11846_v62 }
0x1786   :  { %11352 = vmatpush3.bf16.msra.mxu1 %v11846_v62 }
0x1787   :  { %v12316_v57 = vpop.eup %12315 }
0x1788   :  { %v3958_v38 = vsel %vm566_vm3, %v12316_v57, 0.0 }
0x1789   :  { %3959 = vadd.xlane.f32.xlu0 %v3958_v38 }
0x178b   :  { %v12318_v58 = vpop.eup %12317 }
0x178c   :  { %v3961_v59 = vsel %vm566_vm3, %v12318_v58, 0.0  ;;  %v3965_v60 = vpack.c.bf16 %v12318_v58, %v12316_v57 }
0x178d   :  { %3962 = vadd.xlane.f32.xlu1 %v3961_v59 }
0x178e   :  { %11346 = vmatmul.mubr.msk.bf16.vlgmr.msra.gmra.mxu0 %vm566_vm3, %v3965_v60 }
0x178f   :  { %4475 = vmatprep.mubr.bf16.mxu0 %v12580_v40 }
0x17d5   :  { %v3954_v24 = vpop.xlane.xlu1 %3953 }
0x17d6   :  { %12319 = vrcp.f32 %v3954_v24 }
0x17d9   :  { %v3957_v63 = vpop.xlane.xlu0 %3956 }
0x17da   :  { %12321 = vrcp.f32 %v3957_v63 }
0x17e3   :  { %v12320_v34 = vpop.eup %12319 }
0x17e7   :  { %v12322_v9 = vpop.eup %12321 }
0x1812   :  { %v3960_v52 = vpop.xlane.xlu0 %3959 }
0x1813   :  { %12323 = vrcp.f32 %v3960_v52 }
0x1816   :  { %v3963_v15 = vpop.xlane.xlu1 %3962 }
0x1817   :  { %12325 = vrcp.f32 %v3963_v15 }
0x1820   :  { %v12324_v31 = vpop.eup %12323 }
0x1824   :  { %v12326_v44 = vpop.eup %12325 }
0x1841   :  { %v4006_v32 = vpop.f32.mrf.mxu1 }
0x1842   :  { %v4064_v6 = vmul.f32 %v12320_v34, %v4006_v32  ;;  %v11858_v34 = vld [vmem:[#allocation4 + $0x1cc] ss:$16 sps:$4 sm:$0xff]  }
0x1843   :  { %v11341_v33 = vpop.f32.mrf.mxu1 }
0x1844   :  { %v11855_v33 = vld [vmem:[#allocation4 + $0x1c4] ss:$16 sps:$4 sm:$0xff]  }
0x1845   :  { %v4009_v35 = vpop.f32.mrf.mxu1 }
0x1846   :  { %v4065_v20 = vmul.f32 %v12322_v9, %v4009_v35  ;;  %v11853_v9 = vld [vmem:[#allocation4 + $0x1c0] ss:$16 sps:$4 sm:$0xff]   ;;  %v11856_v35 = vld [vmem:[#allocation4 + $0x1c8] ss:$16 sps:$4 sm:$0xff]  }
0x1847   :  { %v11342_v23 = vpop.f32.mrf.mxu1 }
0x1848   :  { %v4068_v16 = vpack.c.bf16 %v4065_v20, %v4064_v6  ;;  %v11861_v6 = vld [vmem:[#allocation4 + $0x1a4] ss:$16 sps:$4 sm:$0xff]   ;;  %v11864_v20 = vld [vmem:[#allocation4 + $0x1ac] ss:$16 sps:$4 sm:$0xff]   ;;  %v11859_v23 = vld [vmem:[#allocation4 + $0x1a0] ss:$16 sps:$4 sm:$0xff]  }
0x184a   :  { %11353 = vmatprep.mubr.msk.bf16.mxu1 %vm463_vm1, %v4068_v16  ;;  %v11862_v16 = vld [vmem:[#allocation4 + $0x1a8] ss:$16 sps:$4 sm:$0xff]  }
0x184e   :  { %v4053_v30 = vpop.f32.mrf.mxu0 }
0x184f   :  { %v4066_v36 = vmul.f32 %v12324_v31, %v4053_v30  ;;  %v11867_v30 = vld [vmem:[#allocation4 + $0x184] ss:$16 sps:$4 sm:$0xff]   ;;  %v11865_v31 = vld [vmem:[#allocation4 + $0x180] ss:$16 sps:$4 sm:$0xff]  }
0x1850   :  { %v11347_v41 = vpop.f32.mrf.mxu0 }
0x1851   :  { %v11870_v41 = vld [vmem:[#allocation4 + $0x18c] ss:$16 sps:$4 sm:$0xff]  }
0x1852   :  { %v4056_v19 = vpop.f32.mrf.mxu0 }
0x1853   :  { %v4067_v45 = vmul.f32 %v12326_v44, %v4056_v19  ;;  %v11868_v44 = vld [vmem:[#allocation4 + $0x188] ss:$16 sps:$4 sm:$0xff]   ;;  %v11871_v19 = vld [vmem:[#allocation4 + $0x160] ss:$16 sps:$4 sm:$0xff]  }
0x1854   :  { %v11348_v54 = vpop.f32.mrf.mxu0 }
0x1855   :  { %v4069_v37 = vpack.c.bf16 %v4067_v45, %v4066_v36  ;;  %v11873_v36 = vld [vmem:[#allocation4 + $0x164] ss:$16 sps:$4 sm:$0xff]   ;;  %v11874_v45 = vld [vmem:[#allocation4 + $0x168] ss:$16 sps:$4 sm:$0xff]   ;;  %v11876_v54 = vld [vmem:[#allocation4 + $0x16c] ss:$16 sps:$4 sm:$0xff]  }
0x1857   :  { %11354 = vmatmul.mubr.msk.bf16.vlgmr.msra.gmra.mxu1 %vm463_vm1, %v4069_v37  ;;  %v11879_v37 = vld [vmem:[#allocation4 + $0x144] ss:$16 sps:$4 sm:$0xff]  }
0x1858   :  { %4528 = vmatprep.mubr.bf16.mxu1 %v12580_v40 }
0x1917   :  { %v11355_v22 = vpop.f32.mrf.mxu1 }
0x1918   :  { %v4139_v10 = vadd.f32 %v11355_v22, %v13374_v3  ;;  %v11882_v22 = vld [vmem:[#allocation4 + $0x14c] ss:$16 sps:$4 sm:$0xff]  }
0x1919   :  { %v4122_v1 = vpop.f32.mrf.mxu1 }
0x191a   :  { %v4137_v21 = vadd.f32 %v4122_v1, %v13378_v50  ;;  %v4143_v11 = vadd.f32 %v4139_v10, %v13100_v17  ;;  %v11877_v1 = vld [vmem:[#allocation4 + $0x140] ss:$16 sps:$4 sm:$0xff]   ;;  %v11885_v10 = vld [vmem:[#allocation4 + $0x124] ss:$16 sps:$4 sm:$0xff]  }
0x191b   :  { %v11356_v53 = vpop.f32.mrf.mxu1 }
0x191c   :  { %v4141_v39 = vadd.f32 %v4137_v21, %v13092_v4  ;;  %v4140_v26 = vadd.f32 %v11356_v53, %v13380_v7  ;;  %v13426_v4 = vadd.f32 %v10195_v49, %v4143_v11  ;;  %v11847_v7 = vld [vmem:[#allocation4 + $0x1e0] ss:$16 sps:$4 sm:$0xff]   ;;  %v11888_v21 = vld [vmem:[#allocation4 + $0x12c] ss:$16 sps:$4 sm:$0xff]   ;;  %v11892_v11 = vld [vmem:[#allocation4 + $0x108] ss:$16 sps:$4 sm:$0xff]  }
0x191d   :  { %v4125_v47 = vpop.f32.mrf.mxu1  ;;  %4444 = vmatpush1.bf16.msra.mxu0 %v11847_v7  ;;  %v11883_v53 = vld [vmem:[#allocation4 + $0x120] ss:$16 sps:$4 sm:$0xff]  }
0x191e   :  { %v4138_v46 = vadd.f32 %v4125_v47, %v3819_v13  ;;  %v13419_v12 = vadd.f32 %v10195_v49, %v4141_v39  ;;  %v4144_v3 = vadd.f32 %v4140_v26, %v13104_v0  ;;  %4445 = vmatprep.subr.bf16.mxu0 %v11855_v33  ;;  %v11886_v13 = vld [vmem:[#allocation4 + $0x128] ss:$16 sps:$4 sm:$0xff]   ;;  %v11891_v39 = vld [vmem:[#allocation4 + $0x104] ss:$16 sps:$4 sm:$0xff]   ;;  %v11894_v47 = vld [vmem:[#allocation4 + $0x10c] ss:$16 sps:$4 sm:$0xff]  }
0x191f   :  { %v11895_v26 = vld [vmem:[#allocation6 + $0x178] sm:$0xff]  }
0x1920   :  { %v4142_v51 = vadd.f32 %v4138_v46, %v13096_v8  ;;  %4161 = vadd.xlane.f32.xlu0 %v13419_v12  ;;  %v13430_v17 = vadd.f32 %v10195_v49, %v4144_v3  ;;  %v11852_v8 = vld [vmem:[#allocation4 + $0x1ec] ss:$16 sps:$4 sm:$0xff]  }
0x1921   :  { %4496 = vmatprep.subr.bf16.mxu1 %v11852_v8  ;;  %4446 = vmatpush1.bf16.msra.mxu0 %v11853_v9  ;;  %v11896_v46 = vld [vmem:[#allocation6 + $0x1f8] sm:$0xff]  }
0x1922   :  { %v13424_v50 = vadd.f32 %v10195_v49, %v4142_v51  ;;  %4497 = vmatpush1.bf16.msra.mxu1 %v11850_v5  ;;  %4447 = vmatprep.subr.bf16.mxu0 %v11861_v6  ;;  %v11889_v49 = vld [vmem:[#allocation4 + $0x100] ss:$16 sps:$4 sm:$0xff]  }
0x1923   :  { %4498 = vmatprep.subr.bf16.mxu1 %v11858_v34  ;;  %v10199_v34 = vld [vmem:[%s14289_s7 + $0x1] ss:$0 sm:$0xff] }
0x1924   :  { %4163 = vadd.xlane.f32.xlu1 %v13424_v50  ;;  %4165 = vadd.xlane.f32.xlu0 %v13426_v4 }
0x1925   :  { %4448 = vmatpush1.bf16.msra.mxu0 %v11859_v23 }
0x1926   :  { %4499 = vmatpush1.bf16.msra.mxu1 %v11856_v35  ;;  %4449 = vmatprep.subr.bf16.mxu0 %v11867_v30 }
0x1927   :  { %4500 = vmatprep.subr.bf16.mxu1 %v11864_v20 }
0x1928   :  { %4167 = vadd.xlane.f32.xlu1 %v13430_v17 }
0x1929   :  { %4450 = vmatpush1.bf16.msra.mxu0 %v11865_v31  ;;  %v11898_v31 = vld [vmem:[#allocation6 + $0x1b8] sm:$0xff]  }
0x192a   :  { %4501 = vmatpush1.bf16.msra.mxu1 %v11862_v16  ;;  %4451 = vmatprep.subr.bf16.mxu0 %v11873_v36 }
0x192b   :  { %4502 = vmatprep.subr.bf16.mxu1 %v11870_v41  ;;  %v11897_v41 = vld [vmem:[#allocation6 + $0x138] sm:$0xff]  }
0x192d   :  { %4452 = vmatpush1.bf16.msra.mxu0 %v11871_v19 }
0x192e   :  { %4503 = vmatpush1.bf16.msra.mxu1 %v11868_v44  ;;  %4453 = vmatprep.subr.bf16.mxu0 %v11879_v37  ;;  %v11899_v44 = vld [vmem:[#allocation6 + $0x170] sm:$0xff]  }
0x192f   :  { %4504 = vmatprep.subr.bf16.mxu1 %v11876_v54  ;;  %v11904_v54 = vld [vmem:[#allocation6 + $0x1e8] sm:$0xff]  }
0x1931   :  { %4454 = vmatpush1.bf16.msra.mxu0 %v11877_v1  ;;  %v11905_v1 = vld [vmem:[#allocation6 + $0x128] sm:$0xff]  }
0x1932   :  { %4505 = vmatpush1.bf16.msra.mxu1 %v11874_v45  ;;  %4455 = vmatprep.subr.bf16.mxu0 %v11885_v10  ;;  %v11901_v45 = vld [vmem:[#allocation6 + $0x130] sm:$0xff]   ;;  %v11907_v10 = vld [vmem:[#allocation6 + $0x160] sm:$0xff]  }
0x1933   :  { %4506 = vmatprep.subr.bf16.mxu1 %v11882_v22 }
0x1935   :  { %4456 = vmatpush1.bf16.msra.mxu0 %v11883_v53  ;;  %v11909_v53 = vld [vmem:[#allocation6 + $0x120] sm:$0xff]  }
0x1936   :  { %4507 = vmatpush1.bf16.msra.mxu1 %v11880_v2  ;;  %4457 = vmatprep.subr.bf16.mxu0 %v11891_v39  ;;  %v11906_v2 = vld [vmem:[#allocation6 + $0x1a8] sm:$0xff]   ;;  %v11911_v39 = vld [vmem:[#allocation6 + $0x158] sm:$0xff]  }
0x1937   :  { %4508 = vmatprep.subr.bf16.mxu1 %v11888_v21  ;;  %v11908_v21 = vld [vmem:[#allocation6 + $0x1e0] sm:$0xff]  }
0x1939   :  { %4458 = vmatpush1.bf16.msra.mxu0 %v11889_v49  ;;  %v11913_v49 = vld [vmem:[#allocation6 + $0x118] sm:$0xff]  }
0x193a   :  { %4509 = vmatpush1.bf16.msra.mxu1 %v11886_v13  ;;  %10767 = vmatprep.subr.bf16.mxu0 %v11895_v26  ;;  %v11910_v13 = vld [vmem:[#allocation6 + $0x1a0] sm:$0xff]   ;;  %v11915_v26 = vld [vmem:[#allocation6 + $0x150] sm:$0xff]  }
0x193b   :  { %4510 = vmatprep.subr.bf16.mxu1 %v11894_v47  ;;  %v11912_v47 = vld [vmem:[#allocation6 + $0x1d8] sm:$0xff]  }
0x193e   :  { %4511 = vmatpush1.bf16.msra.mxu1 %v11892_v11  ;;  %v11914_v11 = vld [vmem:[#allocation6 + $0x198] sm:$0xff]  }
0x193f   :  { %10795 = vmatprep.subr.bf16.mxu1 %v11896_v46  ;;  %v11916_v46 = vld [vmem:[#allocation6 + $0x1d0] sm:$0xff]  }
0x19a9   :  { %v4162_v0 = vpop.xlane.xlu0 %4161 }
0x19aa   :  { %v4169_v43 = vmul.f32 0.0078125, %v4162_v0 }
0x19ac   :  { %v13434_v56 = vsub.f32 %v13419_v12, %v4169_v43 }
0x19ad   :  { %v4164_v55 = vpop.xlane.xlu1 %4163  ;;  %v4166_v57 = vpop.xlane.xlu0 %4165 }
0x19ae   :  { %v4170_v38 = vmul.f32 0.0078125, %v4164_v55  ;;  %v4171_v58 = vmul.f32 0.0078125, %v4166_v57  ;;  %v4177_v59 = vmul.f32 %v13434_v56, %v13434_v56 }
0x19b0   :  { %v13439_v60 = vsub.f32 %v13424_v50, %v4170_v38  ;;  %v13442_v61 = vsub.f32 %v13426_v4, %v4171_v58  ;;  %4181 = vadd.xlane.f32.xlu0 %v4177_v59 }
0x19b1   :  { %v4168_v62 = vpop.xlane.xlu1 %4167 }
0x19b2   :  { %v4172_v24 = vmul.f32 0.0078125, %v4168_v62  ;;  %v4178_v63 = vmul.f32 %v13439_v60, %v13439_v60  ;;  %v4179_v52 = vmul.f32 %v13442_v61, %v13442_v61 }
0x19b4   :  { %v13449_v32 = vsub.f32 %v13430_v17, %v4172_v24  ;;  %4183 = vadd.xlane.f32.xlu1 %v4178_v63  ;;  %4185 = vadd.xlane.f32.xlu0 %v4179_v52  ;;  %v10198_v24 = vld [vmem:[%s14288_s6 + $0x1] ss:$0 sm:$0xff] }
0x19b6   :  { %v4180_v15 = vmul.f32 %v13449_v32, %v13449_v32 }
0x19b8   :  { %4187 = vadd.xlane.f32.xlu1 %v4180_v15 }
0x1a39   :  { %v4182_v51 = vpop.xlane.xlu0 %4181 }
0x1a3a   :  { %v4189_v3 = vmul.f32 0.0078125, %v4182_v51  ;;  %v11917_v51 = vld [vmem:[#allocation6 + $0x110] sm:$0xff]  }
0x1a3c   :  { %v4193_v7 = vadd.f32 1e-05, %v4189_v3  ;;  %v11918_v3 = vld [vmem:[#allocation6 + $0x190] sm:$0xff]  }
0x1a3d   :  { %v4184_v18 = vpop.xlane.xlu1 %4183  ;;  %v4186_v5 = vpop.xlane.xlu0 %4185 }
0x1a3e   :  { %12327 = vrsqrt.f32 %v4193_v7  ;;  %v4190_v8 = vmul.f32 0.0078125, %v4184_v18  ;;  %v4191_v0 = vmul.f32 0.0078125, %v4186_v5  ;;  %v11919_v7 = vld [vmem:[#allocation6 + $0x148] sm:$0xff]  }
0x1a3f   :  { %v11920_v18 = vld [vmem:[#allocation6 + $0x1c8] sm:$0xff]  }
0x1a40   :  { %v4194_v43 = vadd.f32 1e-05, %v4190_v8  ;;  %v4195_v55 = vadd.f32 1e-05, %v4191_v0  ;;  %v11921_v5 = vld [vmem:[#allocation6 + $0x108] sm:$0xff]   ;;  %v11923_v0 = vld [vmem:[#allocation6 + $0x140] sm:$0xff]  }
0x1a41   :  { %v4188_v57 = vpop.xlane.xlu1 %4187  ;;  %v11922_v8 = vld [vmem:[#allocation6 + $0x188] sm:$0xff]  }
0x1a42   :  { %12329 = vrsqrt.f32 %v4194_v43  ;;  %v4192_v38 = vmul.f32 0.0078125, %v4188_v57  ;;  %v11924_v43 = vld [vmem:[#allocation6 + $0x1c0] sm:$0xff]  }
0x1a43   :  { %12331 = vrsqrt.f32 %v4195_v55  ;;  %v11925_v55 = vld [vmem:[#allocation6 + $0x100] sm:$0xff]  }
0x1a44   :  { %v4196_v58 = vadd.f32 1e-05, %v4192_v38  ;;  %v11926_v57 = vld [vmem:[#allocation6 + $0x180] sm:$0xff]  }
0x1a45   :  { %v10200_v38 = vld [vmem:[%s14291_s9 + $0x4] sm:$0xf] }
0x1a46   :  { %12333 = vrsqrt.f32 %v4196_v58 }
0x1a4b   :  { %v12328_v59 = vpop.eup %12327 }
0x1a4c   :  { %v4201_v62 = vmul.f32 %v12328_v59, %v13434_v56 }
0x1a4e   :  { %v4211_v15 = vmul.f32 %v10198_v24, %v4201_v62  ;;  %v4270_v62 = vrot.slane %v10200_v38, %v13069_v25 }
0x1a4f   :  { %v12330_v63 = vpop.eup %12329 }
0x1a50   :  { %v4202_v52 = vmul.f32 %v12330_v63, %v13439_v60  ;;  %v12332_v33 = vpop.eup %12331  ;;  %v4221_v6 = vadd.f32 %v10199_v34, %v4211_v15  ;;  %v11900_v60 = vld [vmem:[#allocation6 + $0x1f0] sm:$0xff]   ;;  %v4266_v63 = vrot.slane %v10200_v38, %v13075_v28 }
0x1a51   :  { %v4203_v23 = vmul.f32 %v12332_v33, %v13442_v61  ;;  %v11902_v61 = vld [vmem:[#allocation6 + $0x1b0] sm:$0xff]  }
0x1a52   :  { %v4212_v9 = vmul.f32 %v10198_v24, %v4202_v52  ;;  %v4274_v52 = vrot.slane %v10200_v38, %v13078_v29 }
0x1a53   :  { %v12334_v35 = vpop.eup %12333  ;;  %v4213_v19 = vmul.f32 %v10198_v24, %v4203_v23 }
0x1a54   :  { %v4222_v20 = vadd.f32 %v10199_v34, %v4212_v9  ;;  %v4204_v56 = vmul.f32 %v12334_v35, %v13449_v32  ;;  %v11903_v32 = vld [vmem:[#allocation6 + $0x168] sm:$0xff]  }
0x1a55   :  { %v4223_v37 = vadd.f32 %v10199_v34, %v4213_v19 }
0x1a56   :  { %v4225_v16 = vpack.c.bf16 %v4222_v20, %v4221_v6  ;;  %v4214_v30 = vmul.f32 %v10198_v24, %v4204_v56  ;;  %v4278_v24 = vrot.slane %v10200_v38, %v13072_v27 }
0x1a58   :  { %4476 = vmatmul.mubr.bf16.vlgmr.msra.gmra.mxu0 %v4225_v16  ;;  %4529 = vmatmul.mubr.bf16.vlgmr.msra.gmra.mxu1 %v4225_v16  ;;  %v4224_v36 = vadd.f32 %v10199_v34, %v4214_v30 }
0x1a59   :  { %4485 = vmatprep.mubr.bf16.mxu0 %v12580_v40  ;;  %4538 = vmatprep.mubr.bf16.mxu1 %v12580_v40 }
0x1a5a   :  { %10768 = vmatpush3.bf16.msra.mxu0 %v11897_v41  ;;  %10796 = vmatpush3.bf16.msra.mxu1 %v11898_v31  ;;  %v4226_v22 = vpack.c.bf16 %v4224_v36, %v4223_v37 }
0x1a5b   :  { %10769 = vmatprep.subr.bf16.mxu0 %v11899_v44  ;;  %10797 = vmatprep.subr.bf16.mxu1 %v11900_v60 }
0x1a5e   :  { %10770 = vmatpush3.bf16.msra.mxu0 %v11901_v45  ;;  %10798 = vmatpush3.bf16.msra.mxu1 %v11902_v61 }
0x1a5f   :  { %10771 = vmatprep.subr.bf16.mxu0 %v11903_v32  ;;  %10799 = vmatprep.subr.bf16.mxu1 %v11904_v54 }
0x1a60   :  { %4486 = vmatmul.mubr.bf16.gmra.mxu0 %v4226_v22  ;;  %4539 = vmatmul.mubr.bf16.gmra.mxu1 %v4226_v22 }
0x1a62   :  { %10772 = vmatpush3.bf16.msra.mxu0 %v11905_v1  ;;  %10800 = vmatpush3.bf16.msra.mxu1 %v11906_v2 }
0x1a63   :  { %10773 = vmatprep.subr.bf16.mxu0 %v11907_v10  ;;  %10801 = vmatprep.subr.bf16.mxu1 %v11908_v21 }
0x1a66   :  { %10774 = vmatpush3.bf16.msra.mxu0 %v11909_v53  ;;  %10802 = vmatpush3.bf16.msra.mxu1 %v11910_v13 }
0x1a67   :  { %10775 = vmatprep.subr.bf16.mxu0 %v11911_v39  ;;  %10803 = vmatprep.subr.bf16.mxu1 %v11912_v47 }
0x1a6a   :  { %10776 = vmatpush3.bf16.msra.mxu0 %v11913_v49  ;;  %10804 = vmatpush3.bf16.msra.mxu1 %v11914_v11 }
0x1a6b   :  { %10777 = vmatprep.subr.bf16.mxu0 %v11915_v26  ;;  %10805 = vmatprep.subr.bf16.mxu1 %v11916_v46 }
0x1a6e   :  { %10778 = vmatpush3.bf16.msra.mxu0 %v11917_v51  ;;  %10806 = vmatpush3.bf16.msra.mxu1 %v11918_v3 }
0x1a6f   :  { %10779 = vmatprep.subr.bf16.mxu0 %v11919_v7  ;;  %10807 = vmatprep.subr.bf16.mxu1 %v11920_v18 }
0x1a72   :  { %10780 = vmatpush3.bf16.msra.mxu0 %v11921_v5  ;;  %10808 = vmatpush3.bf16.msra.mxu1 %v11922_v8 }
0x1a73   :  { %10781 = vmatprep.subr.bf16.mxu0 %v11923_v0  ;;  %10809 = vmatprep.subr.bf16.mxu1 %v11924_v43 }
0x1a76   :  { %10782 = vmatpush3.bf16.msra.mxu0 %v11925_v55  ;;  %10810 = vmatpush3.bf16.msra.mxu1 %v11926_v57 }
0x1b18   :  { %v4477_v58 = vpop.f32.mrf.mxu0  ;;  %v4530_v59 = vpop.f32.mrf.mxu1 }
0x1b19   :  { %v4478_v56 = vadd.f32 %v4477_v58, %v4266_v63  ;;  %v4531_v16 = vadd.f32 %v4530_v59, %v4274_v52 }
0x1b1a   :  { %v4479_v15 = vpop.f32.mrf.mxu0  ;;  %v4532_v33 = vpop.f32.mrf.mxu1 }
0x1b1b   :  { %v4480_v35 = vadd.f32 %v4479_v15, %v4270_v62  ;;  %v4533_v6 = vadd.f32 %v4532_v33, %v4278_v24  ;;  %v4549_v22 = vmax.f32 %v4478_v56, 0.0  ;;  %v4551_v1 = vmax.f32 %v4531_v16, 0.0 }
0x1b1c   :  { %v4481_v34 = vpop.f32.mrf.mxu0  ;;  %v4534_v9 = vpop.f32.mrf.mxu1 }
0x1b1d   :  { %v4482_v20 = vadd.f32 %v4481_v34, %v4266_v63  ;;  %v4535_v23 = vadd.f32 %v4534_v9, %v4274_v52  ;;  %v4550_v61 = vmax.f32 %v4480_v35, 0.0  ;;  %v4552_v32 = vmax.f32 %v4533_v6, 0.0 }
0x1b1e   :  { %v4483_v30 = vpop.f32.mrf.mxu0  ;;  %v4536_v41 = vpop.f32.mrf.mxu1 }
0x1b1f   :  { %v4484_v31 = vadd.f32 %v4483_v30, %v4270_v62  ;;  %v4537_v44 = vadd.f32 %v4536_v41, %v4278_v24  ;;  %v4553_v60 = vmax.f32 %v4482_v20, 0.0  ;;  %v4555_v19 = vmax.f32 %v4535_v23, 0.0 }
0x1b20   :  { %v4487_v36 = vpop.f32.mrf.mxu0  ;;  %v4540_v45 = vpop.f32.mrf.mxu1 }
0x1b21   :  { %v4554_v54 = vmax.f32 %v4484_v31, 0.0  ;;  %v4556_v37 = vmax.f32 %v4537_v44, 0.0  ;;  %v4565_v13 = vpack.c.bf16 %v4553_v60, %v4549_v22  ;;  %v4567_v39 = vpack.c.bf16 %v4555_v19, %v4551_v1 }
0x1b22   :  { %v4489_v2 = vpop.f32.mrf.mxu0  ;;  %v4542_v10 = vpop.f32.mrf.mxu1  ;;  %v4488_v3 = vadd.f32 %v4487_v36, %v4266_v63  ;;  %v4541_v7 = vadd.f32 %v4540_v45, %v4274_v52 }
0x1b23   :  { %v4566_v21 = vpack.c.bf16 %v4554_v54, %v4550_v61  ;;  %v4568_v53 = vpack.c.bf16 %v4556_v37, %v4552_v32  ;;  %v4490_v47 = vadd.f32 %v4489_v2, %v4270_v62  ;;  %v4543_v26 = vadd.f32 %v4542_v10, %v4278_v24 }
0x1b24   :  { %v4491_v49 = vpop.f32.mrf.mxu0  ;;  %v4544_v11 = vpop.f32.mrf.mxu1  ;;  %v4557_v15 = vmax.f32 %v4488_v3, 0.0  ;;  %v4559_v33 = vmax.f32 %v4541_v7, 0.0 }
0x1b25   :  { %v4492_v46 = vadd.f32 %v4491_v49, %v4266_v63  ;;  %v4545_v51 = vadd.f32 %v4544_v11, %v4274_v52  ;;  %4870 = vmatprep.mubr.bf16.mxu0 %v4566_v21  ;;  %4919 = vmatprep.mubr.bf16.mxu1 %v4568_v53  ;;  %v4558_v57 = vmax.f32 %v4490_v47, 0.0  ;;  %v4560_v38 = vmax.f32 %v4543_v26, 0.0  ;;  %v10234_v63 = vld [vmem:[%s14293_s11 + $0x1] ss:$0 sm:$0xff] }
0x1b26   :  { %v4493_v18 = vpop.f32.mrf.mxu0  ;;  %v4546_v5 = vpop.f32.mrf.mxu1  ;;  %4871 = vmatmul.mubr.bf16.vlgmr.msra.gmra.mxu0 %v4565_v13  ;;  %4920 = vmatmul.mubr.bf16.vlgmr.msra.gmra.mxu1 %v4567_v39 }
0x1b27   :  { %v4494_v8 = vadd.f32 %v4493_v18, %v4270_v62  ;;  %v4547_v0 = vadd.f32 %v4546_v5, %v4278_v24  ;;  %v4561_v43 = vmax.f32 %v4492_v46, 0.0  ;;  %v4563_v55 = vmax.f32 %v4545_v51, 0.0  ;;  %v11929_v18 = vld [vmem:[#allocation2 + $0x22c] ss:$12 sps:$4 sm:$0xff]  }
0x1b28   :  { %5171 = vmatprep.subr.bf16.mxu0 %v11929_v18 }
0x1b29   :  { %v4562_v58 = vmax.f32 %v4494_v8, 0.0  ;;  %v4564_v59 = vmax.f32 %v4547_v0, 0.0  ;;  %v4569_v35 = vpack.c.bf16 %v4561_v43, %v4557_v15  ;;  %v4571_v6 = vpack.c.bf16 %v4563_v55, %v4559_v33 }
0x1b2b   :  { %v4570_v34 = vpack.c.bf16 %v4562_v58, %v4558_v57  ;;  %v4572_v9 = vpack.c.bf16 %v4564_v59, %v4560_v38 }
0x1b2d   :  { %4878 = vmatprep.mubr.bf16.mxu0 %v4570_v34  ;;  %4927 = vmatprep.mubr.bf16.mxu1 %v4572_v9 }
0x1b2e   :  { %4879 = vmatmul.mubr.bf16.gmra.mxu0 %v4569_v35  ;;  %4928 = vmatmul.mubr.bf16.gmra.mxu1 %v4571_v6  ;;  %v11932_v6 = vld [vmem:[#allocation2 + $0x214] ss:$12 sps:$4 sm:$0xff]  }
0x1b2f   :  { %5203 = vmatprep.mubr.bf16.mxu0 %v12580_v40 }
0x1be6   :  { %v10783_v62 = vpop.f32.mrf.mxu0  ;;  %v10811_v24 = vpop.f32.mrf.mxu1 }
0x1be8   :  { %v10784_v52 = vpop.f32.mrf.mxu0  ;;  %v10812_v20 = vpop.f32.mrf.mxu1 }
0x1be9   :  { %v10785_v23 = vadd.f32 %v10784_v52, %v10783_v62  ;;  %v10813_v41 = vadd.f32 %v10812_v20, %v10811_v24  ;;  %v11930_v62 = vld [vmem:[#allocation2 + $0x210] ss:$12 sps:$4 sm:$0xff]   ;;  %v11933_v52 = vld [vmem:[#allocation2 + $0x1f8] ss:$12 sps:$4 sm:$0xff]  }
0x1bea   :  { %v10786_v56 = vpop.f32.mrf.mxu0  ;;  %v10814_v16 = vpop.f32.mrf.mxu1  ;;  %v11935_v24 = vld [vmem:[#allocation2 + $0x1fc] ss:$12 sps:$4 sm:$0xff]   ;;  %v11939_v20 = vld [vmem:[#allocation2 + $0x1e4] ss:$12 sps:$4 sm:$0xff]  }
0x1beb   :  { %v4873_v30 = vadd.f32 %v10785_v23, %v10234_v63  ;;  %v11940_v23 = vld [vmem:[#allocation2 + $0x218] ss:$12 sps:$4 sm:$0xff]  }
0x1bec   :  { %v10787_v31 = vpop.f32.mrf.mxu0  ;;  %v10815_v44 = vpop.f32.mrf.mxu1 }
0x1bed   :  { %v4922_v60 = vadd.f32 %v10813_v41, %v4873_v30  ;;  %v10788_v19 = vadd.f32 %v10787_v31, %v10786_v56  ;;  %v10816_v32 = vadd.f32 %v10815_v44, %v10814_v16  ;;  %v11937_v56 = vld [vmem:[#allocation2 + $0x1e0] ss:$12 sps:$4 sm:$0xff]   ;;  %v11941_v41 = vld [vmem:[#allocation2 + $0x1c8] ss:$12 sps:$4 sm:$0xff]  }
0x1bee   :  { %v10789_v36 = vpop.f32.mrf.mxu0  ;;  %v10817_v45 = vpop.f32.mrf.mxu1  ;;  %v11943_v16 = vld [vmem:[#allocation2 + $0x1cc] ss:$12 sps:$4 sm:$0xff]   ;;  %v11947_v31 = vld [vmem:[#allocation2 + $0x1b4] ss:$12 sps:$4 sm:$0xff]  }
0x1bef   :  { %v4876_v61 = vadd.f32 %v10788_v19, %v10234_v63  ;;  %v13477_v54 = vadd.f32 %v4922_v60, %v13419_v12  ;;  %v11944_v30 = vld [vmem:[#allocation2 + $0x200] ss:$12 sps:$4 sm:$0xff]   ;;  %v11948_v44 = vld [vmem:[#allocation2 + $0x1e8] ss:$12 sps:$4 sm:$0xff]   ;;  %v11945_v60 = vld [vmem:[#allocation2 + $0x1b0] ss:$12 sps:$4 sm:$0xff]  }
0x1bf0   :  { %v10790_v37 = vpop.f32.mrf.mxu0  ;;  %v10818_v22 = vpop.f32.mrf.mxu1  ;;  %v11951_v19 = vld [vmem:[#allocation2 + $0x19c] ss:$12 sps:$4 sm:$0xff]  }
0x1bf1   :  { %v4925_v1 = vadd.f32 %v10816_v32, %v4876_v61  ;;  %v10791_v2 = vadd.f32 %v10790_v37, %v10789_v36  ;;  %4944 = vadd.xlane.f32.xlu0 %v13477_v54  ;;  %v10819_v13 = vadd.f32 %v10818_v22, %v10817_v45  ;;  %v11952_v36 = vld [vmem:[#allocation2 + $0x1d0] ss:$12 sps:$4 sm:$0xff]   ;;  %v11949_v45 = vld [vmem:[#allocation2 + $0x198] ss:$12 sps:$4 sm:$0xff]   ;;  %v11953_v61 = vld [vmem:[#allocation2 + $0x180] ss:$12 sps:$4 sm:$0xff]  }
0x1bf2   :  { %v10792_v10 = vpop.f32.mrf.mxu0  ;;  %v10820_v21 = vpop.f32.mrf.mxu1  ;;  %v11955_v32 = vld [vmem:[#allocation2 + $0x184] ss:$12 sps:$4 sm:$0xff]   ;;  %v11957_v22 = vld [vmem:[#allocation2 + $0x1a0] ss:$12 sps:$4 sm:$0xff]  }
0x1bf3   :  { %v4881_v53 = vadd.f32 %v10791_v2, %v10234_v63  ;;  %v13481_v39 = vadd.f32 %v4925_v1, %v13424_v50  ;;  %v11927_v50 = vld [vmem:[#allocation2 + $0x228] ss:$12 sps:$4 sm:$0xff]   ;;  %v11956_v37 = vld [vmem:[#allocation2 + $0x1b8] ss:$12 sps:$4 sm:$0xff]  }
0x1bf4   :  { %v10793_v47 = vpop.f32.mrf.mxu0  ;;  %v10821_v49 = vpop.f32.mrf.mxu1  ;;  %5172 = vmatpush1.bf16.msra.mxu0 %v11927_v50  ;;  %v11958_v1 = vld [vmem:[#allocation2 + $0x188] ss:$12 sps:$4 sm:$0xff]  }
0x1bf5   :  { %v4930_v11 = vadd.f32 %v10819_v13, %v4881_v53  ;;  %v10794_v26 = vadd.f32 %v10793_v47, %v10792_v10  ;;  %4946 = vadd.xlane.f32.xlu1 %v13481_v39  ;;  %v10822_v46 = vadd.f32 %v10821_v49, %v10820_v21  ;;  %5173 = vmatprep.subr.bf16.mxu0 %v11932_v6 }
0x1bf7   :  { %v4884_v12 = vadd.f32 %v10794_v26, %v10234_v63  ;;  %v13485_v51 = vadd.f32 %v4930_v11, %v13426_v4  ;;  %v11936_v63 = vld [vmem:[#allocation2 + $0x230] ss:$12 sps:$4 sm:$0xff]  }
0x1bf8   :  { %5174 = vmatpush1.bf16.msra.mxu0 %v11930_v62  ;;  %11357 = vmatprep.subr.bf16.mxu1 %v11936_v63 }
0x1bf9   :  { %v4933_v3 = vadd.f32 %v10822_v46, %v4884_v12  ;;  %4948 = vadd.xlane.f32.xlu0 %v13485_v51  ;;  %5175 = vmatprep.subr.bf16.mxu0 %v11935_v24 }
0x1bfa   :  { %11358 = vmatpush3.bf16.msra.mxu1 %v11936_v63 }
0x1bfb   :  { %v13489_v7 = vadd.f32 %v4933_v3, %v13430_v17  ;;  %11359 = vmatprep.subr.bf16.mxu1 %v11940_v23 }
0x1bfc   :  { %5176 = vmatpush1.bf16.msra.mxu0 %v11933_v52 }
0x1bfd   :  { %4950 = vadd.xlane.f32.xlu1 %v13489_v7  ;;  %5177 = vmatprep.subr.bf16.mxu0 %v11939_v20 }
0x1bfe   :  { %11360 = vmatpush3.bf16.msra.mxu1 %v11940_v23 }
0x1bff   :  { %11361 = vmatprep.subr.bf16.mxu1 %v11944_v30 }
0x1c00   :  { %5178 = vmatpush1.bf16.msra.mxu0 %v11937_v56 }
0x1c01   :  { %5179 = vmatprep.subr.bf16.mxu0 %v11943_v16 }
0x1c02   :  { %11362 = vmatpush3.bf16.msra.mxu1 %v11944_v30 }
0x1c03   :  { %11363 = vmatprep.subr.bf16.mxu1 %v11948_v44 }
0x1c04   :  { %5180 = vmatpush1.bf16.msra.mxu0 %v11941_v41 }
0x1c05   :  { %5181 = vmatprep.subr.bf16.mxu0 %v11947_v31 }
0x1c06   :  { %11364 = vmatpush3.bf16.msra.mxu1 %v11948_v44 }
0x1c07   :  { %11365 = vmatprep.subr.bf16.mxu1 %v11952_v36 }
0x1c08   :  { %5182 = vmatpush1.bf16.msra.mxu0 %v11945_v60 }
0x1c09   :  { %5183 = vmatprep.subr.bf16.mxu0 %v11951_v19 }
0x1c0a   :  { %11366 = vmatpush3.bf16.msra.mxu1 %v11952_v36 }
0x1c0b   :  { %11367 = vmatprep.subr.bf16.mxu1 %v11956_v37 }
0x1c0c   :  { %5184 = vmatpush1.bf16.msra.mxu0 %v11949_v45 }
0x1c0d   :  { %5185 = vmatprep.subr.bf16.mxu0 %v11955_v32 }
0x1c0e   :  { %11368 = vmatpush3.bf16.msra.mxu1 %v11956_v37 }
0x1c0f   :  { %11369 = vmatprep.subr.bf16.mxu1 %v11957_v22 }
0x1c10   :  { %5186 = vmatpush1.bf16.msra.mxu0 %v11953_v61 }
0x1c11   :  { %11383 = vmatprep.subr.bf16.mxu0 %v12581_v14 }
0x1c12   :  { %11370 = vmatpush3.bf16.msra.mxu1 %v11957_v22 }
0x1c13   :  { %11371 = vmatprep.subr.bf16.mxu1 %v11958_v1 }
0x1c16   :  { %11372 = vmatpush3.bf16.msra.mxu1 %v11958_v1 }
0x1c17   :  { %11377 = vmatprep.subr.bf16.mxu1 %v12581_v14 }
0x1c7a   :  { %v4945_v5 = vpop.xlane.xlu0 %4944 }
0x1c7b   :  { %v4952_v8 = vmul.f32 0.0078125, %v4945_v5  ;;  %v10269_v5 = vld [vmem:[%s14283_s1 + $0x2] ss:$0 sm:$0xff] }
0x1c7d   :  { %v13493_v0 = vsub.f32 %v13477_v54, %v4952_v8 }
0x1c7e   :  { %v4947_v43 = vpop.xlane.xlu1 %4946 }
0x1c7f   :  { %v4953_v4 = vmul.f32 0.0078125, %v4947_v43  ;;  %v4960_v55 = vmul.f32 %v13493_v0, %v13493_v0 }
0x1c81   :  { %v13498_v57 = vsub.f32 %v13481_v39, %v4953_v4  ;;  %4964 = vadd.xlane.f32.xlu0 %v4960_v55  ;;  %v10270_v55 = vld [vmem:[%s14284_s2 + $0x2] ss:$0 sm:$0xff] }
0x1c82   :  { %v4949_v17 = vpop.xlane.xlu0 %4948 }
0x1c83   :  { %v4954_v38 = vmul.f32 0.0078125, %v4949_v17  ;;  %v4961_v58 = vmul.f32 %v13498_v57, %v13498_v57 }
0x1c85   :  { %v13503_v59 = vsub.f32 %v13485_v51, %v4954_v38  ;;  %4966 = vadd.xlane.f32.xlu1 %v4961_v58 }
0x1c86   :  { %v4951_v15 = vpop.xlane.xlu1 %4950 }
0x1c87   :  { %v4955_v33 = vmul.f32 0.0078125, %v4951_v15  ;;  %v4962_v34 = vmul.f32 %v13503_v59, %v13503_v59 }
0x1c89   :  { %v13508_v9 = vsub.f32 %v13489_v7, %v4955_v33  ;;  %4968 = vadd.xlane.f32.xlu0 %v4962_v34 }
0x1c8b   :  { %v4963_v35 = vmul.f32 %v13508_v9, %v13508_v9 }
0x1c8d   :  { %4970 = vadd.xlane.f32.xlu1 %v4963_v35 }
0x1d0a   :  { %v4965_v2 = vpop.xlane.xlu0 %4964 }
0x1d0b   :  { %v4972_v10 = vmul.f32 0.0078125, %v4965_v2 }
0x1d0d   :  { %v4976_v21 = vadd.f32 1e-05, %v4972_v10 }
0x1d0e   :  { %v4967_v53 = vpop.xlane.xlu1 %4966 }
0x1d0f   :  { %12335 = vrsqrt.f32 %v4976_v21  ;;  %v4973_v13 = vmul.f32 0.0078125, %v4967_v53 }
0x1d11   :  { %v4977_v47 = vadd.f32 1e-05, %v4973_v13 }
0x1d12   :  { %v4969_v49 = vpop.xlane.xlu0 %4968 }
0x1d13   :  { %12337 = vrsqrt.f32 %v4977_v47  ;;  %v4974_v11 = vmul.f32 0.0078125, %v4969_v49 }
0x1d15   :  { %v4978_v26 = vadd.f32 1e-05, %v4974_v11 }
0x1d16   :  { %v4971_v12 = vpop.xlane.xlu1 %4970 }
0x1d17   :  { %12339 = vrsqrt.f32 %v4978_v26  ;;  %v4975_v46 = vmul.f32 0.0078125, %v4971_v12 }
0x1d19   :  { %v4979_v3 = vadd.f32 1e-05, %v4975_v46 }
0x1d1b   :  { %12341 = vrsqrt.f32 %v4979_v3 }
0x1d1c   :  { %v12336_v50 = vpop.eup %12335 }
0x1d1d   :  { %v4984_v18 = vmul.f32 %v12336_v50, %v13493_v0 }
0x1d1f   :  { %v4994_v43 = vmul.f32 %v10269_v5, %v4984_v18 }
0x1d20   :  { %v12338_v8 = vpop.eup %12337 }
0x1d21   :  { %v4985_v4 = vmul.f32 %v12338_v8, %v13498_v57  ;;  %v5004_v58 = vadd.f32 %v10270_v55, %v4994_v43 }
0x1d23   :  { %v4995_v17 = vmul.f32 %v10269_v5, %v4985_v4 }
0x1d24   :  { %v12340_v38 = vpop.eup %12339 }
0x1d25   :  { %v5005_v15 = vadd.f32 %v10270_v55, %v4995_v17  ;;  %v4986_v33 = vmul.f32 %v12340_v38, %v13503_v59 }
0x1d27   :  { %v5008_v34 = vpack.c.bf16 %v5005_v15, %v5004_v58  ;;  %v4996_v6 = vmul.f32 %v10269_v5, %v4986_v33 }
0x1d28   :  { %v12342_v0 = vpop.eup %12341 }
0x1d29   :  { %5204 = vmatmul.mubr.bf16.vlgmr.msra.gmra.mxu0 %v5008_v34  ;;  %11373 = vmatprep.mubr.bf16.mxu1 %v5008_v34  ;;  %v4987_v35 = vmul.f32 %v12342_v0, %v13508_v9  ;;  %v5006_v62 = vadd.f32 %v10270_v55, %v4996_v6 }
0x1d2a   :  { %5213 = vmatprep.mubr.bf16.mxu0 %v12580_v40 }
0x1d2b   :  { %v4997_v57 = vmul.f32 %v10269_v5, %v4987_v35 }
0x1d2d   :  { %v5007_v24 = vadd.f32 %v10270_v55, %v4997_v57 }
0x1d2f   :  { %v5009_v63 = vpack.c.bf16 %v5007_v24, %v5006_v62 }
0x1d31   :  { %5214 = vmatmul.mubr.bf16.gmra.mxu0 %v5009_v63  ;;  %11374 = vmatmul.mubr.bf16.vlgmr.msra.gmra.mxu1 %v5009_v63 }
0x1d32   :  { %11379 = vmatprep.mubr.msk.bf16.mxu1 %vm12582_vm0, %v12581_v14  ;;  %11385 = vmatprep.mubr.msk.bf16.mxu0 %vm12582_vm0, %v12581_v14 }
0x1de9   :  { %v5205_v59 = vpop.f32.mrf.mxu0 }
0x1dea   :  { %v5273_v36 = vmul.f32 0.088388346, %v5205_v59 }
0x1deb   :  { %v5207_v52 = vpop.f32.mrf.mxu0 }
0x1ded   :  { %v5209_v20 = vpop.f32.mrf.mxu0 }
0x1dee   :  { %v5274_v44 = vmul.f32 0.088388346, %v5209_v20 }
0x1def   :  { %v5211_v23 = vpop.f32.mrf.mxu0 }
0x1df0   :  { %v13529_v9 = vpack.c.bf16 %v5211_v23, %v5207_v52  ;;  %v13534_v32 = vpack.c.bf16 %v5274_v44, %v5273_v36 }
0x1df1   :  { %v5215_v56 = vpop.f32.mrf.mxu0  ;;  %v11375_v16 = vpop.f32.mrf.mxu1 }
0x1df2   :  { %v5304_v30 = vsel %vm463_vm1, %v13529_v9, 0  ;;  %v5275_v10 = vmul.f32 0.088388346, %v5215_v56 }
0x1df3   :  { %v5217_v41 = vpop.f32.mrf.mxu0  ;;  %v5258_v31 = vpop.f32.mrf.mxu1  ;;  %11378 = vmatpush3.bf16.xpose.msra.mxu1 %v5304_v30 }
0x1df4   :  { %11389 = vmatprep.subr.bf16.mxu1 %v12581_v14 }
0x1df5   :  { %v5219_v60 = vpop.f32.mrf.mxu0  ;;  %v11376_v19 = vpop.f32.mrf.mxu1 }
0x1df6   :  { %v5276_v2 = vmul.f32 0.088388346, %v5219_v60  ;;  %v13551_v53 = vpack.c.bf16 %v11376_v19, %v11375_v16 }
0x1df7   :  { %v5221_v45 = vpop.f32.mrf.mxu0  ;;  %v5261_v61 = vpop.f32.mrf.mxu1 }
0x1df8   :  { %v13536_v37 = vpack.c.bf16 %v5221_v45, %v5217_v41  ;;  %v13538_v22 = vpack.c.bf16 %v5261_v61, %v5258_v31  ;;  %v13549_v21 = vpack.c.bf16 %v5276_v2, %v5275_v10 }
0x1dfa   :  { %11380 = vmatmul.mubr.msk.bf16.vlgmr.msra.gmra.mxu1 %vm463_vm1, %v13534_v32  ;;  %v5351_v1 = vsel %vm463_vm1, %v13536_v37, 0 }
0x1dfb   :  { %11384 = vmatpush3.bf16.xpose.msra.mxu0 %v5351_v1  ;;  %11390 = vmatpush3.bf16.msra.mxu1 %v13538_v22 }
0x1dfc   :  { %11395 = vmatprep.subr.bf16.mxu0 %v12581_v14  ;;  %11391 = vmatprep.mubr.msk.bf16.mxu1 %vm12582_vm0, %v12581_v14 }
0x1dfd   :  { %11401 = vmatprep.subr.bf16.mxu1 %v12581_v14 }
0x1e02   :  { %11386 = vmatmul.mubr.msk.bf16.vlgmr.msra.gmra.mxu0 %vm463_vm1, %v13549_v21 }
0x1e03   :  { %11396 = vmatpush3.bf16.msra.mxu0 %v13551_v53  ;;  %11397 = vmatprep.mubr.msk.bf16.mxu0 %vm12582_vm0, %v12581_v14 }
0x1e04   :  { %11407 = vmatprep.subr.bf16.mxu0 %v12581_v14 }
0x1eba   :  { %v5340_v13 = vpop.f32.mrf.mxu1 }
0x1ebb   :  { %v5394_v47 = vsel %vm12760_vm2, %v5340_v13, -1e+30 }
0x1ebc   :  { %v5398_v49 = vsel %vm566_vm3, %v5394_v47, -inf  ;;  %v11381_v11 = vpop.f32.mrf.mxu1 }
0x1ebd   :  { %5399 = vmax.xlane.f32.xlu0 %v5398_v49 }
0x1ebe   :  { %v5343_v26 = vpop.f32.mrf.mxu1 }
0x1ebf   :  { %v5395_v12 = vsel %vm12768_vm4, %v5343_v26, -1e+30 }
0x1ec0   :  { %v5401_v46 = vsel %vm566_vm3, %v5395_v12, -inf  ;;  %v11382_v3 = vpop.f32.mrf.mxu1 }
0x1ec1   :  { %5402 = vmax.xlane.f32.xlu1 %v5401_v46 }
0x1ec2   :  { %v5387_v50 = vpop.f32.mrf.mxu0 }
0x1ec3   :  { %v5396_v18 = vsel %vm12760_vm2, %v5387_v50, -1e+30 }
0x1ec4   :  { %v5404_v5 = vsel %vm566_vm3, %v5396_v18, -inf  ;;  %v11387_v8 = vpop.f32.mrf.mxu0 }
0x1ec5   :  { %5405 = vmax.xlane.f32.xlu0 %v5404_v5 }
0x1ec6   :  { %v5390_v43 = vpop.f32.mrf.mxu0 }
0x1ec7   :  { %v5397_v55 = vsel %vm12768_vm4, %v5390_v43, -1e+30 }
0x1ec8   :  { %v11388_v4 = vpop.f32.mrf.mxu0  ;;  %v5407_v17 = vsel %vm566_vm3, %v5397_v55, -inf }
0x1ed2   :  { %5591 = vrot.lane.b32.xlu1 %v13536_v37, %s12583_s8 }
0x1edb   :  { %5538 = vrot.lane.b32.xlu0 %v13529_v9, %s12583_s8 }
0x1ef6   :  { %5408 = vmax.xlane.f32.xlu1 %v5407_v17 }
0x1f07   :  { %5535 = vrot.lane.b32.xlu1 %v13534_v32, %s12583_s8 }
0x1f0b   :  { %5588 = vrot.lane.b32.xlu1 %v13549_v21, %s12583_s8 }
0x1f46   :  { %v5400_v38 = vpop.xlane.xlu0 %5399 }
0x1f47   :  { %v5410_v58 = vsub.f32 %v5394_v47, %v5400_v38 }
0x1f49   :  { %v5414_v15 = vmul.f32 1.442695, %v5410_v58 }
0x1f4a   :  { %v5403_v33 = vpop.xlane.xlu1 %5402 }
0x1f4b   :  { %v5411_v34 = vsub.f32 %v5395_v12, %v5403_v33  ;;  %12343 = vpow2.f32 %v5414_v15 }
0x1f4d   :  { %v5416_v0 = vmul.f32 1.442695, %v5411_v34 }
0x1f4e   :  { %v5406_v35 = vpop.xlane.xlu0 %5405  ;;  %v5592_v59 = vpop.permute.xlu1 %5591 }
0x1f4f   :  { %12345 = vpow2.f32 %v5416_v0  ;;  %v5412_v52 = vsub.f32 %v5396_v18, %v5406_v35  ;;  %v5597_v60 = vsel %vm463_vm1, %v5592_v59, 0 }
0x1f51   :  { %v5418_v20 = vmul.f32 1.442695, %v5412_v52 }
0x1f52   :  { %v5539_v62 = vpop.permute.xlu0 %5538 }
0x1f53   :  { %v5544_v63 = vsel %vm463_vm1, %v5539_v62, 0  ;;  %12347 = vpow2.f32 %v5418_v20 }
0x1f58   :  { %v13579_v6 = vpop.eup %12343 }
0x1f59   :  { %v5422_v34 = vsel %vm566_vm3, %v13579_v6, 0.0 }
0x1f5c   :  { %v12346_v57 = vpop.eup %12345 }
0x1f5d   :  { %v5434_v24 = vpack.c.bf16 %v12346_v57, %v13579_v6  ;;  %v5425_v15 = vsel %vm566_vm3, %v12346_v57, 0.0  ;;  %v11959_v57 = vld [vmem:[%s14286_s4 + $0x88] sm:$0xff]  }
0x1f5f   :  { %11392 = vmatmul.mubr.msk.bf16.vlgmr.msra.gmra.mxu1 %vm566_vm3, %v5434_v24 }
0x1f60   :  { %11402 = vmatpush3.bf16.xpose.msra.mxu1 %v5544_v63  ;;  %11403 = vmatprep.mubr.msk.bf16.mxu1 %vm12582_vm0, %v12581_v14  ;;  %v12348_v41 = vpop.eup %12347 }
0x1f61   :  { %11413 = vmatprep.subr.bf16.mxu1 %v12581_v14  ;;  %v5428_v0 = vsel %vm566_vm3, %v12348_v41, 0.0 }
0x1f7f   :  { %v5409_v23 = vpop.xlane.xlu1 %5408 }
0x1f80   :  { %v5413_v56 = vsub.f32 %v5397_v55, %v5409_v23 }
0x1f82   :  { %v5420_v16 = vmul.f32 1.442695, %v5413_v56 }
0x1f83   :  { %v5536_v30 = vpop.permute.xlu1 %5535 }
0x1f84   :  { %12349 = vpow2.f32 %v5420_v16  ;;  %11404 = vmatmul.mubr.msk.bf16.vlgmr.msra.gmra.mxu1 %vm463_vm1, %v5536_v30 }
0x1f85   :  { %11415 = vmatprep.mubr.msk.bf16.mxu1 %vm12582_vm0, %v12581_v14 }
0x1f87   :  { %v5589_v19 = vpop.permute.xlu1 %5588 }
0x1f91   :  { %v12350_v31 = vpop.eup %12349 }
0x1f92   :  { %v5435_v44 = vpack.c.bf16 %v12350_v31, %v12348_v41  ;;  %v5431_v33 = vsel %vm566_vm3, %v12350_v31, 0.0 }
0x1f94   :  { %11398 = vmatmul.mubr.msk.bf16.vlgmr.msra.gmra.mxu0 %vm566_vm3, %v5435_v44 }
0x1f95   :  { %11408 = vmatpush3.bf16.xpose.msra.mxu0 %v5597_v60  ;;  %11409 = vmatprep.mubr.msk.bf16.mxu0 %vm12582_vm0, %v12581_v14 }
0x1f96   :  { %11419 = vmatprep.subr.bf16.mxu0 %v12581_v14 }
0x1f9c   :  { %11410 = vmatmul.mubr.msk.bf16.vlgmr.msra.gmra.mxu0 %vm463_vm1, %v5589_v19 }
0x1f9d   :  { %11421 = vmatprep.mubr.msk.bf16.mxu0 %vm12582_vm0, %v12581_v14 }
0x201f   :  { %v13598_v36 = vpop.f32.mrf.mxu1 }
0x2021   :  { %v11393_v45 = vpop.f32.mrf.mxu1 }
0x2023   :  { %v13600_v61 = vpop.f32.mrf.mxu1 }
0x2025   :  { %v11394_v1 = vpop.f32.mrf.mxu1 }
0x2044   :  { %v5580_v2 = vpop.f32.mrf.mxu1 }
0x2045   :  { %v5640_v10 = vsel %vm12760_vm2, %v5580_v2, -1e+30 }
0x2046   :  { %v5644_v13 = vsel %vm566_vm3, %v5640_v10, -inf  ;;  %v11405_v47 = vpop.f32.mrf.mxu1 }
0x2047   :  { %5645 = vmax.xlane.f32.xlu0 %v5644_v13 }
0x2048   :  { %v5583_v49 = vpop.f32.mrf.mxu1 }
0x2049   :  { %v5641_v11 = vsel %vm12768_vm4, %v5583_v49, -1e+30  ;;  %v11960_v49 = vld [vmem:[%s14286_s4 + $0x80] sm:$0xff]  }
0x204a   :  { %v5647_v26 = vsel %vm566_vm3, %v5641_v11, -inf  ;;  %v11406_v12 = vpop.f32.mrf.mxu1 }
0x204b   :  { %5648 = vmax.xlane.f32.xlu1 %v5647_v26 }
0x2054   :  { %v13608_v46 = vpop.f32.mrf.mxu0 }
0x2056   :  { %v11399_v3 = vpop.f32.mrf.mxu0 }
0x2058   :  { %v13610_v50 = vpop.f32.mrf.mxu0 }
0x205a   :  { %v11400_v18 = vpop.f32.mrf.mxu0 }
0x205c   :  { %5731 = vrot.lane.b32.xlu1 %v13551_v53, %s12583_s8  ;;  %v5633_v5 = vpop.f32.mrf.mxu0 }
0x205d   :  { %v5642_v8 = vsel %vm12760_vm2, %v5633_v5, -1e+30 }
0x205e   :  { %v5650_v43 = vsel %vm566_vm3, %v5642_v8, -inf  ;;  %v11411_v4 = vpop.f32.mrf.mxu0 }
0x205f   :  { %5651 = vmax.xlane.f32.xlu0 %v5650_v43 }
0x2060   :  { %v5636_v55 = vpop.f32.mrf.mxu0 }
0x2061   :  { %v5643_v17 = vsel %vm12768_vm4, %v5636_v55, -1e+30 }
0x2062   :  { %v5653_v38 = vsel %vm566_vm3, %v5643_v17, -inf  ;;  %v11412_v58 = vpop.f32.mrf.mxu0 }
0x2063   :  { %5654 = vmax.xlane.f32.xlu0 %v5653_v38 }
0x2079   :  { %5683 = vrot.lane.b32.xlu0 %v13538_v22, %s12583_s8 }
0x2080   :  { %5426 = vadd.xlane.f32.xlu1 %v5425_v15 }
0x2084   :  { %5432 = vadd.xlane.f32.xlu1 %v5431_v33 }
0x2098   :  { %5423 = vadd.xlane.f32.xlu0 %v5422_v34 }
0x209c   :  { %5429 = vadd.xlane.f32.xlu0 %v5428_v0 }
0x20d0   :  { %v5646_v35 = vpop.xlane.xlu0 %5645 }
0x20d1   :  { %v5656_v62 = vsub.f32 %v5640_v10, %v5646_v35 }
0x20d3   :  { %v5660_v24 = vmul.f32 1.442695, %v5656_v62 }
0x20d4   :  { %v5649_v63 = vpop.xlane.xlu1 %5648 }
0x20d5   :  { %12351 = vpow2.f32 %v5660_v24  ;;  %v5657_v59 = vsub.f32 %v5641_v11, %v5649_v63 }
0x20d7   :  { %v5662_v52 = vmul.f32 1.442695, %v5657_v59 }
0x20d8   :  { %v5732_v20 = vpop.permute.xlu1 %5731 }
0x20d9   :  { %12353 = vpow2.f32 %v5662_v52  ;;  %11420 = vmatpush3.bf16.msra.mxu0 %v5732_v20 }
0x20da   :  { %11433 = vmatprep.subr.bf16.mxu0 %v11959_v57 }
0x20e2   :  { %v12352_v6 = vpop.eup %12351 }
0x20e3   :  { %v5668_v23 = vsel %vm566_vm3, %v12352_v6, 0.0 }
0x20e4   :  { %5669 = vadd.xlane.f32.xlu1 %v5668_v23 }
0x20e6   :  { %v12354_v56 = vpop.eup %12353 }
0x20e7   :  { %v5671_v16 = vsel %vm566_vm3, %v12354_v56, 0.0  ;;  %v5680_v1 = vpack.c.bf16 %v12354_v56, %v12352_v6 }
0x20e8   :  { %v5652_v30 = vpop.xlane.xlu0 %5651  ;;  %5672 = vadd.xlane.f32.xlu0 %v5671_v16 }
0x20e9   :  { %v5658_v41 = vsub.f32 %v5642_v8, %v5652_v30 }
0x20eb   :  { %v5664_v31 = vmul.f32 1.442695, %v5658_v41 }
0x20ec   :  { %v5655_v44 = vpop.xlane.xlu0 %5654 }
0x20ed   :  { %12355 = vpow2.f32 %v5664_v31  ;;  %v5659_v60 = vsub.f32 %v5643_v17, %v5655_v44 }
0x20ef   :  { %v5666_v19 = vmul.f32 1.442695, %v5659_v60 }
0x20f0   :  { %v5684_v45 = vpop.permute.xlu0 %5683 }
0x20f1   :  { %12357 = vpow2.f32 %v5666_v19  ;;  %11414 = vmatpush3.bf16.msra.mxu1 %v5684_v45 }
0x20f4   :  { %11416 = vmatmul.mubr.msk.bf16.vlgmr.msra.gmra.mxu1 %vm566_vm3, %v5680_v1 }
0x20f5   :  { %5975 = vrot.lane.b32.xlu1 %v13536_v37, %s12578_s22 }
0x20fa   :  { %v12356_v2 = vpop.eup %12355 }
0x20fb   :  { %v5674_v10 = vsel %vm566_vm3, %v12356_v2, 0.0 }
0x20fc   :  { %5675 = vadd.xlane.f32.xlu0 %v5674_v10 }
0x20fe   :  { %v12358_v13 = vpop.eup %12357 }
0x20ff   :  { %v5681_v47 = vpack.c.bf16 %v12358_v13, %v12356_v2  ;;  %v5677_v11 = vsel %vm566_vm3, %v12358_v13, 0.0 }
0x2101   :  { %11422 = vmatmul.mubr.msk.bf16.vlgmr.msra.gmra.mxu0 %vm566_vm3, %v5681_v47 }
0x2102   :  { %11434 = vmatpush3.bf16.msra.mxu0 %v11959_v57 }
0x2103   :  { %11435 = vmatprep.subr.bf16.mxu0 %v11960_v49 }
0x2106   :  { %11436 = vmatpush3.bf16.msra.mxu0 %v11960_v49 }
0x2107   :  { %11447 = vmatprep.subr.bf16.mxu0 %v12581_v14 }
0x2109   :  { %v5427_v26 = vpop.xlane.xlu1 %5426 }
0x210a   :  { %12359 = vrcp.f32 %v5427_v26 }
0x210d   :  { %v5433_v12 = vpop.xlane.xlu1 %5432 }
0x2112   :  { %5924 = vrot.lane.b32.xlu0 %v13529_v9, %s12578_s22 }
0x2117   :  { %v12360_v5 = vpop.eup %12359 }
0x2118   :  { %v5529_v4 = vmul.f32 %v12360_v5, %v13600_v61  ;;  %v11962_v61 = vld [vmem:[%s14286_s4 + $0x90] sm:$0xff]  }
0x2119   :  { %5678 = vadd.xlane.f32.xlu1 %v5677_v11 }
0x2121   :  { %v5424_v3 = vpop.xlane.xlu0 %5423 }
0x2122   :  { %12361 = vrcp.f32 %v5424_v3 }
0x2123   :  { %12363 = vrcp.f32 %v5433_v12 }
0x2125   :  { %v5430_v18 = vpop.xlane.xlu0 %5429 }
0x2126   :  { %12365 = vrcp.f32 %v5430_v18 }
0x212a   :  { %5922 = vrot.lane.b32.xlu1 %v13534_v32, %s12578_s22 }
0x212e   :  { %5973 = vrot.lane.b32.xlu1 %v13549_v21, %s12578_s22 }
0x212f   :  { %v12362_v8 = vpop.eup %12361 }
0x2130   :  { %v5528_v43 = vmul.f32 %v12362_v8, %v13598_v36  ;;  %v12364_v55 = vpop.eup %12363  ;;  %v11961_v36 = vld [vmem:[%s14286_s4 + $0x98] sm:$0xff]  }
0x2131   :  { %v5531_v58 = vmul.f32 %v12364_v55, %v13610_v50  ;;  %11425 = vmatprep.subr.bf16.mxu1 %v11961_v36 }
0x2132   :  { %v5532_v17 = vpack.c.bf16 %v5529_v4, %v5528_v43  ;;  %11426 = vmatpush3.bf16.msra.mxu1 %v11961_v36 }
0x2133   :  { %v12366_v38 = vpop.eup %12365  ;;  %11427 = vmatprep.subr.bf16.mxu1 %v11962_v61 }
0x2134   :  { %v5530_v15 = vmul.f32 %v12366_v38, %v13608_v46  ;;  %11437 = vmatprep.mubr.msk.bf16.mxu0 %vm463_vm1, %v5532_v17 }
0x2136   :  { %v5533_v33 = vpack.c.bf16 %v5531_v58, %v5530_v15  ;;  %11428 = vmatpush3.bf16.msra.mxu1 %v11962_v61 }
0x2137   :  { %11441 = vmatprep.subr.bf16.mxu1 %v12581_v14 }
0x2138   :  { %11438 = vmatmul.mubr.msk.bf16.vlgmr.msra.gmra.mxu0 %vm463_vm1, %v5533_v33 }
0x2139   :  { %11449 = vmatprep.mubr.msk.bf16.mxu0 %vm12582_vm0, %v12581_v14 }
0x216d   :  { %v5670_v46 = vpop.xlane.xlu1 %5669 }
0x216e   :  { %12367 = vrcp.f32 %v5670_v46 }
0x2171   :  { %v5976_v50 = vpop.permute.xlu1 %5975  ;;  %v5673_v62 = vpop.xlane.xlu0 %5672 }
0x2172   :  { %v5981_v34 = vsel %vm463_vm1, %v5976_v50, 0  ;;  %12369 = vrcp.f32 %v5673_v62 }
0x2173   :  { %11448 = vmatpush3.bf16.xpose.msra.mxu0 %v5981_v34 }
0x2174   :  { %11459 = vmatprep.subr.bf16.mxu0 %v12581_v14 }
0x217b   :  { %v12368_v52 = vpop.eup %12367 }
0x217f   :  { %v12370_v20 = vpop.eup %12369 }
0x2185   :  { %v5676_v63 = vpop.xlane.xlu0 %5675 }
0x2186   :  { %12371 = vrcp.f32 %v5676_v63 }
0x2189   :  { %v5925_v2 = vpop.permute.xlu0 %5924 }
0x218a   :  { %v5930_v47 = vsel %vm463_vm1, %v5925_v2, 0 }
0x2193   :  { %v12372_v44 = vpop.eup %12371 }
0x21a2   :  { %v5679_v0 = vpop.xlane.xlu1 %5678 }
0x21a3   :  { %12373 = vrcp.f32 %v5679_v0 }
0x21a6   :  { %v5923_v35 = vpop.permute.xlu1 %5922 }
0x21aa   :  { %v5974_v24 = vpop.permute.xlu1 %5973 }
0x21ab   :  { %11450 = vmatmul.mubr.msk.bf16.vlgmr.msra.gmra.mxu0 %vm463_vm1, %v5974_v24 }
0x21ac   :  { %11461 = vmatprep.mubr.msk.bf16.mxu0 %vm12582_vm0, %v12581_v14 }
0x21b0   :  { %v12374_v60 = vpop.eup %12373 }
0x21b4   :  { %v5723_v59 = vpop.f32.mrf.mxu1 }
0x21b5   :  { %v5782_v23 = vmul.f32 %v12368_v52, %v5723_v59 }
0x21b6   :  { %v11417_v57 = vpop.f32.mrf.mxu1 }
0x21b8   :  { %v5726_v6 = vpop.f32.mrf.mxu1 }
0x21b9   :  { %v5783_v56 = vmul.f32 %v12370_v20, %v5726_v6 }
0x21ba   :  { %v11418_v16 = vpop.f32.mrf.mxu1 }
0x21bb   :  { %v5786_v30 = vpack.c.bf16 %v5783_v56, %v5782_v23 }
0x21bd   :  { %11429 = vmatprep.mubr.msk.bf16.mxu1 %vm463_vm1, %v5786_v30 }
0x21c1   :  { %v5771_v41 = vpop.f32.mrf.mxu0 }
0x21c2   :  { %v5784_v45 = vmul.f32 %v12372_v44, %v5771_v41 }
0x21c3   :  { %v11423_v31 = vpop.f32.mrf.mxu0 }
0x21c5   :  { %v5774_v19 = vpop.f32.mrf.mxu0 }
0x21c6   :  { %v5785_v1 = vmul.f32 %v12374_v60, %v5774_v19 }
0x21c7   :  { %v11424_v10 = vpop.f32.mrf.mxu0 }
0x21c8   :  { %v5787_v13 = vpack.c.bf16 %v5785_v1, %v5784_v45 }
0x21ca   :  { %11430 = vmatmul.mubr.msk.bf16.vlgmr.msra.gmra.mxu1 %vm463_vm1, %v5787_v13 }
0x21cb   :  { %11442 = vmatpush3.bf16.xpose.msra.mxu1 %v5930_v47  ;;  %11443 = vmatprep.mubr.msk.bf16.mxu1 %vm12582_vm0, %v12581_v14 }
0x21cc   :  { %11453 = vmatprep.subr.bf16.mxu1 %v12581_v14 }
0x21d2   :  { %11444 = vmatmul.mubr.msk.bf16.vlgmr.msra.gmra.mxu1 %vm463_vm1, %v5923_v35 }
0x21d3   :  { %11455 = vmatprep.mubr.msk.bf16.mxu1 %vm12582_vm0, %v12581_v14 }
0x21f8   :  { %v13677_v49 = vpop.f32.mrf.mxu0 }
0x21fa   :  { %v13679_v11 = vpop.f32.mrf.mxu0 }
0x21fc   :  { %v13681_v26 = vpop.f32.mrf.mxu0 }
0x21fe   :  { %v5910_v12 = vpop.f32.mrf.mxu0 }
0x226b   :  { %v6017_v3 = vpop.f32.mrf.mxu0 }
0x226c   :  { %v6026_v18 = vsel %vm12760_vm2, %v6017_v3, -1e+30 }
0x226d   :  { %v6034_v5 = vsel %vm566_vm3, %v6026_v18, -inf  ;;  %v11451_v8 = vpop.f32.mrf.mxu0 }
0x226e   :  { %6035 = vmax.xlane.f32.xlu0 %v6034_v5  ;;  %v11963_v5 = vld [vmem:[%s14286_s4 + $0xa8] sm:$0xff]   ;;  %v11964_v8 = vld [vmem:[%s14286_s4 + $0xa0] sm:$0xff]  }
0x226f   :  { %v6020_v43 = vpop.f32.mrf.mxu0 }
0x2270   :  { %v6027_v4 = vsel %vm12768_vm4, %v6020_v43, -1e+30 }
0x2271   :  { %v6037_v55 = vsel %vm566_vm3, %v6027_v4, -inf  ;;  %v11452_v17 = vpop.f32.mrf.mxu0 }
0x2272   :  { %6038 = vmax.xlane.f32.xlu0 %v6037_v55 }
0x228a   :  { %v13689_v38 = vpop.f32.mrf.mxu1 }
0x228c   :  { %v13691_v58 = vpop.f32.mrf.mxu1 }
0x228e   :  { %v13693_v15 = vpop.f32.mrf.mxu1 }
0x2290   :  { %v5843_v33 = vpop.f32.mrf.mxu1 }
0x2291   :  { %v13695_v36 = vadd.f32 %v5910_v12, %v5843_v33 }
0x2292   :  { %v5966_v61 = vpop.f32.mrf.mxu1 }
0x2293   :  { %v6024_v46 = vsel %vm12760_vm2, %v5966_v61, -1e+30 }
0x2294   :  { %v6028_v50 = vsel %vm566_vm3, %v6024_v46, -inf  ;;  %v11445_v34 = vpop.f32.mrf.mxu1 }
0x2295   :  { %6029 = vmax.xlane.f32.xlu0 %v6028_v50 }
0x2296   :  { %v5969_v0 = vpop.f32.mrf.mxu1 }
0x2297   :  { %v6025_v35 = vsel %vm12768_vm4, %v5969_v0, -1e+30 }
0x2298   :  { %v6031_v62 = vsel %vm566_vm3, %v6025_v35, -inf  ;;  %v11446_v24 = vpop.f32.mrf.mxu1 }
0x2299   :  { %6032 = vmax.xlane.f32.xlu1 %v6031_v62 }
0x22aa   :  { %6113 = vrot.lane.b32.xlu1 %v13551_v53, %s12578_s22 }
0x22ab   :  { %6066 = vrot.lane.b32.xlu0 %v13538_v22, %s12578_s22 }
0x22f7   :  { %v6036_v63 = vpop.xlane.xlu0 %6035 }
0x22f8   :  { %v6042_v59 = vsub.f32 %v6026_v18, %v6036_v63 }
0x22fa   :  { %v6048_v57 = vmul.f32 1.442695, %v6042_v59 }
0x22fb   :  { %v6039_v52 = vpop.xlane.xlu0 %6038 }
0x22fc   :  { %12375 = vpow2.f32 %v6048_v57  ;;  %v6043_v20 = vsub.f32 %v6027_v4, %v6039_v52 }
0x22fe   :  { %v6050_v6 = vmul.f32 1.442695, %v6043_v20 }
0x2300   :  { %12377 = vpow2.f32 %v6050_v6 }
0x2309   :  { %v12376_v23 = vpop.eup %12375 }
0x230a   :  { %v6058_v56 = vsel %vm566_vm3, %v12376_v23, 0.0 }
0x230b   :  { %6059 = vadd.xlane.f32.xlu0 %v6058_v56 }
0x230d   :  { %v12378_v16 = vpop.eup %12377 }
0x230e   :  { %v6061_v30 = vsel %vm566_vm3, %v12378_v16, 0.0  ;;  %v6065_v10 = vpack.c.bf16 %v12378_v16, %v12376_v23 }
0x230f   :  { %6062 = vadd.xlane.f32.xlu1 %v6061_v30 }
0x231e   :  { %v6030_v41 = vpop.xlane.xlu0 %6029 }
0x231f   :  { %v6040_v31 = vsub.f32 %v6024_v46, %v6030_v41 }
0x2321   :  { %v6044_v44 = vmul.f32 1.442695, %v6040_v31 }
0x2322   :  { %v6033_v60 = vpop.xlane.xlu1 %6032  ;;  %v6067_v19 = vpop.permute.xlu0 %6066 }
0x2323   :  { %12379 = vpow2.f32 %v6044_v44  ;;  %v6041_v45 = vsub.f32 %v6025_v35, %v6033_v60  ;;  %11454 = vmatpush3.bf16.msra.mxu1 %v6067_v19 }
0x2324   :  { %11465 = vmatprep.subr.bf16.mxu1 %v11963_v5 }
0x2325   :  { %v6046_v1 = vmul.f32 1.442695, %v6041_v45 }
0x2326   :  { %v6114_v2 = vpop.permute.xlu1 %6113 }
0x2327   :  { %12381 = vpow2.f32 %v6046_v1  ;;  %11460 = vmatpush3.bf16.msra.mxu0 %v6114_v2 }
0x2328   :  { %11473 = vmatprep.subr.bf16.mxu0 %v12581_v14 }
0x232a   :  { %11462 = vmatmul.mubr.msk.bf16.vlgmr.msra.gmra.mxu0 %vm566_vm3, %v6065_v10 }
0x232b   :  { %11475 = vmatprep.mubr.msk.bf16.mxu0 %vm12582_vm0, %v12581_v14 }
0x2330   :  { %v12380_v13 = vpop.eup %12379 }
0x2331   :  { %v6052_v47 = vsel %vm566_vm3, %v12380_v13, 0.0 }
0x2332   :  { %6053 = vadd.xlane.f32.xlu1 %v6052_v47 }
0x2334   :  { %v12382_v12 = vpop.eup %12381 }
0x2335   :  { %v6064_v3 = vpack.c.bf16 %v12382_v12, %v12380_v13  ;;  %v6055_v18 = vsel %vm566_vm3, %v12382_v12, 0.0  ;;  %v5916_v13 = vadd.f32 %v13677_v49, %v13689_v38  ;;  %v5908_v12 = vadd.f32 %v13679_v11, %v13691_v58 }
0x2336   :  { %6056 = vadd.xlane.f32.xlu0 %v6055_v18 }
0x2337   :  { %11456 = vmatmul.mubr.msk.bf16.vlgmr.msra.gmra.mxu1 %vm566_vm3, %v6064_v3 }
0x2338   :  { %11466 = vmatpush3.bf16.msra.mxu1 %v11963_v5  ;;  %v5919_v5 = vadd.f32 %v13681_v26, %v13693_v15 }
0x2339   :  { %11467 = vmatprep.subr.bf16.mxu1 %v11964_v8 }
0x233c   :  { %11468 = vmatpush3.bf16.msra.mxu1 %v11964_v8 }
0x233d   :  { %11479 = vmatprep.subr.bf16.mxu1 %v12581_v14 }
0x2343   :  { %6294 = vrot.lane.b32.xlu1 %v13536_v37, %s12584_s0 }
0x2347   :  { %6241 = vrot.lane.b32.xlu1 %v13534_v32, %s12584_s0 }
0x234b   :  { %6292 = vrot.lane.b32.xlu1 %v13549_v21, %s12584_s0 }
0x234c   :  { %6243 = vrot.lane.b32.xlu0 %v13529_v9, %s12584_s0 }
0x2394   :  { %v6060_v32 = vpop.xlane.xlu0 %6059 }
0x2398   :  { %v6063_v37 = vpop.xlane.xlu1 %6062 }
0x2399   :  { %12383 = vrcp.f32 %v6063_v37 }
0x23a6   :  { %v12384_v0 = vpop.eup %12383 }
0x23bb   :  { %v6054_v21 = vpop.xlane.xlu1 %6053 }
0x23bc   :  { %12385 = vrcp.f32 %v6054_v21 }
0x23bf   :  { %v6057_v43 = vpop.xlane.xlu0 %6056  ;;  %v6295_v55 = vpop.permute.xlu1 %6294 }
0x23c0   :  { %12387 = vrcp.f32 %v6057_v43  ;;  %v6300_v30 = vsel %vm463_vm1, %v6295_v55, 0 }
0x23c1   :  { %12389 = vrcp.f32 %v6060_v32 }
0x23c3   :  { %v6244_v4 = vpop.permute.xlu0 %6243  ;;  %v6242_v17 = vpop.permute.xlu1 %6241 }
0x23c4   :  { %v6249_v9 = vsel %vm463_vm1, %v6244_v4, 0 }
0x23c5   :  { %11474 = vmatpush3.bf16.xpose.msra.mxu0 %v6249_v9 }
0x23c6   :  { %11485 = vmatprep.subr.bf16.mxu0 %v12581_v14 }
0x23c7   :  { %v6293_v41 = vpop.permute.xlu1 %6292 }
0x23c9   :  { %v12386_v62 = vpop.eup %12385 }
0x23cc   :  { %11476 = vmatmul.mubr.msk.bf16.vlgmr.msra.gmra.mxu0 %vm463_vm1, %v6242_v17 }
0x23cd   :  { %11487 = vmatprep.mubr.msk.bf16.mxu0 %vm12582_vm0, %v12581_v14  ;;  %v12388_v24 = vpop.eup %12387 }
0x23ce   :  { %v12390_v57 = vpop.eup %12389 }
0x23ea   :  { %v6153_v33 = vpop.f32.mrf.mxu0 }
0x23eb   :  { %v6166_v6 = vmul.f32 %v12390_v57, %v6153_v33 }
0x23ec   :  { %v11463_v61 = vpop.f32.mrf.mxu0 }
0x23ee   :  { %v6156_v46 = vpop.f32.mrf.mxu0 }
0x23ef   :  { %v6167_v63 = vmul.f32 %v12384_v0, %v6156_v46 }
0x23f0   :  { %v11464_v50 = vpop.f32.mrf.mxu0 }
0x23f1   :  { %v6169_v16 = vpack.c.bf16 %v6167_v63, %v6166_v6 }
0x23f7   :  { %v6106_v34 = vpop.f32.mrf.mxu1 }
0x23f8   :  { %v6164_v52 = vmul.f32 %v12386_v62, %v6106_v34 }
0x23f9   :  { %v11457_v35 = vpop.f32.mrf.mxu1 }
0x23fb   :  { %v6109_v59 = vpop.f32.mrf.mxu1 }
0x23fc   :  { %v6165_v20 = vmul.f32 %v12388_v24, %v6109_v59 }
0x23fd   :  { %v11458_v23 = vpop.f32.mrf.mxu1 }
0x23fe   :  { %v6168_v56 = vpack.c.bf16 %v6165_v20, %v6164_v52 }
0x2400   :  { %11469 = vmatprep.mubr.msk.bf16.mxu1 %vm463_vm1, %v6168_v56 }
0x2401   :  { %11470 = vmatmul.mubr.msk.bf16.vlgmr.msra.gmra.mxu1 %vm463_vm1, %v6169_v16 }
0x2402   :  { %11480 = vmatpush3.bf16.xpose.msra.mxu1 %v6300_v30  ;;  %11481 = vmatprep.mubr.msk.bf16.mxu1 %vm12582_vm0, %v12581_v14 }
0x2403   :  { %11491 = vmatprep.subr.bf16.mxu1 %v12581_v14 }
0x2409   :  { %11482 = vmatmul.mubr.msk.bf16.vlgmr.msra.gmra.mxu1 %vm463_vm1, %v6293_v41  ;;  %v11965_v41 = vld [vmem:[%s14286_s4 + $0xb8] sm:$0xff]  }
0x240a   :  { %11493 = vmatprep.mubr.msk.bf16.mxu1 %vm12582_vm0, %v12581_v14 }
0x248c   :  { %v6285_v31 = vpop.f32.mrf.mxu0 }
0x248d   :  { %v6343_v44 = vsel %vm12760_vm2, %v6285_v31, -1e+30  ;;  %v11966_v31 = vld [vmem:[%s14286_s4 + $0xb0] sm:$0xff]  }
0x248e   :  { %v6347_v60 = vsel %vm566_vm3, %v6343_v44, -inf  ;;  %v11477_v19 = vpop.f32.mrf.mxu0 }
0x248f   :  { %6348 = vmax.xlane.f32.xlu0 %v6347_v60 }
0x2490   :  { %v6288_v45 = vpop.f32.mrf.mxu0 }
0x2491   :  { %v6344_v1 = vsel %vm12768_vm4, %v6288_v45, -1e+30 }
0x2492   :  { %v6350_v2 = vsel %vm566_vm3, %v6344_v1, -inf  ;;  %v11478_v10 = vpop.f32.mrf.mxu0 }
0x2493   :  { %6351 = vmax.xlane.f32.xlu1 %v6350_v2 }
0x24a4   :  { %6432 = vrot.lane.b32.xlu1 %v13551_v53, %s12584_s0 }
0x24c1   :  { %v11471_v47 = vpop.f32.mrf.mxu1 }
0x24c2   :  { %v13757_v3 = vadd.f32 %v11471_v47, %v5916_v13 }
0x24c3   :  { %v6222_v18 = vpop.f32.mrf.mxu1 }
0x24c4   :  { %v13761_v8 = vadd.f32 %v6222_v18, %v5908_v12 }
0x24c5   :  { %v11472_v32 = vpop.f32.mrf.mxu1 }
0x24c6   :  { %v13763_v37 = vadd.f32 %v11472_v32, %v5919_v5 }
0x24c7   :  { %v6225_v21 = vpop.f32.mrf.mxu1 }
0x24c8   :  { %v13766_v53 = vadd.f32 %v6225_v21, %v13695_v36 }
0x24c9   :  { %v6336_v49 = vpop.f32.mrf.mxu1 }
0x24ca   :  { %v6345_v38 = vsel %vm12760_vm2, %v6336_v49, -1e+30 }
0x24cb   :  { %v6353_v11 = vsel %vm566_vm3, %v6345_v38, -inf  ;;  %v11483_v58 = vpop.f32.mrf.mxu1 }
0x24cc   :  { %6354 = vmax.xlane.f32.xlu0 %v6353_v11 }
0x24cd   :  { %v6339_v43 = vpop.f32.mrf.mxu1 }
0x24ce   :  { %v6346_v26 = vsel %vm12768_vm4, %v6339_v43, -1e+30 }
0x24cf   :  { %v6356_v15 = vsel %vm566_vm3, %v6346_v26, -inf  ;;  %v11484_v4 = vpop.f32.mrf.mxu1 }
0x24d0   :  { %6357 = vmax.xlane.f32.xlu0 %v6356_v15 }
0x24e6   :  { %6385 = vrot.lane.b32.xlu0 %v13538_v22, %s12584_s0 }
0x2518   :  { %v6349_v36 = vpop.xlane.xlu0 %6348 }
0x2519   :  { %v6359_v9 = vsub.f32 %v6343_v44, %v6349_v36 }
0x251b   :  { %v6363_v55 = vmul.f32 1.442695, %v6359_v9 }
0x251c   :  { %v6352_v17 = vpop.xlane.xlu1 %6351 }
0x251d   :  { %12391 = vpow2.f32 %v6363_v55  ;;  %v6360_v33 = vsub.f32 %v6344_v1, %v6352_v17 }
0x251f   :  { %v6365_v61 = vmul.f32 1.442695, %v6360_v33 }
0x2520   :  { %v6433_v46 = vpop.permute.xlu1 %6432 }
0x2521   :  { %12393 = vpow2.f32 %v6365_v61  ;;  %11492 = vmatpush3.bf16.msra.mxu1 %v6433_v46 }
0x252a   :  { %v12392_v50 = vpop.eup %12391 }
0x252b   :  { %v6371_v34 = vsel %vm566_vm3, %v12392_v50, 0.0 }
0x252c   :  { %6372 = vadd.xlane.f32.xlu1 %v6371_v34 }
0x252e   :  { %v12394_v0 = vpop.eup %12393 }
0x252f   :  { %v6374_v35 = vsel %vm566_vm3, %v12394_v0, 0.0  ;;  %v6383_v20 = vpack.c.bf16 %v12394_v0, %v12392_v50  ;;  %v10344_v50 = vld [vmem:[%s14287_s5 + $0x2] ss:$0 sm:$0xff] }
0x2530   :  { %6375 = vadd.xlane.f32.xlu0 %v6374_v35 }
0x2555   :  { %v6355_v62 = vpop.xlane.xlu0 %6354 }
0x2556   :  { %v6361_v22 = vsub.f32 %v6345_v38, %v6355_v62 }
0x2558   :  { %v6367_v24 = vmul.f32 1.442695, %v6361_v22 }
0x2559   :  { %v6358_v63 = vpop.xlane.xlu0 %6357 }
0x255a   :  { %12395 = vpow2.f32 %v6367_v24  ;;  %v6362_v59 = vsub.f32 %v6346_v26, %v6358_v63  ;;  %v11970_v24 = vld [vmem:[#allocation4 + $0x2e8] ss:$16 sps:$4 sm:$0xff]  }
0x255c   :  { %v6369_v57 = vmul.f32 1.442695, %v6362_v59 }
0x255d   :  { %v6386_v52 = vpop.permute.xlu0 %6385 }
0x255e   :  { %12397 = vpow2.f32 %v6369_v57  ;;  %11486 = vmatpush3.bf16.msra.mxu0 %v6386_v52 }
0x255f   :  { %11497 = vmatprep.subr.bf16.mxu0 %v11965_v41 }
0x2561   :  { %11488 = vmatmul.mubr.msk.bf16.vlgmr.msra.gmra.mxu0 %vm566_vm3, %v6383_v20 }
0x2562   :  { %11498 = vmatpush3.bf16.msra.mxu0 %v11965_v41 }
0x2563   :  { %11499 = vmatprep.subr.bf16.mxu0 %v11966_v31 }
0x2566   :  { %11500 = vmatpush3.bf16.msra.mxu0 %v11966_v31 }
0x2567   :  { %v12396_v6 = vpop.eup %12395 }
0x2568   :  { %v6377_v23 = vsel %vm566_vm3, %v12396_v6, 0.0 }
0x2569   :  { %6378 = vadd.xlane.f32.xlu0 %v6377_v23 }
0x256b   :  { %v12398_v56 = vpop.eup %12397 }
0x256c   :  { %v6384_v16 = vpack.c.bf16 %v12398_v56, %v12396_v6  ;;  %v6380_v30 = vsel %vm566_vm3, %v12398_v56, 0.0 }
0x256d   :  { %6381 = vadd.xlane.f32.xlu1 %v6380_v30 }
0x256e   :  { %11494 = vmatmul.mubr.msk.bf16.vlgmr.msra.gmra.mxu1 %vm566_vm3, %v6384_v16 }
0x256f   :  { %6894 = vmatprep.mubr.bf16.mxu1 %v12580_v40 }
0x25b5   :  { %v6373_v44 = vpop.xlane.xlu1 %6372 }
0x25b6   :  { %12399 = vrcp.f32 %v6373_v44 }
0x25b9   :  { %v6376_v60 = vpop.xlane.xlu0 %6375 }
0x25ba   :  { %12401 = vrcp.f32 %v6376_v60 }
0x25c3   :  { %v12400_v10 = vpop.eup %12399 }
0x25c7   :  { %v12402_v13 = vpop.eup %12401 }
0x25f2   :  { %v6379_v19 = vpop.xlane.xlu0 %6378 }
0x25f3   :  { %12403 = vrcp.f32 %v6379_v19 }
0x25f6   :  { %v6382_v1 = vpop.xlane.xlu1 %6381 }
0x25f7   :  { %12405 = vrcp.f32 %v6382_v1  ;;  %v11978_v1 = vld [vmem:[#allocation4 + $0x2cc] ss:$16 sps:$4 sm:$0xff]  }
0x2600   :  { %v12404_v38 = vpop.eup %12403 }
0x2604   :  { %v12406_v11 = vpop.eup %12405 }
0x2621   :  { %v6425_v45 = vpop.f32.mrf.mxu0 }
0x2622   :  { %v6483_v12 = vmul.f32 %v12400_v10, %v6425_v45  ;;  %v11975_v45 = vld [vmem:[#allocation4 + $0x2c4] ss:$16 sps:$4 sm:$0xff]   ;;  %v11976_v10 = vld [vmem:[#allocation4 + $0x2c8] ss:$16 sps:$4 sm:$0xff]  }
0x2623   :  { %v11489_v2 = vpop.f32.mrf.mxu0 }
0x2624   :  { %v11973_v2 = vld [vmem:[#allocation4 + $0x2c0] ss:$16 sps:$4 sm:$0xff]  }
0x2625   :  { %v6428_v47 = vpop.f32.mrf.mxu0 }
0x2626   :  { %v6484_v18 = vmul.f32 %v12402_v13, %v6428_v47  ;;  %v11981_v13 = vld [vmem:[#allocation4 + $0x2a4] ss:$16 sps:$4 sm:$0xff]   ;;  %v11984_v47 = vld [vmem:[#allocation4 + $0x2ac] ss:$16 sps:$4 sm:$0xff]  }
0x2627   :  { %v11490_v5 = vpop.f32.mrf.mxu0 }
0x2628   :  { %v6487_v32 = vpack.c.bf16 %v6484_v18, %v6483_v12  ;;  %v11979_v12 = vld [vmem:[#allocation4 + $0x2a0] ss:$16 sps:$4 sm:$0xff]   ;;  %v11982_v18 = vld [vmem:[#allocation4 + $0x2a8] ss:$16 sps:$4 sm:$0xff]   ;;  %v11987_v5 = vld [vmem:[#allocation4 + $0x284] ss:$16 sps:$4 sm:$0xff]  }
0x262a   :  { %11501 = vmatprep.mubr.msk.bf16.mxu0 %vm463_vm1, %v6487_v32  ;;  %v11990_v32 = vld [vmem:[#allocation4 + $0x28c] ss:$16 sps:$4 sm:$0xff]  }
0x262e   :  { %v6472_v21 = vpop.f32.mrf.mxu1 }
0x262f   :  { %v6485_v43 = vmul.f32 %v12404_v38, %v6472_v21  ;;  %v11985_v21 = vld [vmem:[#allocation4 + $0x280] ss:$16 sps:$4 sm:$0xff]   ;;  %v11993_v38 = vld [vmem:[#allocation4 + $0x264] ss:$16 sps:$4 sm:$0xff]  }
0x2630   :  { %v11495_v49 = vpop.f32.mrf.mxu1 }
0x2631   :  { %v11988_v49 = vld [vmem:[#allocation4 + $0x288] ss:$16 sps:$4 sm:$0xff]  }
0x2632   :  { %v6475_v58 = vpop.f32.mrf.mxu1 }
0x2633   :  { %v6486_v26 = vmul.f32 %v12406_v11, %v6475_v58  ;;  %v11996_v11 = vld [vmem:[#allocation4 + $0x26c] ss:$16 sps:$4 sm:$0xff]   ;;  %v11991_v58 = vld [vmem:[#allocation4 + $0x260] ss:$16 sps:$4 sm:$0xff]  }
0x2634   :  { %v11496_v15 = vpop.f32.mrf.mxu1 }
0x2635   :  { %v6488_v4 = vpack.c.bf16 %v6486_v26, %v6485_v43  ;;  %v11994_v43 = vld [vmem:[#allocation4 + $0x268] ss:$16 sps:$4 sm:$0xff]   ;;  %v11999_v26 = vld [vmem:[#allocation4 + $0x244] ss:$16 sps:$4 sm:$0xff]   ;;  %v12002_v15 = vld [vmem:[#allocation4 + $0x24c] ss:$16 sps:$4 sm:$0xff]  }
0x2637   :  { %11502 = vmatmul.mubr.msk.bf16.vlgmr.msra.gmra.mxu0 %vm463_vm1, %v6488_v4  ;;  %v11997_v4 = vld [vmem:[#allocation4 + $0x240] ss:$16 sps:$4 sm:$0xff]  }
0x2638   :  { %6947 = vmatprep.mubr.bf16.mxu0 %v12580_v40 }
0x26f7   :  { %v11503_v36 = vpop.f32.mrf.mxu0 }
0x26f8   :  { %v6558_v55 = vadd.f32 %v11503_v36, %v13757_v3  ;;  %v12000_v36 = vld [vmem:[#allocation4 + $0x248] ss:$16 sps:$4 sm:$0xff]  }
0x26f9   :  { %v6541_v9 = vpop.f32.mrf.mxu0 }
0x26fa   :  { %v6556_v17 = vadd.f32 %v6541_v9, %v13761_v8  ;;  %v6562_v34 = vadd.f32 %v6558_v55, %v13485_v51  ;;  %v12005_v9 = vld [vmem:[#allocation4 + $0x224] ss:$16 sps:$4 sm:$0xff]   ;;  %v12008_v55 = vld [vmem:[#allocation4 + $0x22c] ss:$16 sps:$4 sm:$0xff]  }
0x26fb   :  { %v11504_v33 = vpop.f32.mrf.mxu0 }
0x26fc   :  { %v6560_v61 = vadd.f32 %v6556_v17, %v13477_v54  ;;  %v6559_v0 = vadd.f32 %v11504_v33, %v13763_v37  ;;  %v13808_v22 = vadd.f32 %v10344_v50, %v6562_v34  ;;  %v11967_v37 = vld [vmem:[#allocation4 + $0x2e0] ss:$16 sps:$4 sm:$0xff]   ;;  %v12006_v33 = vld [vmem:[#allocation4 + $0x228] ss:$16 sps:$4 sm:$0xff]  }
0x26fd   :  { %v6544_v46 = vpop.f32.mrf.mxu0  ;;  %v12003_v17 = vld [vmem:[#allocation4 + $0x220] ss:$16 sps:$4 sm:$0xff]   ;;  %v12012_v34 = vld [vmem:[#allocation4 + $0x208] ss:$16 sps:$4 sm:$0xff]  }
0x26fe   :  { %v6557_v35 = vadd.f32 %v6544_v46, %v13766_v53  ;;  %v13801_v62 = vadd.f32 %v10344_v50, %v6560_v61  ;;  %v6563_v8 = vadd.f32 %v6559_v0, %v13489_v7  ;;  %v11969_v53 = vld [vmem:[#allocation4 + $0x2e4] ss:$16 sps:$4 sm:$0xff]   ;;  %v12014_v46 = vld [vmem:[#allocation4 + $0x20c] ss:$16 sps:$4 sm:$0xff]  }
0x26ff   :  { %6862 = vmatprep.subr.bf16.mxu1 %v11969_v53  ;;  %v12011_v61 = vld [vmem:[#allocation4 + $0x204] ss:$16 sps:$4 sm:$0xff]   ;;  %v12015_v0 = vld [vmem:[#allocation6 + $0x278] sm:$0xff]  }
0x2700   :  { %v6561_v3 = vadd.f32 %v6557_v35, %v13481_v39  ;;  %6580 = vadd.xlane.f32.xlu0 %v13801_v62  ;;  %v13812_v51 = vadd.f32 %v10344_v50, %v6563_v8  ;;  %v11972_v39 = vld [vmem:[#allocation4 + $0x2ec] ss:$16 sps:$4 sm:$0xff]   ;;  %6863 = vmatpush1.bf16.msra.mxu1 %v11967_v37 }
0x2701   :  { %6915 = vmatprep.subr.bf16.mxu0 %v11972_v39  ;;  %6864 = vmatprep.subr.bf16.mxu1 %v11975_v45  ;;  %v12016_v35 = vld [vmem:[#allocation6 + $0x2f8] sm:$0xff]  }
0x2702   :  { %v13806_v54 = vadd.f32 %v10344_v50, %v6561_v3  ;;  %6916 = vmatpush1.bf16.msra.mxu0 %v11970_v24  ;;  %v12009_v50 = vld [vmem:[#allocation4 + $0x200] ss:$16 sps:$4 sm:$0xff]  }
0x2703   :  { %6917 = vmatprep.subr.bf16.mxu0 %v11978_v1  ;;  %v10348_v1 = vld [vmem:[%s14289_s7 + $0x2] ss:$0 sm:$0xff] }
0x2704   :  { %6582 = vadd.xlane.f32.xlu1 %v13806_v54  ;;  %6584 = vadd.xlane.f32.xlu0 %v13808_v22 }
0x2705   :  { %6865 = vmatpush1.bf16.msra.mxu1 %v11973_v2 }
0x2706   :  { %6918 = vmatpush1.bf16.msra.mxu0 %v11976_v10  ;;  %6866 = vmatprep.subr.bf16.mxu1 %v11981_v13 }
0x2707   :  { %6919 = vmatprep.subr.bf16.mxu0 %v11984_v47 }
0x2708   :  { %6586 = vadd.xlane.f32.xlu1 %v13812_v51 }
0x2709   :  { %6867 = vmatpush1.bf16.msra.mxu1 %v11979_v12 }
0x270a   :  { %6920 = vmatpush1.bf16.msra.mxu0 %v11982_v18  ;;  %6868 = vmatprep.subr.bf16.mxu1 %v11987_v5 }
0x270b   :  { %6921 = vmatprep.subr.bf16.mxu0 %v11990_v32  ;;  %v12017_v32 = vld [vmem:[#allocation6 + $0x238] sm:$0xff]  }
0x270d   :  { %6869 = vmatpush1.bf16.msra.mxu1 %v11985_v21  ;;  %v12018_v21 = vld [vmem:[#allocation6 + $0x2b8] sm:$0xff]  }
0x270e   :  { %6922 = vmatpush1.bf16.msra.mxu0 %v11988_v49  ;;  %6870 = vmatprep.subr.bf16.mxu1 %v11993_v38  ;;  %v12019_v49 = vld [vmem:[#allocation6 + $0x270] sm:$0xff]  }
0x270f   :  { %6923 = vmatprep.subr.bf16.mxu0 %v11996_v11 }
0x2711   :  { %6871 = vmatpush1.bf16.msra.mxu1 %v11991_v58  ;;  %v12021_v58 = vld [vmem:[#allocation6 + $0x230] sm:$0xff]  }
0x2712   :  { %6924 = vmatpush1.bf16.msra.mxu0 %v11994_v43  ;;  %6872 = vmatprep.subr.bf16.mxu1 %v11999_v26  ;;  %v12024_v43 = vld [vmem:[#allocation6 + $0x2e8] sm:$0xff]  }
0x2713   :  { %6925 = vmatprep.subr.bf16.mxu0 %v12002_v15 }
0x2715   :  { %6873 = vmatpush1.bf16.msra.mxu1 %v11997_v4  ;;  %v12025_v4 = vld [vmem:[#allocation6 + $0x228] sm:$0xff]  }
0x2716   :  { %6926 = vmatpush1.bf16.msra.mxu0 %v12000_v36  ;;  %6874 = vmatprep.subr.bf16.mxu1 %v12005_v9  ;;  %v12026_v36 = vld [vmem:[#allocation6 + $0x2a8] sm:$0xff]   ;;  %v12027_v9 = vld [vmem:[#allocation6 + $0x260] sm:$0xff]  }
0x2717   :  { %6927 = vmatprep.subr.bf16.mxu0 %v12008_v55  ;;  %v12028_v55 = vld [vmem:[#allocation6 + $0x2e0] sm:$0xff]  }
0x2719   :  { %6875 = vmatpush1.bf16.msra.mxu1 %v12003_v17  ;;  %v12029_v17 = vld [vmem:[#allocation6 + $0x220] sm:$0xff]  }
0x271a   :  { %6928 = vmatpush1.bf16.msra.mxu0 %v12006_v33  ;;  %6876 = vmatprep.subr.bf16.mxu1 %v12011_v61  ;;  %v12030_v33 = vld [vmem:[#allocation6 + $0x2a0] sm:$0xff]   ;;  %v12031_v61 = vld [vmem:[#allocation6 + $0x258] sm:$0xff]  }
0x271b   :  { %6929 = vmatprep.subr.bf16.mxu0 %v12014_v46  ;;  %v12032_v46 = vld [vmem:[#allocation6 + $0x2d8] sm:$0xff]  }
0x271d   :  { %6877 = vmatpush1.bf16.msra.mxu1 %v12009_v50  ;;  %v12033_v50 = vld [vmem:[#allocation6 + $0x218] sm:$0xff]  }
0x271e   :  { %6930 = vmatpush1.bf16.msra.mxu0 %v12012_v34  ;;  %10881 = vmatprep.subr.bf16.mxu1 %v12015_v0  ;;  %v12034_v34 = vld [vmem:[#allocation6 + $0x298] sm:$0xff]   ;;  %v12035_v0 = vld [vmem:[#allocation6 + $0x250] sm:$0xff]  }
0x271f   :  { %10909 = vmatprep.subr.bf16.mxu0 %v12016_v35  ;;  %v12036_v35 = vld [vmem:[#allocation6 + $0x2d0] sm:$0xff]  }
0x2789   :  { %v6581_v7 = vpop.xlane.xlu0 %6580 }
0x278a   :  { %v6588_v63 = vmul.f32 0.0078125, %v6581_v7 }
0x278c   :  { %v13816_v59 = vsub.f32 %v13801_v62, %v6588_v63 }
0x278d   :  { %v6583_v57 = vpop.xlane.xlu1 %6582  ;;  %v6585_v52 = vpop.xlane.xlu0 %6584 }
0x278e   :  { %v6589_v20 = vmul.f32 0.0078125, %v6583_v57  ;;  %v6590_v6 = vmul.f32 0.0078125, %v6585_v52  ;;  %v6596_v23 = vmul.f32 %v13816_v59, %v13816_v59 }
0x2790   :  { %v13821_v56 = vsub.f32 %v13806_v54, %v6589_v20  ;;  %v13824_v16 = vsub.f32 %v13808_v22, %v6590_v6  ;;  %6600 = vadd.xlane.f32.xlu0 %v6596_v23 }
0x2791   :  { %v6587_v30 = vpop.xlane.xlu1 %6586 }
0x2792   :  { %v6591_v41 = vmul.f32 0.0078125, %v6587_v30  ;;  %v6597_v31 = vmul.f32 %v13821_v56, %v13821_v56  ;;  %v6598_v44 = vmul.f32 %v13824_v16, %v13824_v16 }
0x2794   :  { %v13831_v60 = vsub.f32 %v13812_v51, %v6591_v41  ;;  %6602 = vadd.xlane.f32.xlu1 %v6597_v31  ;;  %6604 = vadd.xlane.f32.xlu0 %v6598_v44  ;;  %v10347_v41 = vld [vmem:[%s14288_s6 + $0x2] ss:$0 sm:$0xff] }
0x2796   :  { %v6599_v19 = vmul.f32 %v13831_v60, %v13831_v60 }
0x2798   :  { %6606 = vadd.xlane.f32.xlu1 %v6599_v19 }
0x2819   :  { %v6601_v3 = vpop.xlane.xlu0 %6600 }
0x281a   :  { %v6608_v8 = vmul.f32 0.0078125, %v6601_v3  ;;  %v12037_v3 = vld [vmem:[#allocation6 + $0x210] sm:$0xff]  }
0x281c   :  { %v6612_v37 = vadd.f32 1e-05, %v6608_v8  ;;  %v12038_v8 = vld [vmem:[#allocation6 + $0x290] sm:$0xff]  }
0x281d   :  { %v6603_v53 = vpop.xlane.xlu1 %6602  ;;  %v6605_v24 = vpop.xlane.xlu0 %6604 }
0x281e   :  { %12407 = vrsqrt.f32 %v6612_v37  ;;  %v6609_v39 = vmul.f32 0.0078125, %v6603_v53  ;;  %v6610_v7 = vmul.f32 0.0078125, %v6605_v24  ;;  %v12039_v37 = vld [vmem:[#allocation6 + $0x248] sm:$0xff]  }
0x281f   :  { %v12040_v53 = vld [vmem:[#allocation6 + $0x2c8] sm:$0xff]  }
0x2820   :  { %v6613_v63 = vadd.f32 1e-05, %v6609_v39  ;;  %v6614_v57 = vadd.f32 1e-05, %v6610_v7  ;;  %v12041_v24 = vld [vmem:[#allocation6 + $0x208] sm:$0xff]   ;;  %v12043_v7 = vld [vmem:[#allocation6 + $0x240] sm:$0xff]  }
0x2821   :  { %v6607_v52 = vpop.xlane.xlu1 %6606  ;;  %v12042_v39 = vld [vmem:[#allocation6 + $0x288] sm:$0xff]  }
0x2822   :  { %12409 = vrsqrt.f32 %v6613_v63  ;;  %v6611_v20 = vmul.f32 0.0078125, %v6607_v52  ;;  %v12044_v63 = vld [vmem:[#allocation6 + $0x2c0] sm:$0xff]  }
0x2823   :  { %12411 = vrsqrt.f32 %v6614_v57  ;;  %v12045_v57 = vld [vmem:[#allocation6 + $0x200] sm:$0xff]  }
0x2824   :  { %v6615_v6 = vadd.f32 1e-05, %v6611_v20  ;;  %v12046_v52 = vld [vmem:[#allocation6 + $0x280] sm:$0xff]   ;;  %v10349_v20 = vld [vmem:[%s14291_s9 + $0x8] sm:$0xf] }
0x2826   :  { %12413 = vrsqrt.f32 %v6615_v6 }
0x282b   :  { %v12408_v23 = vpop.eup %12407 }
0x282c   :  { %v6620_v30 = vmul.f32 %v12408_v23, %v13816_v59 }
0x282e   :  { %v6630_v19 = vmul.f32 %v10347_v41, %v6620_v30  ;;  %v6689_v30 = vrot.slane %v10349_v20, %v13069_v25 }
0x282f   :  { %v12410_v31 = vpop.eup %12409 }
0x2830   :  { %v6621_v44 = vmul.f32 %v12410_v31, %v13821_v56  ;;  %v12412_v45 = vpop.eup %12411  ;;  %v6640_v13 = vadd.f32 %v10348_v1, %v6630_v19  ;;  %v12020_v56 = vld [vmem:[#allocation6 + $0x2f0] sm:$0xff]   ;;  %v6685_v31 = vrot.slane %v10349_v20, %v13075_v28 }
0x2831   :  { %v6622_v12 = vmul.f32 %v12412_v45, %v13824_v16  ;;  %v12022_v16 = vld [vmem:[#allocation6 + $0x2b0] sm:$0xff]  }
0x2832   :  { %v6631_v2 = vmul.f32 %v10347_v41, %v6621_v44  ;;  %v6693_v44 = vrot.slane %v10349_v20, %v13078_v29 }
0x2833   :  { %v12414_v10 = vpop.eup %12413  ;;  %v6632_v38 = vmul.f32 %v10347_v41, %v6622_v12 }
0x2834   :  { %v6641_v47 = vadd.f32 %v10348_v1, %v6631_v2  ;;  %v6623_v59 = vmul.f32 %v12414_v10, %v13831_v60  ;;  %v12023_v60 = vld [vmem:[#allocation6 + $0x268] sm:$0xff]  }
0x2835   :  { %v6642_v26 = vadd.f32 %v10348_v1, %v6632_v38 }
0x2836   :  { %v6644_v18 = vpack.c.bf16 %v6641_v47, %v6640_v13  ;;  %v6633_v5 = vmul.f32 %v10347_v41, %v6623_v59  ;;  %v6697_v41 = vrot.slane %v10349_v20, %v13072_v27 }
0x2838   :  { %6895 = vmatmul.mubr.bf16.vlgmr.msra.gmra.mxu1 %v6644_v18  ;;  %6948 = vmatmul.mubr.bf16.vlgmr.msra.gmra.mxu0 %v6644_v18  ;;  %v6643_v11 = vadd.f32 %v10348_v1, %v6633_v5 }
0x2839   :  { %6904 = vmatprep.mubr.bf16.mxu1 %v12580_v40  ;;  %6957 = vmatprep.mubr.bf16.mxu0 %v12580_v40 }
0x283a   :  { %10882 = vmatpush3.bf16.msra.mxu1 %v12017_v32  ;;  %10910 = vmatpush3.bf16.msra.mxu0 %v12018_v21  ;;  %v6645_v15 = vpack.c.bf16 %v6643_v11, %v6642_v26 }
0x283b   :  { %10883 = vmatprep.subr.bf16.mxu1 %v12019_v49  ;;  %10911 = vmatprep.subr.bf16.mxu0 %v12020_v56 }
0x283e   :  { %10884 = vmatpush3.bf16.msra.mxu1 %v12021_v58  ;;  %10912 = vmatpush3.bf16.msra.mxu0 %v12022_v16 }
0x283f   :  { %10885 = vmatprep.subr.bf16.mxu1 %v12023_v60  ;;  %10913 = vmatprep.subr.bf16.mxu0 %v12024_v43 }
0x2840   :  { %6905 = vmatmul.mubr.bf16.gmra.mxu1 %v6645_v15  ;;  %6958 = vmatmul.mubr.bf16.gmra.mxu0 %v6645_v15 }
0x2842   :  { %10886 = vmatpush3.bf16.msra.mxu1 %v12025_v4  ;;  %10914 = vmatpush3.bf16.msra.mxu0 %v12026_v36 }
0x2843   :  { %10887 = vmatprep.subr.bf16.mxu1 %v12027_v9  ;;  %10915 = vmatprep.subr.bf16.mxu0 %v12028_v55 }
0x2846   :  { %10888 = vmatpush3.bf16.msra.mxu1 %v12029_v17  ;;  %10916 = vmatpush3.bf16.msra.mxu0 %v12030_v33 }
0x2847   :  { %10889 = vmatprep.subr.bf16.mxu1 %v12031_v61  ;;  %10917 = vmatprep.subr.bf16.mxu0 %v12032_v46 }
0x284a   :  { %10890 = vmatpush3.bf16.msra.mxu1 %v12033_v50  ;;  %10918 = vmatpush3.bf16.msra.mxu0 %v12034_v34 }
0x284b   :  { %10891 = vmatprep.subr.bf16.mxu1 %v12035_v0  ;;  %10919 = vmatprep.subr.bf16.mxu0 %v12036_v35 }
0x284e   :  { %10892 = vmatpush3.bf16.msra.mxu1 %v12037_v3  ;;  %10920 = vmatpush3.bf16.msra.mxu0 %v12038_v8 }
0x284f   :  { %10893 = vmatprep.subr.bf16.mxu1 %v12039_v37  ;;  %10921 = vmatprep.subr.bf16.mxu0 %v12040_v53 }
0x2852   :  { %10894 = vmatpush3.bf16.msra.mxu1 %v12041_v24  ;;  %10922 = vmatpush3.bf16.msra.mxu0 %v12042_v39 }
0x2853   :  { %10895 = vmatprep.subr.bf16.mxu1 %v12043_v7  ;;  %10923 = vmatprep.subr.bf16.mxu0 %v12044_v63 }
0x2856   :  { %10896 = vmatpush3.bf16.msra.mxu1 %v12045_v57  ;;  %10924 = vmatpush3.bf16.msra.mxu0 %v12046_v52 }
0x28f8   :  { %v6896_v6 = vpop.f32.mrf.mxu1  ;;  %v6949_v23 = vpop.f32.mrf.mxu0 }
0x28f9   :  { %v6897_v59 = vadd.f32 %v6896_v6, %v6685_v31  ;;  %v6950_v18 = vadd.f32 %v6949_v23, %v6693_v44 }
0x28fa   :  { %v6898_v19 = vpop.f32.mrf.mxu1  ;;  %v6951_v45 = vpop.f32.mrf.mxu0 }
0x28fb   :  { %v6899_v10 = vadd.f32 %v6898_v19, %v6689_v30  ;;  %v6952_v13 = vadd.f32 %v6951_v45, %v6697_v41  ;;  %v6968_v15 = vmax.f32 %v6897_v59, 0.0  ;;  %v6970_v4 = vmax.f32 %v6950_v18, 0.0 }
0x28fc   :  { %v6900_v1 = vpop.f32.mrf.mxu1  ;;  %v6953_v2 = vpop.f32.mrf.mxu0 }
0x28fd   :  { %v6901_v47 = vadd.f32 %v6900_v1, %v6685_v31  ;;  %v6954_v12 = vadd.f32 %v6953_v2, %v6693_v44  ;;  %v6969_v16 = vmax.f32 %v6899_v10, 0.0  ;;  %v6971_v60 = vmax.f32 %v6952_v13, 0.0 }
0x28fe   :  { %v6902_v5 = vpop.f32.mrf.mxu1  ;;  %v6955_v32 = vpop.f32.mrf.mxu0 }
0x28ff   :  { %v6903_v21 = vadd.f32 %v6902_v5, %v6689_v30  ;;  %v6956_v49 = vadd.f32 %v6955_v32, %v6697_v41  ;;  %v6972_v56 = vmax.f32 %v6901_v47, 0.0  ;;  %v6974_v38 = vmax.f32 %v6954_v12, 0.0 }
0x2900   :  { %v6906_v11 = vpop.f32.mrf.mxu1  ;;  %v6959_v58 = vpop.f32.mrf.mxu0 }
0x2901   :  { %v6973_v43 = vmax.f32 %v6903_v21, 0.0  ;;  %v6975_v26 = vmax.f32 %v6956_v49, 0.0  ;;  %v6984_v33 = vpack.c.bf16 %v6972_v56, %v6968_v15  ;;  %v6986_v61 = vpack.c.bf16 %v6974_v38, %v6970_v4 }
0x2902   :  { %v6908_v36 = vpop.f32.mrf.mxu1  ;;  %v6961_v9 = vpop.f32.mrf.mxu0  ;;  %v6907_v8 = vadd.f32 %v6906_v11, %v6685_v31  ;;  %v6960_v37 = vadd.f32 %v6959_v58, %v6693_v44 }
0x2903   :  { %v6985_v55 = vpack.c.bf16 %v6973_v43, %v6969_v16  ;;  %v6987_v17 = vpack.c.bf16 %v6975_v26, %v6971_v60  ;;  %v6909_v46 = vadd.f32 %v6908_v36, %v6689_v30  ;;  %v6962_v0 = vadd.f32 %v6961_v9, %v6697_v41 }
0x2904   :  { %v6910_v50 = vpop.f32.mrf.mxu1  ;;  %v6963_v34 = vpop.f32.mrf.mxu0  ;;  %v6976_v19 = vmax.f32 %v6907_v8, 0.0  ;;  %v6978_v45 = vmax.f32 %v6960_v37, 0.0 }
0x2905   :  { %v6911_v35 = vadd.f32 %v6910_v50, %v6685_v31  ;;  %v6964_v3 = vadd.f32 %v6963_v34, %v6693_v44  ;;  %7289 = vmatprep.mubr.bf16.mxu1 %v6985_v55  ;;  %7338 = vmatprep.mubr.bf16.mxu0 %v6987_v17  ;;  %v6977_v52 = vmax.f32 %v6909_v46, 0.0  ;;  %v6979_v20 = vmax.f32 %v6962_v0, 0.0  ;;  %v10383_v31 = vld [vmem:[%s14293_s11 + $0x2] ss:$0 sm:$0xff] }
0x2906   :  { %v6912_v53 = vpop.f32.mrf.mxu1  ;;  %v6965_v24 = vpop.f32.mrf.mxu0  ;;  %7290 = vmatmul.mubr.bf16.vlgmr.msra.gmra.mxu1 %v6984_v33  ;;  %7339 = vmatmul.mubr.bf16.vlgmr.msra.gmra.mxu0 %v6986_v61 }
0x2907   :  { %v6913_v39 = vadd.f32 %v6912_v53, %v6689_v30  ;;  %v6966_v7 = vadd.f32 %v6965_v24, %v6697_v41  ;;  %v6980_v63 = vmax.f32 %v6911_v35, 0.0  ;;  %v6982_v57 = vmax.f32 %v6964_v3, 0.0  ;;  %v12049_v53 = vld [vmem:[#allocation2 + $0x2ec] ss:$12 sps:$4 sm:$0xff]  }
0x2908   :  { %7590 = vmatprep.subr.bf16.mxu1 %v12049_v53 }
0x2909   :  { %v6981_v6 = vmax.f32 %v6913_v39, 0.0  ;;  %v6983_v23 = vmax.f32 %v6966_v7, 0.0  ;;  %v6988_v10 = vpack.c.bf16 %v6980_v63, %v6976_v19  ;;  %v6990_v13 = vpack.c.bf16 %v6982_v57, %v6978_v45 }
0x290b   :  { %v6989_v1 = vpack.c.bf16 %v6981_v6, %v6977_v52  ;;  %v6991_v2 = vpack.c.bf16 %v6983_v23, %v6979_v20 }
0x290d   :  { %7297 = vmatprep.mubr.bf16.mxu1 %v6989_v1  ;;  %7346 = vmatprep.mubr.bf16.mxu0 %v6991_v2 }
0x290e   :  { %7298 = vmatmul.mubr.bf16.gmra.mxu1 %v6988_v10  ;;  %7347 = vmatmul.mubr.bf16.gmra.mxu0 %v6990_v13  ;;  %v12052_v13 = vld [vmem:[#allocation2 + $0x2d4] ss:$12 sps:$4 sm:$0xff]  }
0x290f   :  { %7622 = vmatprep.mubr.bf16.mxu1 %v12580_v40 }
0x29c6   :  { %v10897_v30 = vpop.f32.mrf.mxu1  ;;  %v10925_v41 = vpop.f32.mrf.mxu0 }
0x29c8   :  { %v10898_v44 = vpop.f32.mrf.mxu1  ;;  %v10926_v47 = vpop.f32.mrf.mxu0 }
0x29c9   :  { %v10899_v12 = vadd.f32 %v10898_v44, %v10897_v30  ;;  %v10927_v32 = vadd.f32 %v10926_v47, %v10925_v41  ;;  %v12050_v30 = vld [vmem:[#allocation2 + $0x2d0] ss:$12 sps:$4 sm:$0xff]   ;;  %v12053_v44 = vld [vmem:[#allocation2 + $0x2b8] ss:$12 sps:$4 sm:$0xff]  }
0x29ca   :  { %v10900_v59 = vpop.f32.mrf.mxu1  ;;  %v10928_v18 = vpop.f32.mrf.mxu0  ;;  %v12055_v41 = vld [vmem:[#allocation2 + $0x2bc] ss:$12 sps:$4 sm:$0xff]   ;;  %v12059_v47 = vld [vmem:[#allocation2 + $0x2a4] ss:$12 sps:$4 sm:$0xff]  }
0x29cb   :  { %v7292_v5 = vadd.f32 %v10899_v12, %v10383_v31  ;;  %v12060_v12 = vld [vmem:[#allocation2 + $0x2d8] ss:$12 sps:$4 sm:$0xff]  }
0x29cc   :  { %v10901_v21 = vpop.f32.mrf.mxu1  ;;  %v10929_v49 = vpop.f32.mrf.mxu0 }
0x29cd   :  { %v7341_v56 = vadd.f32 %v10927_v32, %v7292_v5  ;;  %v10902_v38 = vadd.f32 %v10901_v21, %v10900_v59  ;;  %v10930_v60 = vadd.f32 %v10929_v49, %v10928_v18  ;;  %v12057_v59 = vld [vmem:[#allocation2 + $0x2a0] ss:$12 sps:$4 sm:$0xff]   ;;  %v12061_v32 = vld [vmem:[#allocation2 + $0x288] ss:$12 sps:$4 sm:$0xff]  }
0x29ce   :  { %v10903_v11 = vpop.f32.mrf.mxu1  ;;  %v10931_v58 = vpop.f32.mrf.mxu0  ;;  %v12063_v18 = vld [vmem:[#allocation2 + $0x28c] ss:$12 sps:$4 sm:$0xff]   ;;  %v12067_v21 = vld [vmem:[#allocation2 + $0x274] ss:$12 sps:$4 sm:$0xff]  }
0x29cf   :  { %v7295_v16 = vadd.f32 %v10902_v38, %v10383_v31  ;;  %v13859_v43 = vadd.f32 %v7341_v56, %v13801_v62  ;;  %v12064_v5 = vld [vmem:[#allocation2 + $0x2c0] ss:$12 sps:$4 sm:$0xff]   ;;  %v12068_v49 = vld [vmem:[#allocation2 + $0x2a8] ss:$12 sps:$4 sm:$0xff]   ;;  %v12065_v56 = vld [vmem:[#allocation2 + $0x270] ss:$12 sps:$4 sm:$0xff]  }
0x29d0   :  { %v10904_v26 = vpop.f32.mrf.mxu1  ;;  %v10932_v15 = vpop.f32.mrf.mxu0  ;;  %v12071_v38 = vld [vmem:[#allocation2 + $0x25c] ss:$12 sps:$4 sm:$0xff]  }
0x29d1   :  { %v7344_v4 = vadd.f32 %v10930_v60, %v7295_v16  ;;  %v10905_v36 = vadd.f32 %v10904_v26, %v10903_v11  ;;  %7363 = vadd.xlane.f32.xlu0 %v13859_v43  ;;  %v10933_v33 = vadd.f32 %v10932_v15, %v10931_v58  ;;  %v12072_v11 = vld [vmem:[#allocation2 + $0x290] ss:$12 sps:$4 sm:$0xff]   ;;  %v12069_v58 = vld [vmem:[#allocation2 + $0x258] ss:$12 sps:$4 sm:$0xff]   ;;  %v12073_v16 = vld [vmem:[#allocation2 + $0x240] ss:$12 sps:$4 sm:$0xff]  }
0x29d2   :  { %v10906_v9 = vpop.f32.mrf.mxu1  ;;  %v10934_v55 = vpop.f32.mrf.mxu0  ;;  %v12075_v60 = vld [vmem:[#allocation2 + $0x244] ss:$12 sps:$4 sm:$0xff]   ;;  %v12077_v15 = vld [vmem:[#allocation2 + $0x260] ss:$12 sps:$4 sm:$0xff]  }
0x29d3   :  { %v7300_v17 = vadd.f32 %v10905_v36, %v10383_v31  ;;  %v13863_v61 = vadd.f32 %v7344_v4, %v13806_v54  ;;  %v12047_v54 = vld [vmem:[#allocation2 + $0x2e8] ss:$12 sps:$4 sm:$0xff]   ;;  %v12076_v26 = vld [vmem:[#allocation2 + $0x278] ss:$12 sps:$4 sm:$0xff]  }
0x29d4   :  { %v10907_v46 = vpop.f32.mrf.mxu1  ;;  %v10935_v50 = vpop.f32.mrf.mxu0  ;;  %7591 = vmatpush1.bf16.msra.mxu1 %v12047_v54  ;;  %v12078_v4 = vld [vmem:[#allocation2 + $0x248] ss:$12 sps:$4 sm:$0xff]  }
0x29d5   :  { %v7349_v34 = vadd.f32 %v10933_v33, %v7300_v17  ;;  %v10908_v0 = vadd.f32 %v10907_v46, %v10906_v9  ;;  %7365 = vadd.xlane.f32.xlu1 %v13863_v61  ;;  %v10936_v35 = vadd.f32 %v10935_v50, %v10934_v55  ;;  %7592 = vmatprep.subr.bf16.mxu1 %v12052_v13 }
0x29d7   :  { %v7303_v62 = vadd.f32 %v10908_v0, %v10383_v31  ;;  %v13867_v3 = vadd.f32 %v7349_v34, %v13808_v22  ;;  %v12056_v31 = vld [vmem:[#allocation2 + $0x2f0] ss:$12 sps:$4 sm:$0xff]  }
0x29d8   :  { %7593 = vmatpush1.bf16.msra.mxu1 %v12050_v30  ;;  %11505 = vmatprep.subr.bf16.mxu0 %v12056_v31 }
0x29d9   :  { %v7352_v8 = vadd.f32 %v10936_v35, %v7303_v62  ;;  %7367 = vadd.xlane.f32.xlu0 %v13867_v3  ;;  %7594 = vmatprep.subr.bf16.mxu1 %v12055_v41 }
0x29da   :  { %11506 = vmatpush3.bf16.msra.mxu0 %v12056_v31 }
0x29db   :  { %v13871_v37 = vadd.f32 %v7352_v8, %v13812_v51  ;;  %11507 = vmatprep.subr.bf16.mxu0 %v12060_v12 }
0x29dc   :  { %7595 = vmatpush1.bf16.msra.mxu1 %v12053_v44 }
0x29dd   :  { %7369 = vadd.xlane.f32.xlu1 %v13871_v37  ;;  %7596 = vmatprep.subr.bf16.mxu1 %v12059_v47 }
0x29de   :  { %11508 = vmatpush3.bf16.msra.mxu0 %v12060_v12 }
0x29df   :  { %11509 = vmatprep.subr.bf16.mxu0 %v12064_v5 }
0x29e0   :  { %7597 = vmatpush1.bf16.msra.mxu1 %v12057_v59 }
0x29e1   :  { %7598 = vmatprep.subr.bf16.mxu1 %v12063_v18 }
0x29e2   :  { %11510 = vmatpush3.bf16.msra.mxu0 %v12064_v5 }
0x29e3   :  { %11511 = vmatprep.subr.bf16.mxu0 %v12068_v49 }
0x29e4   :  { %7599 = vmatpush1.bf16.msra.mxu1 %v12061_v32 }
0x29e5   :  { %7600 = vmatprep.subr.bf16.mxu1 %v12067_v21 }
0x29e6   :  { %11512 = vmatpush3.bf16.msra.mxu0 %v12068_v49 }
0x29e7   :  { %11513 = vmatprep.subr.bf16.mxu0 %v12072_v11 }
0x29e8   :  { %7601 = vmatpush1.bf16.msra.mxu1 %v12065_v56 }
0x29e9   :  { %7602 = vmatprep.subr.bf16.mxu1 %v12071_v38 }
0x29ea   :  { %11514 = vmatpush3.bf16.msra.mxu0 %v12072_v11 }
0x29eb   :  { %11515 = vmatprep.subr.bf16.mxu0 %v12076_v26 }
0x29ec   :  { %7603 = vmatpush1.bf16.msra.mxu1 %v12069_v58 }
0x29ed   :  { %7604 = vmatprep.subr.bf16.mxu1 %v12075_v60 }
0x29ee   :  { %11516 = vmatpush3.bf16.msra.mxu0 %v12076_v26 }
0x29ef   :  { %11517 = vmatprep.subr.bf16.mxu0 %v12077_v15 }
0x29f0   :  { %7605 = vmatpush1.bf16.msra.mxu1 %v12073_v16 }
0x29f1   :  { %11531 = vmatprep.subr.bf16.mxu1 %v12581_v14 }
0x29f2   :  { %11518 = vmatpush3.bf16.msra.mxu0 %v12077_v15 }
0x29f3   :  { %11519 = vmatprep.subr.bf16.mxu0 %v12078_v4 }
0x29f6   :  { %11520 = vmatpush3.bf16.msra.mxu0 %v12078_v4 }
0x29f7   :  { %11525 = vmatprep.subr.bf16.mxu0 %v12581_v14 }
0x2a5a   :  { %v7364_v24 = vpop.xlane.xlu0 %7363 }
0x2a5b   :  { %v7371_v39 = vmul.f32 0.0078125, %v7364_v24  ;;  %v10418_v24 = vld [vmem:[%s14283_s1 + $0x3] ss:$0 sm:$0xff] }
0x2a5d   :  { %v13875_v7 = vsub.f32 %v13859_v43, %v7371_v39 }
0x2a5e   :  { %v7366_v63 = vpop.xlane.xlu1 %7365 }
0x2a5f   :  { %v7372_v22 = vmul.f32 0.0078125, %v7366_v63  ;;  %v7379_v57 = vmul.f32 %v13875_v7, %v13875_v7 }
0x2a61   :  { %v13880_v52 = vsub.f32 %v13863_v61, %v7372_v22  ;;  %7383 = vadd.xlane.f32.xlu0 %v7379_v57  ;;  %v10419_v57 = vld [vmem:[%s14284_s2 + $0x3] ss:$0 sm:$0xff] }
0x2a62   :  { %v7368_v51 = vpop.xlane.xlu0 %7367 }
0x2a63   :  { %v7373_v20 = vmul.f32 0.0078125, %v7368_v51  ;;  %v7380_v6 = vmul.f32 %v13880_v52, %v13880_v52 }
0x2a65   :  { %v13885_v23 = vsub.f32 %v13867_v3, %v7373_v20  ;;  %7385 = vadd.xlane.f32.xlu1 %v7380_v6 }
0x2a66   :  { %v7370_v19 = vpop.xlane.xlu1 %7369 }
0x2a67   :  { %v7374_v45 = vmul.f32 0.0078125, %v7370_v19  ;;  %v7381_v1 = vmul.f32 %v13885_v23, %v13885_v23 }
0x2a69   :  { %v13890_v2 = vsub.f32 %v13871_v37, %v7374_v45  ;;  %7387 = vadd.xlane.f32.xlu0 %v7381_v1 }
0x2a6b   :  { %v7382_v10 = vmul.f32 %v13890_v2, %v13890_v2 }
0x2a6d   :  { %7389 = vadd.xlane.f32.xlu1 %v7382_v10 }
0x2aea   :  { %v7384_v36 = vpop.xlane.xlu0 %7383 }
0x2aeb   :  { %v7391_v9 = vmul.f32 0.0078125, %v7384_v36 }
0x2aed   :  { %v7395_v55 = vadd.f32 1e-05, %v7391_v9 }
0x2aee   :  { %v7386_v17 = vpop.xlane.xlu1 %7385 }
0x2aef   :  { %12415 = vrsqrt.f32 %v7395_v55  ;;  %v7392_v33 = vmul.f32 0.0078125, %v7386_v17 }
0x2af1   :  { %v7396_v46 = vadd.f32 1e-05, %v7392_v33 }
0x2af2   :  { %v7388_v50 = vpop.xlane.xlu0 %7387 }
0x2af3   :  { %12417 = vrsqrt.f32 %v7396_v46  ;;  %v7393_v34 = vmul.f32 0.0078125, %v7388_v50 }
0x2af5   :  { %v7397_v0 = vadd.f32 1e-05, %v7393_v34 }
0x2af6   :  { %v7390_v62 = vpop.xlane.xlu1 %7389 }
0x2af7   :  { %12419 = vrsqrt.f32 %v7397_v0  ;;  %v7394_v35 = vmul.f32 0.0078125, %v7390_v62 }
0x2af9   :  { %v7398_v8 = vadd.f32 1e-05, %v7394_v35 }
0x2afb   :  { %12421 = vrsqrt.f32 %v7398_v8 }
0x2afc   :  { %v12416_v54 = vpop.eup %12415 }
0x2afd   :  { %v7403_v53 = vmul.f32 %v12416_v54, %v13875_v7 }
0x2aff   :  { %v7413_v63 = vmul.f32 %v10418_v24, %v7403_v53 }
0x2b00   :  { %v12418_v39 = vpop.eup %12417 }
0x2b01   :  { %v7404_v22 = vmul.f32 %v12418_v39, %v13880_v52  ;;  %v7423_v6 = vadd.f32 %v10419_v57, %v7413_v63 }
0x2b03   :  { %v7414_v51 = vmul.f32 %v10418_v24, %v7404_v22 }
0x2b04   :  { %v12420_v20 = vpop.eup %12419 }
0x2b05   :  { %v7424_v19 = vadd.f32 %v10419_v57, %v7414_v51  ;;  %v7405_v45 = vmul.f32 %v12420_v20, %v13885_v23 }
0x2b07   :  { %v7427_v1 = vpack.c.bf16 %v7424_v19, %v7423_v6  ;;  %v7415_v13 = vmul.f32 %v10418_v24, %v7405_v45 }
0x2b08   :  { %v12422_v7 = vpop.eup %12421 }
0x2b09   :  { %7623 = vmatmul.mubr.bf16.vlgmr.msra.gmra.mxu1 %v7427_v1  ;;  %11521 = vmatprep.mubr.bf16.mxu0 %v7427_v1  ;;  %v7406_v10 = vmul.f32 %v12422_v7, %v13890_v2  ;;  %v7425_v30 = vadd.f32 %v10419_v57, %v7415_v13 }
0x2b0a   :  { %7632 = vmatprep.mubr.bf16.mxu1 %v12580_v40 }
0x2b0b   :  { %v7416_v52 = vmul.f32 %v10418_v24, %v7406_v10 }
0x2b0d   :  { %v7426_v41 = vadd.f32 %v10419_v57, %v7416_v52 }
0x2b0f   :  { %v7428_v31 = vpack.c.bf16 %v7426_v41, %v7425_v30 }
0x2b11   :  { %7633 = vmatmul.mubr.bf16.gmra.mxu1 %v7428_v31  ;;  %11522 = vmatmul.mubr.bf16.vlgmr.msra.gmra.mxu0 %v7428_v31 }
0x2b12   :  { %11527 = vmatprep.mubr.msk.bf16.mxu0 %vm12582_vm0, %v12581_v14  ;;  %11533 = vmatprep.mubr.msk.bf16.mxu1 %vm12582_vm0, %v12581_v14 }
0x2bc9   :  { %v7624_v23 = vpop.f32.mrf.mxu1 }
0x2bca   :  { %v7692_v11 = vmul.f32 0.088388346, %v7624_v23 }
0x2bcb   :  { %v7626_v44 = vpop.f32.mrf.mxu1 }
0x2bcd   :  { %v7628_v47 = vpop.f32.mrf.mxu1 }
0x2bce   :  { %v7693_v49 = vmul.f32 0.088388346, %v7628_v47 }
0x2bcf   :  { %v7630_v12 = vpop.f32.mrf.mxu1 }
0x2bd0   :  { %v13911_v2 = vpack.c.bf16 %v7630_v12, %v7626_v44  ;;  %v13916_v60 = vpack.c.bf16 %v7693_v49, %v7692_v11 }
0x2bd1   :  { %v7634_v59 = vpop.f32.mrf.mxu1  ;;  %v11523_v18 = vpop.f32.mrf.mxu0 }
0x2bd2   :  { %v7723_v5 = vsel %vm463_vm1, %v13911_v2, 0  ;;  %v7694_v9 = vmul.f32 0.088388346, %v7634_v59 }
0x2bd3   :  { %v7636_v32 = vpop.f32.mrf.mxu1  ;;  %v7677_v21 = vpop.f32.mrf.mxu0  ;;  %11526 = vmatpush3.bf16.xpose.msra.mxu0 %v7723_v5 }
0x2bd4   :  { %11537 = vmatprep.subr.bf16.mxu0 %v12581_v14 }
0x2bd5   :  { %v7638_v56 = vpop.f32.mrf.mxu1  ;;  %v11524_v38 = vpop.f32.mrf.mxu0 }
0x2bd6   :  { %v7695_v36 = vmul.f32 0.088388346, %v7638_v56  ;;  %v13933_v17 = vpack.c.bf16 %v11524_v38, %v11523_v18 }
0x2bd7   :  { %v7640_v58 = vpop.f32.mrf.mxu1  ;;  %v7680_v16 = vpop.f32.mrf.mxu0 }
0x2bd8   :  { %v13918_v26 = vpack.c.bf16 %v7640_v58, %v7636_v32  ;;  %v13920_v15 = vpack.c.bf16 %v7680_v16, %v7677_v21  ;;  %v13931_v55 = vpack.c.bf16 %v7695_v36, %v7694_v9 }
0x2bda   :  { %11528 = vmatmul.mubr.msk.bf16.vlgmr.msra.gmra.mxu0 %vm463_vm1, %v13916_v60  ;;  %v7770_v4 = vsel %vm463_vm1, %v13918_v26, 0 }
0x2bdb   :  { %11532 = vmatpush3.bf16.xpose.msra.mxu1 %v7770_v4  ;;  %11538 = vmatpush3.bf16.msra.mxu0 %v13920_v15 }
0x2bdc   :  { %11543 = vmatprep.subr.bf16.mxu1 %v12581_v14  ;;  %11539 = vmatprep.mubr.msk.bf16.mxu0 %vm12582_vm0, %v12581_v14 }
0x2bdd   :  { %11549 = vmatprep.subr.bf16.mxu0 %v12581_v14 }
0x2be2   :  { %11534 = vmatmul.mubr.msk.bf16.vlgmr.msra.gmra.mxu1 %vm463_vm1, %v13931_v55 }
0x2be3   :  { %11544 = vmatpush3.bf16.msra.mxu1 %v13933_v17  ;;  %11545 = vmatprep.mubr.msk.bf16.mxu1 %vm12582_vm0, %v12581_v14 }
0x2be4   :  { %11555 = vmatprep.subr.bf16.mxu1 %v12581_v14 }
0x2c9a   :  { %v7759_v33 = vpop.f32.mrf.mxu0 }
0x2c9b   :  { %v7813_v46 = vsel %vm12760_vm2, %v7759_v33, -1e+30 }
0x2c9c   :  { %v7817_v50 = vsel %vm566_vm3, %v7813_v46, -inf  ;;  %v11529_v34 = vpop.f32.mrf.mxu0 }
0x2c9d   :  { %7818 = vmax.xlane.f32.xlu0 %v7817_v50 }
0x2c9e   :  { %v7762_v0 = vpop.f32.mrf.mxu0 }
0x2c9f   :  { %v7814_v62 = vsel %vm12768_vm4, %v7762_v0, -1e+30 }
0x2ca0   :  { %v7820_v35 = vsel %vm566_vm3, %v7814_v62, -inf  ;;  %v11530_v8 = vpop.f32.mrf.mxu0 }
0x2ca1   :  { %7821 = vmax.xlane.f32.xlu1 %v7820_v35 }
0x2ca2   :  { %v7806_v54 = vpop.f32.mrf.mxu1 }
0x2ca3   :  { %v7815_v53 = vsel %vm12760_vm2, %v7806_v54, -1e+30 }
0x2ca4   :  { %v7823_v24 = vsel %vm566_vm3, %v7815_v53, -inf  ;;  %v11535_v39 = vpop.f32.mrf.mxu1 }
0x2ca5   :  { %7824 = vmax.xlane.f32.xlu0 %v7823_v24 }
0x2ca6   :  { %v7809_v63 = vpop.f32.mrf.mxu1 }
0x2ca7   :  { %v7816_v57 = vsel %vm12768_vm4, %v7809_v63, -1e+30 }
0x2ca8   :  { %v11536_v22 = vpop.f32.mrf.mxu1  ;;  %v7826_v51 = vsel %vm566_vm3, %v7816_v57, -inf }
0x2cb2   :  { %8010 = vrot.lane.b32.xlu1 %v13918_v26, %s12583_s8 }
0x2cbb   :  { %7957 = vrot.lane.b32.xlu0 %v13911_v2, %s12583_s8 }
0x2cd6   :  { %7827 = vmax.xlane.f32.xlu1 %v7826_v51 }
0x2ce7   :  { %7954 = vrot.lane.b32.xlu1 %v13916_v60, %s12583_s8 }
0x2ceb   :  { %8007 = vrot.lane.b32.xlu1 %v13931_v55, %s12583_s8 }
0x2d26   :  { %v7819_v20 = vpop.xlane.xlu0 %7818 }
0x2d27   :  { %v7829_v6 = vsub.f32 %v7813_v46, %v7819_v20 }
0x2d29   :  { %v7833_v19 = vmul.f32 1.442695, %v7829_v6 }
0x2d2a   :  { %v7822_v45 = vpop.xlane.xlu1 %7821 }
0x2d2b   :  { %v7830_v1 = vsub.f32 %v7814_v62, %v7822_v45  ;;  %12423 = vpow2.f32 %v7833_v19 }
0x2d2d   :  { %v7835_v7 = vmul.f32 1.442695, %v7830_v1 }
0x2d2e   :  { %v7825_v10 = vpop.xlane.xlu0 %7824  ;;  %v8011_v23 = vpop.permute.xlu1 %8010 }
0x2d2f   :  { %12425 = vpow2.f32 %v7835_v7  ;;  %v7831_v44 = vsub.f32 %v7815_v53, %v7825_v10  ;;  %v8016_v56 = vsel %vm463_vm1, %v8011_v23, 0 }
0x2d31   :  { %v7837_v47 = vmul.f32 1.442695, %v7831_v44 }
0x2d32   :  { %v7958_v30 = vpop.permute.xlu0 %7957 }
0x2d33   :  { %v7963_v31 = vsel %vm463_vm1, %v7958_v30, 0  ;;  %12427 = vpow2.f32 %v7837_v47 }
0x2d38   :  { %v13961_v13 = vpop.eup %12423 }
0x2d39   :  { %v7841_v1 = vsel %vm566_vm3, %v13961_v13, 0.0 }
0x2d3c   :  { %v12426_v52 = vpop.eup %12425 }
0x2d3d   :  { %v7853_v41 = vpack.c.bf16 %v12426_v52, %v13961_v13  ;;  %v7844_v19 = vsel %vm566_vm3, %v12426_v52, 0.0  ;;  %v12079_v52 = vld [vmem:[%s14286_s4 + $0xc8] sm:$0xff]  }
0x2d3f   :  { %11540 = vmatmul.mubr.msk.bf16.vlgmr.msra.gmra.mxu0 %vm566_vm3, %v7853_v41 }
0x2d40   :  { %11550 = vmatpush3.bf16.xpose.msra.mxu0 %v7963_v31  ;;  %11551 = vmatprep.mubr.msk.bf16.mxu0 %vm12582_vm0, %v12581_v14  ;;  %v12428_v32 = vpop.eup %12427 }
0x2d41   :  { %11561 = vmatprep.subr.bf16.mxu0 %v12581_v14  ;;  %v7847_v7 = vsel %vm566_vm3, %v12428_v32, 0.0 }
0x2d5f   :  { %v7828_v12 = vpop.xlane.xlu1 %7827 }
0x2d60   :  { %v7832_v59 = vsub.f32 %v7816_v57, %v7828_v12 }
0x2d62   :  { %v7839_v18 = vmul.f32 1.442695, %v7832_v59 }
0x2d63   :  { %v7955_v5 = vpop.permute.xlu1 %7954 }
0x2d64   :  { %12429 = vpow2.f32 %v7839_v18  ;;  %11552 = vmatmul.mubr.msk.bf16.vlgmr.msra.gmra.mxu0 %vm463_vm1, %v7955_v5 }
0x2d65   :  { %11563 = vmatprep.mubr.msk.bf16.mxu0 %vm12582_vm0, %v12581_v14 }
0x2d67   :  { %v8008_v38 = vpop.permute.xlu1 %8007 }
0x2d71   :  { %v12430_v21 = vpop.eup %12429 }
0x2d72   :  { %v7854_v49 = vpack.c.bf16 %v12430_v21, %v12428_v32  ;;  %v7850_v45 = vsel %vm566_vm3, %v12430_v21, 0.0 }
0x2d74   :  { %11546 = vmatmul.mubr.msk.bf16.vlgmr.msra.gmra.mxu1 %vm566_vm3, %v7854_v49 }
0x2d75   :  { %11556 = vmatpush3.bf16.xpose.msra.mxu1 %v8016_v56  ;;  %11557 = vmatprep.mubr.msk.bf16.mxu1 %vm12582_vm0, %v12581_v14 }
0x2d76   :  { %11567 = vmatprep.subr.bf16.mxu1 %v12581_v14 }
0x2d7c   :  { %11558 = vmatmul.mubr.msk.bf16.vlgmr.msra.gmra.mxu1 %vm463_vm1, %v8008_v38 }
0x2d7d   :  { %11569 = vmatprep.mubr.msk.bf16.mxu1 %vm12582_vm0, %v12581_v14 }
0x2dff   :  { %v13980_v11 = vpop.f32.mrf.mxu0 }
0x2e01   :  { %v11541_v58 = vpop.f32.mrf.mxu0 }
0x2e03   :  { %v13982_v16 = vpop.f32.mrf.mxu0 }
0x2e05   :  { %v11542_v4 = vpop.f32.mrf.mxu0 }
0x2e24   :  { %v7999_v36 = vpop.f32.mrf.mxu0 }
0x2e25   :  { %v8059_v9 = vsel %vm12760_vm2, %v7999_v36, -1e+30 }
0x2e26   :  { %v8063_v33 = vsel %vm566_vm3, %v8059_v9, -inf  ;;  %v11553_v46 = vpop.f32.mrf.mxu0 }
0x2e27   :  { %8064 = vmax.xlane.f32.xlu0 %v8063_v33 }
0x2e28   :  { %v8002_v50 = vpop.f32.mrf.mxu0 }
0x2e29   :  { %v8060_v34 = vsel %vm12768_vm4, %v8002_v50, -1e+30  ;;  %v12080_v50 = vld [vmem:[%s14286_s4 + $0xc0] sm:$0xff]  }
0x2e2a   :  { %v8066_v0 = vsel %vm566_vm3, %v8060_v34, -inf  ;;  %v11554_v62 = vpop.f32.mrf.mxu0 }
0x2e2b   :  { %8067 = vmax.xlane.f32.xlu1 %v8066_v0 }
0x2e34   :  { %v13990_v35 = vpop.f32.mrf.mxu1 }
0x2e36   :  { %v11547_v8 = vpop.f32.mrf.mxu1 }
0x2e38   :  { %v13992_v54 = vpop.f32.mrf.mxu1 }
0x2e3a   :  { %v11548_v53 = vpop.f32.mrf.mxu1 }
0x2e3c   :  { %8150 = vrot.lane.b32.xlu1 %v13933_v17, %s12583_s8  ;;  %v8052_v24 = vpop.f32.mrf.mxu1 }
0x2e3d   :  { %v8061_v39 = vsel %vm12760_vm2, %v8052_v24, -1e+30 }
0x2e3e   :  { %v8069_v63 = vsel %vm566_vm3, %v8061_v39, -inf  ;;  %v11559_v22 = vpop.f32.mrf.mxu1 }
0x2e3f   :  { %8070 = vmax.xlane.f32.xlu0 %v8069_v63 }
0x2e40   :  { %v8055_v57 = vpop.f32.mrf.mxu1 }
0x2e41   :  { %v8062_v51 = vsel %vm12768_vm4, %v8055_v57, -1e+30 }
0x2e42   :  { %v8072_v20 = vsel %vm566_vm3, %v8062_v51, -inf  ;;  %v11560_v6 = vpop.f32.mrf.mxu1 }
0x2e43   :  { %8073 = vmax.xlane.f32.xlu0 %v8072_v20 }
0x2e59   :  { %8102 = vrot.lane.b32.xlu0 %v13920_v15, %s12583_s8 }
0x2e60   :  { %7845 = vadd.xlane.f32.xlu1 %v7844_v19 }
0x2e64   :  { %7851 = vadd.xlane.f32.xlu1 %v7850_v45 }
0x2e78   :  { %7842 = vadd.xlane.f32.xlu0 %v7841_v1 }
0x2e7c   :  { %7848 = vadd.xlane.f32.xlu0 %v7847_v7 }
0x2eb0   :  { %v8065_v10 = vpop.xlane.xlu0 %8064 }
0x2eb1   :  { %v8075_v30 = vsub.f32 %v8059_v9, %v8065_v10 }
0x2eb3   :  { %v8079_v41 = vmul.f32 1.442695, %v8075_v30 }
0x2eb4   :  { %v8068_v31 = vpop.xlane.xlu1 %8067 }
0x2eb5   :  { %12431 = vpow2.f32 %v8079_v41  ;;  %v8076_v23 = vsub.f32 %v8060_v34, %v8068_v31 }
0x2eb7   :  { %v8081_v44 = vmul.f32 1.442695, %v8076_v23 }
0x2eb8   :  { %v8151_v47 = vpop.permute.xlu1 %8150 }
0x2eb9   :  { %12433 = vpow2.f32 %v8081_v44  ;;  %11568 = vmatpush3.bf16.msra.mxu1 %v8151_v47 }
0x2eba   :  { %11581 = vmatprep.subr.bf16.mxu1 %v12079_v52 }
0x2ec2   :  { %v12432_v13 = vpop.eup %12431 }
0x2ec3   :  { %v8087_v12 = vsel %vm566_vm3, %v12432_v13, 0.0 }
0x2ec4   :  { %8088 = vadd.xlane.f32.xlu1 %v8087_v12 }
0x2ec6   :  { %v12434_v59 = vpop.eup %12433 }
0x2ec7   :  { %v8090_v18 = vsel %vm566_vm3, %v12434_v59, 0.0  ;;  %v8099_v4 = vpack.c.bf16 %v12434_v59, %v12432_v13 }
0x2ec8   :  { %v8071_v5 = vpop.xlane.xlu0 %8070  ;;  %8091 = vadd.xlane.f32.xlu0 %v8090_v18 }
0x2ec9   :  { %v8077_v32 = vsub.f32 %v8061_v39, %v8071_v5 }
0x2ecb   :  { %v8083_v21 = vmul.f32 1.442695, %v8077_v32 }
0x2ecc   :  { %v8074_v49 = vpop.xlane.xlu0 %8073 }
0x2ecd   :  { %12435 = vpow2.f32 %v8083_v21  ;;  %v8078_v56 = vsub.f32 %v8062_v51, %v8074_v49 }
0x2ecf   :  { %v8085_v38 = vmul.f32 1.442695, %v8078_v56 }
0x2ed0   :  { %v8103_v58 = vpop.permute.xlu0 %8102 }
0x2ed1   :  { %12437 = vpow2.f32 %v8085_v38  ;;  %11562 = vmatpush3.bf16.msra.mxu0 %v8103_v58 }
0x2ed4   :  { %11564 = vmatmul.mubr.msk.bf16.vlgmr.msra.gmra.mxu0 %vm566_vm3, %v8099_v4 }
0x2ed5   :  { %8394 = vrot.lane.b32.xlu1 %v13918_v26, %s12578_s22 }
0x2eda   :  { %v12436_v36 = vpop.eup %12435 }
0x2edb   :  { %v8093_v9 = vsel %vm566_vm3, %v12436_v36, 0.0 }
0x2edc   :  { %8094 = vadd.xlane.f32.xlu0 %v8093_v9 }
0x2ede   :  { %v12438_v33 = vpop.eup %12437 }
0x2edf   :  { %v8100_v46 = vpack.c.bf16 %v12438_v33, %v12436_v36  ;;  %v8096_v34 = vsel %vm566_vm3, %v12438_v33, 0.0 }
0x2ee1   :  { %11570 = vmatmul.mubr.msk.bf16.vlgmr.msra.gmra.mxu1 %vm566_vm3, %v8100_v46 }
0x2ee2   :  { %11582 = vmatpush3.bf16.msra.mxu1 %v12079_v52 }
0x2ee3   :  { %11583 = vmatprep.subr.bf16.mxu1 %v12080_v50 }
0x2ee6   :  { %11584 = vmatpush3.bf16.msra.mxu1 %v12080_v50 }
0x2ee7   :  { %11595 = vmatprep.subr.bf16.mxu1 %v12581_v14 }
0x2ee9   :  { %v7846_v0 = vpop.xlane.xlu1 %7845 }
0x2eea   :  { %12439 = vrcp.f32 %v7846_v0 }
0x2eed   :  { %v7852_v62 = vpop.xlane.xlu1 %7851 }
0x2ef2   :  { %8343 = vrot.lane.b32.xlu0 %v13911_v2, %s12578_s22 }
0x2ef7   :  { %v12440_v24 = vpop.eup %12439 }
0x2ef8   :  { %v7948_v22 = vmul.f32 %v12440_v24, %v13982_v16  ;;  %v12082_v16 = vld [vmem:[%s14286_s4 + $0xd0] sm:$0xff]  }
0x2ef9   :  { %8097 = vadd.xlane.f32.xlu1 %v8096_v34 }
0x2f01   :  { %v7843_v8 = vpop.xlane.xlu0 %7842 }
0x2f02   :  { %12441 = vrcp.f32 %v7843_v8 }
0x2f03   :  { %12443 = vrcp.f32 %v7852_v62 }
0x2f05   :  { %v7849_v53 = vpop.xlane.xlu0 %7848 }
0x2f06   :  { %12445 = vrcp.f32 %v7849_v53 }
0x2f0a   :  { %8341 = vrot.lane.b32.xlu1 %v13916_v60, %s12578_s22 }
0x2f0e   :  { %8392 = vrot.lane.b32.xlu1 %v13931_v55, %s12578_s22 }
0x2f0f   :  { %v12442_v39 = vpop.eup %12441 }
0x2f10   :  { %v7947_v63 = vmul.f32 %v12442_v39, %v13980_v11  ;;  %v12444_v57 = vpop.eup %12443  ;;  %v12081_v11 = vld [vmem:[%s14286_s4 + $0xd8] sm:$0xff]  }
0x2f11   :  { %v7950_v6 = vmul.f32 %v12444_v57, %v13992_v54  ;;  %11573 = vmatprep.subr.bf16.mxu0 %v12081_v11 }
0x2f12   :  { %v7951_v51 = vpack.c.bf16 %v7948_v22, %v7947_v63  ;;  %11574 = vmatpush3.bf16.msra.mxu0 %v12081_v11 }
0x2f13   :  { %v12446_v20 = vpop.eup %12445  ;;  %11575 = vmatprep.subr.bf16.mxu0 %v12082_v16 }
0x2f14   :  { %v7949_v19 = vmul.f32 %v12446_v20, %v13990_v35  ;;  %11585 = vmatprep.mubr.msk.bf16.mxu1 %vm463_vm1, %v7951_v51 }
0x2f16   :  { %v7952_v45 = vpack.c.bf16 %v7950_v6, %v7949_v19  ;;  %11576 = vmatpush3.bf16.msra.mxu0 %v12082_v16 }
0x2f17   :  { %11589 = vmatprep.subr.bf16.mxu0 %v12581_v14 }
0x2f18   :  { %11586 = vmatmul.mubr.msk.bf16.vlgmr.msra.gmra.mxu1 %vm463_vm1, %v7952_v45 }
0x2f19   :  { %11597 = vmatprep.mubr.msk.bf16.mxu1 %vm12582_vm0, %v12581_v14 }
0x2f4d   :  { %v8089_v35 = vpop.xlane.xlu1 %8088 }
0x2f4e   :  { %12447 = vrcp.f32 %v8089_v35 }
0x2f51   :  { %v8395_v54 = vpop.permute.xlu1 %8394  ;;  %v8092_v30 = vpop.xlane.xlu0 %8091 }
0x2f52   :  { %v8400_v1 = vsel %vm463_vm1, %v8395_v54, 0  ;;  %12449 = vrcp.f32 %v8092_v30 }
0x2f53   :  { %11596 = vmatpush3.bf16.xpose.msra.mxu1 %v8400_v1 }
0x2f54   :  { %11607 = vmatprep.subr.bf16.mxu1 %v12581_v14 }
0x2f5b   :  { %v12448_v44 = vpop.eup %12447 }
0x2f5f   :  { %v12450_v47 = vpop.eup %12449 }
0x2f65   :  { %v8095_v31 = vpop.xlane.xlu0 %8094 }
0x2f66   :  { %12451 = vrcp.f32 %v8095_v31 }
0x2f69   :  { %v8344_v36 = vpop.permute.xlu0 %8343 }
0x2f6a   :  { %v8349_v46 = vsel %vm463_vm1, %v8344_v36, 0 }
0x2f73   :  { %v12452_v49 = vpop.eup %12451 }
0x2f82   :  { %v8098_v7 = vpop.xlane.xlu1 %8097 }
0x2f83   :  { %12453 = vrcp.f32 %v8098_v7 }
0x2f86   :  { %v8342_v10 = vpop.permute.xlu1 %8341 }
0x2f8a   :  { %v8393_v41 = vpop.permute.xlu1 %8392 }
0x2f8b   :  { %11598 = vmatmul.mubr.msk.bf16.vlgmr.msra.gmra.mxu1 %vm463_vm1, %v8393_v41 }
0x2f8c   :  { %11609 = vmatprep.mubr.msk.bf16.mxu1 %vm12582_vm0, %v12581_v14 }
0x2f90   :  { %v12454_v56 = vpop.eup %12453 }
0x2f94   :  { %v8142_v23 = vpop.f32.mrf.mxu0 }
0x2f95   :  { %v8201_v12 = vmul.f32 %v12448_v44, %v8142_v23 }
0x2f96   :  { %v11565_v52 = vpop.f32.mrf.mxu0 }
0x2f98   :  { %v8145_v13 = vpop.f32.mrf.mxu0 }
0x2f99   :  { %v8202_v59 = vmul.f32 %v12450_v47, %v8145_v13 }
0x2f9a   :  { %v11566_v18 = vpop.f32.mrf.mxu0 }
0x2f9b   :  { %v8205_v5 = vpack.c.bf16 %v8202_v59, %v8201_v12 }
0x2f9d   :  { %11577 = vmatprep.mubr.msk.bf16.mxu0 %vm463_vm1, %v8205_v5 }
0x2fa1   :  { %v8190_v32 = vpop.f32.mrf.mxu1 }
0x2fa2   :  { %v8203_v58 = vmul.f32 %v12452_v49, %v8190_v32 }
0x2fa3   :  { %v11571_v21 = vpop.f32.mrf.mxu1 }
0x2fa5   :  { %v8193_v38 = vpop.f32.mrf.mxu1 }
0x2fa6   :  { %v8204_v4 = vmul.f32 %v12454_v56, %v8193_v38 }
0x2fa7   :  { %v11572_v9 = vpop.f32.mrf.mxu1 }
0x2fa8   :  { %v8206_v33 = vpack.c.bf16 %v8204_v4, %v8203_v58 }
0x2faa   :  { %11578 = vmatmul.mubr.msk.bf16.vlgmr.msra.gmra.mxu0 %vm463_vm1, %v8206_v33 }
0x2fab   :  { %11590 = vmatpush3.bf16.xpose.msra.mxu0 %v8349_v46  ;;  %11591 = vmatprep.mubr.msk.bf16.mxu0 %vm12582_vm0, %v12581_v14 }
0x2fac   :  { %11601 = vmatprep.subr.bf16.mxu0 %v12581_v14 }
0x2fb2   :  { %11592 = vmatmul.mubr.msk.bf16.vlgmr.msra.gmra.mxu0 %vm463_vm1, %v8342_v10 }
0x2fb3   :  { %11603 = vmatprep.mubr.msk.bf16.mxu0 %vm12582_vm0, %v12581_v14 }
0x2fd8   :  { %v14059_v50 = vpop.f32.mrf.mxu1 }
0x2fda   :  { %v14061_v34 = vpop.f32.mrf.mxu1 }
0x2fdc   :  { %v14063_v0 = vpop.f32.mrf.mxu1 }
0x2fde   :  { %v8329_v62 = vpop.f32.mrf.mxu1 }
0x304b   :  { %v8436_v8 = vpop.f32.mrf.mxu1 }
0x304c   :  { %v8445_v53 = vsel %vm12760_vm2, %v8436_v8, -1e+30 }
0x304d   :  { %v8453_v24 = vsel %vm566_vm3, %v8445_v53, -inf  ;;  %v11599_v39 = vpop.f32.mrf.mxu1 }
0x304e   :  { %8454 = vmax.xlane.f32.xlu0 %v8453_v24  ;;  %v12083_v24 = vld [vmem:[%s14286_s4 + $0xe8] sm:$0xff]   ;;  %v12084_v39 = vld [vmem:[%s14286_s4 + $0xe0] sm:$0xff]  }
0x304f   :  { %v8439_v63 = vpop.f32.mrf.mxu1 }
0x3050   :  { %v8446_v22 = vsel %vm12768_vm4, %v8439_v63, -1e+30 }
0x3051   :  { %v8456_v57 = vsel %vm566_vm3, %v8446_v22, -inf  ;;  %v11600_v51 = vpop.f32.mrf.mxu1 }
0x3052   :  { %8457 = vmax.xlane.f32.xlu0 %v8456_v57 }
0x306a   :  { %v14071_v20 = vpop.f32.mrf.mxu0 }
0x306c   :  { %v14073_v6 = vpop.f32.mrf.mxu0 }
0x306e   :  { %v14075_v19 = vpop.f32.mrf.mxu0 }
0x3070   :  { %v8262_v45 = vpop.f32.mrf.mxu0 }
0x3071   :  { %v14077_v11 = vadd.f32 %v8329_v62, %v8262_v45 }
0x3072   :  { %v8385_v16 = vpop.f32.mrf.mxu0 }
0x3073   :  { %v8443_v35 = vsel %vm12760_vm2, %v8385_v16, -1e+30 }
0x3074   :  { %v8447_v54 = vsel %vm566_vm3, %v8443_v35, -inf  ;;  %v11593_v1 = vpop.f32.mrf.mxu0 }
0x3075   :  { %8448 = vmax.xlane.f32.xlu0 %v8447_v54 }
0x3076   :  { %v8388_v7 = vpop.f32.mrf.mxu0 }
0x3077   :  { %v8444_v10 = vsel %vm12768_vm4, %v8388_v7, -1e+30 }
0x3078   :  { %v8450_v30 = vsel %vm566_vm3, %v8444_v10, -inf  ;;  %v11594_v41 = vpop.f32.mrf.mxu0 }
0x3079   :  { %8451 = vmax.xlane.f32.xlu1 %v8450_v30 }
0x308a   :  { %8532 = vrot.lane.b32.xlu1 %v13933_v17, %s12578_s22 }
0x308b   :  { %8485 = vrot.lane.b32.xlu0 %v13920_v15, %s12578_s22 }
0x30d7   :  { %v8455_v31 = vpop.xlane.xlu0 %8454 }
0x30d8   :  { %v8461_v23 = vsub.f32 %v8445_v53, %v8455_v31 }
0x30da   :  { %v8467_v52 = vmul.f32 1.442695, %v8461_v23 }
0x30db   :  { %v8458_v44 = vpop.xlane.xlu0 %8457 }
0x30dc   :  { %12455 = vpow2.f32 %v8467_v52  ;;  %v8462_v47 = vsub.f32 %v8446_v22, %v8458_v44 }
0x30de   :  { %v8469_v13 = vmul.f32 1.442695, %v8462_v47 }
0x30e0   :  { %12457 = vpow2.f32 %v8469_v13 }
0x30e9   :  { %v12456_v12 = vpop.eup %12455 }
0x30ea   :  { %v8477_v59 = vsel %vm566_vm3, %v12456_v12, 0.0 }
0x30eb   :  { %8478 = vadd.xlane.f32.xlu0 %v8477_v59 }
0x30ed   :  { %v12458_v18 = vpop.eup %12457 }
0x30ee   :  { %v8480_v5 = vsel %vm566_vm3, %v12458_v18, 0.0  ;;  %v8484_v9 = vpack.c.bf16 %v12458_v18, %v12456_v12 }
0x30ef   :  { %8481 = vadd.xlane.f32.xlu1 %v8480_v5 }
0x30fe   :  { %v8449_v32 = vpop.xlane.xlu0 %8448 }
0x30ff   :  { %v8459_v21 = vsub.f32 %v8443_v35, %v8449_v32 }
0x3101   :  { %v8463_v49 = vmul.f32 1.442695, %v8459_v21 }
0x3102   :  { %v8452_v56 = vpop.xlane.xlu1 %8451  ;;  %v8486_v38 = vpop.permute.xlu0 %8485 }
0x3103   :  { %12459 = vpow2.f32 %v8463_v49  ;;  %v8460_v58 = vsub.f32 %v8444_v10, %v8452_v56  ;;  %11602 = vmatpush3.bf16.msra.mxu0 %v8486_v38 }
0x3104   :  { %11613 = vmatprep.subr.bf16.mxu0 %v12083_v24 }
0x3105   :  { %v8465_v4 = vmul.f32 1.442695, %v8460_v58 }
0x3106   :  { %v8533_v36 = vpop.permute.xlu1 %8532 }
0x3107   :  { %12461 = vpow2.f32 %v8465_v4  ;;  %11608 = vmatpush3.bf16.msra.mxu1 %v8533_v36 }
0x3108   :  { %11621 = vmatprep.subr.bf16.mxu1 %v12581_v14 }
0x310a   :  { %11610 = vmatmul.mubr.msk.bf16.vlgmr.msra.gmra.mxu1 %vm566_vm3, %v8484_v9 }
0x310b   :  { %11623 = vmatprep.mubr.msk.bf16.mxu1 %vm12582_vm0, %v12581_v14 }
0x3110   :  { %v12460_v33 = vpop.eup %12459 }
0x3111   :  { %v8471_v46 = vsel %vm566_vm3, %v12460_v33, 0.0 }
0x3112   :  { %8472 = vadd.xlane.f32.xlu1 %v8471_v46  ;;  %v8327_v46 = vadd.f32 %v14061_v34, %v14073_v6 }
0x3114   :  { %v12462_v62 = vpop.eup %12461 }
0x3115   :  { %v8483_v8 = vpack.c.bf16 %v12462_v62, %v12460_v33  ;;  %v8474_v53 = vsel %vm566_vm3, %v12462_v62, 0.0 }
0x3116   :  { %8475 = vadd.xlane.f32.xlu0 %v8474_v53  ;;  %v8338_v53 = vadd.f32 %v14063_v0, %v14075_v19 }
0x3117   :  { %11604 = vmatmul.mubr.msk.bf16.vlgmr.msra.gmra.mxu0 %vm566_vm3, %v8483_v8 }
0x3118   :  { %11614 = vmatpush3.bf16.msra.mxu0 %v12083_v24 }
0x3119   :  { %11615 = vmatprep.subr.bf16.mxu0 %v12084_v39 }
0x311c   :  { %11616 = vmatpush3.bf16.msra.mxu0 %v12084_v39 }
0x311d   :  { %11627 = vmatprep.subr.bf16.mxu0 %v12581_v14 }
0x3123   :  { %8713 = vrot.lane.b32.xlu1 %v13918_v26, %s12584_s0 }
0x3127   :  { %8660 = vrot.lane.b32.xlu1 %v13916_v60, %s12584_s0 }
0x312b   :  { %8711 = vrot.lane.b32.xlu1 %v13931_v55, %s12584_s0 }
0x312c   :  { %8662 = vrot.lane.b32.xlu0 %v13911_v2, %s12584_s0 }
0x3174   :  { %v8479_v60 = vpop.xlane.xlu0 %8478 }
0x3178   :  { %v8482_v26 = vpop.xlane.xlu1 %8481 }
0x3179   :  { %12463 = vrcp.f32 %v8482_v26 }
0x3186   :  { %v12464_v7 = vpop.eup %12463 }
0x319b   :  { %v8473_v55 = vpop.xlane.xlu1 %8472 }
0x319c   :  { %12465 = vrcp.f32 %v8473_v55 }
0x319f   :  { %v8476_v63 = vpop.xlane.xlu0 %8475  ;;  %v8714_v57 = vpop.permute.xlu1 %8713 }
0x31a0   :  { %12467 = vrcp.f32 %v8476_v63  ;;  %v8719_v5 = vsel %vm463_vm1, %v8714_v57, 0 }
0x31a1   :  { %12469 = vrcp.f32 %v8479_v60 }
0x31a3   :  { %v8663_v22 = vpop.permute.xlu0 %8662  ;;  %v8661_v51 = vpop.permute.xlu1 %8660 }
0x31a4   :  { %v8668_v2 = vsel %vm463_vm1, %v8663_v22, 0 }
0x31a5   :  { %11622 = vmatpush3.bf16.xpose.msra.mxu1 %v8668_v2 }
0x31a6   :  { %11633 = vmatprep.subr.bf16.mxu1 %v12581_v14 }
0x31a7   :  { %v8712_v32 = vpop.permute.xlu1 %8711 }
0x31a9   :  { %v12466_v30 = vpop.eup %12465 }
0x31ac   :  { %11624 = vmatmul.mubr.msk.bf16.vlgmr.msra.gmra.mxu1 %vm463_vm1, %v8661_v51 }
0x31ad   :  { %11635 = vmatprep.mubr.msk.bf16.mxu1 %vm12582_vm0, %v12581_v14  ;;  %v12468_v41 = vpop.eup %12467 }
0x31ae   :  { %v12470_v52 = vpop.eup %12469 }
0x31ca   :  { %v8572_v45 = vpop.f32.mrf.mxu1 }
0x31cb   :  { %v8585_v13 = vmul.f32 %v12470_v52, %v8572_v45 }
0x31cc   :  { %v11611_v16 = vpop.f32.mrf.mxu1 }
0x31ce   :  { %v8575_v35 = vpop.f32.mrf.mxu1 }
0x31cf   :  { %v8586_v31 = vmul.f32 %v12464_v7, %v8575_v35 }
0x31d0   :  { %v11612_v54 = vpop.f32.mrf.mxu1 }
0x31d1   :  { %v8588_v18 = vpack.c.bf16 %v8586_v31, %v8585_v13 }
0x31d7   :  { %v8525_v1 = vpop.f32.mrf.mxu0 }
0x31d8   :  { %v8583_v44 = vmul.f32 %v12466_v30, %v8525_v1 }
0x31d9   :  { %v11605_v10 = vpop.f32.mrf.mxu0 }
0x31db   :  { %v8528_v23 = vpop.f32.mrf.mxu0 }
0x31dc   :  { %v8584_v47 = vmul.f32 %v12468_v41, %v8528_v23 }
0x31dd   :  { %v11606_v12 = vpop.f32.mrf.mxu0 }
0x31de   :  { %v8587_v59 = vpack.c.bf16 %v8584_v47, %v8583_v44 }
0x31e0   :  { %11617 = vmatprep.mubr.msk.bf16.mxu0 %vm463_vm1, %v8587_v59  ;;  %v12085_v59 = vld [vmem:[%s14286_s4 + $0xf8] sm:$0xff]  }
0x31e1   :  { %11618 = vmatmul.mubr.msk.bf16.vlgmr.msra.gmra.mxu0 %vm463_vm1, %v8588_v18  ;;  %v12086_v18 = vld [vmem:[%s14286_s4 + $0xf0] sm:$0xff]  }
0x31e2   :  { %11628 = vmatpush3.bf16.xpose.msra.mxu0 %v8719_v5  ;;  %11629 = vmatprep.mubr.msk.bf16.mxu0 %vm12582_vm0, %v12581_v14 }
0x31e3   :  { %11639 = vmatprep.subr.bf16.mxu0 %v12581_v14 }
0x31e9   :  { %11630 = vmatmul.mubr.msk.bf16.vlgmr.msra.gmra.mxu0 %vm463_vm1, %v8712_v32 }
0x31ea   :  { %11641 = vmatprep.mubr.msk.bf16.mxu0 %vm12582_vm0, %v12581_v14  ;;  %v8335_v14 = vadd.f32 %v14059_v50, %v14071_v20 }
0x326c   :  { %v8704_v21 = vpop.f32.mrf.mxu1 }
0x326d   :  { %v8762_v49 = vsel %vm12760_vm2, %v8704_v21, -1e+30 }
0x326e   :  { %v8766_v56 = vsel %vm566_vm3, %v8762_v49, -inf  ;;  %v11625_v38 = vpop.f32.mrf.mxu1 }
0x326f   :  { %8767 = vmax.xlane.f32.xlu0 %v8766_v56 }
0x3270   :  { %v8707_v58 = vpop.f32.mrf.mxu1 }
0x3271   :  { %v8763_v4 = vsel %vm12768_vm4, %v8707_v58, -1e+30 }
0x3272   :  { %v8769_v36 = vsel %vm566_vm3, %v8763_v4, -inf  ;;  %v11626_v9 = vpop.f32.mrf.mxu1 }
0x3273   :  { %8770 = vmax.xlane.f32.xlu1 %v8769_v36 }
0x3284   :  { %8851 = vrot.lane.b32.xlu1 %v13933_v17, %s12584_s0 }
0x32a1   :  { %v11619_v33 = vpop.f32.mrf.mxu0 }
0x32a2   :  { %v14139_v62 = vadd.f32 %v11619_v33, %v8335_v14 }
0x32a3   :  { %v8641_v8 = vpop.f32.mrf.mxu0 }
0x32a4   :  { %v14143_v24 = vadd.f32 %v8641_v8, %v8327_v46 }
0x32a5   :  { %v11620_v39 = vpop.f32.mrf.mxu0 }
0x32a6   :  { %v14145_v60 = vadd.f32 %v11620_v39, %v8338_v53 }
0x32a7   :  { %v8644_v26 = vpop.f32.mrf.mxu0 }
0x32a8   :  { %v14148_v17 = vadd.f32 %v8644_v26, %v14077_v11 }
0x32a9   :  { %v8755_v50 = vpop.f32.mrf.mxu0 }
0x32aa   :  { %v8764_v20 = vsel %vm12760_vm2, %v8755_v50, -1e+30 }
0x32ab   :  { %v8772_v34 = vsel %vm566_vm3, %v8764_v20, -inf  ;;  %v11631_v6 = vpop.f32.mrf.mxu0 }
0x32ac   :  { %8773 = vmax.xlane.f32.xlu0 %v8772_v34 }
0x32ad   :  { %v8758_v55 = vpop.f32.mrf.mxu0 }
0x32ae   :  { %v8765_v0 = vsel %vm12768_vm4, %v8758_v55, -1e+30 }
0x32af   :  { %v8775_v19 = vsel %vm566_vm3, %v8765_v0, -inf  ;;  %v11632_v63 = vpop.f32.mrf.mxu0 }
0x32b0   :  { %8776 = vmax.xlane.f32.xlu0 %v8775_v19 }
0x32c6   :  { %8804 = vrot.lane.b32.xlu0 %v13920_v15, %s12584_s0 }
0x32f8   :  { %v8768_v11 = vpop.xlane.xlu0 %8767 }
0x32f9   :  { %v8778_v22 = vsub.f32 %v8762_v49, %v8768_v11 }
0x32fb   :  { %v8782_v2 = vmul.f32 1.442695, %v8778_v22 }
0x32fc   :  { %v8771_v42 = vpop.xlane.xlu1 %8770 }
0x32fd   :  { %12471 = vpow2.f32 %v8782_v2  ;;  %v8779_v57 = vsub.f32 %v8763_v4, %v8771_v42 }
0x32ff   :  { %v8784_v51 = vmul.f32 1.442695, %v8779_v57  ;;  %v10493_v57 = vld [vmem:[%s14287_s5 + $0x3] ss:$0 sm:$0xff] }
0x3300   :  { %v8852_v45 = vpop.permute.xlu1 %8851 }
0x3301   :  { %12473 = vpow2.f32 %v8784_v51  ;;  %11640 = vmatpush3.bf16.msra.mxu0 %v8852_v45 }
0x330a   :  { %v12472_v16 = vpop.eup %12471 }
0x330b   :  { %v8790_v48 = vsel %vm566_vm3, %v12472_v16, 0.0 }
0x330c   :  { %8791 = vadd.xlane.f32.xlu1 %v8790_v48 }
0x330e   :  { %v12474_v35 = vpop.eup %12473 }
0x330f   :  { %v8793_v54 = vsel %vm566_vm3, %v12474_v35, 0.0  ;;  %v8802_v23 = vpack.c.bf16 %v12474_v35, %v12472_v16 }
0x3310   :  { %8794 = vadd.xlane.f32.xlu0 %v8793_v54  ;;  %v12090_v54 = vld [vmem:[#allocation4 + $0x3e8] ss:$16 sps:$4 sm:$0xff]  }
0x3335   :  { %v8774_v1 = vpop.xlane.xlu0 %8773 }
0x3336   :  { %v8780_v15 = vsub.f32 %v8764_v20, %v8774_v1 }
0x3338   :  { %v8786_v7 = vmul.f32 1.442695, %v8780_v15 }
0x3339   :  { %v8777_v10 = vpop.xlane.xlu0 %8776 }
0x333a   :  { %12475 = vpow2.f32 %v8786_v7  ;;  %v8781_v30 = vsub.f32 %v8765_v0, %v8777_v10 }
0x333c   :  { %v8788_v41 = vmul.f32 1.442695, %v8781_v30 }
0x333d   :  { %v8805_v31 = vpop.permute.xlu0 %8804 }
0x333e   :  { %12477 = vpow2.f32 %v8788_v41  ;;  %11634 = vmatpush3.bf16.msra.mxu1 %v8805_v31 }
0x333f   :  { %11645 = vmatprep.subr.bf16.mxu1 %v12085_v59 }
0x3341   :  { %11636 = vmatmul.mubr.msk.bf16.vlgmr.msra.gmra.mxu1 %vm566_vm3, %v8802_v23 }
0x3342   :  { %11646 = vmatpush3.bf16.msra.mxu1 %v12085_v59 }
0x3343   :  { %11647 = vmatprep.subr.bf16.mxu1 %v12086_v18 }
0x3346   :  { %11648 = vmatpush3.bf16.msra.mxu1 %v12086_v18 }
0x3347   :  { %v12476_v52 = vpop.eup %12475 }
0x3348   :  { %v8796_v44 = vsel %vm566_vm3, %v12476_v52, 0.0 }
0x3349   :  { %8797 = vadd.xlane.f32.xlu0 %v8796_v44 }
0x334b   :  { %v12478_v47 = vpop.eup %12477 }
0x334c   :  { %v8803_v13 = vpack.c.bf16 %v12478_v47, %v12476_v52  ;;  %v8799_v12 = vsel %vm566_vm3, %v12478_v47, 0.0 }
0x334d   :  { %8800 = vadd.xlane.f32.xlu1 %v8799_v12 }
0x334e   :  { %11642 = vmatmul.mubr.msk.bf16.vlgmr.msra.gmra.mxu0 %vm566_vm3, %v8803_v13 }
0x334f   :  { %9313 = vmatprep.mubr.bf16.mxu0 %v12580_v40 }
0x3395   :  { %v8792_v5 = vpop.xlane.xlu1 %8791 }
0x3396   :  { %12479 = vrcp.f32 %v8792_v5  ;;  %v12095_v5 = vld [vmem:[#allocation4 + $0x3c4] ss:$16 sps:$4 sm:$0xff]  }
0x3399   :  { %v8795_v32 = vpop.xlane.xlu0 %8794 }
0x339a   :  { %12481 = vrcp.f32 %v8795_v32  ;;  %v12098_v32 = vld [vmem:[#allocation4 + $0x3cc] ss:$16 sps:$4 sm:$0xff]  }
0x33a3   :  { %v12480_v58 = vpop.eup %12479 }
0x33a7   :  { %v12482_v4 = vpop.eup %12481 }
0x33d2   :  { %v8798_v21 = vpop.xlane.xlu0 %8797 }
0x33d3   :  { %12483 = vrcp.f32 %v8798_v21  ;;  %v12093_v21 = vld [vmem:[#allocation4 + $0x3c0] ss:$16 sps:$4 sm:$0xff]  }
0x33d6   :  { %v8801_v56 = vpop.xlane.xlu1 %8800 }
0x33d7   :  { %12485 = vrcp.f32 %v8801_v56  ;;  %v12101_v56 = vld [vmem:[#allocation4 + $0x3a4] ss:$16 sps:$4 sm:$0xff]  }
0x33e0   :  { %v12484_v39 = vpop.eup %12483 }
0x33e4   :  { %v12486_v26 = vpop.eup %12485 }
0x3401   :  { %v8844_v49 = vpop.f32.mrf.mxu1 }
0x3402   :  { %v8902_v9 = vmul.f32 %v12480_v58, %v8844_v49  ;;  %v12096_v49 = vld [vmem:[#allocation4 + $0x3c8] ss:$16 sps:$4 sm:$0xff]   ;;  %v12099_v58 = vld [vmem:[#allocation4 + $0x3a0] ss:$16 sps:$4 sm:$0xff]  }
0x3403   :  { %v11637_v38 = vpop.f32.mrf.mxu1 }
0x3404   :  { %v12104_v38 = vld [vmem:[#allocation4 + $0x3ac] ss:$16 sps:$4 sm:$0xff]  }
0x3405   :  { %v8847_v36 = vpop.f32.mrf.mxu1 }
0x3406   :  { %v8903_v14 = vmul.f32 %v12482_v4, %v8847_v36  ;;  %v12102_v4 = vld [vmem:[#allocation4 + $0x3a8] ss:$16 sps:$4 sm:$0xff]   ;;  %v12107_v36 = vld [vmem:[#allocation4 + $0x384] ss:$16 sps:$4 sm:$0xff]  }
0x3407   :  { %v11638_v33 = vpop.f32.mrf.mxu1 }
0x3408   :  { %v8906_v46 = vpack.c.bf16 %v8903_v14, %v8902_v9  ;;  %v12110_v9 = vld [vmem:[#allocation4 + $0x38c] ss:$16 sps:$4 sm:$0xff]   ;;  %v12105_v14 = vld [vmem:[#allocation4 + $0x380] ss:$16 sps:$4 sm:$0xff]   ;;  %v12108_v33 = vld [vmem:[#allocation4 + $0x388] ss:$16 sps:$4 sm:$0xff]  }
0x340a   :  { %11649 = vmatprep.mubr.msk.bf16.mxu1 %vm463_vm1, %v8906_v46  ;;  %v12113_v46 = vld [vmem:[#allocation4 + $0x364] ss:$16 sps:$4 sm:$0xff]  }
0x340e   :  { %v8891_v8 = vpop.f32.mrf.mxu0 }
0x340f   :  { %v8904_v20 = vmul.f32 %v12484_v39, %v8891_v8  ;;  %v12116_v8 = vld [vmem:[#allocation4 + $0x36c] ss:$16 sps:$4 sm:$0xff]   ;;  %v12114_v39 = vld [vmem:[#allocation4 + $0x368] ss:$16 sps:$4 sm:$0xff]  }
0x3410   :  { %v11643_v53 = vpop.f32.mrf.mxu0 }
0x3411   :  { %v12111_v53 = vld [vmem:[#allocation4 + $0x360] ss:$16 sps:$4 sm:$0xff]  }
0x3412   :  { %v8894_v50 = vpop.f32.mrf.mxu0 }
0x3413   :  { %v8905_v34 = vmul.f32 %v12486_v26, %v8894_v50  ;;  %v12119_v26 = vld [vmem:[#allocation4 + $0x344] ss:$16 sps:$4 sm:$0xff]   ;;  %v12122_v50 = vld [vmem:[#allocation4 + $0x34c] ss:$16 sps:$4 sm:$0xff]  }
0x3414   :  { %v11644_v6 = vpop.f32.mrf.mxu0 }
0x3415   :  { %v8907_v55 = vpack.c.bf16 %v8905_v34, %v8904_v20  ;;  %v12117_v20 = vld [vmem:[#allocation4 + $0x340] ss:$16 sps:$4 sm:$0xff]   ;;  %v12120_v34 = vld [vmem:[#allocation4 + $0x348] ss:$16 sps:$4 sm:$0xff]   ;;  %v12125_v6 = vld [vmem:[#allocation4 + $0x324] ss:$16 sps:$4 sm:$0xff]  }
0x3417   :  { %11650 = vmatmul.mubr.msk.bf16.vlgmr.msra.gmra.mxu1 %vm463_vm1, %v8907_v55  ;;  %v12128_v55 = vld [vmem:[#allocation4 + $0x32c] ss:$16 sps:$4 sm:$0xff]  }
0x3418   :  { %9366 = vmatprep.mubr.bf16.mxu1 %v12580_v40 }
0x34d7   :  { %v11651_v0 = vpop.f32.mrf.mxu1 }
0x34d8   :  { %v8977_v63 = vadd.f32 %v11651_v0, %v14139_v62  ;;  %v12123_v0 = vld [vmem:[#allocation4 + $0x320] ss:$16 sps:$4 sm:$0xff]  }
0x34d9   :  { %v8960_v19 = vpop.f32.mrf.mxu1 }
0x34da   :  { %v8975_v11 = vadd.f32 %v8960_v19, %v14143_v24  ;;  %v8981_v51 = vadd.f32 %v8977_v63, %v13867_v3  ;;  %v12126_v19 = vld [vmem:[#allocation4 + $0x328] ss:$16 sps:$4 sm:$0xff]   ;;  %v12131_v63 = vld [vmem:[#allocation4 + $0x304] ss:$16 sps:$4 sm:$0xff]  }
0x34db   :  { %v11652_v22 = vpop.f32.mrf.mxu1 }
0x34dc   :  { %v8979_v2 = vadd.f32 %v8975_v11, %v13859_v43  ;;  %v8978_v45 = vadd.f32 %v11652_v22, %v14145_v60  ;;  %v14190_v35 = vadd.f32 %v10493_v57, %v8981_v51  ;;  %v12087_v60 = vld [vmem:[#allocation4 + $0x3e0] ss:$16 sps:$4 sm:$0xff]   ;;  %v12134_v11 = vld [vmem:[#allocation4 + $0x30c] ss:$16 sps:$4 sm:$0xff]  }
0x34dd   :  { %v8963_v42 = vpop.f32.mrf.mxu1  ;;  %v12129_v22 = vld [vmem:[#allocation4 + $0x300] ss:$16 sps:$4 sm:$0xff]  }
0x34de   :  { %v8976_v16 = vadd.f32 %v8963_v42, %v14148_v17  ;;  %v14183_v48 = vadd.f32 %v10493_v57, %v8979_v2  ;;  %v8982_v24 = vadd.f32 %v8978_v45, %v13871_v37  ;;  %v12089_v17 = vld [vmem:[#allocation4 + $0x3e4] ss:$16 sps:$4 sm:$0xff]   ;;  %v12132_v2 = vld [vmem:[#allocation4 + $0x308] ss:$16 sps:$4 sm:$0xff]  }
0x34df   :  { %9281 = vmatprep.subr.bf16.mxu0 %v12089_v17  ;;  %v12135_v42 = vld [vmem:[#allocation6 + $0x378] sm:$0xff]  }
0x34e0   :  { %v8980_v62 = vadd.f32 %v8976_v16, %v13863_v61  ;;  %8999 = vadd.xlane.f32.xlu0 %v14183_v48  ;;  %v14194_v3 = vadd.f32 %v10493_v57, %v8982_v24  ;;  %v12092_v61 = vld [vmem:[#allocation4 + $0x3ec] ss:$16 sps:$4 sm:$0xff]   ;;  %9282 = vmatpush1.bf16.msra.mxu0 %v12087_v60 }
0x34e1   :  { %9334 = vmatprep.subr.bf16.mxu1 %v12092_v61  ;;  %9283 = vmatprep.subr.bf16.mxu0 %v12095_v5 }
0x34e2   :  { %v14188_v43 = vadd.f32 %v10493_v57, %v8980_v62  ;;  %9335 = vmatpush1.bf16.msra.mxu1 %v12090_v54  ;;  %v12136_v57 = vld [vmem:[#allocation6 + $0x3f8] sm:$0xff]  }
0x34e3   :  { %9336 = vmatprep.subr.bf16.mxu1 %v12098_v32 }
0x34e4   :  { %9001 = vadd.xlane.f32.xlu1 %v14188_v43  ;;  %9003 = vadd.xlane.f32.xlu0 %v14190_v35 }
0x34e5   :  { %9284 = vmatpush1.bf16.msra.mxu0 %v12093_v21 }
0x34e6   :  { %9337 = vmatpush1.bf16.msra.mxu1 %v12096_v49  ;;  %9285 = vmatprep.subr.bf16.mxu0 %v12101_v56 }
0x34e7   :  { %9338 = vmatprep.subr.bf16.mxu1 %v12104_v38 }
0x34e8   :  { %9005 = vadd.xlane.f32.xlu1 %v14194_v3 }
0x34e9   :  { %9286 = vmatpush1.bf16.msra.mxu0 %v12099_v58  ;;  %v12137_v58 = vld [vmem:[#allocation6 + $0x338] sm:$0xff]  }
0x34ea   :  { %9339 = vmatpush1.bf16.msra.mxu1 %v12102_v4  ;;  %9287 = vmatprep.subr.bf16.mxu0 %v12107_v36  ;;  %v12138_v4 = vld [vmem:[#allocation6 + $0x3b8] sm:$0xff]   ;;  %v12139_v36 = vld [vmem:[#allocation6 + $0x370] sm:$0xff]  }
0x34eb   :  { %9340 = vmatprep.subr.bf16.mxu1 %v12110_v9 }
0x34ed   :  { %9288 = vmatpush1.bf16.msra.mxu0 %v12105_v14 }
0x34ee   :  { %9341 = vmatpush1.bf16.msra.mxu1 %v12108_v33  ;;  %9289 = vmatprep.subr.bf16.mxu0 %v12113_v46  ;;  %v12141_v33 = vld [vmem:[#allocation6 + $0x330] sm:$0xff]   ;;  %v12144_v46 = vld [vmem:[#allocation6 + $0x3e8] sm:$0xff]  }
0x34ef   :  { %9342 = vmatprep.subr.bf16.mxu1 %v12116_v8 }
0x34f1   :  { %9290 = vmatpush1.bf16.msra.mxu0 %v12111_v53 }
0x34f2   :  { %9343 = vmatpush1.bf16.msra.mxu1 %v12114_v39  ;;  %9291 = vmatprep.subr.bf16.mxu0 %v12119_v26  ;;  %v12145_v39 = vld [vmem:[#allocation6 + $0x328] sm:$0xff]  }
0x34f3   :  { %9344 = vmatprep.subr.bf16.mxu1 %v12122_v50  ;;  %v12146_v26 = vld [vmem:[#allocation6 + $0x3a8] sm:$0xff]   ;;  %v12147_v50 = vld [vmem:[#allocation6 + $0x360] sm:$0xff]  }
0x34f5   :  { %9292 = vmatpush1.bf16.msra.mxu0 %v12117_v20  ;;  %v12148_v20 = vld [vmem:[#allocation6 + $0x3e0] sm:$0xff]  }
0x34f6   :  { %9345 = vmatpush1.bf16.msra.mxu1 %v12120_v34  ;;  %9293 = vmatprep.subr.bf16.mxu0 %v12125_v6  ;;  %v12150_v34 = vld [vmem:[#allocation6 + $0x3a0] sm:$0xff]   ;;  %v12151_v6 = vld [vmem:[#allocation6 + $0x358] sm:$0xff]  }
0x34f7   :  { %9346 = vmatprep.subr.bf16.mxu1 %v12128_v55  ;;  %v12152_v55 = vld [vmem:[#allocation6 + $0x3d8] sm:$0xff]  }
0x34f9   :  { %9294 = vmatpush1.bf16.msra.mxu0 %v12123_v0  ;;  %v12153_v0 = vld [vmem:[#allocation6 + $0x318] sm:$0xff]  }
0x34fa   :  { %9347 = vmatpush1.bf16.msra.mxu1 %v12126_v19  ;;  %9295 = vmatprep.subr.bf16.mxu0 %v12131_v63  ;;  %v12154_v19 = vld [vmem:[#allocation6 + $0x398] sm:$0xff]   ;;  %v12155_v63 = vld [vmem:[#allocation6 + $0x350] sm:$0xff]  }
0x34fb   :  { %9348 = vmatprep.subr.bf16.mxu1 %v12134_v11  ;;  %v12156_v11 = vld [vmem:[#allocation6 + $0x3d0] sm:$0xff]  }
0x34fd   :  { %9296 = vmatpush1.bf16.msra.mxu0 %v12129_v22  ;;  %v12157_v22 = vld [vmem:[#allocation6 + $0x310] sm:$0xff]  }
0x34fe   :  { %9349 = vmatpush1.bf16.msra.mxu1 %v12132_v2  ;;  %10995 = vmatprep.subr.bf16.mxu0 %v12135_v42  ;;  %v12158_v2 = vld [vmem:[#allocation6 + $0x390] sm:$0xff]   ;;  %v12159_v42 = vld [vmem:[#allocation6 + $0x348] sm:$0xff]  }
0x34ff   :  { %11023 = vmatprep.subr.bf16.mxu1 %v12136_v57  ;;  %v12160_v57 = vld [vmem:[#allocation6 + $0x3c8] sm:$0xff]  }
0x3569   :  { %v9000_v37 = vpop.xlane.xlu0 %8999 }
0x356a   :  { %v9007_v1 = vmul.f32 0.0078125, %v9000_v37 }
0x356c   :  { %v14198_v15 = vsub.f32 %v14183_v48, %v9007_v1 }
0x356d   :  { %v9002_v7 = vpop.xlane.xlu1 %9001  ;;  %v9004_v10 = vpop.xlane.xlu0 %9003 }
0x356e   :  { %v9008_v30 = vmul.f32 0.0078125, %v9002_v7  ;;  %v9009_v41 = vmul.f32 0.0078125, %v9004_v10  ;;  %v9015_v31 = vmul.f32 %v14198_v15, %v14198_v15 }
0x3570   :  { %v14203_v23 = vsub.f32 %v14188_v43, %v9008_v30  ;;  %v14206_v52 = vsub.f32 %v14190_v35, %v9009_v41  ;;  %9019 = vadd.xlane.f32.xlu0 %v9015_v31  ;;  %v10496_v41 = vld [vmem:[%s14288_s6 + $0x3] ss:$0 sm:$0xff] }
0x3571   :  { %v9006_v44 = vpop.xlane.xlu1 %9005 }
0x3572   :  { %v9010_v47 = vmul.f32 0.0078125, %v9006_v44  ;;  %v9016_v13 = vmul.f32 %v14203_v23, %v14203_v23  ;;  %v9017_v12 = vmul.f32 %v14206_v52, %v14206_v52 }
0x3574   :  { %v14213_v59 = vsub.f32 %v14194_v3, %v9010_v47  ;;  %9021 = vadd.xlane.f32.xlu1 %v9016_v13  ;;  %9023 = vadd.xlane.f32.xlu0 %v9017_v12  ;;  %v10497_v12 = vld [vmem:[%s14289_s7 + $0x3] ss:$0 sm:$0xff] }
0x3576   :  { %v9018_v18 = vmul.f32 %v14213_v59, %v14213_v59 }
0x3578   :  { %9025 = vadd.xlane.f32.xlu1 %v9018_v18 }
0x35f9   :  { %v9020_v51 = vpop.xlane.xlu0 %9019 }
0x35fa   :  { %v9027_v45 = vmul.f32 0.0078125, %v9020_v51  ;;  %v12161_v51 = vld [vmem:[#allocation6 + $0x308] sm:$0xff]  }
0x35fc   :  { %v9031_v16 = vadd.f32 1e-05, %v9027_v45  ;;  %v12162_v45 = vld [vmem:[#allocation6 + $0x388] sm:$0xff]  }
0x35fd   :  { %v9022_v62 = vpop.xlane.xlu1 %9021  ;;  %v9024_v24 = vpop.xlane.xlu0 %9023 }
0x35fe   :  { %12487 = vrsqrt.f32 %v9031_v16  ;;  %v9028_v60 = vmul.f32 0.0078125, %v9022_v62  ;;  %v9029_v17 = vmul.f32 0.0078125, %v9024_v24  ;;  %v12163_v16 = vld [vmem:[#allocation6 + $0x340] sm:$0xff]  }
0x35ff   :  { %v12164_v62 = vld [vmem:[#allocation6 + $0x3c0] sm:$0xff]  }
0x3600   :  { %v9032_v54 = vadd.f32 1e-05, %v9028_v60  ;;  %v9033_v61 = vadd.f32 1e-05, %v9029_v17  ;;  %v12165_v24 = vld [vmem:[#allocation6 + $0x300] sm:$0xff]  }
0x3601   :  { %v9026_v37 = vpop.xlane.xlu1 %9025  ;;  %v12166_v60 = vld [vmem:[#allocation6 + $0x380] sm:$0xff]   ;;  %v10498_v17 = vld [vmem:[%s14291_s9 + $0xc] sm:$0xf] }
0x3602   :  { %12489 = vrsqrt.f32 %v9032_v54  ;;  %v9030_v1 = vmul.f32 0.0078125, %v9026_v37  ;;  %v9108_v37 = vrot.slane %v10498_v17, %v13069_v25 }
0x3603   :  { %12491 = vrsqrt.f32 %v9033_v61 }
0x3604   :  { %v9034_v7 = vadd.f32 1e-05, %v9030_v1  ;;  %v9116_v1 = vrot.slane %v10498_v17, %v13072_v27 }
0x3606   :  { %12493 = vrsqrt.f32 %v9034_v7  ;;  %v9104_v7 = vrot.slane %v10498_v17, %v13075_v28 }
0x360b   :  { %v12488_v10 = vpop.eup %12487 }
0x360c   :  { %v9039_v30 = vmul.f32 %v12488_v10, %v14198_v15  ;;  %v9112_v10 = vrot.slane %v10498_v17, %v13078_v29 }
0x360e   :  { %v9049_v47 = vmul.f32 %v10496_v41, %v9039_v30 }
0x360f   :  { %v12490_v31 = vpop.eup %12489 }
0x3610   :  { %v9040_v44 = vmul.f32 %v12490_v31, %v14203_v23  ;;  %v12492_v13 = vpop.eup %12491  ;;  %v9059_v32 = vadd.f32 %v10497_v12, %v9049_v47  ;;  %v12140_v23 = vld [vmem:[#allocation6 + $0x3f0] sm:$0xff]  }
0x3611   :  { %v9041_v49 = vmul.f32 %v12492_v13, %v14206_v52  ;;  %v12142_v52 = vld [vmem:[#allocation6 + $0x3b0] sm:$0xff]  }
0x3612   :  { %v9050_v18 = vmul.f32 %v10496_v41, %v9040_v44 }
0x3613   :  { %v12494_v5 = vpop.eup %12493  ;;  %v9051_v9 = vmul.f32 %v10496_v41, %v9041_v49 }
0x3614   :  { %v9060_v21 = vadd.f32 %v10497_v12, %v9050_v18  ;;  %v9042_v15 = vmul.f32 %v12494_v5, %v14213_v59  ;;  %v12143_v59 = vld [vmem:[#allocation6 + $0x368] sm:$0xff]  }
0x3615   :  { %v9061_v8 = vadd.f32 %v10497_v12, %v9051_v9 }
0x3616   :  { %v9063_v56 = vpack.c.bf16 %v9060_v21, %v9059_v32  ;;  %v9052_v38 = vmul.f32 %v10496_v41, %v9042_v15 }
0x3618   :  { %9314 = vmatmul.mubr.bf16.vlgmr.msra.gmra.mxu0 %v9063_v56  ;;  %9367 = vmatmul.mubr.bf16.vlgmr.msra.gmra.mxu1 %v9063_v56  ;;  %v9062_v14 = vadd.f32 %v10497_v12, %v9052_v38 }
0x3619   :  { %9323 = vmatprep.mubr.bf16.mxu0 %v12580_v40  ;;  %9376 = vmatprep.mubr.bf16.mxu1 %v12580_v40  ;;  %v12149_v40 = vld [vmem:[#allocation6 + $0x320] sm:$0xff]  }
0x361a   :  { %10996 = vmatpush3.bf16.msra.mxu0 %v12137_v58  ;;  %11024 = vmatpush3.bf16.msra.mxu1 %v12138_v4  ;;  %v9064_v53 = vpack.c.bf16 %v9062_v14, %v9061_v8 }
0x361b   :  { %10997 = vmatprep.subr.bf16.mxu0 %v12139_v36  ;;  %11025 = vmatprep.subr.bf16.mxu1 %v12140_v23 }
0x361e   :  { %10998 = vmatpush3.bf16.msra.mxu0 %v12141_v33  ;;  %11026 = vmatpush3.bf16.msra.mxu1 %v12142_v52 }
0x361f   :  { %10999 = vmatprep.subr.bf16.mxu0 %v12143_v59  ;;  %11027 = vmatprep.subr.bf16.mxu1 %v12144_v46 }
0x3620   :  { %9324 = vmatmul.mubr.bf16.gmra.mxu0 %v9064_v53  ;;  %9377 = vmatmul.mubr.bf16.gmra.mxu1 %v9064_v53 }
0x3622   :  { %11000 = vmatpush3.bf16.msra.mxu0 %v12145_v39  ;;  %11028 = vmatpush3.bf16.msra.mxu1 %v12146_v26 }
0x3623   :  { %11001 = vmatprep.subr.bf16.mxu0 %v12147_v50  ;;  %11029 = vmatprep.subr.bf16.mxu1 %v12148_v20 }
0x3626   :  { %11002 = vmatpush3.bf16.msra.mxu0 %v12149_v40  ;;  %11030 = vmatpush3.bf16.msra.mxu1 %v12150_v34 }
0x3627   :  { %11003 = vmatprep.subr.bf16.mxu0 %v12151_v6  ;;  %11031 = vmatprep.subr.bf16.mxu1 %v12152_v55 }
0x362a   :  { %11004 = vmatpush3.bf16.msra.mxu0 %v12153_v0  ;;  %11032 = vmatpush3.bf16.msra.mxu1 %v12154_v19 }
0x362b   :  { %11005 = vmatprep.subr.bf16.mxu0 %v12155_v63  ;;  %11033 = vmatprep.subr.bf16.mxu1 %v12156_v11 }
0x362e   :  { %11006 = vmatpush3.bf16.msra.mxu0 %v12157_v22  ;;  %11034 = vmatpush3.bf16.msra.mxu1 %v12158_v2 }
0x362f   :  { %11007 = vmatprep.subr.bf16.mxu0 %v12159_v42  ;;  %11035 = vmatprep.subr.bf16.mxu1 %v12160_v57 }
0x3632   :  { %11008 = vmatpush3.bf16.msra.mxu0 %v12161_v51  ;;  %11036 = vmatpush3.bf16.msra.mxu1 %v12162_v45 }
0x3633   :  { %11009 = vmatprep.subr.bf16.mxu0 %v12163_v16  ;;  %11037 = vmatprep.subr.bf16.mxu1 %v12164_v62 }
0x3636   :  { %11010 = vmatpush3.bf16.msra.mxu0 %v12165_v24  ;;  %11038 = vmatpush3.bf16.msra.mxu1 %v12166_v60 }
0x36d8   :  { %v9315_v54 = vpop.f32.mrf.mxu0  ;;  %v9368_v61 = vpop.f32.mrf.mxu1 }
0x36d9   :  { %v9316_v5 = vadd.f32 %v9315_v54, %v9104_v7  ;;  %v9369_v32 = vadd.f32 %v9368_v61, %v9112_v10 }
0x36da   :  { %v9317_v30 = vpop.f32.mrf.mxu0  ;;  %v9370_v41 = vpop.f32.mrf.mxu1 }
0x36db   :  { %v9318_v47 = vadd.f32 %v9317_v30, %v9108_v37  ;;  %v9371_v13 = vadd.f32 %v9370_v41, %v9116_v1  ;;  %v9387_v23 = vmax.f32 %v9316_v5, 0.0  ;;  %v9389_v9 = vmax.f32 %v9369_v32, 0.0 }
0x36dc   :  { %v9319_v31 = vpop.f32.mrf.mxu0  ;;  %v9372_v44 = vpop.f32.mrf.mxu1 }
0x36dd   :  { %v9320_v12 = vadd.f32 %v9319_v31, %v9104_v7  ;;  %v9373_v18 = vadd.f32 %v9372_v44, %v9112_v10  ;;  %v9388_v58 = vmax.f32 %v9318_v47, 0.0  ;;  %v9390_v29 = vmax.f32 %v9371_v13, 0.0 }
0x36de   :  { %v9321_v21 = vpop.f32.mrf.mxu0  ;;  %v9374_v49 = vpop.f32.mrf.mxu1 }
0x36df   :  { %v9322_v15 = vadd.f32 %v9321_v21, %v9108_v37  ;;  %v9375_v25 = vadd.f32 %v9374_v49, %v9116_v1  ;;  %v9391_v56 = vmax.f32 %v9320_v12, 0.0  ;;  %v9393_v27 = vmax.f32 %v9373_v18, 0.0 }
0x36e0   :  { %v9325_v38 = vpop.f32.mrf.mxu0  ;;  %v9378_v28 = vpop.f32.mrf.mxu1 }
0x36e1   :  { %v9392_v4 = vmax.f32 %v9322_v15, 0.0  ;;  %v9394_v36 = vmax.f32 %v9375_v25, 0.0  ;;  %v9403_v46 = vpack.c.bf16 %v9391_v56, %v9387_v23  ;;  %v9405_v8 = vpack.c.bf16 %v9393_v27, %v9389_v9 }
0x36e2   :  { %v9327_v14 = vpop.f32.mrf.mxu0  ;;  %v9380_v33 = vpop.f32.mrf.mxu1  ;;  %v9326_v34 = vadd.f32 %v9325_v38, %v9104_v7  ;;  %v9379_v6 = vadd.f32 %v9378_v28, %v9112_v10 }
0x36e3   :  { %v9404_v52 = vpack.c.bf16 %v9392_v4, %v9388_v58  ;;  %v9406_v59 = vpack.c.bf16 %v9394_v36, %v9390_v29  ;;  %v9328_v53 = vadd.f32 %v9327_v14, %v9108_v37  ;;  %v9381_v50 = vadd.f32 %v9380_v33, %v9116_v1 }
0x36e4   :  { %v9329_v39 = vpop.f32.mrf.mxu0  ;;  %v9382_v26 = vpop.f32.mrf.mxu1  ;;  %v9395_v45 = vmax.f32 %v9326_v34, 0.0  ;;  %v9397_v16 = vmax.f32 %v9379_v6, 0.0 }
0x36e5   :  { %v9330_v20 = vadd.f32 %v9329_v39, %v9104_v7  ;;  %v9383_v40 = vadd.f32 %v9382_v26, %v9112_v10  ;;  %9708 = vmatprep.mubr.bf16.mxu0 %v9404_v52  ;;  %9757 = vmatprep.mubr.bf16.mxu1 %v9406_v59  ;;  %v9396_v2 = vmax.f32 %v9328_v53, 0.0  ;;  %v9398_v42 = vmax.f32 %v9381_v50, 0.0 }
0x36e6   :  { %v9331_v55 = vpop.f32.mrf.mxu0  ;;  %v9384_v0 = vpop.f32.mrf.mxu1  ;;  %9709 = vmatmul.mubr.bf16.vlgmr.msra.gmra.mxu0 %v9403_v46  ;;  %9758 = vmatmul.mubr.bf16.vlgmr.msra.gmra.mxu1 %v9405_v8 }
0x36e7   :  { %v9332_v19 = vadd.f32 %v9331_v55, %v9108_v37  ;;  %v9385_v63 = vadd.f32 %v9384_v0, %v9116_v1  ;;  %v9399_v11 = vmax.f32 %v9330_v20, 0.0  ;;  %v9401_v22 = vmax.f32 %v9383_v40, 0.0  ;;  %v10532_v37 = vld [vmem:[%s14293_s11 + $0x3] ss:$0 sm:$0xff] }
0x36e9   :  { %v9400_v57 = vmax.f32 %v9332_v19, 0.0  ;;  %v9402_v51 = vmax.f32 %v9385_v63, 0.0  ;;  %v9407_v60 = vpack.c.bf16 %v9399_v11, %v9395_v45  ;;  %v9409_v17 = vpack.c.bf16 %v9401_v22, %v9397_v16  ;;  %v12167_v22 = vld [vmem:[%s14296_s14 + $0x38] sm:$0xff]   ;;  %v12172_v45 = vld [vmem:[%s14296_s14 + $0x10] sm:$0xff]   ;;  %v12173_v16 = vld [vmem:[%s14296_s14 + $0x8] sm:$0xff]  }
0x36ea   :  { %11653 = vmatprep.subr.bf16.mxu0 %v12167_v22 }
0x36eb   :  { %v9408_v62 = vpack.c.bf16 %v9400_v57, %v9396_v2  ;;  %v9410_v24 = vpack.c.bf16 %v9402_v51, %v9398_v42  ;;  %11654 = vmatpush3.bf16.msra.mxu0 %v12167_v22  ;;  %v12168_v2 = vld [vmem:[%s14296_s14 + $0x30] sm:$0xff]   ;;  %v12169_v42 = vld [vmem:[%s14296_s14 + $0x28] sm:$0xff]   ;;  %v12170_v57 = vld [vmem:[%s14296_s14 + $0x20] sm:$0xff]  }
0x36ec   :  { %11655 = vmatprep.subr.bf16.mxu0 %v12168_v2  ;;  %v12171_v51 = vld [vmem:[%s14296_s14 + $0x18] sm:$0xff]  }
0x36ed   :  { %9716 = vmatprep.mubr.bf16.mxu0 %v9408_v62  ;;  %9765 = vmatprep.mubr.bf16.mxu1 %v9410_v24  ;;  %v12174_v62 = vld [vmem:[%s14296_s14] sm:$0xff]  }
0x36ee   :  { %9717 = vmatmul.mubr.bf16.gmra.mxu0 %v9407_v60  ;;  %9766 = vmatmul.mubr.bf16.gmra.mxu1 %v9409_v17 }
0x36ef   :  { %11656 = vmatpush3.bf16.msra.mxu0 %v12168_v2 }
0x36f0   :  { %11657 = vmatprep.subr.bf16.mxu0 %v12169_v42 }
0x36f3   :  { %11658 = vmatpush3.bf16.msra.mxu0 %v12169_v42 }
0x36f4   :  { %11659 = vmatprep.subr.bf16.mxu0 %v12170_v57 }
0x36f7   :  { %11660 = vmatpush3.bf16.msra.mxu0 %v12170_v57 }
0x36f8   :  { %11661 = vmatprep.subr.bf16.mxu0 %v12171_v51 }
0x36fb   :  { %11662 = vmatpush3.bf16.msra.mxu0 %v12171_v51 }
0x36fc   :  { %11663 = vmatprep.subr.bf16.mxu0 %v12172_v45 }
0x36ff   :  { %11664 = vmatpush3.bf16.msra.mxu0 %v12172_v45 }
0x3700   :  { %11665 = vmatprep.subr.bf16.mxu0 %v12173_v16 }
0x3703   :  { %11666 = vmatpush3.bf16.msra.mxu0 %v12173_v16 }
0x3704   :  { %11667 = vmatprep.subr.bf16.mxu0 %v12174_v62 }
0x3707   :  { %11668 = vmatpush3.bf16.msra.mxu0 %v12174_v62 }
0x37a6   :  { %v11011_v54 = vpop.f32.mrf.mxu0  ;;  %v11039_v61 = vpop.f32.mrf.mxu1 }
0x37a8   :  { %v11012_v1 = vpop.f32.mrf.mxu0  ;;  %v11040_v7 = vpop.f32.mrf.mxu1 }
0x37a9   :  { %v11013_v10 = vadd.f32 %v11012_v1, %v11011_v54  ;;  %v11041_v44 = vadd.f32 %v11040_v7, %v11039_v61 }
0x37aa   :  { %v11014_v30 = vpop.f32.mrf.mxu0  ;;  %v11042_v41 = vpop.f32.mrf.mxu1 }
0x37ab   :  { %v9711_v31 = vadd.f32 %v11013_v10, %v10532_v37 }
0x37ac   :  { %v11015_v47 = vpop.f32.mrf.mxu0  ;;  %v11043_v13 = vpop.f32.mrf.mxu1 }
0x37ad   :  { %v9760_v12 = vadd.f32 %v11041_v44, %v9711_v31  ;;  %v11016_v18 = vadd.f32 %v11015_v47, %v11014_v30  ;;  %v11044_v49 = vadd.f32 %v11043_v13, %v11042_v41  ;;  %v10565_v13 = vld [vmem:[%s14294_s12] ss:$0 sm:$0xff] }
0x37ae   :  { %v11017_v5 = vpop.f32.mrf.mxu0  ;;  %v11045_v32 = vpop.f32.mrf.mxu1 }
0x37af   :  { %v9714_v21 = vadd.f32 %v11016_v18, %v10532_v37  ;;  %v9774_v15 = vadd.f32 %v9760_v12, %v14183_v48 }
0x37b0   :  { %v11018_v25 = vpop.f32.mrf.mxu0  ;;  %v11046_v56 = vpop.f32.mrf.mxu1 }
0x37b1   :  { %v9763_v27 = vadd.f32 %v11044_v49, %v9714_v21  ;;  %v11019_v38 = vadd.f32 %v11018_v25, %v11017_v5  ;;  %9780 = vadd.xlane.f32.xlu0 %v9774_v15  ;;  %v11047_v4 = vadd.f32 %v11046_v56, %v11045_v32  ;;  %v10566_v32 = vld [vmem:[%s14295_s13] ss:$0 sm:$0xff] }
0x37b2   :  { %v11020_v28 = vpop.f32.mrf.mxu0  ;;  %v11048_v58 = vpop.f32.mrf.mxu1 }
0x37b3   :  { %v9719_v29 = vadd.f32 %v11019_v38, %v10532_v37  ;;  %v9775_v36 = vadd.f32 %v9763_v27, %v14188_v43 }
0x37b4   :  { %v11021_v23 = vpop.f32.mrf.mxu0  ;;  %v11049_v9 = vpop.f32.mrf.mxu1 }
0x37b5   :  { %v9768_v14 = vadd.f32 %v11047_v4, %v9719_v29  ;;  %v11022_v33 = vadd.f32 %v11021_v23, %v11020_v28  ;;  %9782 = vadd.xlane.f32.xlu1 %v9775_v36  ;;  %v11050_v59 = vadd.f32 %v11049_v9, %v11048_v58 }
0x37b7   :  { %v9722_v52 = vadd.f32 %v11022_v33, %v10532_v37  ;;  %v9776_v48 = vadd.f32 %v9768_v14, %v14190_v35  ;;  %v10567_v14 = vld [vmem:[%s14297_s15] ss:$0 sm:$0xff] }
0x37b9   :  { %v9771_v46 = vadd.f32 %v11050_v59, %v9722_v52  ;;  %9784 = vadd.xlane.f32.xlu0 %v9776_v48 }
0x37bb   :  { %v9777_v8 = vadd.f32 %v9771_v46, %v14194_v3 }
0x37bd   :  { %9786 = vadd.xlane.f32.xlu1 %v9777_v8 }
0x383a   :  { %v9781_v53 = vpop.xlane.xlu0 %9780 }
0x383b   :  { %v9788_v39 = vmul.f32 0.0078125, %v9781_v53 }
0x383d   :  { %v9792_v26 = vsub.f32 %v9774_v15, %v9788_v39 }
0x383e   :  { %v9783_v50 = vpop.xlane.xlu1 %9782 }
0x383f   :  { %v9789_v20 = vmul.f32 0.0078125, %v9783_v50  ;;  %v9796_v43 = vmul.f32 %v9792_v26, %v9792_v26 }
0x3841   :  { %v9793_v40 = vsub.f32 %v9775_v36, %v9789_v20  ;;  %9800 = vadd.xlane.f32.xlu0 %v9796_v43 }
0x3842   :  { %v9785_v34 = vpop.xlane.xlu0 %9784 }
0x3843   :  { %v9790_v6 = vmul.f32 0.0078125, %v9785_v34  ;;  %v9797_v55 = vmul.f32 %v9793_v40, %v9793_v40 }
0x3845   :  { %v9794_v0 = vsub.f32 %v9776_v48, %v9790_v6  ;;  %9802 = vadd.xlane.f32.xlu1 %v9797_v55 }
0x3846   :  { %v9787_v19 = vpop.xlane.xlu1 %9786 }
0x3847   :  { %v9791_v35 = vmul.f32 0.0078125, %v9787_v19  ;;  %v9798_v63 = vmul.f32 %v9794_v0, %v9794_v0 }
0x3849   :  { %v9795_v11 = vsub.f32 %v9777_v8, %v9791_v35  ;;  %9804 = vadd.xlane.f32.xlu0 %v9798_v63 }
0x384b   :  { %v9799_v3 = vmul.f32 %v9795_v11, %v9795_v11 }
0x384d   :  { %9806 = vadd.xlane.f32.xlu1 %v9799_v3 }
0x38ca   :  { %v9801_v24 = vpop.xlane.xlu0 %9800 }
0x38cb   :  { %v9808_v60 = vmul.f32 0.0078125, %v9801_v24 }
0x38cd   :  { %v9812_v17 = vadd.f32 1e-05, %v9808_v60 }
0x38ce   :  { %v9803_v54 = vpop.xlane.xlu1 %9802 }
0x38cf   :  { %12495 = vrsqrt.f32 %v9812_v17  ;;  %v9809_v61 = vmul.f32 0.0078125, %v9803_v54 }
0x38d1   :  { %v9813_v37 = vadd.f32 1e-05, %v9809_v61 }
0x38d2   :  { %v9805_v1 = vpop.xlane.xlu0 %9804 }
0x38d3   :  { %12497 = vrsqrt.f32 %v9813_v37  ;;  %v9810_v7 = vmul.f32 0.0078125, %v9805_v1 }
0x38d5   :  { %v9814_v10 = vadd.f32 1e-05, %v9810_v7 }
0x38d6   :  { %v9807_v30 = vpop.xlane.xlu1 %9806 }
0x38d7   :  { %12499 = vrsqrt.f32 %v9814_v10  ;;  %v9811_v41 = vmul.f32 0.0078125, %v9807_v30 }
0x38d9   :  { %v9815_v31 = vadd.f32 1e-05, %v9811_v41 }
0x38db   :  { %12501 = vrsqrt.f32 %v9815_v31 }
0x38dc   :  { %v12496_v44 = vpop.eup %12495 }
0x38dd   :  { %v9820_v47 = vmul.f32 %v12496_v44, %v9792_v26 }
0x38df   :  { %v9830_v5 = vmul.f32 %v10565_v13, %v9820_v47 }
0x38e0   :  { %v12498_v12 = vpop.eup %12497 }
0x38e1   :  { %v9821_v18 = vmul.f32 %v12498_v12, %v9793_v40  ;;  %v9840_v25 = vadd.f32 %v10566_v32, %v9830_v5 }
0x38e3   :  { %v9831_v21 = vmul.f32 %v10565_v13, %v9821_v18 }
0x38e4   :  { %v12500_v49 = vpop.eup %12499 }
0x38e5   :  { %v9822_v15 = vmul.f32 %v12500_v49, %v9794_v0  ;;  %v9841_v56 = vadd.f32 %v10566_v32, %v9831_v21 }
0x38e7   :  { %v9844_v27 = vpack.c.bf16 %v9841_v56, %v9840_v25  ;;  %v9832_v58 = vmul.f32 %v10565_v13, %v9822_v15 }
0x38e8   :  { %v12502_v38 = vpop.eup %12501 }
0x38e9   :  { %v9823_v28 = vmul.f32 %v12502_v38, %v9795_v11  ;;  %11669 = vmatprep.mubr.bf16.mxu0 %v9844_v27  ;;  %v9842_v4 = vadd.f32 %v10566_v32, %v9832_v58 }
0x38eb   :  { %v9833_v29 = vmul.f32 %v10565_v13, %v9823_v28 }
0x38ed   :  { %v9843_v36 = vadd.f32 %v10566_v32, %v9833_v29 }
0x38ef   :  { %v9845_v23 = vpack.c.bf16 %v9843_v36, %v9842_v4 }
0x38f1   :  { %11670 = vmatmul.mubr.bf16.vlgmr.msra.gmra.mxu0 %v9845_v23 }
0x39b1   :  { %v11671_v9 = vpop.f32.mrf.mxu0 }
0x39b2   :  { %v9960_v59 = vadd.f32 %v11671_v9, %v10567_v14 }
0x39b3   :  { %v9951_v33 = vpop.f32.mrf.mxu0 }
0x39b4   :  { %v9952_v8 = vadd.f32 %v10567_v14, %v9951_v33 }
0x39b5   :  { %v11672_v52 = vpop.f32.mrf.mxu0 }
0x39b6   :  { %v9963_v48 = vadd.f32 %v11672_v52, %v10567_v14 }
0x39b7   :  { %v9954_v46 = vpop.f32.mrf.mxu0 }
0x39b8   :  { %v10592_v53 = vpack.c.bf16 %v9963_v48, %v9960_v59  ;;  %v9955_v39 = vadd.f32 %v10567_v14, %v9954_v46 }
0x39ba   :  { %10594 = vst [vmem:[%s14298_s16 + $0x8] sm:$0xff] %v10592_v53   ;;  %v10587_v26 = vpack.c.bf16 %v9955_v39, %v9952_v8 }
0x39bc   :  { %10588 = vst [vmem:[%s14298_s16] sm:$0xff] %v10587_v26  }
0x39bd   :  { %9990 = vsyncpa [#allocation3], 1 }
0x39be   :  { %9991 = vsyncpa [#allocation5], 1 }

</bundles_post_ra>
